<compile_context>
chip_gen: v6e
topology: v6e:2x2x1
jax: 0.10.0
libtpu: 0.0.40
codegen_flags: <defaults>
</compile_context>

<pallas_src>
import jax
import jax.numpy as jnp
import numpy as np
from jax import lax
from jax.experimental import pallas as pl
from jax.experimental.pallas import tpu as pltpu


def _eclipse_kernel(x_ref, h0_ref, c0_ref,
                    wih0_ref, b0_ref, whh0_ref, whh1_ref, wih1_ref, b1_ref,
                    wa1_hbm, ba1_ref, wa2_ref, ba2_ref,
                    wh1_hbm, bh1_ref, wh2_hbm, bh2_ref,
                    attn_ref, hN_ref, cN_ref, heads_ref,
                    g0_scr, lstm_scr, wa1_vmem, wh1_vmem, wh2_vmem, dma_sem):
    T, Bp, H = lstm_scr.shape
    L = heads_ref.shape[-1]          # 128 packed output lanes

    # ---- kick off the post-recurrence weight DMAs; they hide behind the T-step loop.
    wa1_cp = pltpu.make_async_copy(wa1_hbm, wa1_vmem, dma_sem.at[0])
    wh1_cp = pltpu.make_async_copy(wh1_hbm, wh1_vmem, dma_sem.at[1])
    wh2_cp = pltpu.make_async_copy(wh2_hbm, wh2_vmem, dma_sem.at[2])
    wa1_cp.start()
    wh1_cp.start()
    wh2_cp.start()

    # ---- prologue: layer-0 input projection hoisted out of the recurrence.
    # One (T*Bp, Dp) @ (Dp, 4H) matmul; the D->128 padding over-compute is paid once.
    g0_scr[...] = (jnp.dot(x_ref[...], wih0_ref[...],
                           preferred_element_type=jnp.float32) + b0_ref[...])

    def gates(g, c):
        # gate columns are packed (i, f, o | g): one contiguous sigmoid slab + one tanh
        sig = jax.nn.sigmoid(g[:, 0:3 * H])
        i = sig[:, 0:H]
        f = sig[:, H:2 * H]
        o = sig[:, 2 * H:3 * H]
        gg = jnp.tanh(g[:, 3 * H:4 * H])
        c_new = f * c + i * gg
        h_new = o * jnp.tanh(c_new)
        return h_new, c_new

    def step(t, carry):
        h_l0, c_l0, h_l1, c_l1 = carry
        # two independent recurrent dots (OLD hidden states, ref-fed bf16 weights):
        # step t+1's rec0 only needs h_l0(t), so the scheduler can overlap steps.
        rec0 = jnp.dot(h_l0.astype(jnp.bfloat16), whh0_ref[...],
                       preferred_element_type=jnp.float32)
        rec1 = jnp.dot(h_l1.astype(jnp.bfloat16), whh1_ref[...],
                       preferred_element_type=jnp.float32)
        row = pl.multiple_of(t * Bp, 8)
        g0 = g0_scr[pl.ds(row, Bp), :] + rec0
        h_l0, c_l0 = gates(g0, c_l0)
        # inter-layer dropout skipped (eval semantics)
        g1 = (jnp.dot(h_l0.astype(jnp.bfloat16), wih1_ref[...],
                      preferred_element_type=jnp.float32) + rec1 + b1_ref[...])
        h_l1, c_l1 = gates(g1, c_l1)
        lstm_scr[t] = h_l1
        return (h_l0, c_l0, h_l1, c_l1)

    init = (h0_ref[0], c0_ref[0], h0_ref[1], c0_ref[1])
    hf0, cf0, hf1, cf1 = lax.fori_loop(0, T, step, init, unroll=True)

    hN_ref[0] = hf0
    hN_ref[1] = hf1
    cN_ref[0] = cf0
    cN_ref[1] = cf1

    # ---- attention / head weights must be resident now (DMAs overlapped the loop).
    wa1_cp.wait()
    wh1_cp.wait()
    wh2_cp.wait()

    # ---- attention MLP, one shot over all T*Bp rows (off the serial chain) ----
    lstm3 = lstm_scr[...]                                        # (T, Bp, H) f32
    lstm2 = lstm3.reshape(T * Bp, H).astype(jnp.bfloat16)        # tile-aligned merge
    a2 = jnp.tanh(jnp.dot(lstm2, wa1_vmem[...],
                          preferred_element_type=jnp.float32) + ba1_ref[...])
    a3 = a2.reshape(T, Bp, H)
    # (H -> 1) attention projection as a lane reduction (VPU/XLU, MXU stays free)
    scores = jnp.sum(a3 * wa2_ref[...], axis=-1, keepdims=True) + ba2_ref[...]

    # softmax over time (PyTorch Softmax(dim=1) on (B, T, 1)); exact normalization.
    m = jnp.max(scores, axis=0, keepdims=True)
    e = jnp.exp(scores - m)
    attn = e / jnp.sum(e, axis=0, keepdims=True)                 # (T, Bp, 1)
    context = jnp.sum(attn * lstm3, axis=0)                      # (Bp, H) f32

    # ---- lane-dense attention output: (Bp, L) slab, time t in lane t.
    # Built with iota + select (pure VPU); avoids an in-kernel transpose and the
    # masked lane-1 partial stores of a (T, Bp, 1) output.
    lane = lax.broadcasted_iota(jnp.int32, (Bp, L), 1)
    slab = jnp.zeros((Bp, L), jnp.float32)
    for t in range(T):                                           # T is static & small
        slab = slab + jnp.where(lane == t, attn[t], 0.0)
    attn_ref[...] = slab

    # ---- all 4 heads packed: layer1 concat, layer2 block-diag padded to L lanes
    hidden1 = jax.nn.relu(
        jnp.dot(context.astype(jnp.bfloat16), wh1_vmem[...],
                preferred_element_type=jnp.float32) + bh1_ref[...])        # (Bp, 2H)
    heads_ref[...] = (jnp.dot(hidden1.astype(jnp.bfloat16), wh2_vmem[...],
                              preferred_element_type=jnp.float32)
                      + bh2_ref[...])                                       # (Bp, L)


def eclipse_predictor_forward(x_btd, params, hidden=None):
    """Pallas implementation of EclipsePredictor.forward (eval mode)."""
    B, T, D = x_btd.shape
    H = params["hidden_dim"]
    Hh = H // 2
    Bp = 8 * int(pl.cdiv(B, 8))          # pad batch to full sublanes
    Dp = 128 * int(pl.cdiv(D, 128))      # pad LSTM input features to full lanes
    assert T <= 128, "attention lanes pack time into a single 128-lane slab"

    if hidden is None:
        h0 = jnp.zeros((2, B, H), jnp.float32)
        c0 = jnp.zeros((2, B, H), jnp.float32)
    else:
        h0, c0 = hidden

    # time-major, batch/feature padded, flattened to (T*Bp, Dp), bf16 for the MXU
    x_tbd = jnp.transpose(x_btd, (1, 0, 2)).astype(jnp.float32)
    x_tbd = jnp.pad(x_tbd, ((0, 0), (0, Bp - B), (0, Dp - D)))
    x2d = x_tbd.reshape(T * Bp, Dp).astype(jnp.bfloat16)

    h0p = jnp.pad(h0.astype(jnp.float32), ((0, 0), (0, Bp - B), (0, 0)))
    c0p = jnp.pad(c0.astype(jnp.float32), ((0, 0), (0, Bp - B), (0, 0)))

    wih0 = jnp.pad(params["wih0"], ((0, Dp - D), (0, 0)))        # stays bf16

    vmem = pl.BlockSpec(memory_space=pltpu.MemorySpace.VMEM)
    hbm = pl.BlockSpec(memory_space=pl.ANY)                      # manual DMA in-kernel

    out_shapes = (
        jax.ShapeDtypeStruct((Bp, 128), jnp.float32),    # attention (lane-dense, t in lane t)
        jax.ShapeDtypeStruct((2, Bp, H), jnp.float32),   # h_n
        jax.ShapeDtypeStruct((2, Bp, H), jnp.float32),   # c_n
        jax.ShapeDtypeStruct((Bp, 128), jnp.float32),    # packed heads (lane-dense)
    )

    call_args = (x2d, h0p, c0p,
                 wih0, params["b0"], params["whh0"], params["whh1"],
                 params["wih1"], params["b1"],
                 params["wa1"], params["ba1"], params["wa2_row"], params["ba2"],
                 params["wh1"], params["bh1"], params["wh2"], params["bh2"])
    in_specs = [vmem] * 9 + [hbm, vmem, vmem, vmem, hbm, vmem, hbm, vmem]

    # advisory cost estimate so XLA schedules neighbors around this small call
    flops = int(2 * (T * Bp * Dp * 4 * H          # input projection
                     + 3 * T * Bp * H * 4 * H     # whh0 + whh1 + wih1 per step
                     + T * Bp * H * H             # attention layer 1
                     + Bp * H * 4 * Hh            # head layer 1
                     + Bp * 4 * Hh * 128))        # head layer 2
    transcendentals = int(11 * T * Bp * H + 2 * T * Bp)
    in_bytes = sum(int(np.prod(a.shape)) * a.dtype.itemsize for a in call_args)
    out_bytes = sum(int(np.prod(s.shape)) * 4 for s in out_shapes)

    outs = pl.pallas_call(
        _eclipse_kernel,
        out_shape=out_shapes,
        in_specs=in_specs,
        out_specs=[vmem] * len(out_shapes),
        scratch_shapes=[
            pltpu.VMEM((T * Bp, 4 * H), jnp.float32),    # precomputed x @ Wih0 + b0
            pltpu.VMEM((T, Bp, H), jnp.float32),         # layer-2 hidden states
            pltpu.VMEM((H, H), jnp.bfloat16),            # wa1 landing buffer
            pltpu.VMEM((H, 4 * Hh), jnp.bfloat16),       # wh1 landing buffer
            pltpu.VMEM((4 * Hh, 128), jnp.bfloat16),     # wh2 landing buffer
            pltpu.SemaphoreType.DMA((3,)),
        ],
        compiler_params=pltpu.CompilerParams(vmem_limit_bytes=16 * 1024 * 1024),
        cost_estimate=pl.CostEstimate(flops=flops, transcendentals=transcendentals,
                                      bytes_accessed=in_bytes + out_bytes),
    )(*call_args)

    attn_slab, hNp, cNp, heads = outs
    attention_weights = attn_slab[:B, :T][:, :, None]            # (B, T, 1)

    return {
        "eclipse_state": heads[:B, 0:3],
        "temperature": heads[:B, 3:4],
        "power_state": heads[:B, 4:6],
        "uncertainties": jax.nn.softplus(heads[:B, 6:10]),
        "attention_weights": attention_weights,
        "hidden": (hNp[:, :B], cNp[:, :B]),
    }


def make_params(key, D, H):
    """Deterministic parameter init mirroring EclipsePredictor.__init__ shapes."""
    Hh = H // 2

    def u(k, shape):
        return jax.random.uniform(k, shape, jnp.float32, -0.1, 0.1)

    ks = iter(jax.random.split(key, 32))
    raw = dict(
        # LSTM (weights stored pre-transposed to (in, out); gate order i,f,g,o)
        wih0=u(next(ks), (D, 4 * H)), whh0=u(next(ks), (H, 4 * H)),
        bih0=u(next(ks), (4 * H,)), bhh0=u(next(ks), (4 * H,)),
        wih1=u(next(ks), (H, 4 * H)), whh1=u(next(ks), (H, 4 * H)),
        bih1=u(next(ks), (4 * H,)), bhh1=u(next(ks), (4 * H,)),
        # attention
        wa1=u(next(ks), (H, H)), ba1=u(next(ks), (H,)),
        wa2=u(next(ks), (H, 1)), ba2=u(next(ks), (1,)),
        # heads
        we1=u(next(ks), (H, Hh)), be1=u(next(ks), (Hh,)),
        we2=u(next(ks), (Hh, 3)), be2=u(next(ks), (3,)),
        wt1=u(next(ks), (H, Hh)), bt1=u(next(ks), (Hh,)),
        wt2=u(next(ks), (Hh, 1)), bt2=u(next(ks), (1,)),
        wp1=u(next(ks), (H, Hh)), bp1=u(next(ks), (Hh,)),
        wp2=u(next(ks), (Hh, 2)), bp2=u(next(ks), (2,)),
        wu1=u(next(ks), (H, Hh)), bu1=u(next(ks), (Hh,)),
        wu2=u(next(ks), (Hh, 4)), bu2=u(next(ks), (4,)),
    )

    def reorder_gates(w):
        # (i, f, g, o) -> (i, f, o, g): sigmoid becomes one contiguous 3H slab
        return jnp.concatenate(
            [w[..., 0:2 * H], w[..., 3 * H:4 * H], w[..., 2 * H:3 * H]], axis=-1)

    bf = lambda w: w.astype(jnp.bfloat16)

    # heads packed: layer1 concat, layer2 block-diagonal, padded to 128 output lanes
    wh1 = jnp.concatenate([raw["we1"], raw["wt1"], raw["wp1"], raw["wu1"]], axis=1)
    bh1 = jnp.concatenate([raw["be1"], raw["bt1"], raw["bp1"], raw["bu1"]])[None, :]
    wh2 = jnp.zeros((4 * Hh, 128), jnp.float32)
    wh2 = wh2.at[0:Hh, 0:3].set(raw["we2"])
    wh2 = wh2.at[Hh:2 * Hh, 3:4].set(raw["wt2"])
    wh2 = wh2.at[2 * Hh:3 * Hh, 4:6].set(raw["wp2"])
    wh2 = wh2.at[3 * Hh:4 * Hh, 6:10].set(raw["wu2"])
    bh2 = jnp.zeros((1, 128), jnp.float32)
    bh2 = bh2.at[0, 0:3].set(raw["be2"])
    bh2 = bh2.at[0, 3:4].set(raw["bt2"])
    bh2 = bh2.at[0, 4:6].set(raw["bp2"])
    bh2 = bh2.at[0, 6:10].set(raw["bu2"])

    packed = dict(
        hidden_dim=H,
        # matmul weights stored bf16 (MXU-native); biases / elementwise params f32
        wih0=bf(reorder_gates(raw["wih0"])),
        b0=reorder_gates(raw["bih0"] + raw["bhh0"])[None, :],
        whh0=bf(reorder_gates(raw["whh0"])),
        whh1=bf(reorder_gates(raw["whh1"])),
        wih1=bf(reorder_gates(raw["wih1"])),
        b1=reorder_gates(raw["bih1"] + raw["bhh1"])[None, :],
        wa1=bf(raw["wa1"]), ba1=raw["ba1"][None, :],
        wa2_row=raw["wa2"].T, ba2=raw["ba2"].reshape(1, 1),
        wh1=bf(wh1), bh1=bh1, wh2=bf(wh2), bh2=bh2,
    )
    return raw, packed


def reference_forward(x, raw, H):
    """Pure-JAX f32 reference matching the PyTorch forward (eval mode)."""
    B, T, _ = x.shape

    def cell(x_t, h, c, wih, whh, bih, bhh):
        g = x_t @ wih + h @ whh + bih + bhh
        i = jax.nn.sigmoid(g[:, 0:H])
        f = jax.nn.sigmoid(g[:, H:2 * H])
        gg = jnp.tanh(g[:, 2 * H:3 * H])
        o = jax.nn.sigmoid(g[:, 3 * H:4 * H])
        c = f * c + i * gg
        h = o * jnp.tanh(c)
        return h, c

    h0 = jnp.zeros((B, H)); c0 = jnp.zeros((B, H))
    h1 = jnp.zeros((B, H)); c1 = jnp.zeros((B, H))
    outs = []
    for t in range(T):
        h0, c0 = cell(x[:, t], h0, c0, raw["wih0"], raw["whh0"], raw["bih0"], raw["bhh0"])
        h1, c1 = cell(h0, h1, c1, raw["wih1"], raw["whh1"], raw["bih1"], raw["bhh1"])
        outs.append(h1)
    lstm_out = jnp.stack(outs, axis=1)                                     # (B, T, H)
    a = jnp.tanh(lstm_out @ raw["wa1"] + raw["ba1"]) @ raw["wa2"] + raw["ba2"]
    attn = jax.nn.softmax(a, axis=1)                                       # (B, T, 1)
    context = jnp.sum(attn * lstm_out, axis=1)                             # (B, H)

    def head(w1, b1, w2, b2):
        return jax.nn.relu(context @ w1 + b1) @ w2 + b2

    return dict(
        eclipse_state=head(raw["we1"], raw["be1"], raw["we2"], raw["be2"]),
        temperature=head(raw["wt1"], raw["bt1"], raw["wt2"], raw["bt2"]),
        power_state=head(raw["wp1"], raw["bp1"], raw["wp2"], raw["bp2"]),
        uncertainties=jax.nn.softplus(head(raw["wu1"], raw["bu1"], raw["wu2"], raw["bu2"])),
        attention_weights=attn,
        hidden=(jnp.stack([h0, h1]), jnp.stack([c0, c1])),
    )


if __name__ == "__main__":
    B, T, D, H = 2, 8, 6, 128   # input_dim=6 (3 eclipse + 1 temp + 2 power), hidden_dim=128
    key = jax.random.PRNGKey(0)
    kx, kp = jax.random.split(key)
    x = jax.random.normal(kx, (B, T, D), jnp.float32)
    raw, packed = make_params(kp, D, H)

    out = eclipse_predictor_forward(x, packed)
    jax.block_until_ready(out)

    ref = reference_forward(x, raw, H)
    # Tolerance reflects bf16 storage of matmul weights/operands (MXU-native, per the
    # perf review) vs. the f32 reference; structural errors would be orders larger.
    tol = dict(rtol=2e-2, atol=2e-2)
    for k in ["eclipse_state", "temperature", "power_state",
              "uncertainties", "attention_weights"]:
        np.testing.assert_allclose(np.asarray(out[k]), np.asarray(ref[k]), **tol)
    np.testing.assert_allclose(np.asarray(out["hidden"][0]),
                               np.asarray(ref["hidden"][0]), **tol)
    np.testing.assert_allclose(np.asarray(out["hidden"][1]),
                               np.asarray(ref["hidden"][1]), **tol)
    # attention weights must sum to 1 (exact softmax normalization in-kernel)
    np.testing.assert_allclose(np.asarray(out["attention_weights"]).sum(axis=1),
                               np.ones((B, 1)), rtol=1e-5, atol=1e-5)

    print("KERNEL_OK")
</pallas_src>

<mosaic_0001>
module attributes {stable_mosaic.version = 11 : i64} {
  func.func @_eclipse_kernel(%arg0: memref<64x128xbf16, #tpu.memory_space<vmem>>, %arg1: memref<2x8x128xf32, #tpu.memory_space<vmem>>, %arg2: memref<2x8x128xf32, #tpu.memory_space<vmem>>, %arg3: memref<128x512xbf16, #tpu.memory_space<vmem>>, %arg4: memref<1x512xf32, #tpu.memory_space<vmem>>, %arg5: memref<128x512xbf16, #tpu.memory_space<vmem>>, %arg6: memref<128x512xbf16, #tpu.memory_space<vmem>>, %arg7: memref<128x512xbf16, #tpu.memory_space<vmem>>, %arg8: memref<1x512xf32, #tpu.memory_space<vmem>>, %arg9: memref<128x128xbf16, #tpu.memory_space<any>>, %arg10: memref<1x128xf32, #tpu.memory_space<vmem>>, %arg11: memref<1x128xf32, #tpu.memory_space<vmem>>, %arg12: memref<1x1xf32, #tpu.memory_space<vmem>>, %arg13: memref<128x256xbf16, #tpu.memory_space<any>>, %arg14: memref<1x256xf32, #tpu.memory_space<vmem>>, %arg15: memref<256x128xbf16, #tpu.memory_space<any>>, %arg16: memref<1x128xf32, #tpu.memory_space<vmem>>, %arg17: memref<8x128xf32, #tpu.memory_space<vmem>>, %arg18: memref<2x8x128xf32, #tpu.memory_space<vmem>>, %arg19: memref<2x8x128xf32, #tpu.memory_space<vmem>>, %arg20: memref<8x128xf32, #tpu.memory_space<vmem>>, %arg21: memref<64x512xf32, #tpu.memory_space<vmem>>, %arg22: memref<8x8x128xf32, #tpu.memory_space<vmem>>, %arg23: memref<128x128xbf16, #tpu.memory_space<vmem>>, %arg24: memref<128x256xbf16, #tpu.memory_space<vmem>>, %arg25: memref<256x128xbf16, #tpu.memory_space<vmem>>, %arg26: memref<3x!tpu.dma_semaphore, #tpu.memory_space<semaphore_mem>>) attributes {dimension_semantics = [], scalar_prefetch = 0 : i64, scratch_operands = 6 : i64, tpu.core_type = #tpu.core_type<tc>} {
    %c0_i32 = arith.constant 0 : i32
    %0 = tpu.memref_slice %arg26[%c0_i32] : memref<3x!tpu.dma_semaphore, #tpu.memory_space<semaphore_mem>> -> memref<1x!tpu.dma_semaphore, #tpu.memory_space<semaphore_mem>>
    %1 = tpu.memref_squeeze %0 : memref<1x!tpu.dma_semaphore, #tpu.memory_space<semaphore_mem>> -> memref<!tpu.dma_semaphore, #tpu.memory_space<semaphore_mem>>
    tpu.enqueue_dma source(%arg9 : memref<128x128xbf16, #tpu.memory_space<any>>) target(%arg23 : memref<128x128xbf16, #tpu.memory_space<vmem>>) target_semaphore(%1 : memref<!tpu.dma_semaphore, #tpu.memory_space<semaphore_mem>>)
    %c1_i32 = arith.constant 1 : i32
    %2 = tpu.memref_slice %arg26[%c1_i32] : memref<3x!tpu.dma_semaphore, #tpu.memory_space<semaphore_mem>> -> memref<1x!tpu.dma_semaphore, #tpu.memory_space<semaphore_mem>>
    %3 = tpu.memref_squeeze %2 : memref<1x!tpu.dma_semaphore, #tpu.memory_space<semaphore_mem>> -> memref<!tpu.dma_semaphore, #tpu.memory_space<semaphore_mem>>
    tpu.enqueue_dma source(%arg13 : memref<128x256xbf16, #tpu.memory_space<any>>) target(%arg24 : memref<128x256xbf16, #tpu.memory_space<vmem>>) target_semaphore(%3 : memref<!tpu.dma_semaphore, #tpu.memory_space<semaphore_mem>>)
    %c2_i32 = arith.constant 2 : i32
    %4 = tpu.memref_slice %arg26[%c2_i32] : memref<3x!tpu.dma_semaphore, #tpu.memory_space<semaphore_mem>> -> memref<1x!tpu.dma_semaphore, #tpu.memory_space<semaphore_mem>>
    %5 = tpu.memref_squeeze %4 : memref<1x!tpu.dma_semaphore, #tpu.memory_space<semaphore_mem>> -> memref<!tpu.dma_semaphore, #tpu.memory_space<semaphore_mem>>
    tpu.enqueue_dma source(%arg15 : memref<256x128xbf16, #tpu.memory_space<any>>) target(%arg25 : memref<256x128xbf16, #tpu.memory_space<vmem>>) target_semaphore(%5 : memref<!tpu.dma_semaphore, #tpu.memory_space<semaphore_mem>>)
    %c0 = arith.constant 0 : index
    %c0_0 = arith.constant 0 : index
    %6 = vector.load %arg0[%c0, %c0_0] : memref<64x128xbf16, #tpu.memory_space<vmem>>, vector<64x128xbf16>
    %c0_1 = arith.constant 0 : index
    %c0_2 = arith.constant 0 : index
    %7 = vector.load %arg3[%c0_1, %c0_2] : memref<128x512xbf16, #tpu.memory_space<vmem>>, vector<128x512xbf16>
    %cst = arith.constant dense<0.000000e+00> : vector<64x512xf32>
    %8 = tpu.matmul %6, %7, %cst {dimension_numbers = #tpu.dot_dimension_numbers<[1], [0], [0], [1], [0, 0, 1, 1], [], []>} : vector<64x128xbf16>, vector<128x512xbf16>, vector<64x512xf32> -> vector<64x512xf32>
    %c0_3 = arith.constant 0 : index
    %c0_4 = arith.constant 0 : index
    %9 = vector.load %arg4[%c0_3, %c0_4] : memref<1x512xf32, #tpu.memory_space<vmem>>, vector<1x512xf32>
    %10 = vector.broadcast %9 : vector<1x512xf32> to vector<64x512xf32>
    %11 = arith.addf %8, %10 : vector<64x512xf32>
    %c0_5 = arith.constant 0 : index
    %c0_6 = arith.constant 0 : index
    %12 = vector.load %arg21[%c0_5, %c0_6] : memref<64x512xf32, #tpu.memory_space<vmem>>, vector<64x512xf32>
    tpu.vector_store %arg21[%c0_5, %c0_6], %11 {strides = array<i32>} : memref<64x512xf32, #tpu.memory_space<vmem>>, vector<64x512xf32>,
    %c0_7 = arith.constant 0 : index
    %c0_8 = arith.constant 0 : index
    %c0_9 = arith.constant 0 : index
    %13 = vector.load %arg1[%c0_7, %c0_8, %c0_9] : memref<2x8x128xf32, #tpu.memory_space<vmem>>, vector<1x8x128xf32>
    %14 = vector.shape_cast %13 : vector<1x8x128xf32> to vector<8x128xf32>
    %c0_10 = arith.constant 0 : index
    %c0_11 = arith.constant 0 : index
    %c0_12 = arith.constant 0 : index
    %15 = vector.load %arg2[%c0_10, %c0_11, %c0_12] : memref<2x8x128xf32, #tpu.memory_space<vmem>>, vector<1x8x128xf32>
    %16 = vector.shape_cast %15 : vector<1x8x128xf32> to vector<8x128xf32>
    %c1 = arith.constant 1 : index
    %c0_13 = arith.constant 0 : index
    %c0_14 = arith.constant 0 : index
    %17 = vector.load %arg1[%c1, %c0_13, %c0_14] : memref<2x8x128xf32, #tpu.memory_space<vmem>>, vector<1x8x128xf32>
    %18 = vector.shape_cast %17 : vector<1x8x128xf32> to vector<8x128xf32>
    %c1_15 = arith.constant 1 : index
    %c0_16 = arith.constant 0 : index
    %c0_17 = arith.constant 0 : index
    %19 = vector.load %arg2[%c1_15, %c0_16, %c0_17] : memref<2x8x128xf32, #tpu.memory_space<vmem>>, vector<1x8x128xf32>
    %20 = vector.shape_cast %19 : vector<1x8x128xf32> to vector<8x128xf32>
    %c0_i32_18 = arith.constant 0 : i32
    %21 = arith.truncf %14 : vector<8x128xf32> to vector<8x128xbf16>
    %c0_19 = arith.constant 0 : index
    %c0_20 = arith.constant 0 : index
    %22 = vector.load %arg5[%c0_19, %c0_20] : memref<128x512xbf16, #tpu.memory_space<vmem>>, vector<128x512xbf16>
    %cst_21 = arith.constant dense<0.000000e+00> : vector<8x512xf32>
    %23 = tpu.matmul %21, %22, %cst_21 {dimension_numbers = #tpu.dot_dimension_numbers<[1], [0], [0], [1], [0, 0, 1, 1], [], []>} : vector<8x128xbf16>, vector<128x512xbf16>, vector<8x512xf32> -> vector<8x512xf32>
    %24 = arith.truncf %18 : vector<8x128xf32> to vector<8x128xbf16>
    %c0_22 = arith.constant 0 : index
    %c0_23 = arith.constant 0 : index
    %25 = vector.load %arg6[%c0_22, %c0_23] : memref<128x512xbf16, #tpu.memory_space<vmem>>, vector<128x512xbf16>
    %cst_24 = arith.constant dense<0.000000e+00> : vector<8x512xf32>
    %26 = tpu.matmul %24, %25, %cst_24 {dimension_numbers = #tpu.dot_dimension_numbers<[1], [0], [0], [1], [0, 0, 1, 1], [], []>} : vector<8x128xbf16>, vector<128x512xbf16>, vector<8x512xf32> -> vector<8x512xf32>
    %c8_i32 = arith.constant 8 : i32
    %27 = arith.muli %c0_i32_18, %c8_i32 : i32
    %28 = tpu.assume_multiple %27, 8 : i32
    %29 = arith.index_cast %28 : i32 to index
    %c0_25 = arith.constant 0 : index
    %30 = vector.load %arg21[%29, %c0_25] : memref<64x512xf32, #tpu.memory_space<vmem>>, vector<8x512xf32>
    %31 = arith.addf %30, %23 : vector<8x512xf32>
    %32 = vector.extract_strided_slice %31 {offsets = [0, 0], sizes = [8, 384], strides = [1, 1]} : vector<8x512xf32> to vector<8x384xf32>
    %33 = arith.negf %32 : vector<8x384xf32>
    %34 = math.exp %33 : vector<8x384xf32>
    %cst_26 = arith.constant 1.000000e+00 : f32
    %35 = vector.broadcast %cst_26 : f32 to vector<8x384xf32>
    %36 = arith.addf %35, %34 : vector<8x384xf32>
    %37 = arith.divf %35, %36 : vector<8x384xf32>
    %38 = vector.extract_strided_slice %37 {offsets = [0, 0], sizes = [8, 128], strides = [1, 1]} : vector<8x384xf32> to vector<8x128xf32>
    %39 = vector.extract_strided_slice %37 {offsets = [0, 128], sizes = [8, 128], strides = [1, 1]} : vector<8x384xf32> to vector<8x128xf32>
    %40 = vector.extract_strided_slice %37 {offsets = [0, 256], sizes = [8, 128], strides = [1, 1]} : vector<8x384xf32> to vector<8x128xf32>
    %41 = vector.extract_strided_slice %31 {offsets = [0, 384], sizes = [8, 128], strides = [1, 1]} : vector<8x512xf32> to vector<8x128xf32>
    %42 = math.tanh %41 : vector<8x128xf32>
    %43 = arith.mulf %39, %16 : vector<8x128xf32>
    %44 = arith.mulf %38, %42 : vector<8x128xf32>
    %45 = arith.addf %43, %44 : vector<8x128xf32>
    %46 = math.tanh %45 : vector<8x128xf32>
    %47 = arith.mulf %40, %46 : vector<8x128xf32>
    %48 = arith.truncf %47 : vector<8x128xf32> to vector<8x128xbf16>
    %c0_27 = arith.constant 0 : index
    %c0_28 = arith.constant 0 : index
    %49 = vector.load %arg7[%c0_27, %c0_28] : memref<128x512xbf16, #tpu.memory_space<vmem>>, vector<128x512xbf16>
    %cst_29 = arith.constant dense<0.000000e+00> : vector<8x512xf32>
    %50 = tpu.matmul %48, %49, %cst_29 {dimension_numbers = #tpu.dot_dimension_numbers<[1], [0], [0], [1], [0, 0, 1, 1], [], []>} : vector<8x128xbf16>, vector<128x512xbf16>, vector<8x512xf32> -> vector<8x512xf32>
    %51 = arith.addf %50, %26 : vector<8x512xf32>
    %c0_30 = arith.constant 0 : index
    %c0_31 = arith.constant 0 : index
    %52 = vector.load %arg8[%c0_30, %c0_31] : memref<1x512xf32, #tpu.memory_space<vmem>>, vector<1x512xf32>
    %53 = vector.broadcast %52 : vector<1x512xf32> to vector<8x512xf32>
    %54 = arith.addf %51, %53 : vector<8x512xf32>
    %55 = vector.extract_strided_slice %54 {offsets = [0, 0], sizes = [8, 384], strides = [1, 1]} : vector<8x512xf32> to vector<8x384xf32>
    %56 = arith.negf %55 : vector<8x384xf32>
    %57 = math.exp %56 : vector<8x384xf32>
    %cst_32 = arith.constant 1.000000e+00 : f32
    %58 = vector.broadcast %cst_32 : f32 to vector<8x384xf32>
    %59 = arith.addf %58, %57 : vector<8x384xf32>
    %60 = arith.divf %58, %59 : vector<8x384xf32>
    %61 = vector.extract_strided_slice %60 {offsets = [0, 0], sizes = [8, 128], strides = [1, 1]} : vector<8x384xf32> to vector<8x128xf32>
    %62 = vector.extract_strided_slice %60 {offsets = [0, 128], sizes = [8, 128], strides = [1, 1]} : vector<8x384xf32> to vector<8x128xf32>
    %63 = vector.extract_strided_slice %60 {offsets = [0, 256], sizes = [8, 128], strides = [1, 1]} : vector<8x384xf32> to vector<8x128xf32>
    %64 = vector.extract_strided_slice %54 {offsets = [0, 384], sizes = [8, 128], strides = [1, 1]} : vector<8x512xf32> to vector<8x128xf32>
    %65 = math.tanh %64 : vector<8x128xf32>
    %66 = arith.mulf %62, %20 : vector<8x128xf32>
    %67 = arith.mulf %61, %65 : vector<8x128xf32>
    %68 = arith.addf %66, %67 : vector<8x128xf32>
    %69 = math.tanh %68 : vector<8x128xf32>
    %70 = arith.mulf %63, %69 : vector<8x128xf32>
    %71 = arith.index_cast %c0_i32_18 : i32 to index
    %c0_33 = arith.constant 0 : index
    %c0_34 = arith.constant 0 : index
    %72 = vector.load %arg22[%71, %c0_33, %c0_34] : memref<8x8x128xf32, #tpu.memory_space<vmem>>, vector<1x8x128xf32>
    %73 = vector.shape_cast %72 : vector<1x8x128xf32> to vector<8x128xf32>
    %74 = vector.shape_cast %70 : vector<8x128xf32> to vector<1x8x128xf32>
    tpu.vector_store %arg22[%71, %c0_33, %c0_34], %74 {strides = array<i32>} : memref<8x8x128xf32, #tpu.memory_space<vmem>>, vector<1x8x128xf32>,
    %c1_i32_35 = arith.constant 1 : i32
    %75 = arith.truncf %47 : vector<8x128xf32> to vector<8x128xbf16>
    %c0_36 = arith.constant 0 : index
    %c0_37 = arith.constant 0 : index
    %76 = vector.load %arg5[%c0_36, %c0_37] : memref<128x512xbf16, #tpu.memory_space<vmem>>, vector<128x512xbf16>
    %cst_38 = arith.constant dense<0.000000e+00> : vector<8x512xf32>
    %77 = tpu.matmul %75, %76, %cst_38 {dimension_numbers = #tpu.dot_dimension_numbers<[1], [0], [0], [1], [0, 0, 1, 1], [], []>} : vector<8x128xbf16>, vector<128x512xbf16>, vector<8x512xf32> -> vector<8x512xf32>
    %78 = arith.truncf %70 : vector<8x128xf32> to vector<8x128xbf16>
    %c0_39 = arith.constant 0 : index
    %c0_40 = arith.constant 0 : index
    %79 = vector.load %arg6[%c0_39, %c0_40] : memref<128x512xbf16, #tpu.memory_space<vmem>>, vector<128x512xbf16>
    %cst_41 = arith.constant dense<0.000000e+00> : vector<8x512xf32>
    %80 = tpu.matmul %78, %79, %cst_41 {dimension_numbers = #tpu.dot_dimension_numbers<[1], [0], [0], [1], [0, 0, 1, 1], [], []>} : vector<8x128xbf16>, vector<128x512xbf16>, vector<8x512xf32> -> vector<8x512xf32>
    %c8_i32_42 = arith.constant 8 : i32
    %81 = arith.muli %c1_i32_35, %c8_i32_42 : i32
    %82 = tpu.assume_multiple %81, 8 : i32
    %83 = arith.index_cast %82 : i32 to index
    %c0_43 = arith.constant 0 : index
    %84 = vector.load %arg21[%83, %c0_43] : memref<64x512xf32, #tpu.memory_space<vmem>>, vector<8x512xf32>
    %85 = arith.addf %84, %77 : vector<8x512xf32>
    %86 = vector.extract_strided_slice %85 {offsets = [0, 0], sizes = [8, 384], strides = [1, 1]} : vector<8x512xf32> to vector<8x384xf32>
    %87 = arith.negf %86 : vector<8x384xf32>
    %88 = math.exp %87 : vector<8x384xf32>
    %cst_44 = arith.constant 1.000000e+00 : f32
    %89 = vector.broadcast %cst_44 : f32 to vector<8x384xf32>
    %90 = arith.addf %89, %88 : vector<8x384xf32>
    %91 = arith.divf %89, %90 : vector<8x384xf32>
    %92 = vector.extract_strided_slice %91 {offsets = [0, 0], sizes = [8, 128], strides = [1, 1]} : vector<8x384xf32> to vector<8x128xf32>
    %93 = vector.extract_strided_slice %91 {offsets = [0, 128], sizes = [8, 128], strides = [1, 1]} : vector<8x384xf32> to vector<8x128xf32>
    %94 = vector.extract_strided_slice %91 {offsets = [0, 256], sizes = [8, 128], strides = [1, 1]} : vector<8x384xf32> to vector<8x128xf32>
    %95 = vector.extract_strided_slice %85 {offsets = [0, 384], sizes = [8, 128], strides = [1, 1]} : vector<8x512xf32> to vector<8x128xf32>
    %96 = math.tanh %95 : vector<8x128xf32>
    %97 = arith.mulf %93, %45 : vector<8x128xf32>
    %98 = arith.mulf %92, %96 : vector<8x128xf32>
    %99 = arith.addf %97, %98 : vector<8x128xf32>
    %100 = math.tanh %99 : vector<8x128xf32>
    %101 = arith.mulf %94, %100 : vector<8x128xf32>
    %102 = arith.truncf %101 : vector<8x128xf32> to vector<8x128xbf16>
    %c0_45 = arith.constant 0 : index
    %c0_46 = arith.constant 0 : index
    %103 = vector.load %arg7[%c0_45, %c0_46] : memref<128x512xbf16, #tpu.memory_space<vmem>>, vector<128x512xbf16>
    %cst_47 = arith.constant dense<0.000000e+00> : vector<8x512xf32>
    %104 = tpu.matmul %102, %103, %cst_47 {dimension_numbers = #tpu.dot_dimension_numbers<[1], [0], [0], [1], [0, 0, 1, 1], [], []>} : vector<8x128xbf16>, vector<128x512xbf16>, vector<8x512xf32> -> vector<8x512xf32>
    %105 = arith.addf %104, %80 : vector<8x512xf32>
    %c0_48 = arith.constant 0 : index
    %c0_49 = arith.constant 0 : index
    %106 = vector.load %arg8[%c0_48, %c0_49] : memref<1x512xf32, #tpu.memory_space<vmem>>, vector<1x512xf32>
    %107 = vector.broadcast %106 : vector<1x512xf32> to vector<8x512xf32>
    %108 = arith.addf %105, %107 : vector<8x512xf32>
    %109 = vector.extract_strided_slice %108 {offsets = [0, 0], sizes = [8, 384], strides = [1, 1]} : vector<8x512xf32> to vector<8x384xf32>
    %110 = arith.negf %109 : vector<8x384xf32>
    %111 = math.exp %110 : vector<8x384xf32>
    %cst_50 = arith.constant 1.000000e+00 : f32
    %112 = vector.broadcast %cst_50 : f32 to vector<8x384xf32>
    %113 = arith.addf %112, %111 : vector<8x384xf32>
    %114 = arith.divf %112, %113 : vector<8x384xf32>
    %115 = vector.extract_strided_slice %114 {offsets = [0, 0], sizes = [8, 128], strides = [1, 1]} : vector<8x384xf32> to vector<8x128xf32>
    %116 = vector.extract_strided_slice %114 {offsets = [0, 128], sizes = [8, 128], strides = [1, 1]} : vector<8x384xf32> to vector<8x128xf32>
    %117 = vector.extract_strided_slice %114 {offsets = [0, 256], sizes = [8, 128], strides = [1, 1]} : vector<8x384xf32> to vector<8x128xf32>
    %118 = vector.extract_strided_slice %108 {offsets = [0, 384], sizes = [8, 128], strides = [1, 1]} : vector<8x512xf32> to vector<8x128xf32>
    %119 = math.tanh %118 : vector<8x128xf32>
    %120 = arith.mulf %116, %68 : vector<8x128xf32>
    %121 = arith.mulf %115, %119 : vector<8x128xf32>
    %122 = arith.addf %120, %121 : vector<8x128xf32>
    %123 = math.tanh %122 : vector<8x128xf32>
    %124 = arith.mulf %117, %123 : vector<8x128xf32>
    %125 = arith.index_cast %c1_i32_35 : i32 to index
    %c0_51 = arith.constant 0 : index
    %c0_52 = arith.constant 0 : index
    %126 = vector.load %arg22[%125, %c0_51, %c0_52] : memref<8x8x128xf32, #tpu.memory_space<vmem>>, vector<1x8x128xf32>
    %127 = vector.shape_cast %126 : vector<1x8x128xf32> to vector<8x128xf32>
    %128 = vector.shape_cast %124 : vector<8x128xf32> to vector<1x8x128xf32>
    tpu.vector_store %arg22[%125, %c0_51, %c0_52], %128 {strides = array<i32>} : memref<8x8x128xf32, #tpu.memory_space<vmem>>, vector<1x8x128xf32>,
    %c2_i32_53 = arith.constant 2 : i32
    %129 = arith.truncf %101 : vector<8x128xf32> to vector<8x128xbf16>
    %c0_54 = arith.constant 0 : index
    %c0_55 = arith.constant 0 : index
    %130 = vector.load %arg5[%c0_54, %c0_55] : memref<128x512xbf16, #tpu.memory_space<vmem>>, vector<128x512xbf16>
    %cst_56 = arith.constant dense<0.000000e+00> : vector<8x512xf32>
    %131 = tpu.matmul %129, %130, %cst_56 {dimension_numbers = #tpu.dot_dimension_numbers<[1], [0], [0], [1], [0, 0, 1, 1], [], []>} : vector<8x128xbf16>, vector<128x512xbf16>, vector<8x512xf32> -> vector<8x512xf32>
    %132 = arith.truncf %124 : vector<8x128xf32> to vector<8x128xbf16>
    %c0_57 = arith.constant 0 : index
    %c0_58 = arith.constant 0 : index
    %133 = vector.load %arg6[%c0_57, %c0_58] : memref<128x512xbf16, #tpu.memory_space<vmem>>, vector<128x512xbf16>
    %cst_59 = arith.constant dense<0.000000e+00> : vector<8x512xf32>
    %134 = tpu.matmul %132, %133, %cst_59 {dimension_numbers = #tpu.dot_dimension_numbers<[1], [0], [0], [1], [0, 0, 1, 1], [], []>} : vector<8x128xbf16>, vector<128x512xbf16>, vector<8x512xf32> -> vector<8x512xf32>
    %c8_i32_60 = arith.constant 8 : i32
    %135 = arith.muli %c2_i32_53, %c8_i32_60 : i32
    %136 = tpu.assume_multiple %135, 8 : i32
    %137 = arith.index_cast %136 : i32 to index
    %c0_61 = arith.constant 0 : index
    %138 = vector.load %arg21[%137, %c0_61] : memref<64x512xf32, #tpu.memory_space<vmem>>, vector<8x512xf32>
    %139 = arith.addf %138, %131 : vector<8x512xf32>
    %140 = vector.extract_strided_slice %139 {offsets = [0, 0], sizes = [8, 384], strides = [1, 1]} : vector<8x512xf32> to vector<8x384xf32>
    %141 = arith.negf %140 : vector<8x384xf32>
    %142 = math.exp %141 : vector<8x384xf32>
    %cst_62 = arith.constant 1.000000e+00 : f32
    %143 = vector.broadcast %cst_62 : f32 to vector<8x384xf32>
    %144 = arith.addf %143, %142 : vector<8x384xf32>
    %145 = arith.divf %143, %144 : vector<8x384xf32>
    %146 = vector.extract_strided_slice %145 {offsets = [0, 0], sizes = [8, 128], strides = [1, 1]} : vector<8x384xf32> to vector<8x128xf32>
    %147 = vector.extract_strided_slice %145 {offsets = [0, 128], sizes = [8, 128], strides = [1, 1]} : vector<8x384xf32> to vector<8x128xf32>
    %148 = vector.extract_strided_slice %145 {offsets = [0, 256], sizes = [8, 128], strides = [1, 1]} : vector<8x384xf32> to vector<8x128xf32>
    %149 = vector.extract_strided_slice %139 {offsets = [0, 384], sizes = [8, 128], strides = [1, 1]} : vector<8x512xf32> to vector<8x128xf32>
    %150 = math.tanh %149 : vector<8x128xf32>
    %151 = arith.mulf %147, %99 : vector<8x128xf32>
    %152 = arith.mulf %146, %150 : vector<8x128xf32>
    %153 = arith.addf %151, %152 : vector<8x128xf32>
    %154 = math.tanh %153 : vector<8x128xf32>
    %155 = arith.mulf %148, %154 : vector<8x128xf32>
    %156 = arith.truncf %155 : vector<8x128xf32> to vector<8x128xbf16>
    %c0_63 = arith.constant 0 : index
    %c0_64 = arith.constant 0 : index
    %157 = vector.load %arg7[%c0_63, %c0_64] : memref<128x512xbf16, #tpu.memory_space<vmem>>, vector<128x512xbf16>
    %cst_65 = arith.constant dense<0.000000e+00> : vector<8x512xf32>
    %158 = tpu.matmul %156, %157, %cst_65 {dimension_numbers = #tpu.dot_dimension_numbers<[1], [0], [0], [1], [0, 0, 1, 1], [], []>} : vector<8x128xbf16>, vector<128x512xbf16>, vector<8x512xf32> -> vector<8x512xf32>
    %159 = arith.addf %158, %134 : vector<8x512xf32>
    %c0_66 = arith.constant 0 : index
    %c0_67 = arith.constant 0 : index
    %160 = vector.load %arg8[%c0_66, %c0_67] : memref<1x512xf32, #tpu.memory_space<vmem>>, vector<1x512xf32>
    %161 = vector.broadcast %160 : vector<1x512xf32> to vector<8x512xf32>
    %162 = arith.addf %159, %161 : vector<8x512xf32>
    %163 = vector.extract_strided_slice %162 {offsets = [0, 0], sizes = [8, 384], strides = [1, 1]} : vector<8x512xf32> to vector<8x384xf32>
    %164 = arith.negf %163 : vector<8x384xf32>
    %165 = math.exp %164 : vector<8x384xf32>
    %cst_68 = arith.constant 1.000000e+00 : f32
    %166 = vector.broadcast %cst_68 : f32 to vector<8x384xf32>
    %167 = arith.addf %166, %165 : vector<8x384xf32>
    %168 = arith.divf %166, %167 : vector<8x384xf32>
    %169 = vector.extract_strided_slice %168 {offsets = [0, 0], sizes = [8, 128], strides = [1, 1]} : vector<8x384xf32> to vector<8x128xf32>
    %170 = vector.extract_strided_slice %168 {offsets = [0, 128], sizes = [8, 128], strides = [1, 1]} : vector<8x384xf32> to vector<8x128xf32>
    %171 = vector.extract_strided_slice %168 {offsets = [0, 256], sizes = [8, 128], strides = [1, 1]} : vector<8x384xf32> to vector<8x128xf32>
    %172 = vector.extract_strided_slice %162 {offsets = [0, 384], sizes = [8, 128], strides = [1, 1]} : vector<8x512xf32> to vector<8x128xf32>
    %173 = math.tanh %172 : vector<8x128xf32>
    %174 = arith.mulf %170, %122 : vector<8x128xf32>
    %175 = arith.mulf %169, %173 : vector<8x128xf32>
    %176 = arith.addf %174, %175 : vector<8x128xf32>
    %177 = math.tanh %176 : vector<8x128xf32>
    %178 = arith.mulf %171, %177 : vector<8x128xf32>
    %179 = arith.index_cast %c2_i32_53 : i32 to index
    %c0_69 = arith.constant 0 : index
    %c0_70 = arith.constant 0 : index
    %180 = vector.load %arg22[%179, %c0_69, %c0_70] : memref<8x8x128xf32, #tpu.memory_space<vmem>>, vector<1x8x128xf32>
    %181 = vector.shape_cast %180 : vector<1x8x128xf32> to vector<8x128xf32>
    %182 = vector.shape_cast %178 : vector<8x128xf32> to vector<1x8x128xf32>
    tpu.vector_store %arg22[%179, %c0_69, %c0_70], %182 {strides = array<i32>} : memref<8x8x128xf32, #tpu.memory_space<vmem>>, vector<1x8x128xf32>,
    %c3_i32 = arith.constant 3 : i32
    %183 = arith.truncf %155 : vector<8x128xf32> to vector<8x128xbf16>
    %c0_71 = arith.constant 0 : index
    %c0_72 = arith.constant 0 : index
    %184 = vector.load %arg5[%c0_71, %c0_72] : memref<128x512xbf16, #tpu.memory_space<vmem>>, vector<128x512xbf16>
    %cst_73 = arith.constant dense<0.000000e+00> : vector<8x512xf32>
    %185 = tpu.matmul %183, %184, %cst_73 {dimension_numbers = #tpu.dot_dimension_numbers<[1], [0], [0], [1], [0, 0, 1, 1], [], []>} : vector<8x128xbf16>, vector<128x512xbf16>, vector<8x512xf32> -> vector<8x512xf32>
    %186 = arith.truncf %178 : vector<8x128xf32> to vector<8x128xbf16>
    %c0_74 = arith.constant 0 : index
    %c0_75 = arith.constant 0 : index
    %187 = vector.load %arg6[%c0_74, %c0_75] : memref<128x512xbf16, #tpu.memory_space<vmem>>, vector<128x512xbf16>
    %cst_76 = arith.constant dense<0.000000e+00> : vector<8x512xf32>
    %188 = tpu.matmul %186, %187, %cst_76 {dimension_numbers = #tpu.dot_dimension_numbers<[1], [0], [0], [1], [0, 0, 1, 1], [], []>} : vector<8x128xbf16>, vector<128x512xbf16>, vector<8x512xf32> -> vector<8x512xf32>
    %c8_i32_77 = arith.constant 8 : i32
    %189 = arith.muli %c3_i32, %c8_i32_77 : i32
    %190 = tpu.assume_multiple %189, 8 : i32
    %191 = arith.index_cast %190 : i32 to index
    %c0_78 = arith.constant 0 : index
    %192 = vector.load %arg21[%191, %c0_78] : memref<64x512xf32, #tpu.memory_space<vmem>>, vector<8x512xf32>
    %193 = arith.addf %192, %185 : vector<8x512xf32>
    %194 = vector.extract_strided_slice %193 {offsets = [0, 0], sizes = [8, 384], strides = [1, 1]} : vector<8x512xf32> to vector<8x384xf32>
    %195 = arith.negf %194 : vector<8x384xf32>
    %196 = math.exp %195 : vector<8x384xf32>
    %cst_79 = arith.constant 1.000000e+00 : f32
    %197 = vector.broadcast %cst_79 : f32 to vector<8x384xf32>
    %198 = arith.addf %197, %196 : vector<8x384xf32>
    %199 = arith.divf %197, %198 : vector<8x384xf32>
    %200 = vector.extract_strided_slice %199 {offsets = [0, 0], sizes = [8, 128], strides = [1, 1]} : vector<8x384xf32> to vector<8x128xf32>
    %201 = vector.extract_strided_slice %199 {offsets = [0, 128], sizes = [8, 128], strides = [1, 1]} : vector<8x384xf32> to vector<8x128xf32>
    %202 = vector.extract_strided_slice %199 {offsets = [0, 256], sizes = [8, 128], strides = [1, 1]} : vector<8x384xf32> to vector<8x128xf32>
    %203 = vector.extract_strided_slice %193 {offsets = [0, 384], sizes = [8, 128], strides = [1, 1]} : vector<8x512xf32> to vector<8x128xf32>
    %204 = math.tanh %203 : vector<8x128xf32>
    %205 = arith.mulf %201, %153 : vector<8x128xf32>
    %206 = arith.mulf %200, %204 : vector<8x128xf32>
    %207 = arith.addf %205, %206 : vector<8x128xf32>
    %208 = math.tanh %207 : vector<8x128xf32>
    %209 = arith.mulf %202, %208 : vector<8x128xf32>
    %210 = arith.truncf %209 : vector<8x128xf32> to vector<8x128xbf16>
    %c0_80 = arith.constant 0 : index
    %c0_81 = arith.constant 0 : index
    %211 = vector.load %arg7[%c0_80, %c0_81] : memref<128x512xbf16, #tpu.memory_space<vmem>>, vector<128x512xbf16>
    %cst_82 = arith.constant dense<0.000000e+00> : vector<8x512xf32>
    %212 = tpu.matmul %210, %211, %cst_82 {dimension_numbers = #tpu.dot_dimension_numbers<[1], [0], [0], [1], [0, 0, 1, 1], [], []>} : vector<8x128xbf16>, vector<128x512xbf16>, vector<8x512xf32> -> vector<8x512xf32>
    %213 = arith.addf %212, %188 : vector<8x512xf32>
    %c0_83 = arith.constant 0 : index
    %c0_84 = arith.constant 0 : index
    %214 = vector.load %arg8[%c0_83, %c0_84] : memref<1x512xf32, #tpu.memory_space<vmem>>, vector<1x512xf32>
    %215 = vector.broadcast %214 : vector<1x512xf32> to vector<8x512xf32>
    %216 = arith.addf %213, %215 : vector<8x512xf32>
    %217 = vector.extract_strided_slice %216 {offsets = [0, 0], sizes = [8, 384], strides = [1, 1]} : vector<8x512xf32> to vector<8x384xf32>
    %218 = arith.negf %217 : vector<8x384xf32>
    %219 = math.exp %218 : vector<8x384xf32>
    %cst_85 = arith.constant 1.000000e+00 : f32
    %220 = vector.broadcast %cst_85 : f32 to vector<8x384xf32>
    %221 = arith.addf %220, %219 : vector<8x384xf32>
    %222 = arith.divf %220, %221 : vector<8x384xf32>
    %223 = vector.extract_strided_slice %222 {offsets = [0, 0], sizes = [8, 128], strides = [1, 1]} : vector<8x384xf32> to vector<8x128xf32>
    %224 = vector.extract_strided_slice %222 {offsets = [0, 128], sizes = [8, 128], strides = [1, 1]} : vector<8x384xf32> to vector<8x128xf32>
    %225 = vector.extract_strided_slice %222 {offsets = [0, 256], sizes = [8, 128], strides = [1, 1]} : vector<8x384xf32> to vector<8x128xf32>
    %226 = vector.extract_strided_slice %216 {offsets = [0, 384], sizes = [8, 128], strides = [1, 1]} : vector<8x512xf32> to vector<8x128xf32>
    %227 = math.tanh %226 : vector<8x128xf32>
    %228 = arith.mulf %224, %176 : vector<8x128xf32>
    %229 = arith.mulf %223, %227 : vector<8x128xf32>
    %230 = arith.addf %228, %229 : vector<8x128xf32>
    %231 = math.tanh %230 : vector<8x128xf32>
    %232 = arith.mulf %225, %231 : vector<8x128xf32>
    %233 = arith.index_cast %c3_i32 : i32 to index
    %c0_86 = arith.constant 0 : index
    %c0_87 = arith.constant 0 : index
    %234 = vector.load %arg22[%233, %c0_86, %c0_87] : memref<8x8x128xf32, #tpu.memory_space<vmem>>, vector<1x8x128xf32>
    %235 = vector.shape_cast %234 : vector<1x8x128xf32> to vector<8x128xf32>
    %236 = vector.shape_cast %232 : vector<8x128xf32> to vector<1x8x128xf32>
    tpu.vector_store %arg22[%233, %c0_86, %c0_87], %236 {strides = array<i32>} : memref<8x8x128xf32, #tpu.memory_space<vmem>>, vector<1x8x128xf32>,
    %c4_i32 = arith.constant 4 : i32
    %237 = arith.truncf %209 : vector<8x128xf32> to vector<8x128xbf16>
    %c0_88 = arith.constant 0 : index
    %c0_89 = arith.constant 0 : index
    %238 = vector.load %arg5[%c0_88, %c0_89] : memref<128x512xbf16, #tpu.memory_space<vmem>>, vector<128x512xbf16>
    %cst_90 = arith.constant dense<0.000000e+00> : vector<8x512xf32>
    %239 = tpu.matmul %237, %238, %cst_90 {dimension_numbers = #tpu.dot_dimension_numbers<[1], [0], [0], [1], [0, 0, 1, 1], [], []>} : vector<8x128xbf16>, vector<128x512xbf16>, vector<8x512xf32> -> vector<8x512xf32>
    %240 = arith.truncf %232 : vector<8x128xf32> to vector<8x128xbf16>
    %c0_91 = arith.constant 0 : index
    %c0_92 = arith.constant 0 : index
    %241 = vector.load %arg6[%c0_91, %c0_92] : memref<128x512xbf16, #tpu.memory_space<vmem>>, vector<128x512xbf16>
    %cst_93 = arith.constant dense<0.000000e+00> : vector<8x512xf32>
    %242 = tpu.matmul %240, %241, %cst_93 {dimension_numbers = #tpu.dot_dimension_numbers<[1], [0], [0], [1], [0, 0, 1, 1], [], []>} : vector<8x128xbf16>, vector<128x512xbf16>, vector<8x512xf32> -> vector<8x512xf32>
    %c8_i32_94 = arith.constant 8 : i32
    %243 = arith.muli %c4_i32, %c8_i32_94 : i32
    %244 = tpu.assume_multiple %243, 8 : i32
    %245 = arith.index_cast %244 : i32 to index
    %c0_95 = arith.constant 0 : index
    %246 = vector.load %arg21[%245, %c0_95] : memref<64x512xf32, #tpu.memory_space<vmem>>, vector<8x512xf32>
    %247 = arith.addf %246, %239 : vector<8x512xf32>
    %248 = vector.extract_strided_slice %247 {offsets = [0, 0], sizes = [8, 384], strides = [1, 1]} : vector<8x512xf32> to vector<8x384xf32>
    %249 = arith.negf %248 : vector<8x384xf32>
    %250 = math.exp %249 : vector<8x384xf32>
    %cst_96 = arith.constant 1.000000e+00 : f32
    %251 = vector.broadcast %cst_96 : f32 to vector<8x384xf32>
    %252 = arith.addf %251, %250 : vector<8x384xf32>
    %253 = arith.divf %251, %252 : vector<8x384xf32>
    %254 = vector.extract_strided_slice %253 {offsets = [0, 0], sizes = [8, 128], strides = [1, 1]} : vector<8x384xf32> to vector<8x128xf32>
    %255 = vector.extract_strided_slice %253 {offsets = [0, 128], sizes = [8, 128], strides = [1, 1]} : vector<8x384xf32> to vector<8x128xf32>
    %256 = vector.extract_strided_slice %253 {offsets = [0, 256], sizes = [8, 128], strides = [1, 1]} : vector<8x384xf32> to vector<8x128xf32>
    %257 = vector.extract_strided_slice %247 {offsets = [0, 384], sizes = [8, 128], strides = [1, 1]} : vector<8x512xf32> to vector<8x128xf32>
    %258 = math.tanh %257 : vector<8x128xf32>
    %259 = arith.mulf %255, %207 : vector<8x128xf32>
    %260 = arith.mulf %254, %258 : vector<8x128xf32>
    %261 = arith.addf %259, %260 : vector<8x128xf32>
    %262 = math.tanh %261 : vector<8x128xf32>
    %263 = arith.mulf %256, %262 : vector<8x128xf32>
    %264 = arith.truncf %263 : vector<8x128xf32> to vector<8x128xbf16>
    %c0_97 = arith.constant 0 : index
    %c0_98 = arith.constant 0 : index
    %265 = vector.load %arg7[%c0_97, %c0_98] : memref<128x512xbf16, #tpu.memory_space<vmem>>, vector<128x512xbf16>
    %cst_99 = arith.constant dense<0.000000e+00> : vector<8x512xf32>
    %266 = tpu.matmul %264, %265, %cst_99 {dimension_numbers = #tpu.dot_dimension_numbers<[1], [0], [0], [1], [0, 0, 1, 1], [], []>} : vector<8x128xbf16>, vector<128x512xbf16>, vector<8x512xf32> -> vector<8x512xf32>
    %267 = arith.addf %266, %242 : vector<8x512xf32>
    %c0_100 = arith.constant 0 : index
    %c0_101 = arith.constant 0 : index
    %268 = vector.load %arg8[%c0_100, %c0_101] : memref<1x512xf32, #tpu.memory_space<vmem>>, vector<1x512xf32>
    %269 = vector.broadcast %268 : vector<1x512xf32> to vector<8x512xf32>
    %270 = arith.addf %267, %269 : vector<8x512xf32>
    %271 = vector.extract_strided_slice %270 {offsets = [0, 0], sizes = [8, 384], strides = [1, 1]} : vector<8x512xf32> to vector<8x384xf32>
    %272 = arith.negf %271 : vector<8x384xf32>
    %273 = math.exp %272 : vector<8x384xf32>
    %cst_102 = arith.constant 1.000000e+00 : f32
    %274 = vector.broadcast %cst_102 : f32 to vector<8x384xf32>
    %275 = arith.addf %274, %273 : vector<8x384xf32>
    %276 = arith.divf %274, %275 : vector<8x384xf32>
    %277 = vector.extract_strided_slice %276 {offsets = [0, 0], sizes = [8, 128], strides = [1, 1]} : vector<8x384xf32> to vector<8x128xf32>
    %278 = vector.extract_strided_slice %276 {offsets = [0, 128], sizes = [8, 128], strides = [1, 1]} : vector<8x384xf32> to vector<8x128xf32>
    %279 = vector.extract_strided_slice %276 {offsets = [0, 256], sizes = [8, 128], strides = [1, 1]} : vector<8x384xf32> to vector<8x128xf32>
    %280 = vector.extract_strided_slice %270 {offsets = [0, 384], sizes = [8, 128], strides = [1, 1]} : vector<8x512xf32> to vector<8x128xf32>
    %281 = math.tanh %280 : vector<8x128xf32>
    %282 = arith.mulf %278, %230 : vector<8x128xf32>
    %283 = arith.mulf %277, %281 : vector<8x128xf32>
    %284 = arith.addf %282, %283 : vector<8x128xf32>
    %285 = math.tanh %284 : vector<8x128xf32>
    %286 = arith.mulf %279, %285 : vector<8x128xf32>
    %287 = arith.index_cast %c4_i32 : i32 to index
    %c0_103 = arith.constant 0 : index
    %c0_104 = arith.constant 0 : index
    %288 = vector.load %arg22[%287, %c0_103, %c0_104] : memref<8x8x128xf32, #tpu.memory_space<vmem>>, vector<1x8x128xf32>
    %289 = vector.shape_cast %288 : vector<1x8x128xf32> to vector<8x128xf32>
    %290 = vector.shape_cast %286 : vector<8x128xf32> to vector<1x8x128xf32>
    tpu.vector_store %arg22[%287, %c0_103, %c0_104], %290 {strides = array<i32>} : memref<8x8x128xf32, #tpu.memory_space<vmem>>, vector<1x8x128xf32>,
    %c5_i32 = arith.constant 5 : i32
    %291 = arith.truncf %263 : vector<8x128xf32> to vector<8x128xbf16>
    %c0_105 = arith.constant 0 : index
    %c0_106 = arith.constant 0 : index
    %292 = vector.load %arg5[%c0_105, %c0_106] : memref<128x512xbf16, #tpu.memory_space<vmem>>, vector<128x512xbf16>
    %cst_107 = arith.constant dense<0.000000e+00> : vector<8x512xf32>
    %293 = tpu.matmul %291, %292, %cst_107 {dimension_numbers = #tpu.dot_dimension_numbers<[1], [0], [0], [1], [0, 0, 1, 1], [], []>} : vector<8x128xbf16>, vector<128x512xbf16>, vector<8x512xf32> -> vector<8x512xf32>
    %294 = arith.truncf %286 : vector<8x128xf32> to vector<8x128xbf16>
    %c0_108 = arith.constant 0 : index
    %c0_109 = arith.constant 0 : index
    %295 = vector.load %arg6[%c0_108, %c0_109] : memref<128x512xbf16, #tpu.memory_space<vmem>>, vector<128x512xbf16>
    %cst_110 = arith.constant dense<0.000000e+00> : vector<8x512xf32>
    %296 = tpu.matmul %294, %295, %cst_110 {dimension_numbers = #tpu.dot_dimension_numbers<[1], [0], [0], [1], [0, 0, 1, 1], [], []>} : vector<8x128xbf16>, vector<128x512xbf16>, vector<8x512xf32> -> vector<8x512xf32>
    %c8_i32_111 = arith.constant 8 : i32
    %297 = arith.muli %c5_i32, %c8_i32_111 : i32
    %298 = tpu.assume_multiple %297, 8 : i32
    %299 = arith.index_cast %298 : i32 to index
    %c0_112 = arith.constant 0 : index
    %300 = vector.load %arg21[%299, %c0_112] : memref<64x512xf32, #tpu.memory_space<vmem>>, vector<8x512xf32>
    %301 = arith.addf %300, %293 : vector<8x512xf32>
    %302 = vector.extract_strided_slice %301 {offsets = [0, 0], sizes = [8, 384], strides = [1, 1]} : vector<8x512xf32> to vector<8x384xf32>
    %303 = arith.negf %302 : vector<8x384xf32>
    %304 = math.exp %303 : vector<8x384xf32>
    %cst_113 = arith.constant 1.000000e+00 : f32
    %305 = vector.broadcast %cst_113 : f32 to vector<8x384xf32>
    %306 = arith.addf %305, %304 : vector<8x384xf32>
    %307 = arith.divf %305, %306 : vector<8x384xf32>
    %308 = vector.extract_strided_slice %307 {offsets = [0, 0], sizes = [8, 128], strides = [1, 1]} : vector<8x384xf32> to vector<8x128xf32>
    %309 = vector.extract_strided_slice %307 {offsets = [0, 128], sizes = [8, 128], strides = [1, 1]} : vector<8x384xf32> to vector<8x128xf32>
    %310 = vector.extract_strided_slice %307 {offsets = [0, 256], sizes = [8, 128], strides = [1, 1]} : vector<8x384xf32> to vector<8x128xf32>
    %311 = vector.extract_strided_slice %301 {offsets = [0, 384], sizes = [8, 128], strides = [1, 1]} : vector<8x512xf32> to vector<8x128xf32>
    %312 = math.tanh %311 : vector<8x128xf32>
    %313 = arith.mulf %309, %261 : vector<8x128xf32>
    %314 = arith.mulf %308, %312 : vector<8x128xf32>
    %315 = arith.addf %313, %314 : vector<8x128xf32>
    %316 = math.tanh %315 : vector<8x128xf32>
    %317 = arith.mulf %310, %316 : vector<8x128xf32>
    %318 = arith.truncf %317 : vector<8x128xf32> to vector<8x128xbf16>
    %c0_114 = arith.constant 0 : index
    %c0_115 = arith.constant 0 : index
    %319 = vector.load %arg7[%c0_114, %c0_115] : memref<128x512xbf16, #tpu.memory_space<vmem>>, vector<128x512xbf16>
    %cst_116 = arith.constant dense<0.000000e+00> : vector<8x512xf32>
    %320 = tpu.matmul %318, %319, %cst_116 {dimension_numbers = #tpu.dot_dimension_numbers<[1], [0], [0], [1], [0, 0, 1, 1], [], []>} : vector<8x128xbf16>, vector<128x512xbf16>, vector<8x512xf32> -> vector<8x512xf32>
    %321 = arith.addf %320, %296 : vector<8x512xf32>
    %c0_117 = arith.constant 0 : index
    %c0_118 = arith.constant 0 : index
    %322 = vector.load %arg8[%c0_117, %c0_118] : memref<1x512xf32, #tpu.memory_space<vmem>>, vector<1x512xf32>
    %323 = vector.broadcast %322 : vector<1x512xf32> to vector<8x512xf32>
    %324 = arith.addf %321, %323 : vector<8x512xf32>
    %325 = vector.extract_strided_slice %324 {offsets = [0, 0], sizes = [8, 384], strides = [1, 1]} : vector<8x512xf32> to vector<8x384xf32>
    %326 = arith.negf %325 : vector<8x384xf32>
    %327 = math.exp %326 : vector<8x384xf32>
    %cst_119 = arith.constant 1.000000e+00 : f32
    %328 = vector.broadcast %cst_119 : f32 to vector<8x384xf32>
    %329 = arith.addf %328, %327 : vector<8x384xf32>
    %330 = arith.divf %328, %329 : vector<8x384xf32>
    %331 = vector.extract_strided_slice %330 {offsets = [0, 0], sizes = [8, 128], strides = [1, 1]} : vector<8x384xf32> to vector<8x128xf32>
    %332 = vector.extract_strided_slice %330 {offsets = [0, 128], sizes = [8, 128], strides = [1, 1]} : vector<8x384xf32> to vector<8x128xf32>
    %333 = vector.extract_strided_slice %330 {offsets = [0, 256], sizes = [8, 128], strides = [1, 1]} : vector<8x384xf32> to vector<8x128xf32>
    %334 = vector.extract_strided_slice %324 {offsets = [0, 384], sizes = [8, 128], strides = [1, 1]} : vector<8x512xf32> to vector<8x128xf32>
    %335 = math.tanh %334 : vector<8x128xf32>
    %336 = arith.mulf %332, %284 : vector<8x128xf32>
    %337 = arith.mulf %331, %335 : vector<8x128xf32>
    %338 = arith.addf %336, %337 : vector<8x128xf32>
    %339 = math.tanh %338 : vector<8x128xf32>
    %340 = arith.mulf %333, %339 : vector<8x128xf32>
    %341 = arith.index_cast %c5_i32 : i32 to index
    %c0_120 = arith.constant 0 : index
    %c0_121 = arith.constant 0 : index
    %342 = vector.load %arg22[%341, %c0_120, %c0_121] : memref<8x8x128xf32, #tpu.memory_space<vmem>>, vector<1x8x128xf32>
    %343 = vector.shape_cast %342 : vector<1x8x128xf32> to vector<8x128xf32>
    %344 = vector.shape_cast %340 : vector<8x128xf32> to vector<1x8x128xf32>
    tpu.vector_store %arg22[%341, %c0_120, %c0_121], %344 {strides = array<i32>} : memref<8x8x128xf32, #tpu.memory_space<vmem>>, vector<1x8x128xf32>,
    %c6_i32 = arith.constant 6 : i32
    %345 = arith.truncf %317 : vector<8x128xf32> to vector<8x128xbf16>
    %c0_122 = arith.constant 0 : index
    %c0_123 = arith.constant 0 : index
    %346 = vector.load %arg5[%c0_122, %c0_123] : memref<128x512xbf16, #tpu.memory_space<vmem>>, vector<128x512xbf16>
    %cst_124 = arith.constant dense<0.000000e+00> : vector<8x512xf32>
    %347 = tpu.matmul %345, %346, %cst_124 {dimension_numbers = #tpu.dot_dimension_numbers<[1], [0], [0], [1], [0, 0, 1, 1], [], []>} : vector<8x128xbf16>, vector<128x512xbf16>, vector<8x512xf32> -> vector<8x512xf32>
    %348 = arith.truncf %340 : vector<8x128xf32> to vector<8x128xbf16>
    %c0_125 = arith.constant 0 : index
    %c0_126 = arith.constant 0 : index
    %349 = vector.load %arg6[%c0_125, %c0_126] : memref<128x512xbf16, #tpu.memory_space<vmem>>, vector<128x512xbf16>
    %cst_127 = arith.constant dense<0.000000e+00> : vector<8x512xf32>
    %350 = tpu.matmul %348, %349, %cst_127 {dimension_numbers = #tpu.dot_dimension_numbers<[1], [0], [0], [1], [0, 0, 1, 1], [], []>} : vector<8x128xbf16>, vector<128x512xbf16>, vector<8x512xf32> -> vector<8x512xf32>
    %c8_i32_128 = arith.constant 8 : i32
    %351 = arith.muli %c6_i32, %c8_i32_128 : i32
    %352 = tpu.assume_multiple %351, 8 : i32
    %353 = arith.index_cast %352 : i32 to index
    %c0_129 = arith.constant 0 : index
    %354 = vector.load %arg21[%353, %c0_129] : memref<64x512xf32, #tpu.memory_space<vmem>>, vector<8x512xf32>
    %355 = arith.addf %354, %347 : vector<8x512xf32>
    %356 = vector.extract_strided_slice %355 {offsets = [0, 0], sizes = [8, 384], strides = [1, 1]} : vector<8x512xf32> to vector<8x384xf32>
    %357 = arith.negf %356 : vector<8x384xf32>
    %358 = math.exp %357 : vector<8x384xf32>
    %cst_130 = arith.constant 1.000000e+00 : f32
    %359 = vector.broadcast %cst_130 : f32 to vector<8x384xf32>
    %360 = arith.addf %359, %358 : vector<8x384xf32>
    %361 = arith.divf %359, %360 : vector<8x384xf32>
    %362 = vector.extract_strided_slice %361 {offsets = [0, 0], sizes = [8, 128], strides = [1, 1]} : vector<8x384xf32> to vector<8x128xf32>
    %363 = vector.extract_strided_slice %361 {offsets = [0, 128], sizes = [8, 128], strides = [1, 1]} : vector<8x384xf32> to vector<8x128xf32>
    %364 = vector.extract_strided_slice %361 {offsets = [0, 256], sizes = [8, 128], strides = [1, 1]} : vector<8x384xf32> to vector<8x128xf32>
    %365 = vector.extract_strided_slice %355 {offsets = [0, 384], sizes = [8, 128], strides = [1, 1]} : vector<8x512xf32> to vector<8x128xf32>
    %366 = math.tanh %365 : vector<8x128xf32>
    %367 = arith.mulf %363, %315 : vector<8x128xf32>
    %368 = arith.mulf %362, %366 : vector<8x128xf32>
    %369 = arith.addf %367, %368 : vector<8x128xf32>
    %370 = math.tanh %369 : vector<8x128xf32>
    %371 = arith.mulf %364, %370 : vector<8x128xf32>
    %372 = arith.truncf %371 : vector<8x128xf32> to vector<8x128xbf16>
    %c0_131 = arith.constant 0 : index
    %c0_132 = arith.constant 0 : index
    %373 = vector.load %arg7[%c0_131, %c0_132] : memref<128x512xbf16, #tpu.memory_space<vmem>>, vector<128x512xbf16>
    %cst_133 = arith.constant dense<0.000000e+00> : vector<8x512xf32>
    %374 = tpu.matmul %372, %373, %cst_133 {dimension_numbers = #tpu.dot_dimension_numbers<[1], [0], [0], [1], [0, 0, 1, 1], [], []>} : vector<8x128xbf16>, vector<128x512xbf16>, vector<8x512xf32> -> vector<8x512xf32>
    %375 = arith.addf %374, %350 : vector<8x512xf32>
    %c0_134 = arith.constant 0 : index
    %c0_135 = arith.constant 0 : index
    %376 = vector.load %arg8[%c0_134, %c0_135] : memref<1x512xf32, #tpu.memory_space<vmem>>, vector<1x512xf32>
    %377 = vector.broadcast %376 : vector<1x512xf32> to vector<8x512xf32>
    %378 = arith.addf %375, %377 : vector<8x512xf32>
    %379 = vector.extract_strided_slice %378 {offsets = [0, 0], sizes = [8, 384], strides = [1, 1]} : vector<8x512xf32> to vector<8x384xf32>
    %380 = arith.negf %379 : vector<8x384xf32>
    %381 = math.exp %380 : vector<8x384xf32>
    %cst_136 = arith.constant 1.000000e+00 : f32
    %382 = vector.broadcast %cst_136 : f32 to vector<8x384xf32>
    %383 = arith.addf %382, %381 : vector<8x384xf32>
    %384 = arith.divf %382, %383 : vector<8x384xf32>
    %385 = vector.extract_strided_slice %384 {offsets = [0, 0], sizes = [8, 128], strides = [1, 1]} : vector<8x384xf32> to vector<8x128xf32>
    %386 = vector.extract_strided_slice %384 {offsets = [0, 128], sizes = [8, 128], strides = [1, 1]} : vector<8x384xf32> to vector<8x128xf32>
    %387 = vector.extract_strided_slice %384 {offsets = [0, 256], sizes = [8, 128], strides = [1, 1]} : vector<8x384xf32> to vector<8x128xf32>
    %388 = vector.extract_strided_slice %378 {offsets = [0, 384], sizes = [8, 128], strides = [1, 1]} : vector<8x512xf32> to vector<8x128xf32>
    %389 = math.tanh %388 : vector<8x128xf32>
    %390 = arith.mulf %386, %338 : vector<8x128xf32>
    %391 = arith.mulf %385, %389 : vector<8x128xf32>
    %392 = arith.addf %390, %391 : vector<8x128xf32>
    %393 = math.tanh %392 : vector<8x128xf32>
    %394 = arith.mulf %387, %393 : vector<8x128xf32>
    %395 = arith.index_cast %c6_i32 : i32 to index
    %c0_137 = arith.constant 0 : index
    %c0_138 = arith.constant 0 : index
    %396 = vector.load %arg22[%395, %c0_137, %c0_138] : memref<8x8x128xf32, #tpu.memory_space<vmem>>, vector<1x8x128xf32>
    %397 = vector.shape_cast %396 : vector<1x8x128xf32> to vector<8x128xf32>
    %398 = vector.shape_cast %394 : vector<8x128xf32> to vector<1x8x128xf32>
    tpu.vector_store %arg22[%395, %c0_137, %c0_138], %398 {strides = array<i32>} : memref<8x8x128xf32, #tpu.memory_space<vmem>>, vector<1x8x128xf32>,
    %c7_i32 = arith.constant 7 : i32
    %399 = arith.truncf %371 : vector<8x128xf32> to vector<8x128xbf16>
    %c0_139 = arith.constant 0 : index
    %c0_140 = arith.constant 0 : index
    %400 = vector.load %arg5[%c0_139, %c0_140] : memref<128x512xbf16, #tpu.memory_space<vmem>>, vector<128x512xbf16>
    %cst_141 = arith.constant dense<0.000000e+00> : vector<8x512xf32>
    %401 = tpu.matmul %399, %400, %cst_141 {dimension_numbers = #tpu.dot_dimension_numbers<[1], [0], [0], [1], [0, 0, 1, 1], [], []>} : vector<8x128xbf16>, vector<128x512xbf16>, vector<8x512xf32> -> vector<8x512xf32>
    %402 = arith.truncf %394 : vector<8x128xf32> to vector<8x128xbf16>
    %c0_142 = arith.constant 0 : index
    %c0_143 = arith.constant 0 : index
    %403 = vector.load %arg6[%c0_142, %c0_143] : memref<128x512xbf16, #tpu.memory_space<vmem>>, vector<128x512xbf16>
    %cst_144 = arith.constant dense<0.000000e+00> : vector<8x512xf32>
    %404 = tpu.matmul %402, %403, %cst_144 {dimension_numbers = #tpu.dot_dimension_numbers<[1], [0], [0], [1], [0, 0, 1, 1], [], []>} : vector<8x128xbf16>, vector<128x512xbf16>, vector<8x512xf32> -> vector<8x512xf32>
    %c8_i32_145 = arith.constant 8 : i32
    %405 = arith.muli %c7_i32, %c8_i32_145 : i32
    %406 = tpu.assume_multiple %405, 8 : i32
    %407 = arith.index_cast %406 : i32 to index
    %c0_146 = arith.constant 0 : index
    %408 = vector.load %arg21[%407, %c0_146] : memref<64x512xf32, #tpu.memory_space<vmem>>, vector<8x512xf32>
    %409 = arith.addf %408, %401 : vector<8x512xf32>
    %410 = vector.extract_strided_slice %409 {offsets = [0, 0], sizes = [8, 384], strides = [1, 1]} : vector<8x512xf32> to vector<8x384xf32>
    %411 = arith.negf %410 : vector<8x384xf32>
    %412 = math.exp %411 : vector<8x384xf32>
    %cst_147 = arith.constant 1.000000e+00 : f32
    %413 = vector.broadcast %cst_147 : f32 to vector<8x384xf32>
    %414 = arith.addf %413, %412 : vector<8x384xf32>
    %415 = arith.divf %413, %414 : vector<8x384xf32>
    %416 = vector.extract_strided_slice %415 {offsets = [0, 0], sizes = [8, 128], strides = [1, 1]} : vector<8x384xf32> to vector<8x128xf32>
    %417 = vector.extract_strided_slice %415 {offsets = [0, 128], sizes = [8, 128], strides = [1, 1]} : vector<8x384xf32> to vector<8x128xf32>
    %418 = vector.extract_strided_slice %415 {offsets = [0, 256], sizes = [8, 128], strides = [1, 1]} : vector<8x384xf32> to vector<8x128xf32>
    %419 = vector.extract_strided_slice %409 {offsets = [0, 384], sizes = [8, 128], strides = [1, 1]} : vector<8x512xf32> to vector<8x128xf32>
    %420 = math.tanh %419 : vector<8x128xf32>
    %421 = arith.mulf %417, %369 : vector<8x128xf32>
    %422 = arith.mulf %416, %420 : vector<8x128xf32>
    %423 = arith.addf %421, %422 : vector<8x128xf32>
    %424 = math.tanh %423 : vector<8x128xf32>
    %425 = arith.mulf %418, %424 : vector<8x128xf32>
    %426 = arith.truncf %425 : vector<8x128xf32> to vector<8x128xbf16>
    %c0_148 = arith.constant 0 : index
    %c0_149 = arith.constant 0 : index
    %427 = vector.load %arg7[%c0_148, %c0_149] : memref<128x512xbf16, #tpu.memory_space<vmem>>, vector<128x512xbf16>
    %cst_150 = arith.constant dense<0.000000e+00> : vector<8x512xf32>
    %428 = tpu.matmul %426, %427, %cst_150 {dimension_numbers = #tpu.dot_dimension_numbers<[1], [0], [0], [1], [0, 0, 1, 1], [], []>} : vector<8x128xbf16>, vector<128x512xbf16>, vector<8x512xf32> -> vector<8x512xf32>
    %429 = arith.addf %428, %404 : vector<8x512xf32>
    %c0_151 = arith.constant 0 : index
    %c0_152 = arith.constant 0 : index
    %430 = vector.load %arg8[%c0_151, %c0_152] : memref<1x512xf32, #tpu.memory_space<vmem>>, vector<1x512xf32>
    %431 = vector.broadcast %430 : vector<1x512xf32> to vector<8x512xf32>
    %432 = arith.addf %429, %431 : vector<8x512xf32>
    %433 = vector.extract_strided_slice %432 {offsets = [0, 0], sizes = [8, 384], strides = [1, 1]} : vector<8x512xf32> to vector<8x384xf32>
    %434 = arith.negf %433 : vector<8x384xf32>
    %435 = math.exp %434 : vector<8x384xf32>
    %cst_153 = arith.constant 1.000000e+00 : f32
    %436 = vector.broadcast %cst_153 : f32 to vector<8x384xf32>
    %437 = arith.addf %436, %435 : vector<8x384xf32>
    %438 = arith.divf %436, %437 : vector<8x384xf32>
    %439 = vector.extract_strided_slice %438 {offsets = [0, 0], sizes = [8, 128], strides = [1, 1]} : vector<8x384xf32> to vector<8x128xf32>
    %440 = vector.extract_strided_slice %438 {offsets = [0, 128], sizes = [8, 128], strides = [1, 1]} : vector<8x384xf32> to vector<8x128xf32>
    %441 = vector.extract_strided_slice %438 {offsets = [0, 256], sizes = [8, 128], strides = [1, 1]} : vector<8x384xf32> to vector<8x128xf32>
    %442 = vector.extract_strided_slice %432 {offsets = [0, 384], sizes = [8, 128], strides = [1, 1]} : vector<8x512xf32> to vector<8x128xf32>
    %443 = math.tanh %442 : vector<8x128xf32>
    %444 = arith.mulf %440, %392 : vector<8x128xf32>
    %445 = arith.mulf %439, %443 : vector<8x128xf32>
    %446 = arith.addf %444, %445 : vector<8x128xf32>
    %447 = math.tanh %446 : vector<8x128xf32>
    %448 = arith.mulf %441, %447 : vector<8x128xf32>
    %449 = arith.index_cast %c7_i32 : i32 to index
    %c0_154 = arith.constant 0 : index
    %c0_155 = arith.constant 0 : index
    %450 = vector.load %arg22[%449, %c0_154, %c0_155] : memref<8x8x128xf32, #tpu.memory_space<vmem>>, vector<1x8x128xf32>
    %451 = vector.shape_cast %450 : vector<1x8x128xf32> to vector<8x128xf32>
    %452 = vector.shape_cast %448 : vector<8x128xf32> to vector<1x8x128xf32>
    tpu.vector_store %arg22[%449, %c0_154, %c0_155], %452 {strides = array<i32>} : memref<8x8x128xf32, #tpu.memory_space<vmem>>, vector<1x8x128xf32>,
    %c8_i32_156 = arith.constant 8 : i32
    %c0_157 = arith.constant 0 : index
    %c0_158 = arith.constant 0 : index
    %c0_159 = arith.constant 0 : index
    %453 = vector.load %arg18[%c0_157, %c0_158, %c0_159] : memref<2x8x128xf32, #tpu.memory_space<vmem>>, vector<1x8x128xf32>
    %454 = vector.shape_cast %453 : vector<1x8x128xf32> to vector<8x128xf32>
    %455 = vector.shape_cast %425 : vector<8x128xf32> to vector<1x8x128xf32>
    tpu.vector_store %arg18[%c0_157, %c0_158, %c0_159], %455 {strides = array<i32>} : memref<2x8x128xf32, #tpu.memory_space<vmem>>, vector<1x8x128xf32>,
    %c1_160 = arith.constant 1 : index
    %c0_161 = arith.constant 0 : index
    %c0_162 = arith.constant 0 : index
    %456 = vector.load %arg18[%c1_160, %c0_161, %c0_162] : memref<2x8x128xf32, #tpu.memory_space<vmem>>, vector<1x8x128xf32>
    %457 = vector.shape_cast %456 : vector<1x8x128xf32> to vector<8x128xf32>
    %458 = vector.shape_cast %448 : vector<8x128xf32> to vector<1x8x128xf32>
    tpu.vector_store %arg18[%c1_160, %c0_161, %c0_162], %458 {strides = array<i32>} : memref<2x8x128xf32, #tpu.memory_space<vmem>>, vector<1x8x128xf32>,
    %c0_163 = arith.constant 0 : index
    %c0_164 = arith.constant 0 : index
    %c0_165 = arith.constant 0 : index
    %459 = vector.load %arg19[%c0_163, %c0_164, %c0_165] : memref<2x8x128xf32, #tpu.memory_space<vmem>>, vector<1x8x128xf32>
    %460 = vector.shape_cast %459 : vector<1x8x128xf32> to vector<8x128xf32>
    %461 = vector.shape_cast %423 : vector<8x128xf32> to vector<1x8x128xf32>
    tpu.vector_store %arg19[%c0_163, %c0_164, %c0_165], %461 {strides = array<i32>} : memref<2x8x128xf32, #tpu.memory_space<vmem>>, vector<1x8x128xf32>,
    %c1_166 = arith.constant 1 : index
    %c0_167 = arith.constant 0 : index
    %c0_168 = arith.constant 0 : index
    %462 = vector.load %arg19[%c1_166, %c0_167, %c0_168] : memref<2x8x128xf32, #tpu.memory_space<vmem>>, vector<1x8x128xf32>
    %463 = vector.shape_cast %462 : vector<1x8x128xf32> to vector<8x128xf32>
    %464 = vector.shape_cast %446 : vector<8x128xf32> to vector<1x8x128xf32>
    tpu.vector_store %arg19[%c1_166, %c0_167, %c0_168], %464 {strides = array<i32>} : memref<2x8x128xf32, #tpu.memory_space<vmem>>, vector<1x8x128xf32>,
    %c0_i32_169 = arith.constant 0 : i32
    %465 = tpu.memref_slice %arg26[%c0_i32_169] : memref<3x!tpu.dma_semaphore, #tpu.memory_space<semaphore_mem>> -> memref<1x!tpu.dma_semaphore, #tpu.memory_space<semaphore_mem>>
    %466 = tpu.memref_squeeze %465 : memref<1x!tpu.dma_semaphore, #tpu.memory_space<semaphore_mem>> -> memref<!tpu.dma_semaphore, #tpu.memory_space<semaphore_mem>>
    tpu.wait_dma2 semaphore(%466 : memref<!tpu.dma_semaphore, #tpu.memory_space<semaphore_mem>>) src(%arg9 : memref<128x128xbf16, #tpu.memory_space<any>>) dst(%arg23 : memref<128x128xbf16, #tpu.memory_space<vmem>>)
    %c1_i32_170 = arith.constant 1 : i32
    %467 = tpu.memref_slice %arg26[%c1_i32_170] : memref<3x!tpu.dma_semaphore, #tpu.memory_space<semaphore_mem>> -> memref<1x!tpu.dma_semaphore, #tpu.memory_space<semaphore_mem>>
    %468 = tpu.memref_squeeze %467 : memref<1x!tpu.dma_semaphore, #tpu.memory_space<semaphore_mem>> -> memref<!tpu.dma_semaphore, #tpu.memory_space<semaphore_mem>>
    tpu.wait_dma2 semaphore(%468 : memref<!tpu.dma_semaphore, #tpu.memory_space<semaphore_mem>>) src(%arg13 : memref<128x256xbf16, #tpu.memory_space<any>>) dst(%arg24 : memref<128x256xbf16, #tpu.memory_space<vmem>>)
    %c2_i32_171 = arith.constant 2 : i32
    %469 = tpu.memref_slice %arg26[%c2_i32_171] : memref<3x!tpu.dma_semaphore, #tpu.memory_space<semaphore_mem>> -> memref<1x!tpu.dma_semaphore, #tpu.memory_space<semaphore_mem>>
    %470 = tpu.memref_squeeze %469 : memref<1x!tpu.dma_semaphore, #tpu.memory_space<semaphore_mem>> -> memref<!tpu.dma_semaphore, #tpu.memory_space<semaphore_mem>>
    tpu.wait_dma2 semaphore(%470 : memref<!tpu.dma_semaphore, #tpu.memory_space<semaphore_mem>>) src(%arg15 : memref<256x128xbf16, #tpu.memory_space<any>>) dst(%arg25 : memref<256x128xbf16, #tpu.memory_space<vmem>>)
    %c0_172 = arith.constant 0 : index
    %c0_173 = arith.constant 0 : index
    %c0_174 = arith.constant 0 : index
    %471 = vector.load %arg22[%c0_172, %c0_173, %c0_174] : memref<8x8x128xf32, #tpu.memory_space<vmem>>, vector<8x8x128xf32>
    %472 = vector.shape_cast %471 : vector<8x8x128xf32> to vector<64x128xf32>
    %473 = arith.truncf %472 : vector<64x128xf32> to vector<64x128xbf16>
    %c0_175 = arith.constant 0 : index
    %c0_176 = arith.constant 0 : index
    %474 = vector.load %arg23[%c0_175, %c0_176] : memref<128x128xbf16, #tpu.memory_space<vmem>>, vector<128x128xbf16>
    %cst_177 = arith.constant dense<0.000000e+00> : vector<64x128xf32>
    %475 = tpu.matmul %473, %474, %cst_177 {dimension_numbers = #tpu.dot_dimension_numbers<[1], [0], [0], [1], [0, 0, 1, 1], [], []>} : vector<64x128xbf16>, vector<128x128xbf16>, vector<64x128xf32> -> vector<64x128xf32>
    %c0_178 = arith.constant 0 : index
    %c0_179 = arith.constant 0 : index
    %476 = vector.load %arg10[%c0_178, %c0_179] : memref<1x128xf32, #tpu.memory_space<vmem>>, vector<1x128xf32>
    %477 = vector.broadcast %476 : vector<1x128xf32> to vector<64x128xf32>
    %478 = arith.addf %475, %477 : vector<64x128xf32>
    %479 = math.tanh %478 : vector<64x128xf32>
    %480 = vector.shape_cast %479 : vector<64x128xf32> to vector<8x8x128xf32>
    %c0_180 = arith.constant 0 : index
    %c0_181 = arith.constant 0 : index
    %481 = vector.load %arg11[%c0_180, %c0_181] : memref<1x128xf32, #tpu.memory_space<vmem>>, vector<1x128xf32>
    %482 = vector.shape_cast %481 : vector<1x128xf32> to vector<1x1x128xf32>
    %483 = vector.broadcast %482 : vector<1x1x128xf32> to vector<8x8x128xf32>
    %484 = arith.mulf %480, %483 : vector<8x8x128xf32>
    %cst_182 = arith.constant dense<0.000000e+00> : vector<8x8xf32>
    %485 = vector.multi_reduction <add>, %484, %cst_182 [2] : vector<8x8x128xf32> to vector<8x8xf32>
    %486 = vector.shape_cast %485 : vector<8x8xf32> to vector<8x8x1xf32>
    %c0_183 = arith.constant 0 : index
    %c0_184 = arith.constant 0 : index
    %487 = vector.load %arg12[%c0_183, %c0_184] : memref<1x1xf32, #tpu.memory_space<vmem>>, vector<1x1xf32>
    %488 = vector.shape_cast %487 : vector<1x1xf32> to vector<1x1x1xf32>
    %489 = vector.broadcast %488 : vector<1x1x1xf32> to vector<8x8x1xf32>
    %490 = arith.addf %486, %489 : vector<8x8x1xf32>
    %cst_185 = arith.constant dense<0xFF800000> : vector<8x1xf32>
    %491 = vector.multi_reduction <maximumf>, %490, %cst_185 [0] : vector<8x8x1xf32> to vector<8x1xf32>
    %492 = vector.shape_cast %491 : vector<8x1xf32> to vector<1x8x1xf32>
    %493 = vector.broadcast %492 : vector<1x8x1xf32> to vector<8x8x1xf32>
    %494 = arith.subf %490, %493 : vector<8x8x1xf32>
    %495 = math.exp %494 : vector<8x8x1xf32>
    %cst_186 = arith.constant dense<0.000000e+00> : vector<8x1xf32>
    %496 = vector.multi_reduction <add>, %495, %cst_186 [0] : vector<8x8x1xf32> to vector<8x1xf32>
    %497 = vector.shape_cast %496 : vector<8x1xf32> to vector<1x8x1xf32>
    %498 = vector.broadcast %497 : vector<1x8x1xf32> to vector<8x8x1xf32>
    %499 = arith.divf %495, %498 : vector<8x8x1xf32>
    %500 = vector.broadcast %499 : vector<8x8x1xf32> to vector<8x8x128xf32>
    %501 = arith.mulf %500, %471 : vector<8x8x128xf32>
    %cst_187 = arith.constant dense<0.000000e+00> : vector<8x128xf32>
    %502 = vector.multi_reduction <add>, %501, %cst_187 [0] : vector<8x8x128xf32> to vector<8x128xf32>
    %503 = tpu.iota {dimensions = array<i32: 1>} : vector<8x128xi32>
    %cst_188 = arith.constant 0.000000e+00 : f32
    %504 = vector.broadcast %cst_188 : f32 to vector<8x128xf32>
    %c0_i32_189 = arith.constant 0 : i32
    %505 = vector.broadcast %c0_i32_189 : i32 to vector<8x128xi32>
    %506 = arith.cmpi eq, %503, %505 : vector<8x128xi32>
    %507 = vector.extract_strided_slice %499 {offsets = [0, 0, 0], sizes = [1, 8, 1], strides = [1, 1, 1]} : vector<8x8x1xf32> to vector<1x8x1xf32>
    %508 = vector.shape_cast %507 : vector<1x8x1xf32> to vector<8x1xf32>
    %cst_190 = arith.constant 0.000000e+00 : f32
    %509 = vector.shape_cast %508 : vector<8x1xf32> to vector<8x1xf32>
    %510 = vector.broadcast %509 : vector<8x1xf32> to vector<8x128xf32>
    %511 = vector.broadcast %cst_190 : f32 to vector<8x128xf32>
    %512 = arith.select %506, %510, %511 : vector<8x128xi1>, vector<8x128xf32>
    %513 = arith.addf %504, %512 : vector<8x128xf32>
    %c1_i32_191 = arith.constant 1 : i32
    %514 = vector.broadcast %c1_i32_191 : i32 to vector<8x128xi32>
    %515 = arith.cmpi eq, %503, %514 : vector<8x128xi32>
    %516 = vector.extract_strided_slice %499 {offsets = [1, 0, 0], sizes = [1, 8, 1], strides = [1, 1, 1]} : vector<8x8x1xf32> to vector<1x8x1xf32>
    %517 = vector.shape_cast %516 : vector<1x8x1xf32> to vector<8x1xf32>
    %cst_192 = arith.constant 0.000000e+00 : f32
    %518 = vector.shape_cast %517 : vector<8x1xf32> to vector<8x1xf32>
    %519 = vector.broadcast %518 : vector<8x1xf32> to vector<8x128xf32>
    %520 = vector.broadcast %cst_192 : f32 to vector<8x128xf32>
    %521 = arith.select %515, %519, %520 : vector<8x128xi1>, vector<8x128xf32>
    %522 = arith.addf %513, %521 : vector<8x128xf32>
    %c2_i32_193 = arith.constant 2 : i32
    %523 = vector.broadcast %c2_i32_193 : i32 to vector<8x128xi32>
    %524 = arith.cmpi eq, %503, %523 : vector<8x128xi32>
    %525 = vector.extract_strided_slice %499 {offsets = [2, 0, 0], sizes = [1, 8, 1], strides = [1, 1, 1]} : vector<8x8x1xf32> to vector<1x8x1xf32>
    %526 = vector.shape_cast %525 : vector<1x8x1xf32> to vector<8x1xf32>
    %cst_194 = arith.constant 0.000000e+00 : f32
    %527 = vector.shape_cast %526 : vector<8x1xf32> to vector<8x1xf32>
    %528 = vector.broadcast %527 : vector<8x1xf32> to vector<8x128xf32>
    %529 = vector.broadcast %cst_194 : f32 to vector<8x128xf32>
    %530 = arith.select %524, %528, %529 : vector<8x128xi1>, vector<8x128xf32>
    %531 = arith.addf %522, %530 : vector<8x128xf32>
    %c3_i32_195 = arith.constant 3 : i32
    %532 = vector.broadcast %c3_i32_195 : i32 to vector<8x128xi32>
    %533 = arith.cmpi eq, %503, %532 : vector<8x128xi32>
    %534 = vector.extract_strided_slice %499 {offsets = [3, 0, 0], sizes = [1, 8, 1], strides = [1, 1, 1]} : vector<8x8x1xf32> to vector<1x8x1xf32>
    %535 = vector.shape_cast %534 : vector<1x8x1xf32> to vector<8x1xf32>
    %cst_196 = arith.constant 0.000000e+00 : f32
    %536 = vector.shape_cast %535 : vector<8x1xf32> to vector<8x1xf32>
    %537 = vector.broadcast %536 : vector<8x1xf32> to vector<8x128xf32>
    %538 = vector.broadcast %cst_196 : f32 to vector<8x128xf32>
    %539 = arith.select %533, %537, %538 : vector<8x128xi1>, vector<8x128xf32>
    %540 = arith.addf %531, %539 : vector<8x128xf32>
    %c4_i32_197 = arith.constant 4 : i32
    %541 = vector.broadcast %c4_i32_197 : i32 to vector<8x128xi32>
    %542 = arith.cmpi eq, %503, %541 : vector<8x128xi32>
    %543 = vector.extract_strided_slice %499 {offsets = [4, 0, 0], sizes = [1, 8, 1], strides = [1, 1, 1]} : vector<8x8x1xf32> to vector<1x8x1xf32>
    %544 = vector.shape_cast %543 : vector<1x8x1xf32> to vector<8x1xf32>
    %cst_198 = arith.constant 0.000000e+00 : f32
    %545 = vector.shape_cast %544 : vector<8x1xf32> to vector<8x1xf32>
    %546 = vector.broadcast %545 : vector<8x1xf32> to vector<8x128xf32>
    %547 = vector.broadcast %cst_198 : f32 to vector<8x128xf32>
    %548 = arith.select %542, %546, %547 : vector<8x128xi1>, vector<8x128xf32>
    %549 = arith.addf %540, %548 : vector<8x128xf32>
    %c5_i32_199 = arith.constant 5 : i32
    %550 = vector.broadcast %c5_i32_199 : i32 to vector<8x128xi32>
    %551 = arith.cmpi eq, %503, %550 : vector<8x128xi32>
    %552 = vector.extract_strided_slice %499 {offsets = [5, 0, 0], sizes = [1, 8, 1], strides = [1, 1, 1]} : vector<8x8x1xf32> to vector<1x8x1xf32>
    %553 = vector.shape_cast %552 : vector<1x8x1xf32> to vector<8x1xf32>
    %cst_200 = arith.constant 0.000000e+00 : f32
    %554 = vector.shape_cast %553 : vector<8x1xf32> to vector<8x1xf32>
    %555 = vector.broadcast %554 : vector<8x1xf32> to vector<8x128xf32>
    %556 = vector.broadcast %cst_200 : f32 to vector<8x128xf32>
    %557 = arith.select %551, %555, %556 : vector<8x128xi1>, vector<8x128xf32>
    %558 = arith.addf %549, %557 : vector<8x128xf32>
    %c6_i32_201 = arith.constant 6 : i32
    %559 = vector.broadcast %c6_i32_201 : i32 to vector<8x128xi32>
    %560 = arith.cmpi eq, %503, %559 : vector<8x128xi32>
    %561 = vector.extract_strided_slice %499 {offsets = [6, 0, 0], sizes = [1, 8, 1], strides = [1, 1, 1]} : vector<8x8x1xf32> to vector<1x8x1xf32>
    %562 = vector.shape_cast %561 : vector<1x8x1xf32> to vector<8x1xf32>
    %cst_202 = arith.constant 0.000000e+00 : f32
    %563 = vector.shape_cast %562 : vector<8x1xf32> to vector<8x1xf32>
    %564 = vector.broadcast %563 : vector<8x1xf32> to vector<8x128xf32>
    %565 = vector.broadcast %cst_202 : f32 to vector<8x128xf32>
    %566 = arith.select %560, %564, %565 : vector<8x128xi1>, vector<8x128xf32>
    %567 = arith.addf %558, %566 : vector<8x128xf32>
    %c7_i32_203 = arith.constant 7 : i32
    %568 = vector.broadcast %c7_i32_203 : i32 to vector<8x128xi32>
    %569 = arith.cmpi eq, %503, %568 : vector<8x128xi32>
    %570 = vector.extract_strided_slice %499 {offsets = [7, 0, 0], sizes = [1, 8, 1], strides = [1, 1, 1]} : vector<8x8x1xf32> to vector<1x8x1xf32>
    %571 = vector.shape_cast %570 : vector<1x8x1xf32> to vector<8x1xf32>
    %cst_204 = arith.constant 0.000000e+00 : f32
    %572 = vector.shape_cast %571 : vector<8x1xf32> to vector<8x1xf32>
    %573 = vector.broadcast %572 : vector<8x1xf32> to vector<8x128xf32>
    %574 = vector.broadcast %cst_204 : f32 to vector<8x128xf32>
    %575 = arith.select %569, %573, %574 : vector<8x128xi1>, vector<8x128xf32>
    %576 = arith.addf %567, %575 : vector<8x128xf32>
    %c0_205 = arith.constant 0 : index
    %c0_206 = arith.constant 0 : index
    %577 = vector.load %arg17[%c0_205, %c0_206] : memref<8x128xf32, #tpu.memory_space<vmem>>, vector<8x128xf32>
    tpu.vector_store %arg17[%c0_205, %c0_206], %576 {strides = array<i32>} : memref<8x128xf32, #tpu.memory_space<vmem>>, vector<8x128xf32>,
    %578 = arith.truncf %502 : vector<8x128xf32> to vector<8x128xbf16>
    %c0_207 = arith.constant 0 : index
    %c0_208 = arith.constant 0 : index
    %579 = vector.load %arg24[%c0_207, %c0_208] : memref<128x256xbf16, #tpu.memory_space<vmem>>, vector<128x256xbf16>
    %cst_209 = arith.constant dense<0.000000e+00> : vector<8x256xf32>
    %580 = tpu.matmul %578, %579, %cst_209 {dimension_numbers = #tpu.dot_dimension_numbers<[1], [0], [0], [1], [0, 0, 1, 1], [], []>} : vector<8x128xbf16>, vector<128x256xbf16>, vector<8x256xf32> -> vector<8x256xf32>
    %c0_210 = arith.constant 0 : index
    %c0_211 = arith.constant 0 : index
    %581 = vector.load %arg14[%c0_210, %c0_211] : memref<1x256xf32, #tpu.memory_space<vmem>>, vector<1x256xf32>
    %582 = vector.broadcast %581 : vector<1x256xf32> to vector<8x256xf32>
    %583 = arith.addf %580, %582 : vector<8x256xf32>
    %cst_212 = arith.constant 0.000000e+00 : f32
    %584 = vector.broadcast %cst_212 : f32 to vector<8x256xf32>
    %585 = arith.maximumf %583, %584 : vector<8x256xf32>
    %586 = arith.truncf %585 : vector<8x256xf32> to vector<8x256xbf16>
    %c0_213 = arith.constant 0 : index
    %c0_214 = arith.constant 0 : index
    %587 = vector.load %arg25[%c0_213, %c0_214] : memref<256x128xbf16, #tpu.memory_space<vmem>>, vector<256x128xbf16>
    %cst_215 = arith.constant dense<0.000000e+00> : vector<8x128xf32>
    %588 = tpu.matmul %586, %587, %cst_215 {dimension_numbers = #tpu.dot_dimension_numbers<[1], [0], [0], [1], [0, 0, 1, 1], [], []>} : vector<8x256xbf16>, vector<256x128xbf16>, vector<8x128xf32> -> vector<8x128xf32>
    %c0_216 = arith.constant 0 : index
    %c0_217 = arith.constant 0 : index
    %589 = vector.load %arg16[%c0_216, %c0_217] : memref<1x128xf32, #tpu.memory_space<vmem>>, vector<1x128xf32>
    %590 = vector.broadcast %589 : vector<1x128xf32> to vector<8x128xf32>
    %591 = arith.addf %588, %590 : vector<8x128xf32>
    %c0_218 = arith.constant 0 : index
    %c0_219 = arith.constant 0 : index
    %592 = vector.load %arg20[%c0_218, %c0_219] : memref<8x128xf32, #tpu.memory_space<vmem>>, vector<8x128xf32>
    tpu.vector_store %arg20[%c0_218, %c0_219], %591 {strides = array<i32>} : memref<8x128xf32, #tpu.memory_space<vmem>>, vector<8x128xf32>,
    return
  }
}

</mosaic_0001>

<bundles_post_ra>
// kernel: tpu_custom_call.1
= control target key start
LH: loop header
LB: loop body
LE: loop exit
PB: predicated region body
PF: predicated region fallthrough
CT: control target
= control target key end

     0   :  { %s12979_s0 = inlined_call_operand.hbm [shape: bf16[64,128], index: 0, kind: input, shape index: {}]   ;;  %s12980_s1 = inlined_call_operand.hbm [shape: f32[2,8,128], index: 1, kind: input, shape index: {}]   ;;  %s12981_s2 = inlined_call_operand.hbm [shape: f32[2,8,128], index: 2, kind: input, shape index: {}]   ;;  %s12982_s3 = inlined_call_operand.hbm [shape: bf16[128,512], index: 3, kind: input, shape index: {}]   ;;  %s12983_s4 = inlined_call_operand.vmem [shape: f32[1,512], index: 4, kind: input, shape index: {}]   ;;  %s12984_s5 = inlined_call_operand.hbm [shape: bf16[128,512], index: 5, kind: input, shape index: {}]   ;;  %s12985_s6 = inlined_call_operand.hbm [shape: bf16[128,512], index: 6, kind: input, shape index: {}]   ;;  %s12986_s7 = inlined_call_operand.hbm [shape: bf16[128,512], index: 7, kind: input, shape index: {}]   ;;  %s12987_s8 = inlined_call_operand.vmem [shape: f32[1,512], index: 8, kind: input, shape index: {}]   ;;  %s12988_s9 = inlined_call_operand.hbm [shape: bf16[128,128], index: 9, kind: input, shape index: {}]   ;;  %s12989_s10 = inlined_call_operand.vmem [shape: f32[1,128], index: 10, kind: input, shape index: {}]   ;;  %s12990_s11 = inlined_call_operand.vmem [shape: f32[1,128], index: 11, kind: input, shape index: {}]   ;;  %s12991_s12 = inlined_call_operand.<no memory space> [shape: f32[1,1], index: 12, kind: input, shape index: {}]   ;;  %s12992_s13 = inlined_call_operand.hbm [shape: bf16[128,256], index: 13, kind: input, shape index: {}]   ;;  %s12993_s14 = inlined_call_operand.vmem [shape: f32[1,256], index: 14, kind: input, shape index: {}]   ;;  %s12994_s15 = inlined_call_operand.hbm [shape: bf16[256,128], index: 15, kind: input, shape index: {}]   ;;  %s12995_s16 = inlined_call_operand.vmem [shape: f32[1,128], index: 16, kind: input, shape index: {}]   ;;  %s12996_s17 = inlined_call_operand.hbm [shape: f32[8,128], index: 17, kind: output, shape index: {0}]   ;;  %s12997_s18 = inlined_call_operand.hbm [shape: f32[2,8,128], index: 18, kind: output, shape index: {1}]   ;;  %s12998_s19 = inlined_call_operand.hbm [shape: f32[2,8,128], index: 19, kind: output, shape index: {2}]   ;;  %s12999_s20 = inlined_call_operand.hbm [shape: f32[8,128], index: 20, kind: output, shape index: {3}]  }
   0x1   :  { %13180 = sst [smem:[#allocation110_spill]] %s12979_s0  ;;  %v26_v0 = vstv %s12991_s12 }
   0x2   :  { %13181 = sst [smem:[#allocation111_spill]] %s12980_s1  ;;  %27 = vst [vmem:[#allocation8] sm:$0x1] %v26_v0 }
   0x3   :  { %13182 = sst [smem:[#allocation112_spill]] %s12981_s2 }
   0x4   :  { %13183 = sst [smem:[#allocation113_spill]] %s12982_s3 }
   0x5   :  { %13184 = sst [smem:[#allocation114_spill]] %s12983_s4 }
   0x6   :  { %28 = vsyncpa [#allocation10], 0 }
   0x7   :  { %29 = vsyncpa [#allocation13], 0 }
   0x8   :  { %30 = vsyncpa [#allocation16], 0 }
   0x9   :  { %31 = vsyncpa [#allocation19], 0 }
   0xa   :  { %32 = vsyncpa [#allocation11], 0 }
   0xb   :  { %33 = vsyncpa [#allocation23], 0 }
   0xc   :  { %34 = vsyncpa [#allocation26], 0  ;;  %s10971_s23 = smov [#allocation12]  }
   0xd   :  { %s52_s24 = sshll.u32 %s10971_s23, 4  ;;  %s53_s24 = int_to_ptr.vmem [resolvable:$true] %s52_s24 }
   0xe   :  { %s10679_s2 = scalar_lea.vmem %s53_s24, 256  ;;  %p10684_p1 = scmp.lt.s32.totalorder %s53_s24, %s53_s24 }
   0xf   :  { %p10680_p0 = scmp.ne.s32.totalorder %s53_s24, %s10679_s2  ;;  %p10685_p2 = scmp.lt.s32.totalorder %s10679_s2, %s10679_s2 }
  0x11   :  { %p10686_p3 = por %p10685_p2, %p10684_p1 }
  0x13   :  { %p10687_p4 = pnand %p10686_p3, %p10680_p0 }
  0x15   :  { %10690 = shalt.err (!%p10687_p4)
}
  0x16   :  { %s13000_s25 = smov 128   ;;  %s13002_s12 = smov 8  }
  0x17   :  { %s13185_s27 = sld [smem:[#allocation111_spill]]  ;;  %s10974_s28 = smov [#allocation15]  }
  0x18   :  { %s76_s4 = sshll.u32 %s10974_s28, 4  ;;  %s77_s4 = int_to_ptr.vmem [resolvable:$true] %s76_s4 }
  0x19   :  { %s10699_s29 = scalar_lea.vmem %s77_s4, 4096  ;;  %p10704_p6 = scmp.lt.s32.totalorder %s77_s4, %s77_s4 }
  0x1a   :  { %p10700_p5 = scmp.ne.s32.totalorder %s77_s4, %s10699_s29  ;;  %p10705_p7 = scmp.lt.s32.totalorder %s10699_s29, %s10699_s29 }
  0x1c   :  { %p10706_p8 = por %p10705_p7, %p10704_p6 }
  0x1d   :  { %58 = dma.hbm_to_vmem [thread:$0]  %s13185_s27, 256, %s53_s24, [#allocation13], %s13000_s25, %s13000_s25, %s13002_s12  }
  0x1e   :  { %p10707_p9 = pnand %p10706_p8, %p10700_p5 }
  0x20   :  { %10710 = shalt.err (!%p10707_p9)
}
  0x21   :  { %s10975_s30 = smov 256   ;;  %s10976_s0 = smov 16  }
  0x22   :  { %s13186_s22 = sld [smem:[#allocation113_spill]]  ;;  %s10977_s23 = smov [#allocation18]  }
  0x23   :  { %s102_s24 = sshll.u32 %s10977_s23, 4  ;;  %s10978_s2 = smov [#allocation9]   ;;  %s103_s24 = int_to_ptr.vmem [resolvable:$true] %s102_s24 }
  0x24   :  { %s40_s3 = sshll.u32 %s10978_s2, 4  ;;  %s10719_s26 = scalar_lea.vmem %s103_s24, 4096  ;;  %s41_s3 = int_to_ptr.vmem [resolvable:$true] %s40_s3 }
  0x25   :  { %p10720_p10 = scmp.ne.s32.totalorder %s103_s24, %s10719_s26  ;;  %p10724_p11 = scmp.lt.s32.totalorder %s103_s24, %s103_s24 }
  0x26   :  { %p10725_p12 = scmp.lt.s32.totalorder %s10719_s26, %s10719_s26 }
  0x28   :  { %82 = dma.hbm_to_vmem [thread:$0]  %s13186_s22, 4096, %s77_s4, [#allocation16], %s10975_s30, %s10975_s30, %s10976_s0  }
  0x29   :  { %p10726_p13 = por %p10725_p12, %p10724_p11 }
  0x2b   :  { %p10727_p0 = pnand %p10726_p13, %p10720_p10 }
  0x2d   :  { %10730 = shalt.err (!%p10727_p0)
}
  0x2e   :  { %108 = dma.hbm_to_vmem [thread:$0]  %s12985_s6, 4096, %s103_s24, [#allocation19], %s10975_s30, %s10975_s30, %s10976_s0  }
  0x2f   :  { %s10739_s4 = scalar_lea.vmem %s41_s3, 512  ;;  %p10744_p2 = scmp.lt.s32.totalorder %s41_s3, %s41_s3 }
  0x30   :  { %p10740_p1 = scmp.ne.s32.totalorder %s41_s3, %s10739_s4  ;;  %p10745_p3 = scmp.lt.s32.totalorder %s10739_s4, %s10739_s4 }
  0x32   :  { %p10746_p4 = por %p10745_p3, %p10744_p2 }
  0x34   :  { %p10747_p5 = pnand %p10746_p4, %p10740_p1 }
  0x36   :  { %10750 = shalt.err (!%p10747_p5)
}
  0x37   :  { %s10979_s29 = smov 64   ;;  %s10980_s21 = smov 4  }
  0x38   :  { %s13187_s23 = sld [smem:[#allocation110_spill]]  ;;  %s10981_s2 = smov [#allocation14]  }
  0x39   :  { %s64_s26 = sshll.u32 %s10981_s2, 4  ;;  %s10982_s25 = smov [#allocation17]   ;;  %s65_s26 = int_to_ptr.vmem [resolvable:$true] %s64_s26 }
  0x3a   :  { %s90_s12 = sshll.u32 %s10982_s25, 4  ;;  %s10759_s6 = scalar_lea.vmem %s65_s26, 256  ;;  %s91_s12 = int_to_ptr.vmem [resolvable:$true] %s90_s12 }
  0x3b   :  { %p10760_p6 = scmp.ne.s32.totalorder %s65_s26, %s10759_s6  ;;  %p10764_p7 = scmp.lt.s32.totalorder %s65_s26, %s65_s26 }
  0x3c   :  { %p10765_p8 = scmp.lt.s32.totalorder %s10759_s6, %s10759_s6 }
  0x3e   :  { %46 = dma.hbm_to_vmem [thread:$0]  %s13187_s23, 512, %s41_s3, [#allocation10], %s10979_s29, %s10979_s29, %s10980_s21  }
  0x3f   :  { %p10766_p9 = por %p10765_p8, %p10764_p7 }
  0x41   :  { %p10767_p10 = pnand %p10766_p9, %p10760_p6 }
  0x43   :  { %10770 = shalt.err (!%p10767_p10)
}
  0x44   :  { %s13188_s24 = smov 8   ;;  %s13189_s27 = smov 128  }
  0x45   :  { %s13190_s1 = sld [smem:[#allocation112_spill]]  ;;  %s10779_s3 = scalar_lea.vmem %s91_s12, 4096 }
  0x46   :  { %p10780_p11 = scmp.ne.s32.totalorder %s91_s12, %s10779_s3  ;;  %p10784_p12 = scmp.lt.s32.totalorder %s91_s12, %s91_s12 }
  0x47   :  { %p10785_p13 = scmp.lt.s32.totalorder %s10779_s3, %s10779_s3 }
  0x49   :  { %p10786_p0 = por %p10785_p13, %p10784_p12 }
  0x4b   :  { %70 = dma.hbm_to_vmem [thread:$0]  %s13190_s1, 256, %s65_s26, [#allocation13], %s13189_s27, %s13189_s27, %s13188_s24  }
  0x4c   :  { %p10787_p1 = pnand %p10786_p0, %p10780_p11 }
  0x4e   :  { %10790 = shalt.err (!%p10787_p1)
}
  0x4f   :  { %96 = dma.hbm_to_vmem [thread:$0]  %s12984_s5, 4096, %s91_s12, [#allocation16], %s10975_s30, %s10975_s30, %s10976_s0  }
  0x50   :  { %s10983_s21 = smov [#allocation20]  }
  0x51   :  { %s114_s22 = sshll.u32 %s10983_s21, 4  ;;  %s115_s22 = int_to_ptr.vmem [resolvable:$true] %s114_s22 }
  0x52   :  { %s10799_s23 = scalar_lea.vmem %s115_s22, 4096  ;;  %p10804_p3 = scmp.lt.s32.totalorder %s115_s22, %s115_s22 }
  0x53   :  { %p10800_p2 = scmp.ne.s32.totalorder %s115_s22, %s10799_s23  ;;  %p10805_p4 = scmp.lt.s32.totalorder %s10799_s23, %s10799_s23 }
  0x55   :  { %p10806_p5 = por %p10805_p4, %p10804_p3 }
  0x57   :  { %p10807_p6 = pnand %p10806_p5, %p10800_p2 }
  0x59   :  { %10810 = shalt.err (!%p10807_p6)
}
  0x5a   :  { %120 = dma.hbm_to_vmem [thread:$0]  %s12986_s7, 4096, %s115_s22, [#allocation19], %s10975_s30, %s10975_s30, %s10976_s0  }
  0x5b   :  { %10951 = dma.done.wait [#allocation10], 512  }
  0x5c   :  { %10952 = vsyncadd [#allocation10], 4294966784 }
  0x5d   :  { %10953 = dma.done.wait [#allocation13], 512  }
  0x5e   :  { %10954 = vsyncadd [#allocation13], 4294966784 }
  0x5f   :  { %10955 = dma.done.wait [#allocation16], 8192  }
  0x60   :  { %10956 = vsyncadd [#allocation16], 4294959104 }
  0x61   :  { %10957 = dma.done.wait [#allocation19], 8192  }
  0x62   :  { %10958 = vsyncadd [#allocation19], 4294959104  ;;  %v13004_v1 = vmov 0   ;;  %v9671_v2 = vld [vmem:[#allocation15 + $0xe4] ss:$16 sps:$4 sm:$0xff]   ;;  %v9732_v45 = vld [vmem:[#allocation9 + $0x8] sm:$0xff]  }
  0x63   :  { %468 = vmatprep.mubr.bf16.mxu0 %v13004_v1  ;;  %541 = vmatprep.mubr.bf16.mxu1 %v13004_v1  ;;  %v9673_v3 = vld [vmem:[#allocation15 + $0xec] ss:$16 sps:$4 sm:$0xff]   ;;  %v9675_v4 = vld [vmem:[#allocation15 + $0xe0] ss:$16 sps:$4 sm:$0xff]   ;;  %v9676_v5 = vld [vmem:[#allocation15 + $0xe8] ss:$16 sps:$4 sm:$0xff]  }
  0x64   :  { %436 = vmatprep.subr.bf16.mxu0 %v9671_v2  ;;  %509 = vmatprep.subr.bf16.mxu1 %v9673_v3  ;;  %v9677_v6 = vld [vmem:[#allocation15 + $0xc4] ss:$16 sps:$4 sm:$0xff]   ;;  %v9679_v7 = vld [vmem:[#allocation15 + $0xcc] ss:$16 sps:$4 sm:$0xff]   ;;  %v9681_v8 = vld [vmem:[#allocation15 + $0xc0] ss:$16 sps:$4 sm:$0xff]  }
  0x65   :  { %437 = vmatpush1.bf16.msra.mxu0 %v9675_v4  ;;  %510 = vmatpush1.bf16.msra.mxu1 %v9676_v5  ;;  %v9682_v9 = vld [vmem:[#allocation15 + $0xc8] ss:$16 sps:$4 sm:$0xff]   ;;  %v9683_v10 = vld [vmem:[#allocation15 + $0xa4] ss:$16 sps:$4 sm:$0xff]   ;;  %v9685_v11 = vld [vmem:[#allocation15 + $0xac] ss:$16 sps:$4 sm:$0xff]  }
  0x66   :  { %438 = vmatprep.subr.bf16.mxu0 %v9677_v6  ;;  %511 = vmatprep.subr.bf16.mxu1 %v9679_v7  ;;  %v9687_v12 = vld [vmem:[#allocation15 + $0xa0] ss:$16 sps:$4 sm:$0xff]   ;;  %v9688_v13 = vld [vmem:[#allocation15 + $0xa8] ss:$16 sps:$4 sm:$0xff]   ;;  %v9689_v14 = vld [vmem:[#allocation15 + $0x84] ss:$16 sps:$4 sm:$0xff]  }
  0x67   :  { %v9691_v15 = vld [vmem:[#allocation15 + $0x8c] ss:$16 sps:$4 sm:$0xff]   ;;  %v9693_v16 = vld [vmem:[#allocation15 + $0x80] ss:$16 sps:$4 sm:$0xff]   ;;  %v9694_v17 = vld [vmem:[#allocation15 + $0x88] ss:$16 sps:$4 sm:$0xff]  }
  0x68   :  { %v9695_v18 = vld [vmem:[#allocation15 + $0x64] ss:$16 sps:$4 sm:$0xff]   ;;  %v9697_v19 = vld [vmem:[#allocation15 + $0x6c] ss:$16 sps:$4 sm:$0xff]   ;;  %v9699_v20 = vld [vmem:[#allocation15 + $0x60] ss:$16 sps:$4 sm:$0xff]  }
  0x69   :  { %439 = vmatpush1.bf16.msra.mxu0 %v9681_v8  ;;  %512 = vmatpush1.bf16.msra.mxu1 %v9682_v9  ;;  %v9700_v21 = vld [vmem:[#allocation15 + $0x68] ss:$16 sps:$4 sm:$0xff]   ;;  %v9701_v22 = vld [vmem:[#allocation15 + $0x44] ss:$16 sps:$4 sm:$0xff]   ;;  %v9703_v23 = vld [vmem:[#allocation15 + $0x4c] ss:$16 sps:$4 sm:$0xff]  }
  0x6a   :  { %440 = vmatprep.subr.bf16.mxu0 %v9683_v10  ;;  %513 = vmatprep.subr.bf16.mxu1 %v9685_v11  ;;  %v9705_v24 = vld [vmem:[#allocation15 + $0x40] ss:$16 sps:$4 sm:$0xff]   ;;  %v9706_v25 = vld [vmem:[#allocation15 + $0x48] ss:$16 sps:$4 sm:$0xff]   ;;  %v9707_v26 = vld [vmem:[#allocation15 + $0x24] ss:$16 sps:$4 sm:$0xff]  }
  0x6b   :  { %v9709_v27 = vld [vmem:[#allocation15 + $0x2c] ss:$16 sps:$4 sm:$0xff]   ;;  %v9711_v28 = vld [vmem:[#allocation15 + $0x20] ss:$16 sps:$4 sm:$0xff]   ;;  %v9712_v29 = vld [vmem:[#allocation15 + $0x28] ss:$16 sps:$4 sm:$0xff]  }
  0x6c   :  { %v9713_v30 = vld [vmem:[#allocation15 + $0x4] ss:$16 sps:$4 sm:$0xff]   ;;  %v9715_v31 = vld [vmem:[#allocation15 + $0xc] ss:$16 sps:$4 sm:$0xff]   ;;  %v9717_v32 = vld [vmem:[#allocation15] ss:$16 sps:$4 sm:$0xff]  }
  0x6d   :  { %441 = vmatpush1.bf16.msra.mxu0 %v9687_v12  ;;  %514 = vmatpush1.bf16.msra.mxu1 %v9688_v13  ;;  %v9718_v33 = vld [vmem:[#allocation15 + $0x8] ss:$16 sps:$4 sm:$0xff]   ;;  %v9722_v34 = vld [vmem:[#allocation17 + $0xe4] ss:$16 sps:$4 sm:$0xff]   ;;  %v9725_v35 = vld [vmem:[#allocation17 + $0xec] ss:$16 sps:$4 sm:$0xff]  }
  0x6e   :  { %442 = vmatprep.subr.bf16.mxu0 %v9689_v14  ;;  %515 = vmatprep.subr.bf16.mxu1 %v9691_v15  ;;  %v9719_v36 = vld [vmem:[#allocation9] sm:$0xff]   ;;  %v9723_v38 = vld [vmem:[#allocation17 + $0xe8] ss:$16 sps:$4 sm:$0xff]   ;;  %v9731_v40 = vld [vmem:[#allocation17 + $0xcc] ss:$16 sps:$4 sm:$0xff]   ;;  %s13222_s12 = sld [smem:[#allocation114_spill]] }
  0x6f   :  { %v9720_v37 = vld [vmem:[#allocation17 + $0xe0] ss:$16 sps:$4 sm:$0xff]   ;;  %v9728_v39 = vld [vmem:[#allocation17 + $0xc4] ss:$16 sps:$4 sm:$0xff]   ;;  %v9729_v42 = vld [vmem:[#allocation17 + $0xc8] ss:$16 sps:$4 sm:$0xff]  }
  0x70   :  { %v9726_v41 = vld [vmem:[#allocation17 + $0xc0] ss:$16 sps:$4 sm:$0xff]   ;;  %v9735_v43 = vld [vmem:[#allocation17 + $0xa4] ss:$16 sps:$4 sm:$0xff]   ;;  %v9738_v44 = vld [vmem:[#allocation17 + $0xac] ss:$16 sps:$4 sm:$0xff]  }
  0x71   :  { %443 = vmatpush1.bf16.msra.mxu0 %v9693_v16  ;;  %516 = vmatpush1.bf16.msra.mxu1 %v9694_v17  ;;  %v9733_v46 = vld [vmem:[#allocation17 + $0xa0] ss:$16 sps:$4 sm:$0xff]   ;;  %v9736_v47 = vld [vmem:[#allocation17 + $0xa8] ss:$16 sps:$4 sm:$0xff]   ;;  %v9741_v48 = vld [vmem:[#allocation17 + $0x84] ss:$16 sps:$4 sm:$0xff]  }
  0x72   :  { %444 = vmatprep.subr.bf16.mxu0 %v9695_v18  ;;  %517 = vmatprep.subr.bf16.mxu1 %v9697_v19  ;;  %v9744_v49 = vld [vmem:[#allocation17 + $0x8c] ss:$16 sps:$4 sm:$0xff]   ;;  %v9739_v50 = vld [vmem:[#allocation17 + $0x80] ss:$16 sps:$4 sm:$0xff]   ;;  %v9742_v51 = vld [vmem:[#allocation17 + $0x88] ss:$16 sps:$4 sm:$0xff]  }
  0x73   :  { %v9748_v52 = vld [vmem:[#allocation17 + $0x64] ss:$16 sps:$4 sm:$0xff]   ;;  %v9751_v53 = vld [vmem:[#allocation17 + $0x6c] ss:$16 sps:$4 sm:$0xff]   ;;  %v9746_v55 = vld [vmem:[#allocation17 + $0x60] ss:$16 sps:$4 sm:$0xff]  }
  0x74   :  { %v9745_v54 = vld [vmem:[#allocation9 + $0x10] sm:$0xff]   ;;  %v9749_v56 = vld [vmem:[#allocation17 + $0x68] ss:$16 sps:$4 sm:$0xff]   ;;  %v9757_v58 = vld [vmem:[#allocation17 + $0x4c] ss:$16 sps:$4 sm:$0xff]   ;;  %s10985_s5 = smov [#allocation4]  }
  0x75   :  { %445 = vmatpush1.bf16.msra.mxu0 %v9699_v20  ;;  %518 = vmatpush1.bf16.msra.mxu1 %v9700_v21  ;;  %v9754_v57 = vld [vmem:[#allocation17 + $0x44] ss:$16 sps:$4 sm:$0xff]   ;;  %v9752_v59 = vld [vmem:[#allocation17 + $0x40] ss:$16 sps:$4 sm:$0xff]   ;;  %v9755_v60 = vld [vmem:[#allocation17 + $0x48] ss:$16 sps:$4 sm:$0xff]  }
  0x76   :  { %446 = vmatprep.subr.bf16.mxu0 %v9701_v22  ;;  %519 = vmatprep.subr.bf16.mxu1 %v9703_v23  ;;  %v9761_v61 = vld [vmem:[#allocation17 + $0x24] ss:$16 sps:$4 sm:$0xff]   ;;  %v9764_v62 = vld [vmem:[#allocation17 + $0x2c] ss:$16 sps:$4 sm:$0xff]   ;;  %v9759_v0 = vld [vmem:[#allocation17 + $0x20] ss:$16 sps:$4 sm:$0xff]  }
  0x77   :  { %v9758_v63 = vld [vmem:[#allocation9 + $0x18] sm:$0xff]   ;;  %v9767_v3 = vld [vmem:[#allocation17 + $0x4] ss:$16 sps:$4 sm:$0xff]   ;;  %v9765_v5 = vld [vmem:[#allocation17] ss:$16 sps:$4 sm:$0xff]   ;;  %s162_s7 = sshll.u32 %s10985_s5, 4  ;;  %s163_s7 = int_to_ptr.vmem [resolvable:$true] %s162_s7 }
  0x78   :  { %v9762_v2 = vld [vmem:[#allocation17 + $0x28] ss:$16 sps:$4 sm:$0xff]   ;;  %v9770_v4 = vld [vmem:[#allocation17 + $0xc] ss:$16 sps:$4 sm:$0xff]   ;;  %v614_v7 = vld [vmem:[#allocation12] sm:$0xff]  ;;  %s10819_s0 = scalar_lea.vmem %s163_s7, 1024  ;;  %p10824_p8 = scmp.lt.s32.totalorder %s163_s7, %s163_s7 }
  0x79   :  { %447 = vmatpush1.bf16.msra.mxu0 %v9705_v24  ;;  %520 = vmatpush1.bf16.msra.mxu1 %v9706_v25  ;;  %v9768_v6 = vld [vmem:[#allocation17 + $0x8] ss:$16 sps:$4 sm:$0xff]   ;;  %v620_v8 = vpack.c.bf16 %v614_v7, %v614_v7  ;;  %v11151_v9 = vld [vmem:[#allocation18 + $0xe4] ss:$16 sps:$4 sm:$0xff]   ;;  %v11153_v10 = vld [vmem:[#allocation18 + $0xe0] ss:$16 sps:$4 sm:$0xff]   ;;  %p10820_p7 = scmp.ne.s32.totalorder %s163_s7, %s10819_s0  ;;  %p10825_p9 = scmp.lt.s32.totalorder %s10819_s0, %s10819_s0 }
  0x7a   :  { %448 = vmatprep.subr.bf16.mxu0 %v9707_v26  ;;  %521 = vmatprep.subr.bf16.mxu1 %v9709_v27  ;;  %v11157_v11 = vld [vmem:[#allocation18 + $0xec] ss:$16 sps:$4 sm:$0xff]   ;;  %v11159_v12 = vld [vmem:[#allocation18 + $0xc4] ss:$16 sps:$4 sm:$0xff]   ;;  %v11161_v13 = vld [vmem:[#allocation18 + $0xe8] ss:$16 sps:$4 sm:$0xff]  }
  0x7b   :  { %v11163_v14 = vld [vmem:[#allocation18 + $0xc0] ss:$16 sps:$4 sm:$0xff]   ;;  %v11169_v15 = vld [vmem:[#allocation18 + $0xcc] ss:$16 sps:$4 sm:$0xff]   ;;  %v11171_v16 = vld [vmem:[#allocation18 + $0xa4] ss:$16 sps:$4 sm:$0xff]   ;;  %p10826_p10 = por %p10825_p9, %p10824_p8 }
  0x7c   :  { %v11173_v17 = vld [vmem:[#allocation18 + $0xc8] ss:$16 sps:$4 sm:$0xff]   ;;  %v11175_v18 = vld [vmem:[#allocation18 + $0xa0] ss:$16 sps:$4 sm:$0xff]   ;;  %v11181_v19 = vld [vmem:[#allocation18 + $0xac] ss:$16 sps:$4 sm:$0xff]  }
  0x7d   :  { %449 = vmatpush1.bf16.msra.mxu0 %v9711_v28  ;;  %522 = vmatpush1.bf16.msra.mxu1 %v9712_v29  ;;  %v11183_v20 = vld [vmem:[#allocation18 + $0x84] ss:$16 sps:$4 sm:$0xff]   ;;  %v11185_v21 = vld [vmem:[#allocation18 + $0xa8] ss:$16 sps:$4 sm:$0xff]   ;;  %v11187_v22 = vld [vmem:[#allocation18 + $0x80] ss:$16 sps:$4 sm:$0xff]   ;;  %p10827_p11 = pnand %p10826_p10, %p10820_p7 }
  0x7e   :  { %450 = vmatprep.subr.bf16.mxu0 %v9713_v30  ;;  %523 = vmatprep.subr.bf16.mxu1 %v9715_v31  ;;  %v11193_v23 = vld [vmem:[#allocation18 + $0x8c] ss:$16 sps:$4 sm:$0xff]   ;;  %v11195_v24 = vld [vmem:[#allocation18 + $0x64] ss:$16 sps:$4 sm:$0xff]   ;;  %v11197_v25 = vld [vmem:[#allocation18 + $0x88] ss:$16 sps:$4 sm:$0xff]  }
  0x7f   :  { %v11199_v26 = vld [vmem:[#allocation18 + $0x60] ss:$16 sps:$4 sm:$0xff]   ;;  %v11205_v27 = vld [vmem:[#allocation18 + $0x6c] ss:$16 sps:$4 sm:$0xff]   ;;  %v11207_v28 = vld [vmem:[#allocation18 + $0x44] ss:$16 sps:$4 sm:$0xff]  }
  0x80   :  { %v11209_v29 = vld [vmem:[#allocation18 + $0x68] ss:$16 sps:$4 sm:$0xff]   ;;  %v11211_v30 = vld [vmem:[#allocation18 + $0x40] ss:$16 sps:$4 sm:$0xff]   ;;  %v11217_v31 = vld [vmem:[#allocation18 + $0x4c] ss:$16 sps:$4 sm:$0xff]  }
  0x81   :  { %451 = vmatpush1.bf16.msra.mxu0 %v9717_v32  ;;  %524 = vmatpush1.bf16.msra.mxu1 %v9718_v33  ;;  %v11219_v32 = vld [vmem:[#allocation18 + $0x24] ss:$16 sps:$4 sm:$0xff]   ;;  %v11221_v33 = vld [vmem:[#allocation18 + $0x48] ss:$16 sps:$4 sm:$0xff]  }
  0x82   :  { %813 = vmatprep.subr.bf16.mxu0 %v9722_v34  ;;  %854 = vmatprep.subr.bf16.mxu1 %v9725_v35  ;;  %v11223_v34 = vld [vmem:[#allocation18 + $0x20] ss:$16 sps:$4 sm:$0xff]   ;;  %v11229_v35 = vld [vmem:[#allocation18 + $0x2c] ss:$16 sps:$4 sm:$0xff]   ;;  %v11325_v7 = vld [vmem:[#allocation20 + $0x28] ss:$16 sps:$4 sm:$0xff]  }
  0x83   :  { %13216 = vst [vmem:[#allocation70_spill] sm:$0xff] %v11325_v7 }
  0x84   :  { %469 = vmatmul.mubr.bf16.vlgmr.msra.gmra.mxu0 %v9719_v36  ;;  %542 = vmatmul.mubr.bf16.vlgmr.msra.gmra.mxu1 %v9719_v36  ;;  %v11231_v36 = vld [vmem:[#allocation18 + $0x4] ss:$16 sps:$4 sm:$0xff]  }
  0x85   :  { %814 = vmatpush1.bf16.msra.mxu0 %v9720_v37  ;;  %855 = vmatpush1.bf16.msra.mxu1 %v9723_v38  ;;  %v11233_v37 = vld [vmem:[#allocation18 + $0x28] ss:$16 sps:$4 sm:$0xff]   ;;  %v11235_v38 = vld [vmem:[#allocation18] ss:$16 sps:$4 sm:$0xff]  }
  0x86   :  { %815 = vmatprep.subr.bf16.mxu0 %v9728_v39  ;;  %856 = vmatprep.subr.bf16.mxu1 %v9731_v40  ;;  %v617_v39 = vld [vmem:[#allocation12 + $0x8] sm:$0xff] }
  0x87   :  { %478 = vmatprep.mubr.bf16.mxu0 %v13004_v1  ;;  %551 = vmatprep.mubr.bf16.mxu1 %v13004_v1  ;;  %v11241_v40 = vld [vmem:[#allocation18 + $0xc] ss:$16 sps:$4 sm:$0xff]  }
  0x89   :  { %816 = vmatpush1.bf16.msra.mxu0 %v9726_v41  ;;  %857 = vmatpush1.bf16.msra.mxu1 %v9729_v42  ;;  %v895_v41 = vpack.c.bf16 %v617_v39, %v617_v39  ;;  %v11243_v42 = vld [vmem:[#allocation18 + $0x8] ss:$16 sps:$4 sm:$0xff]   ;;  %v11330_v39 = vld [vmem:[#allocation20 + $0xc] ss:$16 sps:$4 sm:$0xff]  }
  0x8a   :  { %817 = vmatprep.subr.bf16.mxu0 %v9735_v43  ;;  %858 = vmatprep.subr.bf16.mxu1 %v9738_v44  ;;  %v11248_v43 = vld [vmem:[#allocation20 + $0xe4] ss:$16 sps:$4 sm:$0xff]   ;;  %v11250_v44 = vld [vmem:[#allocation20 + $0xec] ss:$16 sps:$4 sm:$0xff]   ;;  %13218 = vst [vmem:[#allocation72_spill] sm:$0xff] %v11330_v39 }
  0x8c   :  { %479 = vmatmul.mubr.bf16.gmra.mxu0 %v9732_v45  ;;  %552 = vmatmul.mubr.bf16.gmra.mxu1 %v9732_v45  ;;  %v11252_v45 = vld [vmem:[#allocation20 + $0xe0] ss:$16 sps:$4 sm:$0xff]  }
  0x8d   :  { %818 = vmatpush1.bf16.msra.mxu0 %v9733_v46  ;;  %859 = vmatpush1.bf16.msra.mxu1 %v9736_v47  ;;  %13191 = vst [vmem:[#allocation45_spill] sm:$0xff] %v11252_v45  ;;  %v11254_v46 = vld [vmem:[#allocation20 + $0xe8] ss:$16 sps:$4 sm:$0xff]   ;;  %v11260_v47 = vld [vmem:[#allocation20 + $0xc4] ss:$16 sps:$4 sm:$0xff]  }
  0x8e   :  { %819 = vmatprep.subr.bf16.mxu0 %v9741_v48  ;;  %860 = vmatprep.subr.bf16.mxu1 %v9744_v49  ;;  %13192 = vst [vmem:[#allocation46_spill] sm:$0xff] %v11254_v46  ;;  %13193 = vst [vmem:[#allocation47_spill] sm:$0xff] %v11260_v47  ;;  %v11262_v48 = vld [vmem:[#allocation20 + $0xcc] ss:$16 sps:$4 sm:$0xff]   ;;  %v11265_v49 = vld [vmem:[#allocation20 + $0xc0] ss:$16 sps:$4 sm:$0xff]  }
  0x8f   :  { %488 = vmatprep.mubr.bf16.mxu0 %v13004_v1  ;;  %561 = vmatprep.mubr.bf16.mxu1 %v13004_v1  ;;  %13194 = vst [vmem:[#allocation48_spill] sm:$0xff] %v11262_v48  ;;  %13195 = vst [vmem:[#allocation49_spill] sm:$0xff] %v11265_v49 }
  0x91   :  { %820 = vmatpush1.bf16.msra.mxu0 %v9739_v50  ;;  %861 = vmatpush1.bf16.msra.mxu1 %v9742_v51  ;;  %v11267_v50 = vld [vmem:[#allocation20 + $0xc8] ss:$16 sps:$4 sm:$0xff]   ;;  %v11273_v51 = vld [vmem:[#allocation20 + $0xa4] ss:$16 sps:$4 sm:$0xff]  }
  0x92   :  { %821 = vmatprep.subr.bf16.mxu0 %v9748_v52  ;;  %862 = vmatprep.subr.bf16.mxu1 %v9751_v53  ;;  %13196 = vst [vmem:[#allocation50_spill] sm:$0xff] %v11267_v50  ;;  %13197 = vst [vmem:[#allocation51_spill] sm:$0xff] %v11273_v51  ;;  %v11275_v52 = vld [vmem:[#allocation20 + $0xac] ss:$16 sps:$4 sm:$0xff]   ;;  %v11277_v53 = vld [vmem:[#allocation20 + $0xa0] ss:$16 sps:$4 sm:$0xff]  }
  0x93   :  { %13198 = vst [vmem:[#allocation52_spill] sm:$0xff] %v11275_v52  ;;  %13199 = vst [vmem:[#allocation53_spill] sm:$0xff] %v11277_v53 }
  0x94   :  { %489 = vmatmul.mubr.bf16.gmra.mxu0 %v9745_v54  ;;  %562 = vmatmul.mubr.bf16.gmra.mxu1 %v9745_v54  ;;  %v11279_v54 = vld [vmem:[#allocation20 + $0xa8] ss:$16 sps:$4 sm:$0xff]  }
  0x95   :  { %822 = vmatpush1.bf16.msra.mxu0 %v9746_v55  ;;  %863 = vmatpush1.bf16.msra.mxu1 %v9749_v56  ;;  %13200 = vst [vmem:[#allocation54_spill] sm:$0xff] %v11279_v54  ;;  %v11285_v55 = vld [vmem:[#allocation20 + $0x84] ss:$16 sps:$4 sm:$0xff]   ;;  %v11287_v56 = vld [vmem:[#allocation20 + $0x8c] ss:$16 sps:$4 sm:$0xff]  }
  0x96   :  { %823 = vmatprep.subr.bf16.mxu0 %v9754_v57  ;;  %864 = vmatprep.subr.bf16.mxu1 %v9757_v58  ;;  %13201 = vst [vmem:[#allocation55_spill] sm:$0xff] %v11285_v55  ;;  %13202 = vst [vmem:[#allocation56_spill] sm:$0xff] %v11287_v56  ;;  %v11289_v57 = vld [vmem:[#allocation20 + $0x80] ss:$16 sps:$4 sm:$0xff]   ;;  %v11291_v58 = vld [vmem:[#allocation20 + $0x88] ss:$16 sps:$4 sm:$0xff]  }
  0x97   :  { %498 = vmatprep.mubr.bf16.mxu0 %v13004_v1  ;;  %571 = vmatprep.mubr.bf16.mxu1 %v13004_v1  ;;  %13203 = vst [vmem:[#allocation57_spill] sm:$0xff] %v11289_v57  ;;  %13204 = vst [vmem:[#allocation58_spill] sm:$0xff] %v11291_v58 }
  0x99   :  { %824 = vmatpush1.bf16.msra.mxu0 %v9752_v59  ;;  %865 = vmatpush1.bf16.msra.mxu1 %v9755_v60  ;;  %v11295_v59 = vld [vmem:[#allocation20 + $0x64] ss:$16 sps:$4 sm:$0xff]   ;;  %v11298_v60 = vld [vmem:[#allocation20 + $0x60] ss:$16 sps:$4 sm:$0xff]  }
  0x9a   :  { %825 = vmatprep.subr.bf16.mxu0 %v9761_v61  ;;  %866 = vmatprep.subr.bf16.mxu1 %v9764_v62  ;;  %13205 = vst [vmem:[#allocation59_spill] sm:$0xff] %v11295_v59  ;;  %13206 = vst [vmem:[#allocation60_spill] sm:$0xff] %v11298_v60  ;;  %v11300_v61 = vld [vmem:[#allocation20 + $0x6c] ss:$16 sps:$4 sm:$0xff]   ;;  %v11304_v62 = vld [vmem:[#allocation20 + $0x68] ss:$16 sps:$4 sm:$0xff]  }
  0x9b   :  { %13207 = vst [vmem:[#allocation61_spill] sm:$0xff] %v11300_v61  ;;  %13208 = vst [vmem:[#allocation62_spill] sm:$0xff] %v11304_v62 }
  0x9c   :  { %499 = vmatmul.mubr.bf16.gmra.mxu0 %v9758_v63  ;;  %572 = vmatmul.mubr.bf16.gmra.mxu1 %v9758_v63  ;;  %v11306_v63 = vld [vmem:[#allocation20 + $0x44] ss:$16 sps:$4 sm:$0xff]  }
  0x9d   :  { %826 = vmatpush1.bf16.msra.mxu0 %v9759_v0  ;;  %867 = vmatpush1.bf16.msra.mxu1 %v9762_v2  ;;  %13209 = vst [vmem:[#allocation63_spill] sm:$0xff] %v11306_v63  ;;  %v11309_v0 = vld [vmem:[#allocation20 + $0x4c] ss:$16 sps:$4 sm:$0xff]   ;;  %v11311_v2 = vld [vmem:[#allocation20 + $0x40] ss:$16 sps:$4 sm:$0xff]  }
  0x9e   :  { %827 = vmatprep.subr.bf16.mxu0 %v9767_v3  ;;  %868 = vmatprep.subr.bf16.mxu1 %v9770_v4  ;;  %13210 = vst [vmem:[#allocation64_spill] sm:$0xff] %v11309_v0  ;;  %13211 = vst [vmem:[#allocation65_spill] sm:$0xff] %v11311_v2  ;;  %v11313_v3 = vld [vmem:[#allocation20 + $0x48] ss:$16 sps:$4 sm:$0xff]   ;;  %v11315_v4 = vld [vmem:[#allocation20 + $0x24] ss:$16 sps:$4 sm:$0xff]  }
  0x9f   :  { %845 = vmatprep.mubr.bf16.mxu0 %v13004_v1  ;;  %886 = vmatprep.mubr.bf16.mxu1 %v13004_v1  ;;  %13212 = vst [vmem:[#allocation66_spill] sm:$0xff] %v11313_v3  ;;  %13213 = vst [vmem:[#allocation67_spill] sm:$0xff] %v11315_v4 }
  0xa1   :  { %828 = vmatpush1.bf16.msra.mxu0 %v9765_v5  ;;  %869 = vmatpush1.bf16.msra.mxu1 %v9768_v6  ;;  %v11318_v5 = vld [vmem:[#allocation20 + $0x2c] ss:$16 sps:$4 sm:$0xff]   ;;  %v11323_v6 = vld [vmem:[#allocation20 + $0x20] ss:$16 sps:$4 sm:$0xff]  }
  0xa2   :  { %1088 = vmatprep.subr.bf16.mxu0 %v11151_v9  ;;  %1129 = vmatprep.subr.bf16.mxu1 %v11157_v11  ;;  %13214 = vst [vmem:[#allocation68_spill] sm:$0xff] %v11318_v5  ;;  %13215 = vst [vmem:[#allocation69_spill] sm:$0xff] %v11323_v6 }
  0xa4   :  { %846 = vmatmul.mubr.bf16.vlgmr.msra.gmra.mxu0 %v620_v8  ;;  %887 = vmatmul.mubr.bf16.vlgmr.msra.gmra.mxu1 %v620_v8  ;;  %v11327_v8 = vld [vmem:[#allocation20 + $0x4] ss:$16 sps:$4 sm:$0xff]  }
  0xa5   :  { %1120 = vmatprep.mubr.bf16.mxu0 %v13004_v1  ;;  %1161 = vmatprep.mubr.bf16.mxu1 %v13004_v1  ;;  %13217 = vst [vmem:[#allocation71_spill] sm:$0xff] %v11327_v8 }
  0xa6   :  { %1089 = vmatpush1.bf16.msra.mxu0 %v11153_v10  ;;  %1130 = vmatpush1.bf16.msra.mxu1 %v11161_v13 }
  0xa7   :  { %1090 = vmatprep.subr.bf16.mxu0 %v11159_v12  ;;  %1131 = vmatprep.subr.bf16.mxu1 %v11169_v15 }
  0xaa   :  { %1091 = vmatpush1.bf16.msra.mxu0 %v11163_v14  ;;  %1132 = vmatpush1.bf16.msra.mxu1 %v11173_v17 }
  0xab   :  { %1092 = vmatprep.subr.bf16.mxu0 %v11171_v16  ;;  %1133 = vmatprep.subr.bf16.mxu1 %v11181_v19 }
  0xae   :  { %1093 = vmatpush1.bf16.msra.mxu0 %v11175_v18  ;;  %1134 = vmatpush1.bf16.msra.mxu1 %v11185_v21 }
  0xaf   :  { %1094 = vmatprep.subr.bf16.mxu0 %v11183_v20  ;;  %1135 = vmatprep.subr.bf16.mxu1 %v11193_v23 }
  0xb2   :  { %1095 = vmatpush1.bf16.msra.mxu0 %v11187_v22  ;;  %1136 = vmatpush1.bf16.msra.mxu1 %v11197_v25 }
  0xb3   :  { %1096 = vmatprep.subr.bf16.mxu0 %v11195_v24  ;;  %1137 = vmatprep.subr.bf16.mxu1 %v11205_v27 }
  0xb6   :  { %1097 = vmatpush1.bf16.msra.mxu0 %v11199_v26  ;;  %1138 = vmatpush1.bf16.msra.mxu1 %v11209_v29 }
  0xb7   :  { %1098 = vmatprep.subr.bf16.mxu0 %v11207_v28  ;;  %1139 = vmatprep.subr.bf16.mxu1 %v11217_v31 }
  0xba   :  { %1099 = vmatpush1.bf16.msra.mxu0 %v11211_v30  ;;  %1140 = vmatpush1.bf16.msra.mxu1 %v11221_v33 }
  0xbb   :  { %1100 = vmatprep.subr.bf16.mxu0 %v11219_v32  ;;  %1141 = vmatprep.subr.bf16.mxu1 %v11229_v35 }
  0xbe   :  { %1101 = vmatpush1.bf16.msra.mxu0 %v11223_v34  ;;  %1142 = vmatpush1.bf16.msra.mxu1 %v11233_v37 }
  0xbf   :  { %1102 = vmatprep.subr.bf16.mxu0 %v11231_v36  ;;  %1143 = vmatprep.subr.bf16.mxu1 %v11241_v40 }
  0xc2   :  { %1103 = vmatpush1.bf16.msra.mxu0 %v11235_v38  ;;  %1144 = vmatpush1.bf16.msra.mxu1 %v11243_v42 }
  0xc3   :  { %1398 = vmatprep.subr.bf16.mxu0 %v11248_v43  ;;  %1439 = vmatprep.subr.bf16.mxu1 %v11250_v44 }
  0xc5   :  { %1121 = vmatmul.mubr.bf16.vlgmr.msra.gmra.mxu0 %v895_v41  ;;  %1162 = vmatmul.mubr.bf16.vlgmr.msra.gmra.mxu1 %v895_v41  ;;  %v11335_v41 = vld [vmem:[#allocation20] ss:$16 sps:$4 sm:$0xff]  }
  0xc6   :  { %1430 = vmatprep.mubr.bf16.mxu0 %v13004_v1  ;;  %1399 = vmatpush1.bf16.msra.mxu0 %v11252_v45  ;;  %13219 = vst [vmem:[#allocation73_spill] sm:$0xff] %v11335_v41 }
  0xc7   :  { %1440 = vmatpush1.bf16.msra.mxu1 %v11254_v46  ;;  %1471 = vmatprep.mubr.bf16.mxu1 %v13004_v1  ;;  %v11340_v1 = vld [vmem:[#allocation20 + $0x8] ss:$16 sps:$4 sm:$0xff]  }
  0xc8   :  { %1400 = vmatprep.subr.bf16.mxu0 %v11260_v47  ;;  %1441 = vmatprep.subr.bf16.mxu1 %v11262_v48  ;;  %13220 = vst [vmem:[#allocation74_spill] sm:$0xff] %v11340_v1 }
  0xca   :  { %1401 = vmatpush1.bf16.msra.mxu0 %v11265_v49 }
  0xcb   :  { %1442 = vmatpush1.bf16.msra.mxu1 %v11267_v50  ;;  %1402 = vmatprep.subr.bf16.mxu0 %v11273_v51 }
  0xcc   :  { %1443 = vmatprep.subr.bf16.mxu1 %v11275_v52 }
  0xce   :  { %1403 = vmatpush1.bf16.msra.mxu0 %v11277_v53 }
  0xcf   :  { %1444 = vmatpush1.bf16.msra.mxu1 %v11279_v54  ;;  %1404 = vmatprep.subr.bf16.mxu0 %v11285_v55 }
  0xd0   :  { %1445 = vmatprep.subr.bf16.mxu1 %v11287_v56 }
  0xd2   :  { %1405 = vmatpush1.bf16.msra.mxu0 %v11289_v57 }
  0xd3   :  { %1446 = vmatpush1.bf16.msra.mxu1 %v11291_v58  ;;  %1406 = vmatprep.subr.bf16.mxu0 %v11295_v59 }
  0xd4   :  { %1447 = vmatprep.subr.bf16.mxu1 %v11300_v61 }
  0xd6   :  { %1407 = vmatpush1.bf16.msra.mxu0 %v11298_v60 }
  0xd7   :  { %1448 = vmatpush1.bf16.msra.mxu1 %v11304_v62  ;;  %1408 = vmatprep.subr.bf16.mxu0 %v11306_v63 }
  0xd8   :  { %1449 = vmatprep.subr.bf16.mxu1 %v11309_v0 }
  0xda   :  { %1409 = vmatpush1.bf16.msra.mxu0 %v11311_v2 }
  0xdb   :  { %1450 = vmatpush1.bf16.msra.mxu1 %v11313_v3  ;;  %1410 = vmatprep.subr.bf16.mxu0 %v11315_v4  ;;  %v10555_v3 = vld [vmem:[#allocation17 + $0xe4] ss:$16 sps:$4 sm:$0xff]   ;;  %v10556_v4 = vld [vmem:[#allocation17 + $0xec] ss:$16 sps:$4 sm:$0xff]  }
  0xdc   :  { %1451 = vmatprep.subr.bf16.mxu1 %v11318_v5  ;;  %v13016_v5 = vlaneseq }
  0xde   :  { %1411 = vmatpush1.bf16.msra.mxu0 %v11323_v6  ;;  %v233_v2 = vshrl.u32 %v13016_v5, 7 }
  0xdf   :  { %1452 = vmatpush1.bf16.msra.mxu1 %v11325_v7  ;;  %1412 = vmatprep.subr.bf16.mxu0 %v11327_v8 }
  0xe0   :  { %1453 = vmatprep.subr.bf16.mxu1 %v11330_v39  ;;  %v11346_v6 = vsub.s32 2, %v233_v2  ;;  %v11348_v7 = vsub.s32 0, %v233_v2  ;;  %v11350_v8 = vsub.s32 3, %v233_v2  ;;  %v230_v39 = vld [vmem:[%s13222_s12] sm:$0xf]  ;;  %s10986_s12 = smov [#allocation5]  }
  0xe1   :  { %s174_s30 = sshll.u32 %s10986_s12, 4  ;;  %s175_s30 = int_to_ptr.vmem [resolvable:$true] %s174_s30 }
  0xe2   :  { %1413 = vmatpush1.bf16.msra.mxu0 %v11335_v41  ;;  %13221 = vst [vmem:[#allocation75_spill] sm:$0xff] %v11348_v7  ;;  %v235_v63 = vrot.slane %v230_v39, %v11348_v7  ;;  %v11370_v62 = vrot.slane %v230_v39, %v11350_v8 }
  0xe3   :  { %1454 = vmatpush1.bf16.msra.mxu1 %v11340_v1  ;;  %1723 = vmatprep.subr.bf16.mxu0 %v10555_v3  ;;  %v11360_v3 = vrot.slane %v230_v39, %v11346_v6 }
  0xe4   :  { %1764 = vmatprep.subr.bf16.mxu1 %v10556_v4  ;;  %v11362_v4 = vsub.s32 1, %v233_v2 }
  0xe6   :  { %13223 = vst [vmem:[#allocation76_spill] sm:$0xff] %v11362_v4  ;;  %v239_v59 = vrot.slane %v230_v39, %v11362_v4 }
 0x144   :  { %v11355_v41 = vpop.f32.mrf.mxu0  ;;  %v11357_v1 = vpop.f32.mrf.mxu1 }
 0x146   :  { %v11364_v5 = vpop.f32.mrf.mxu0  ;;  %v11366_v0 = vpop.f32.mrf.mxu1 }
 0x148   :  { %v474_v60 = vpop.f32.mrf.mxu0  ;;  %v547_v61 = vpop.f32.mrf.mxu1 }
 0x149   :  { %v11373_v58 = vadd.f32 %v474_v60, %v235_v63  ;;  %v11376_v57 = vadd.f32 %v547_v61, %v11360_v3 }
 0x14a   :  { %v476_v2 = vpop.f32.mrf.mxu0  ;;  %v549_v56 = vpop.f32.mrf.mxu1 }
 0x14b   :  { %13224 = vst [vmem:[#allocation77_spill] sm:$0xff] %v11376_v57  ;;  %v11378_v55 = vadd.f32 %v476_v2, %v239_v59  ;;  %v11381_v54 = vadd.f32 %v549_v56, %v11370_v62 }
 0x14c   :  { %v480_v53 = vpop.f32.mrf.mxu0  ;;  %v553_v52 = vpop.f32.mrf.mxu1 }
 0x14d   :  { %13225 = vst [vmem:[#allocation78_spill] sm:$0xff] %v11378_v55  ;;  %13226 = vst [vmem:[#allocation79_spill] sm:$0xff] %v11381_v54  ;;  %v11383_v51 = vadd.f32 %v480_v53, %v235_v63  ;;  %v11386_v50 = vadd.f32 %v553_v52, %v11360_v3 }
 0x14e   :  { %v482_v39 = vpop.f32.mrf.mxu0  ;;  %v555_v60 = vpop.f32.mrf.mxu1 }
 0x14f   :  { %13227 = vst [vmem:[#allocation80_spill] sm:$0xff] %v11383_v51  ;;  %13228 = vst [vmem:[#allocation81_spill] sm:$0xff] %v11386_v50  ;;  %v11388_v49 = vadd.f32 %v482_v39, %v239_v59  ;;  %v11391_v61 = vadd.f32 %v555_v60, %v11370_v62 }
 0x150   :  { %v484_v48 = vpop.f32.mrf.mxu0  ;;  %v557_v2 = vpop.f32.mrf.mxu1 }
 0x151   :  { %13229 = vst [vmem:[#allocation82_spill] sm:$0xff] %v11388_v49  ;;  %13230 = vst [vmem:[#allocation83_spill] sm:$0xff] %v11391_v61  ;;  %v11393_v47 = vadd.f32 %v484_v48, %v235_v63  ;;  %v11396_v56 = vadd.f32 %v557_v2, %v11360_v3 }
 0x152   :  { %v486_v46 = vpop.f32.mrf.mxu0  ;;  %v559_v53 = vpop.f32.mrf.mxu1 }
 0x153   :  { %13231 = vst [vmem:[#allocation84_spill] sm:$0xff] %v11393_v47  ;;  %13232 = vst [vmem:[#allocation85_spill] sm:$0xff] %v11396_v56  ;;  %v11398_v51 = vadd.f32 %v486_v46, %v239_v59  ;;  %v11401_v52 = vadd.f32 %v559_v53, %v11370_v62 }
 0x154   :  { %v490_v50 = vpop.f32.mrf.mxu0  ;;  %v563_v39 = vpop.f32.mrf.mxu1 }
 0x155   :  { %13233 = vst [vmem:[#allocation86_spill] sm:$0xff] %v11398_v51  ;;  %13234 = vst [vmem:[#allocation87_spill] sm:$0xff] %v11401_v52  ;;  %v11403_v49 = vadd.f32 %v490_v50, %v235_v63  ;;  %v11406_v60 = vadd.f32 %v563_v39, %v11360_v3 }
 0x156   :  { %v492_v61 = vpop.f32.mrf.mxu0  ;;  %v565_v48 = vpop.f32.mrf.mxu1 }
 0x157   :  { %13235 = vst [vmem:[#allocation88_spill] sm:$0xff] %v11403_v49  ;;  %13236 = vst [vmem:[#allocation89_spill] sm:$0xff] %v11406_v60  ;;  %v11408_v47 = vadd.f32 %v492_v61, %v239_v59  ;;  %v11411_v2 = vadd.f32 %v565_v48, %v11370_v62 }
 0x158   :  { %v494_v56 = vpop.f32.mrf.mxu0  ;;  %v567_v46 = vpop.f32.mrf.mxu1 }
 0x159   :  { %13237 = vst [vmem:[#allocation90_spill] sm:$0xff] %v11408_v47  ;;  %13238 = vst [vmem:[#allocation91_spill] sm:$0xff] %v11411_v2  ;;  %v11413_v51 = vadd.f32 %v494_v56, %v235_v63  ;;  %v11416_v53 = vadd.f32 %v567_v46, %v11360_v3 }
 0x15a   :  { %v496_v52 = vpop.f32.mrf.mxu0  ;;  %v569_v50 = vpop.f32.mrf.mxu1 }
 0x15b   :  { %13239 = vst [vmem:[#allocation92_spill] sm:$0xff] %v11413_v51  ;;  %13240 = vst [vmem:[#allocation93_spill] sm:$0xff] %v11416_v53  ;;  %v11418_v49 = vadd.f32 %v496_v52, %v239_v59  ;;  %v11421_v39 = vadd.f32 %v569_v50, %v11370_v62 }
 0x15c   :  { %v500_v60 = vpop.f32.mrf.mxu0  ;;  %v573_v61 = vpop.f32.mrf.mxu1 }
 0x15d   :  { %13241 = vst [vmem:[#allocation94_spill] sm:$0xff] %v11418_v49  ;;  %13242 = vst [vmem:[#allocation95_spill] sm:$0xff] %v11421_v39  ;;  %v11423_v47 = vadd.f32 %v500_v60, %v235_v63  ;;  %v11426_v48 = vadd.f32 %v573_v61, %v11360_v3 }
 0x15e   :  { %v502_v2 = vpop.f32.mrf.mxu0  ;;  %v575_v56 = vpop.f32.mrf.mxu1 }
 0x15f   :  { %13243 = vst [vmem:[#allocation96_spill] sm:$0xff] %v11423_v47  ;;  %13244 = vst [vmem:[#allocation97_spill] sm:$0xff] %v11426_v48  ;;  %v11428_v51 = vadd.f32 %v502_v2, %v239_v59  ;;  %v11431_v46 = vadd.f32 %v575_v56, %v11370_v62  ;;  %v471_v47 = vadd.f32 %v11355_v41, %v235_v63 }
 0x160   :  { %v504_v53 = vpop.f32.mrf.mxu0  ;;  %v577_v52 = vpop.f32.mrf.mxu1  ;;  %v473_v56 = vadd.f32 %v11364_v5, %v239_v59  ;;  %v544_v41 = vadd.f32 %v11357_v1, %v11360_v3 }
 0x161   :  { %13245 = vst [vmem:[#allocation98_spill] sm:$0xff] %v11428_v51  ;;  %13246 = vst [vmem:[#allocation99_spill] sm:$0xff] %v11431_v46  ;;  %v11433_v49 = vadd.f32 %v504_v53, %v235_v63  ;;  %v11436_v50 = vadd.f32 %v577_v52, %v11360_v3 }
 0x162   :  { %v506_v39 = vpop.f32.mrf.mxu0  ;;  %v579_v60 = vpop.f32.mrf.mxu1 }
 0x163   :  { %13247 = vst [vmem:[#allocation100_spill] sm:$0xff] %v11433_v49  ;;  %13248 = vst [vmem:[#allocation101_spill] sm:$0xff] %v11436_v50  ;;  %v11439_v61 = vadd.f32 %v506_v39, %v239_v59  ;;  %v11442_v48 = vadd.f32 %v579_v60, %v11370_v62  ;;  %v546_v60 = vadd.f32 %v11366_v0, %v11370_v62 }
 0x164   :  { %v847_v2 = vpop.f32.mrf.mxu0  ;;  %v888_v51 = vpop.f32.mrf.mxu1 }
 0x165   :  { %13249 = vst [vmem:[#allocation102_spill] sm:$0xff] %v11439_v61  ;;  %13250 = vst [vmem:[#allocation103_spill] sm:$0xff] %v11442_v48  ;;  %v1177_v46 = vadd.f32 %v847_v2, %v471_v47  ;;  %v1179_v39 = vadd.f32 %v888_v51, %v544_v41  ;;  %v10558_v41 = vld [vmem:[#allocation17 + $0xe8] ss:$16 sps:$4 sm:$0xff]   ;;  %v11728_v61 = vld [vmem:[#allocation18 + $0x24] ss:$16 sps:$4 sm:$0xff]  }
 0x166   :  { %v849_v45 = vpop.f32.mrf.mxu0  ;;  %v890_v53 = vpop.f32.mrf.mxu1  ;;  %v11722_v48 = vld [vmem:[#allocation18 + $0x48] ss:$16 sps:$4 sm:$0xff]  }
 0x167   :  { %v8793_v49 = vmul.f32 -1.442695, %v1177_v46  ;;  %v1178_v54 = vadd.f32 %v849_v45, %v473_v56  ;;  %v8795_v59 = vmul.f32 -1.442695, %v1179_v39  ;;  %v1180_v5 = vadd.f32 %v890_v53, %v546_v60  ;;  %v10559_v39 = vld [vmem:[#allocation17 + $0xc4] ss:$16 sps:$4 sm:$0xff]  }
 0x168   :  { %v851_v52 = vpop.f32.mrf.mxu0  ;;  %v892_v50 = vpop.f32.mrf.mxu1  ;;  %v10560_v60 = vld [vmem:[#allocation17 + $0xcc] ss:$16 sps:$4 sm:$0xff]  }
 0x169   :  { %10299 = vpow2.f32 %v8793_v49  ;;  %v8794_v57 = vmul.f32 -1.442695, %v1178_v54 }
 0x16a   :  { %v852_v55 = vpop.f32.mrf.mxu0  ;;  %v893_v63 = vpop.f32.mrf.mxu1 }
 0x16b   :  { %10301 = vpow2.f32 %v8794_v57  ;;  %v615_v55 = vld [vmem:[#allocation14] sm:$0xff] }
 0x16c   :  { %10303 = vpow2.f32 %v8795_v59  ;;  %v10557_v63 = vld [vmem:[#allocation17 + $0xe0] ss:$16 sps:$4 sm:$0xff]   ;;  %v13251_v59 = vmov 0  }
 0x176   :  { %v10300_v47 = vpop.eup %10299 }
 0x177   :  { %v1190_v2 = vadd.f32 1.0, %v10300_v47  ;;  %v10561_v47 = vld [vmem:[#allocation17 + $0xc0] ss:$16 sps:$4 sm:$0xff]  }
 0x178   :  { %v10302_v46 = vpop.eup %10301 }
 0x179   :  { %10305 = vrcp.f32 %v1190_v2  ;;  %v1191_v45 = vadd.f32 1.0, %v10302_v46  ;;  %v10304_v49 = vpop.eup %10303  ;;  %v10563_v2 = vld [vmem:[#allocation17 + $0xa4] ss:$16 sps:$4 sm:$0xff]   ;;  %v10564_v46 = vld [vmem:[#allocation17 + $0xac] ss:$16 sps:$4 sm:$0xff]  }
 0x17a   :  { %10307 = vtanh.f32 %v1180_v5  ;;  %v1192_v1 = vadd.f32 1.0, %v10304_v49  ;;  %v10562_v5 = vld [vmem:[#allocation17 + $0xc8] ss:$16 sps:$4 sm:$0xff]  }
 0x17b   :  { %10309 = vrcp.f32 %v1191_v45  ;;  %v10565_v45 = vld [vmem:[#allocation17 + $0xa0] ss:$16 sps:$4 sm:$0xff]   ;;  %v10566_v49 = vld [vmem:[#allocation17 + $0xa8] ss:$16 sps:$4 sm:$0xff]  }
 0x17c   :  { %10311 = vrcp.f32 %v1192_v1  ;;  %v10571_v1 = vld [vmem:[#allocation17 + $0x64] ss:$16 sps:$4 sm:$0xff]  }
 0x186   :  { %v10306_v54 = vpop.eup %10305 }
 0x187   :  { %v10308_v57 = vpop.eup %10307 }
 0x188   :  { %v10310_v50 = vpop.eup %10309  ;;  %v1201_v3 = vmul.f32 %v10308_v57, %v10306_v54  ;;  %v10567_v54 = vld [vmem:[#allocation17 + $0x84] ss:$16 sps:$4 sm:$0xff]   ;;  %v10569_v57 = vld [vmem:[#allocation17 + $0x80] ss:$16 sps:$4 sm:$0xff]  }
 0x189   :  { %v1200_v51 = vmul.f32 %v10310_v50, %v615_v55  ;;  %v10312_v62 = vpop.eup %10311  ;;  %v10568_v55 = vld [vmem:[#allocation17 + $0x8c] ss:$16 sps:$4 sm:$0xff]   ;;  %v10570_v50 = vld [vmem:[#allocation17 + $0x88] ss:$16 sps:$4 sm:$0xff]  }
 0x18b   :  { %v11449_v56 = vadd.f32 %v1201_v3, %v1200_v51  ;;  %v10572_v51 = vld [vmem:[#allocation17 + $0x6c] ss:$16 sps:$4 sm:$0xff]   ;;  %v10573_v3 = vld [vmem:[#allocation17 + $0x60] ss:$16 sps:$4 sm:$0xff]  }
 0x18d   :  { %10313 = vtanh.f32 %v11449_v56 }
 0x19a   :  { %v10314_v0 = vpop.eup %10313 }
 0x19b   :  { %v1204_v53 = vmul.f32 %v10314_v0, %v10312_v62  ;;  %v10574_v62 = vld [vmem:[#allocation17 + $0x68] ss:$16 sps:$4 sm:$0xff]   ;;  %v10575_v0 = vld [vmem:[#allocation17 + $0x44] ss:$16 sps:$4 sm:$0xff]  }
 0x19d   :  { %v11452_v52 = vpack.c.bf16 %v1204_v53, %v1204_v53  ;;  %v10576_v53 = vld [vmem:[#allocation17 + $0x4c] ss:$16 sps:$4 sm:$0xff]  }
 0x19f   :  { %1431 = vmatmul.mubr.bf16.vlgmr.msra.gmra.mxu0 %v11452_v52  ;;  %1472 = vmatmul.mubr.bf16.vlgmr.msra.gmra.mxu1 %v11452_v52 }
 0x1a0   :  { %1724 = vmatpush1.bf16.msra.mxu0 %v10557_v63  ;;  %1765 = vmatpush1.bf16.msra.mxu1 %v10558_v41  ;;  %v10577_v63 = vld [vmem:[#allocation17 + $0x40] ss:$16 sps:$4 sm:$0xff]   ;;  %v10578_v41 = vld [vmem:[#allocation17 + $0x48] ss:$16 sps:$4 sm:$0xff]  }
 0x1a1   :  { %1725 = vmatprep.subr.bf16.mxu0 %v10559_v39  ;;  %1766 = vmatprep.subr.bf16.mxu1 %v10560_v60  ;;  %v10579_v39 = vld [vmem:[#allocation17 + $0x24] ss:$16 sps:$4 sm:$0xff]   ;;  %v10580_v60 = vld [vmem:[#allocation17 + $0x2c] ss:$16 sps:$4 sm:$0xff]  }
 0x1a2   :  { %1755 = vmatprep.mubr.bf16.mxu0 %v13251_v59  ;;  %1796 = vmatprep.mubr.bf16.mxu1 %v13251_v59 }
 0x1a4   :  { %1726 = vmatpush1.bf16.msra.mxu0 %v10561_v47  ;;  %1767 = vmatpush1.bf16.msra.mxu1 %v10562_v5  ;;  %v10581_v47 = vld [vmem:[#allocation17 + $0x20] ss:$16 sps:$4 sm:$0xff]   ;;  %v10582_v5 = vld [vmem:[#allocation17 + $0x28] ss:$16 sps:$4 sm:$0xff]  }
 0x1a5   :  { %1727 = vmatprep.subr.bf16.mxu0 %v10563_v2  ;;  %1768 = vmatprep.subr.bf16.mxu1 %v10564_v46  ;;  %v10583_v2 = vld [vmem:[#allocation17 + $0x4] ss:$16 sps:$4 sm:$0xff]   ;;  %v10584_v46 = vld [vmem:[#allocation17 + $0xc] ss:$16 sps:$4 sm:$0xff]  }
 0x1a8   :  { %1728 = vmatpush1.bf16.msra.mxu0 %v10565_v45  ;;  %1769 = vmatpush1.bf16.msra.mxu1 %v10566_v49  ;;  %v10585_v45 = vld [vmem:[#allocation17] ss:$16 sps:$4 sm:$0xff]   ;;  %v10586_v49 = vld [vmem:[#allocation17 + $0x8] ss:$16 sps:$4 sm:$0xff]  }
 0x1a9   :  { %1729 = vmatprep.subr.bf16.mxu0 %v10567_v54  ;;  %1770 = vmatprep.subr.bf16.mxu1 %v10568_v55  ;;  %v1122_v54 = vpop.f32.mrf.mxu0 }
 0x1ab   :  { %v1124_v55 = vpop.f32.mrf.mxu0 }
 0x1ac   :  { %1730 = vmatpush1.bf16.msra.mxu0 %v10569_v57  ;;  %1771 = vmatpush1.bf16.msra.mxu1 %v10570_v50  ;;  %v1163_v50 = vpop.f32.mrf.mxu1 }
 0x1ad   :  { %1731 = vmatprep.subr.bf16.mxu0 %v10571_v1  ;;  %1772 = vmatprep.subr.bf16.mxu1 %v10572_v51  ;;  %v1126_v57 = vpop.f32.mrf.mxu0 }
 0x1ae   :  { %v13253_v57 = vld [vmem:[#allocation77_spill] sm:$0xff] }
 0x1b0   :  { %1732 = vmatpush1.bf16.msra.mxu0 %v10573_v3  ;;  %1773 = vmatpush1.bf16.msra.mxu1 %v10574_v62 }
 0x1b1   :  { %1733 = vmatprep.subr.bf16.mxu0 %v10575_v0  ;;  %1774 = vmatprep.subr.bf16.mxu1 %v10576_v53  ;;  %v13252_v0 = vld [vmem:[#allocation78_spill] sm:$0xff] }
 0x1b4   :  { %1734 = vmatpush1.bf16.msra.mxu0 %v10577_v63  ;;  %1775 = vmatpush1.bf16.msra.mxu1 %v10578_v41  ;;  %v619_v41 = vld [vmem:[#allocation14 + $0x8] sm:$0xff] }
 0x1b5   :  { %1735 = vmatprep.subr.bf16.mxu0 %v10579_v39  ;;  %1776 = vmatprep.subr.bf16.mxu1 %v10580_v60 }
 0x1b8   :  { %1736 = vmatpush1.bf16.msra.mxu0 %v10581_v47  ;;  %1777 = vmatpush1.bf16.msra.mxu1 %v10582_v5 }
 0x1b9   :  { %1737 = vmatprep.subr.bf16.mxu0 %v10583_v2  ;;  %1778 = vmatprep.subr.bf16.mxu1 %v10584_v46 }
 0x1bc   :  { %1738 = vmatpush1.bf16.msra.mxu0 %v10585_v45  ;;  %1779 = vmatpush1.bf16.msra.mxu1 %v10586_v49 }
 0x1bd   :  { %1998 = vmatprep.subr.bf16.mxu0 %v11151_v9  ;;  %2039 = vmatprep.subr.bf16.mxu1 %v11157_v11  ;;  %v1127_v9 = vpop.f32.mrf.mxu0  ;;  %v1165_v11 = vpop.f32.mrf.mxu1 }
 0x1bf   :  { %1756 = vmatmul.mubr.bf16.vlgmr.msra.gmra.mxu0 %v11452_v52  ;;  %1797 = vmatmul.mubr.bf16.vlgmr.msra.gmra.mxu1 %v11452_v52 }
 0x1c0   :  { %1999 = vmatpush1.bf16.msra.mxu0 %v11153_v10  ;;  %2040 = vmatpush1.bf16.msra.mxu1 %v11161_v13  ;;  %v1167_v10 = vpop.f32.mrf.mxu1 }
 0x1c1   :  { %2000 = vmatprep.subr.bf16.mxu0 %v11159_v12  ;;  %2041 = vmatprep.subr.bf16.mxu1 %v11169_v15  ;;  %v1480_v12 = vld [vmem:[%s12987_s8] sm:$0xf] }
 0x1c2   :  { %2030 = vmatprep.mubr.bf16.mxu0 %v13251_v59  ;;  %2071 = vmatprep.mubr.bf16.mxu1 %v13251_v59  ;;  %v1168_v13 = vpop.f32.mrf.mxu1 }
 0x1c4   :  { %2001 = vmatpush1.bf16.msra.mxu0 %v11163_v14  ;;  %2042 = vmatpush1.bf16.msra.mxu1 %v11173_v17  ;;  %v1485_v14 = vrot.slane %v1480_v12, %v11348_v7 }
 0x1c5   :  { %2002 = vmatprep.subr.bf16.mxu0 %v11171_v16  ;;  %2043 = vmatprep.subr.bf16.mxu1 %v11181_v19 }
 0x1c8   :  { %2003 = vmatpush1.bf16.msra.mxu0 %v11175_v18  ;;  %2044 = vmatpush1.bf16.msra.mxu1 %v11185_v21  ;;  %v1489_v18 = vrot.slane %v1480_v12, %v11362_v4 }
 0x1c9   :  { %2004 = vmatprep.subr.bf16.mxu0 %v11183_v20  ;;  %2045 = vmatprep.subr.bf16.mxu1 %v11193_v23 }
 0x1cc   :  { %2005 = vmatpush1.bf16.msra.mxu0 %v11187_v22  ;;  %2046 = vmatpush1.bf16.msra.mxu1 %v11197_v25 }
 0x1cd   :  { %2006 = vmatprep.subr.bf16.mxu0 %v11195_v24  ;;  %2047 = vmatprep.subr.bf16.mxu1 %v11205_v27 }
 0x1d0   :  { %2007 = vmatpush1.bf16.msra.mxu0 %v11199_v26  ;;  %2048 = vmatpush1.bf16.msra.mxu1 %v11209_v29 }
 0x1d1   :  { %2008 = vmatprep.subr.bf16.mxu0 %v11207_v28  ;;  %2049 = vmatprep.subr.bf16.mxu1 %v11217_v31  ;;  %v1493_v31 = vrot.slane %v1480_v12, %v11346_v6 }
 0x1d4   :  { %2009 = vmatpush1.bf16.msra.mxu0 %v11211_v30  ;;  %2050 = vmatpush1.bf16.msra.mxu1 %v11221_v33 }
 0x1d5   :  { %2010 = vmatprep.subr.bf16.mxu0 %v11219_v32  ;;  %2051 = vmatprep.subr.bf16.mxu1 %v11229_v35 }
 0x1d8   :  { %2011 = vmatpush1.bf16.msra.mxu0 %v11223_v34  ;;  %2052 = vmatpush1.bf16.msra.mxu1 %v11233_v37  ;;  %v1497_v34 = vrot.slane %v1480_v12, %v11350_v8 }
 0x1d9   :  { %2012 = vmatprep.subr.bf16.mxu0 %v11231_v36  ;;  %2053 = vmatprep.subr.bf16.mxu1 %v11241_v40 }
 0x1dc   :  { %2013 = vmatpush1.bf16.msra.mxu0 %v11235_v38  ;;  %2054 = vmatpush1.bf16.msra.mxu1 %v11243_v42 }
 0x1dd   :  { %2308 = vmatprep.subr.bf16.mxu0 %v11248_v43  ;;  %2349 = vmatprep.subr.bf16.mxu1 %v11250_v44 }
 0x25f   :  { %v1432_v15 = vpop.f32.mrf.mxu0  ;;  %v1473_v16 = vpop.f32.mrf.mxu1 }
 0x260   :  { %v1433_v17 = vadd.f32 %v1432_v15, %v1122_v54  ;;  %v1474_v30 = vadd.f32 %v1473_v16, %v1163_v50 }
 0x261   :  { %v1434_v19 = vpop.f32.mrf.mxu0  ;;  %v1475_v20 = vpop.f32.mrf.mxu1 }
 0x262   :  { %v1502_v21 = vadd.f32 %v1485_v14, %v1433_v17  ;;  %v1435_v22 = vadd.f32 %v1434_v19, %v1124_v55  ;;  %v1504_v32 = vadd.f32 %v1493_v31, %v1474_v30  ;;  %v1476_v33 = vadd.f32 %v1475_v20, %v1165_v11  ;;  %v13254_v11 = vld [vmem:[#allocation79_spill] sm:$0xff]  ;;  %v13256_v20 = vld [vmem:[#allocation45_spill] sm:$0xff]  ;;  %v13263_v31 = vld [vmem:[#allocation52_spill] sm:$0xff] }
 0x263   :  { %v1436_v23 = vpop.f32.mrf.mxu0  ;;  %v1477_v24 = vpop.f32.mrf.mxu1  ;;  %v13262_v30 = vld [vmem:[#allocation51_spill] sm:$0xff] }
 0x264   :  { %v8828_v25 = vmul.f32 -1.442695, %v1502_v21  ;;  %v1503_v26 = vadd.f32 %v1489_v18, %v1435_v22  ;;  %v8830_v35 = vmul.f32 -1.442695, %v1504_v32  ;;  %v1505_v37 = vadd.f32 %v1497_v34, %v1476_v33  ;;  %v13257_v21 = vld [vmem:[#allocation46_spill] sm:$0xff]  ;;  %v13258_v22 = vld [vmem:[#allocation47_spill] sm:$0xff] }
 0x265   :  { %v1437_v27 = vpop.f32.mrf.mxu0  ;;  %v1478_v28 = vpop.f32.mrf.mxu1  ;;  %v13259_v23 = vld [vmem:[#allocation48_spill] sm:$0xff] }
 0x266   :  { %10315 = vpow2.f32 %v8828_v25  ;;  %v8829_v29 = vmul.f32 -1.442695, %v1503_v26  ;;  %v13260_v27 = vld [vmem:[#allocation49_spill] sm:$0xff]  ;;  %v13261_v28 = vld [vmem:[#allocation50_spill] sm:$0xff] }
 0x268   :  { %10317 = vpow2.f32 %v8829_v29 }
 0x269   :  { %10319 = vpow2.f32 %v8830_v35  ;;  %v13264_v35 = vld [vmem:[#allocation53_spill] sm:$0xff] }
 0x273   :  { %v10316_v36 = vpop.eup %10315 }
 0x274   :  { %v1515_v38 = vadd.f32 1.0, %v10316_v36  ;;  %v13265_v36 = vld [vmem:[#allocation54_spill] sm:$0xff] }
 0x275   :  { %v10318_v40 = vpop.eup %10317 }
 0x276   :  { %10321 = vrcp.f32 %v1515_v38  ;;  %v1516_v42 = vadd.f32 1.0, %v10318_v40  ;;  %v10320_v3 = vpop.eup %10319  ;;  %v13266_v38 = vld [vmem:[#allocation55_spill] sm:$0xff]  ;;  %v13267_v40 = vld [vmem:[#allocation56_spill] sm:$0xff] }
 0x277   :  { %10323 = vtanh.f32 %v1505_v37  ;;  %v1517_v46 = vadd.f32 1.0, %v10320_v3  ;;  %v13275_v3 = vld [vmem:[#allocation64_spill] sm:$0xff] }
 0x278   :  { %10325 = vrcp.f32 %v1516_v42  ;;  %v13268_v42 = vld [vmem:[#allocation57_spill] sm:$0xff] }
 0x27f   :  { %v1757_v43 = vpop.f32.mrf.mxu0  ;;  %v1798_v44 = vpop.f32.mrf.mxu1 }
 0x280   :  { %v2087_v52 = vadd.f32 %v1757_v43, %v11373_v58  ;;  %v2089_v50 = vadd.f32 %v1798_v44, %v13253_v57  ;;  %v13269_v43 = vld [vmem:[#allocation58_spill] sm:$0xff]  ;;  %v13270_v44 = vld [vmem:[#allocation59_spill] sm:$0xff] }
 0x281   :  { %v1759_v1 = vpop.f32.mrf.mxu0  ;;  %v1800_v51 = vpop.f32.mrf.mxu1  ;;  %v11554_v57 = vld [vmem:[#allocation17 + $0xe0] ss:$16 sps:$4 sm:$0xff]  }
 0x282   :  { %v8895_v62 = vmul.f32 -1.442695, %v2087_v52  ;;  %v2088_v53 = vadd.f32 %v1759_v1, %v13252_v0  ;;  %v8897_v9 = vmul.f32 -1.442695, %v2089_v50  ;;  %v2090_v10 = vadd.f32 %v1800_v51, %v13254_v11  ;;  %v13272_v52 = vld [vmem:[#allocation60_spill] sm:$0xff]  ;;  %v13273_v1 = vld [vmem:[#allocation62_spill] sm:$0xff] }
 0x283   :  { %v10322_v63 = vpop.eup %10321  ;;  %v1761_v39 = vpop.f32.mrf.mxu0  ;;  %v13274_v51 = vld [vmem:[#allocation63_spill] sm:$0xff]  ;;  %v13277_v0 = vld [vmem:[#allocation66_spill] sm:$0xff] }
 0x284   :  { %v1802_v60 = vpop.f32.mrf.mxu1  ;;  %v10324_v47 = vpop.eup %10323  ;;  %10327 = vpow2.f32 %v8895_v62  ;;  %v8896_v5 = vmul.f32 -1.442695, %v2088_v53  ;;  %v13276_v62 = vld [vmem:[#allocation65_spill] sm:$0xff]  ;;  %v13278_v53 = vld [vmem:[#allocation67_spill] sm:$0xff]  ;;  %v11556_v50 = vld [vmem:[#allocation17 + $0xe8] ss:$16 sps:$4 sm:$0xff]  }
 0x285   :  { %v10326_v2 = vpop.eup %10325  ;;  %v1762_v45 = vpop.f32.mrf.mxu0  ;;  %v1526_v55 = vmul.f32 %v10324_v47, %v10322_v63  ;;  %v13279_v63 = vld [vmem:[#allocation68_spill] sm:$0xff]  ;;  %v13280_v60 = vld [vmem:[#allocation69_spill] sm:$0xff]  ;;  %v13281_v47 = vld [vmem:[#allocation70_spill] sm:$0xff]  ;;  %13308 = vst [vmem:[#allocation65_spill] sm:$0xff] %v11722_v48 }
 0x286   :  { %v1803_v49 = vpop.f32.mrf.mxu1  ;;  %v1525_v54 = vmul.f32 %v10326_v2, %v619_v41  ;;  %10329 = vpow2.f32 %v8896_v5  ;;  %v13282_v5 = vld [vmem:[#allocation71_spill] sm:$0xff]  ;;  %v13283_v2 = vld [vmem:[#allocation72_spill] sm:$0xff]  ;;  %13309 = vst [vmem:[#allocation66_spill] sm:$0xff] %v11728_v61 }
 0x287   :  { %10331 = vrcp.f32 %v1517_v46  ;;  %v11548_v45 = vld [vmem:[#allocation17 + $0xe4] ss:$16 sps:$4 sm:$0xff]   ;;  %v11550_v49 = vld [vmem:[#allocation17 + $0xec] ss:$16 sps:$4 sm:$0xff]  }
 0x288   :  { %v11505_v58 = vadd.f32 %v1526_v55, %v1525_v54  ;;  %v13284_v54 = vld [vmem:[#allocation73_spill] sm:$0xff]  ;;  %v13285_v55 = vld [vmem:[#allocation74_spill] sm:$0xff] }
 0x289   :  { %v11562_v11 = vld [vmem:[#allocation17 + $0xc4] ss:$16 sps:$4 sm:$0xff]  }
 0x28a   :  { %10333 = vtanh.f32 %v11505_v58 }
 0x28b   :  { %10335 = vpow2.f32 %v8897_v9 }
 0x28c   :  { %10337 = vtanh.f32 %v2090_v10  ;;  %v11564_v10 = vld [vmem:[#allocation17 + $0xcc] ss:$16 sps:$4 sm:$0xff]  }
 0x291   :  { %v10328_v13 = vpop.eup %10327 }
 0x292   :  { %v2100_v12 = vadd.f32 1.0, %v10328_v13  ;;  %v11570_v13 = vld [vmem:[#allocation17 + $0xc0] ss:$16 sps:$4 sm:$0xff]  }
 0x293   :  { %v10330_v14 = vpop.eup %10329 }
 0x294   :  { %10339 = vrcp.f32 %v2100_v12  ;;  %v2101_v15 = vadd.f32 1.0, %v10330_v14  ;;  %v10332_v16 = vpop.eup %10331  ;;  %v11572_v12 = vld [vmem:[#allocation17 + $0xc8] ss:$16 sps:$4 sm:$0xff]   ;;  %v11576_v14 = vld [vmem:[#allocation17 + $0xa4] ss:$16 sps:$4 sm:$0xff]  }
 0x296   :  { %10341 = vrcp.f32 %v2101_v15  ;;  %v11578_v15 = vld [vmem:[#allocation17 + $0xac] ss:$16 sps:$4 sm:$0xff]  }
 0x297   :  { %v10334_v17 = vpop.eup %10333 }
 0x298   :  { %v11510_v18 = vmul.f32 %v10334_v17, %v10332_v16  ;;  %v10336_v24 = vpop.eup %10335  ;;  %v11584_v16 = vld [vmem:[#allocation17 + $0xa0] ss:$16 sps:$4 sm:$0xff]   ;;  %v11586_v17 = vld [vmem:[#allocation17 + $0xa8] ss:$16 sps:$4 sm:$0xff]  }
 0x299   :  { %v10338_v25 = vpop.eup %10337  ;;  %v2102_v33 = vadd.f32 1.0, %v10336_v24  ;;  %v11604_v24 = vld [vmem:[#allocation17 + $0x6c] ss:$16 sps:$4 sm:$0xff]  }
 0x29a   :  { %13255 = vst [vmem:[#allocation78_spill] sm:$0xff] %v11510_v18  ;;  %v1805_v19 = vpack.c.bf16 %v11510_v18, %v11510_v18  ;;  %v11720_v18 = vld [vmem:[#allocation18 + $0x40] ss:$16 sps:$4 sm:$0xff]  }
 0x29b   :  { %10343 = vrcp.f32 %v2102_v33  ;;  %v11632_v33 = vld [vmem:[#allocation17 + $0x20] ss:$16 sps:$4 sm:$0xff]   ;;  %13307 = vst [vmem:[#allocation64_spill] sm:$0xff] %v11720_v18 }
 0x29c   :  { %2031 = vmatmul.mubr.bf16.vlgmr.msra.gmra.mxu0 %v1805_v19  ;;  %2072 = vmatmul.mubr.bf16.vlgmr.msra.gmra.mxu1 %v1805_v19  ;;  %v11590_v19 = vld [vmem:[#allocation17 + $0x84] ss:$16 sps:$4 sm:$0xff]  }
 0x29d   :  { %2309 = vmatpush1.bf16.msra.mxu0 %v13256_v20  ;;  %2350 = vmatpush1.bf16.msra.mxu1 %v13257_v21  ;;  %v11592_v20 = vld [vmem:[#allocation17 + $0x8c] ss:$16 sps:$4 sm:$0xff]   ;;  %v11596_v21 = vld [vmem:[#allocation17 + $0x80] ss:$16 sps:$4 sm:$0xff]  }
 0x29e   :  { %2310 = vmatprep.subr.bf16.mxu0 %v13258_v22  ;;  %2351 = vmatprep.subr.bf16.mxu1 %v13259_v23  ;;  %v11598_v22 = vld [vmem:[#allocation17 + $0x88] ss:$16 sps:$4 sm:$0xff]   ;;  %v11602_v23 = vld [vmem:[#allocation17 + $0x64] ss:$16 sps:$4 sm:$0xff]  }
 0x29f   :  { %2340 = vmatprep.mubr.bf16.mxu0 %v13251_v59  ;;  %2381 = vmatprep.mubr.bf16.mxu1 %v13251_v59 }
 0x2a1   :  { %v10340_v26 = vpop.eup %10339  ;;  %2311 = vmatpush1.bf16.msra.mxu0 %v13260_v27  ;;  %2352 = vmatpush1.bf16.msra.mxu1 %v13261_v28  ;;  %v11614_v27 = vld [vmem:[#allocation17 + $0x44] ss:$16 sps:$4 sm:$0xff]   ;;  %v11616_v28 = vld [vmem:[#allocation17 + $0x4c] ss:$16 sps:$4 sm:$0xff]  }
 0x2a2   :  { %v2111_v29 = vmul.f32 %v10340_v26, %v10338_v25  ;;  %2312 = vmatprep.subr.bf16.mxu0 %v13262_v30  ;;  %2353 = vmatprep.subr.bf16.mxu1 %v13263_v31  ;;  %v11608_v25 = vld [vmem:[#allocation17 + $0x60] ss:$16 sps:$4 sm:$0xff]   ;;  %v11610_v26 = vld [vmem:[#allocation17 + $0x68] ss:$16 sps:$4 sm:$0xff]   ;;  %v11626_v31 = vld [vmem:[#allocation17 + $0x24] ss:$16 sps:$4 sm:$0xff]  }
 0x2a3   :  { %v10342_v32 = vpop.eup %10341  ;;  %v11622_v30 = vld [vmem:[#allocation17 + $0x48] ss:$16 sps:$4 sm:$0xff]  }
 0x2a4   :  { %v2110_v34 = vmul.f32 %v10342_v32, %v11449_v56  ;;  %v13271_v56 = vld [vmem:[#allocation61_spill] sm:$0xff]  ;;  %v11628_v32 = vld [vmem:[#allocation17 + $0x2c] ss:$16 sps:$4 sm:$0xff]  }
 0x2a5   :  { %2313 = vmatpush1.bf16.msra.mxu0 %v13264_v35  ;;  %2354 = vmatpush1.bf16.msra.mxu1 %v13265_v36  ;;  %v11638_v35 = vld [vmem:[#allocation17 + $0x4] ss:$16 sps:$4 sm:$0xff]   ;;  %v11640_v36 = vld [vmem:[#allocation17 + $0xc] ss:$16 sps:$4 sm:$0xff]  }
 0x2a6   :  { %v11527_v37 = vadd.f32 %v2111_v29, %v2110_v34  ;;  %2314 = vmatprep.subr.bf16.mxu0 %v13266_v38  ;;  %2355 = vmatprep.subr.bf16.mxu1 %v13267_v40  ;;  %v11620_v29 = vld [vmem:[#allocation17 + $0x40] ss:$16 sps:$4 sm:$0xff]   ;;  %v11634_v34 = vld [vmem:[#allocation17 + $0x28] ss:$16 sps:$4 sm:$0xff]  }
 0x2a7   :  { %v11644_v38 = vld [vmem:[#allocation17] ss:$16 sps:$4 sm:$0xff]   ;;  %v11646_v40 = vld [vmem:[#allocation17 + $0x8] ss:$16 sps:$4 sm:$0xff]  }
 0x2a8   :  { %10345 = vtanh.f32 %v11527_v37  ;;  %v10344_v41 = vpop.eup %10343 }
 0x2a9   :  { %2315 = vmatpush1.bf16.msra.mxu0 %v13268_v42  ;;  %2356 = vmatpush1.bf16.msra.mxu1 %v13269_v43  ;;  %v11656_v42 = vld [vmem:[#allocation18 + $0xe4] ss:$16 sps:$4 sm:$0xff]   ;;  %v11658_v43 = vld [vmem:[#allocation18 + $0xec] ss:$16 sps:$4 sm:$0xff]  }
 0x2aa   :  { %2316 = vmatprep.subr.bf16.mxu0 %v13270_v44  ;;  %2357 = vmatprep.subr.bf16.mxu1 %v13271_v56  ;;  %13286 = vst [vmem:[#allocation77_spill] sm:$0xff] %v11658_v43  ;;  %v11660_v44 = vld [vmem:[#allocation18 + $0xe0] ss:$16 sps:$4 sm:$0xff]   ;;  %v11662_v56 = vld [vmem:[#allocation18 + $0xe8] ss:$16 sps:$4 sm:$0xff]  }
 0x2ab   :  { %13287 = vst [vmem:[#allocation79_spill] sm:$0xff] %v11660_v44  ;;  %13288 = vst [vmem:[#allocation45_spill] sm:$0xff] %v11662_v56 }
 0x2ad   :  { %2317 = vmatpush1.bf16.msra.mxu0 %v13272_v52  ;;  %2358 = vmatpush1.bf16.msra.mxu1 %v13273_v1  ;;  %v11668_v52 = vld [vmem:[#allocation18 + $0xc4] ss:$16 sps:$4 sm:$0xff]   ;;  %v11670_v1 = vld [vmem:[#allocation18 + $0xcc] ss:$16 sps:$4 sm:$0xff]  }
 0x2ae   :  { %2318 = vmatprep.subr.bf16.mxu0 %v13274_v51  ;;  %2359 = vmatprep.subr.bf16.mxu1 %v13275_v3  ;;  %13289 = vst [vmem:[#allocation46_spill] sm:$0xff] %v11668_v52  ;;  %13290 = vst [vmem:[#allocation47_spill] sm:$0xff] %v11670_v1  ;;  %v11672_v51 = vld [vmem:[#allocation18 + $0xc0] ss:$16 sps:$4 sm:$0xff]   ;;  %v11674_v3 = vld [vmem:[#allocation18 + $0xc8] ss:$16 sps:$4 sm:$0xff]  }
 0x2af   :  { %13291 = vst [vmem:[#allocation48_spill] sm:$0xff] %v11672_v51  ;;  %13292 = vst [vmem:[#allocation49_spill] sm:$0xff] %v11674_v3 }
 0x2b1   :  { %2319 = vmatpush1.bf16.msra.mxu0 %v13276_v62  ;;  %2360 = vmatpush1.bf16.msra.mxu1 %v13277_v0  ;;  %v11680_v62 = vld [vmem:[#allocation18 + $0xa4] ss:$16 sps:$4 sm:$0xff]   ;;  %v11682_v0 = vld [vmem:[#allocation18 + $0xac] ss:$16 sps:$4 sm:$0xff]  }
 0x2b2   :  { %2320 = vmatprep.subr.bf16.mxu0 %v13278_v53  ;;  %2361 = vmatprep.subr.bf16.mxu1 %v13279_v63  ;;  %13293 = vst [vmem:[#allocation50_spill] sm:$0xff] %v11680_v62  ;;  %13294 = vst [vmem:[#allocation51_spill] sm:$0xff] %v11682_v0  ;;  %v11684_v53 = vld [vmem:[#allocation18 + $0xa0] ss:$16 sps:$4 sm:$0xff]   ;;  %v11686_v63 = vld [vmem:[#allocation18 + $0xa8] ss:$16 sps:$4 sm:$0xff]  }
 0x2b3   :  { %13295 = vst [vmem:[#allocation52_spill] sm:$0xff] %v11684_v53  ;;  %13296 = vst [vmem:[#allocation53_spill] sm:$0xff] %v11686_v63 }
 0x2b5   :  { %v10346_v39 = vpop.eup %10345  ;;  %2321 = vmatpush1.bf16.msra.mxu0 %v13280_v60  ;;  %2362 = vmatpush1.bf16.msra.mxu1 %v13281_v47  ;;  %v11696_v60 = vld [vmem:[#allocation18 + $0x80] ss:$16 sps:$4 sm:$0xff]   ;;  %v11698_v47 = vld [vmem:[#allocation18 + $0x88] ss:$16 sps:$4 sm:$0xff]  }
 0x2b6   :  { %2322 = vmatprep.subr.bf16.mxu0 %v13282_v5  ;;  %2363 = vmatprep.subr.bf16.mxu1 %v13283_v2  ;;  %v2114_v46 = vmul.f32 %v10346_v39, %v10344_v41  ;;  %v11692_v41 = vld [vmem:[#allocation18 + $0x84] ss:$16 sps:$4 sm:$0xff]   ;;  %v11694_v39 = vld [vmem:[#allocation18 + $0x8c] ss:$16 sps:$4 sm:$0xff]   ;;  %13299 = vst [vmem:[#allocation56_spill] sm:$0xff] %v11696_v60  ;;  %13300 = vst [vmem:[#allocation57_spill] sm:$0xff] %v11698_v47 }
 0x2b7   :  { %13297 = vst [vmem:[#allocation54_spill] sm:$0xff] %v11692_v41  ;;  %13298 = vst [vmem:[#allocation55_spill] sm:$0xff] %v11694_v39  ;;  %v11704_v5 = vld [vmem:[#allocation18 + $0x64] ss:$16 sps:$4 sm:$0xff]   ;;  %v11706_v2 = vld [vmem:[#allocation18 + $0x6c] ss:$16 sps:$4 sm:$0xff]  }
 0x2b8   :  { %v11558_v9 = vpack.c.bf16 %v2114_v46, %v2114_v46  ;;  %13301 = vst [vmem:[#allocation58_spill] sm:$0xff] %v11704_v5  ;;  %13302 = vst [vmem:[#allocation59_spill] sm:$0xff] %v11706_v2  ;;  %v11708_v46 = vld [vmem:[#allocation18 + $0x60] ss:$16 sps:$4 sm:$0xff]  }
 0x2b9   :  { %2323 = vmatpush1.bf16.msra.mxu0 %v13284_v54  ;;  %2364 = vmatpush1.bf16.msra.mxu1 %v13285_v55  ;;  %13303 = vst [vmem:[#allocation61_spill] sm:$0xff] %v11708_v46  ;;  %v11710_v54 = vld [vmem:[#allocation18 + $0x68] ss:$16 sps:$4 sm:$0xff]   ;;  %v11716_v55 = vld [vmem:[#allocation18 + $0x44] ss:$16 sps:$4 sm:$0xff]  }
 0x2ba   :  { %2634 = vmatprep.subr.bf16.mxu0 %v11548_v45  ;;  %2675 = vmatprep.subr.bf16.mxu1 %v11550_v49  ;;  %13304 = vst [vmem:[#allocation60_spill] sm:$0xff] %v11710_v54  ;;  %13305 = vst [vmem:[#allocation62_spill] sm:$0xff] %v11716_v55 }
 0x2bc   :  { %2341 = vmatmul.mubr.bf16.vlgmr.msra.gmra.mxu0 %v11558_v9  ;;  %2382 = vmatmul.mubr.bf16.vlgmr.msra.gmra.mxu1 %v11558_v9 }
 0x2bd   :  { %2635 = vmatpush1.bf16.msra.mxu0 %v11554_v57  ;;  %2676 = vmatpush1.bf16.msra.mxu1 %v11556_v50 }
 0x2be   :  { %2636 = vmatprep.subr.bf16.mxu0 %v11562_v11  ;;  %2677 = vmatprep.subr.bf16.mxu1 %v11564_v10 }
 0x2bf   :  { %2666 = vmatprep.mubr.bf16.mxu0 %v13251_v59  ;;  %2707 = vmatprep.mubr.bf16.mxu1 %v13251_v59 }
 0x2c1   :  { %2637 = vmatpush1.bf16.msra.mxu0 %v11570_v13  ;;  %2678 = vmatpush1.bf16.msra.mxu1 %v11572_v12 }
 0x2c2   :  { %2638 = vmatprep.subr.bf16.mxu0 %v11576_v14  ;;  %2679 = vmatprep.subr.bf16.mxu1 %v11578_v15 }
 0x2c5   :  { %2639 = vmatpush1.bf16.msra.mxu0 %v11584_v16  ;;  %2680 = vmatpush1.bf16.msra.mxu1 %v11586_v17 }
 0x2c6   :  { %2640 = vmatprep.subr.bf16.mxu0 %v11590_v19  ;;  %2681 = vmatprep.subr.bf16.mxu1 %v11592_v20 }
 0x2c9   :  { %2641 = vmatpush1.bf16.msra.mxu0 %v11596_v21  ;;  %2682 = vmatpush1.bf16.msra.mxu1 %v11598_v22 }
 0x2ca   :  { %2642 = vmatprep.subr.bf16.mxu0 %v11602_v23  ;;  %2683 = vmatprep.subr.bf16.mxu1 %v11604_v24 }
 0x2cd   :  { %2643 = vmatpush1.bf16.msra.mxu0 %v11608_v25  ;;  %2684 = vmatpush1.bf16.msra.mxu1 %v11610_v26 }
 0x2ce   :  { %2644 = vmatprep.subr.bf16.mxu0 %v11614_v27  ;;  %2685 = vmatprep.subr.bf16.mxu1 %v11616_v28 }
 0x2d1   :  { %2645 = vmatpush1.bf16.msra.mxu0 %v11620_v29  ;;  %2686 = vmatpush1.bf16.msra.mxu1 %v11622_v30 }
 0x2d2   :  { %2646 = vmatprep.subr.bf16.mxu0 %v11626_v31  ;;  %2687 = vmatprep.subr.bf16.mxu1 %v11628_v32 }
 0x2d5   :  { %2647 = vmatpush1.bf16.msra.mxu0 %v11632_v33  ;;  %2688 = vmatpush1.bf16.msra.mxu1 %v11634_v34 }
 0x2d6   :  { %2648 = vmatprep.subr.bf16.mxu0 %v11638_v35  ;;  %2689 = vmatprep.subr.bf16.mxu1 %v11640_v36 }
 0x2d9   :  { %2649 = vmatpush1.bf16.msra.mxu0 %v11644_v38  ;;  %2690 = vmatpush1.bf16.msra.mxu1 %v11646_v40 }
 0x2da   :  { %2909 = vmatprep.subr.bf16.mxu0 %v11656_v42  ;;  %2950 = vmatprep.subr.bf16.mxu1 %v11658_v43 }
 0x2dc   :  { %2667 = vmatmul.mubr.bf16.vlgmr.msra.gmra.mxu0 %v11558_v9  ;;  %2708 = vmatmul.mubr.bf16.vlgmr.msra.gmra.mxu1 %v11558_v9  ;;  %v11718_v9 = vld [vmem:[#allocation18 + $0x4c] ss:$16 sps:$4 sm:$0xff]  }
 0x2dd   :  { %2941 = vmatprep.mubr.bf16.mxu0 %v13251_v59  ;;  %2982 = vmatprep.mubr.bf16.mxu1 %v13251_v59  ;;  %13306 = vst [vmem:[#allocation63_spill] sm:$0xff] %v11718_v9 }
 0x2de   :  { %2910 = vmatpush1.bf16.msra.mxu0 %v11660_v44  ;;  %2951 = vmatpush1.bf16.msra.mxu1 %v11662_v56 }
 0x2df   :  { %2911 = vmatprep.subr.bf16.mxu0 %v11668_v52  ;;  %2952 = vmatprep.subr.bf16.mxu1 %v11670_v1 }
 0x2e2   :  { %2912 = vmatpush1.bf16.msra.mxu0 %v11672_v51  ;;  %2953 = vmatpush1.bf16.msra.mxu1 %v11674_v3 }
 0x2e3   :  { %2913 = vmatprep.subr.bf16.mxu0 %v11680_v62  ;;  %2954 = vmatprep.subr.bf16.mxu1 %v11682_v0 }
 0x2e6   :  { %2914 = vmatpush1.bf16.msra.mxu0 %v11684_v53  ;;  %2955 = vmatpush1.bf16.msra.mxu1 %v11686_v63 }
 0x2e7   :  { %2915 = vmatprep.subr.bf16.mxu0 %v11692_v41  ;;  %2956 = vmatprep.subr.bf16.mxu1 %v11694_v39 }
 0x2ea   :  { %2916 = vmatpush1.bf16.msra.mxu0 %v11696_v60  ;;  %2957 = vmatpush1.bf16.msra.mxu1 %v11698_v47 }
 0x2eb   :  { %2917 = vmatprep.subr.bf16.mxu0 %v11704_v5  ;;  %2958 = vmatprep.subr.bf16.mxu1 %v11706_v2  ;;  %v11734_v2 = vld [vmem:[#allocation18 + $0x28] ss:$16 sps:$4 sm:$0xff]  }
 0x2ec   :  { %13312 = vst [vmem:[#allocation69_spill] sm:$0xff] %v11734_v2 }
 0x2ee   :  { %2918 = vmatpush1.bf16.msra.mxu0 %v11708_v46  ;;  %2959 = vmatpush1.bf16.msra.mxu1 %v11710_v54  ;;  %v11730_v46 = vld [vmem:[#allocation18 + $0x2c] ss:$16 sps:$4 sm:$0xff]   ;;  %v11732_v54 = vld [vmem:[#allocation18 + $0x20] ss:$16 sps:$4 sm:$0xff]  }
 0x2ef   :  { %2919 = vmatprep.subr.bf16.mxu0 %v11716_v55  ;;  %2960 = vmatprep.subr.bf16.mxu1 %v11718_v9  ;;  %13310 = vst [vmem:[#allocation67_spill] sm:$0xff] %v11730_v46  ;;  %13311 = vst [vmem:[#allocation68_spill] sm:$0xff] %v11732_v54  ;;  %v11740_v9 = vld [vmem:[#allocation18 + $0x4] ss:$16 sps:$4 sm:$0xff]   ;;  %v11746_v55 = vld [vmem:[#allocation18 + $0x8] ss:$16 sps:$4 sm:$0xff]  }
 0x2f0   :  { %13313 = vst [vmem:[#allocation70_spill] sm:$0xff] %v11740_v9  ;;  %13316 = vst [vmem:[#allocation73_spill] sm:$0xff] %v11746_v55 }
 0x2f2   :  { %2920 = vmatpush1.bf16.msra.mxu0 %v11720_v18  ;;  %2961 = vmatpush1.bf16.msra.mxu1 %v11722_v48  ;;  %v11742_v18 = vld [vmem:[#allocation18 + $0xc] ss:$16 sps:$4 sm:$0xff]   ;;  %v11744_v48 = vld [vmem:[#allocation18] ss:$16 sps:$4 sm:$0xff]  }
 0x2f3   :  { %2921 = vmatprep.subr.bf16.mxu0 %v11728_v61  ;;  %2962 = vmatprep.subr.bf16.mxu1 %v11730_v46  ;;  %13314 = vst [vmem:[#allocation71_spill] sm:$0xff] %v11742_v18  ;;  %13315 = vst [vmem:[#allocation72_spill] sm:$0xff] %v11744_v48  ;;  %v11752_v46 = vld [vmem:[#allocation20 + $0xe4] ss:$16 sps:$4 sm:$0xff]  }
 0x2f4   :  { %13317 = vst [vmem:[#allocation74_spill] sm:$0xff] %v11752_v46 }
 0x2f6   :  { %2922 = vmatpush1.bf16.msra.mxu0 %v11732_v54  ;;  %2963 = vmatpush1.bf16.msra.mxu1 %v11734_v2  ;;  %v11754_v54 = vld [vmem:[#allocation20 + $0xec] ss:$16 sps:$4 sm:$0xff]  }
 0x2f7   :  { %2923 = vmatprep.subr.bf16.mxu0 %v11740_v9  ;;  %2964 = vmatprep.subr.bf16.mxu1 %v11742_v18  ;;  %13318 = vst [vmem:[#allocation104_spill] sm:$0xff] %v11754_v54 }
 0x2fa   :  { %2924 = vmatpush1.bf16.msra.mxu0 %v11744_v48  ;;  %2965 = vmatpush1.bf16.msra.mxu1 %v11746_v55  ;;  %v2390_v55 = vld [vmem:[%s12987_s8] sm:$0xf] }
 0x2fb   :  { %3219 = vmatprep.subr.bf16.mxu0 %v11752_v46  ;;  %3260 = vmatprep.subr.bf16.mxu1 %v11754_v54  ;;  %v2395_v48 = vrot.slane %v2390_v55, %v11348_v7  ;;  %v2399_v46 = vrot.slane %v2390_v55, %v11362_v4  ;;  %v2403_v7 = vrot.slane %v2390_v55, %v11346_v6 }
 0x35c   :  { %v2032_v2 = vpop.f32.mrf.mxu0  ;;  %v2073_v61 = vpop.f32.mrf.mxu1 }
 0x35e   :  { %v2034_v5 = vpop.f32.mrf.mxu0  ;;  %v2075_v47 = vpop.f32.mrf.mxu1 }
 0x360   :  { %v2036_v60 = vpop.f32.mrf.mxu0  ;;  %v2077_v9 = vpop.f32.mrf.mxu1 }
 0x362   :  { %v2037_v39 = vpop.f32.mrf.mxu0  ;;  %v2078_v18 = vpop.f32.mrf.mxu1 }
 0x37c   :  { %v2342_v41 = vpop.f32.mrf.mxu0  ;;  %v2383_v63 = vpop.f32.mrf.mxu1 }
 0x37d   :  { %v2343_v53 = vadd.f32 %v2342_v41, %v2032_v2  ;;  %v2384_v56 = vadd.f32 %v2383_v63, %v2073_v61  ;;  %v2407_v2 = vrot.slane %v2390_v55, %v11350_v8 }
 0x37e   :  { %v2344_v54 = vpop.f32.mrf.mxu0  ;;  %v2385_v0 = vpop.f32.mrf.mxu1 }
 0x37f   :  { %v2412_v62 = vadd.f32 %v2395_v48, %v2343_v53  ;;  %v2345_v3 = vadd.f32 %v2344_v54, %v2034_v5  ;;  %v2414_v44 = vadd.f32 %v2403_v7, %v2384_v56  ;;  %v2386_v41 = vadd.f32 %v2385_v0, %v2075_v47  ;;  %v13320_v0 = vld [vmem:[#allocation82_spill] sm:$0xff] }
 0x380   :  { %v2346_v51 = vpop.f32.mrf.mxu0  ;;  %v2387_v60 = vpop.f32.mrf.mxu1 }
 0x381   :  { %v8930_v9 = vmul.f32 -1.442695, %v2412_v62  ;;  %v2413_v39 = vadd.f32 %v2399_v46, %v2345_v3  ;;  %v8932_v4 = vmul.f32 -1.442695, %v2414_v44  ;;  %v2415_v48 = vadd.f32 %v2407_v2, %v2386_v41 }
 0x382   :  { %v2347_v18 = vpop.f32.mrf.mxu0  ;;  %v2388_v1 = vpop.f32.mrf.mxu1 }
 0x383   :  { %10347 = vpow2.f32 %v8930_v9  ;;  %v8931_v52 = vmul.f32 -1.442695, %v2413_v39 }
 0x385   :  { %10349 = vpow2.f32 %v8931_v52  ;;  %v13319_v52 = vld [vmem:[#allocation80_spill] sm:$0xff] }
 0x386   :  { %10351 = vpow2.f32 %v8932_v4 }
 0x390   :  { %v10348_v43 = vpop.eup %10347 }
 0x391   :  { %v2425_v53 = vadd.f32 1.0, %v10348_v43 }
 0x392   :  { %v10350_v51 = vpop.eup %10349 }
 0x393   :  { %10353 = vrcp.f32 %v2425_v53  ;;  %v2426_v3 = vadd.f32 1.0, %v10350_v51  ;;  %v10352_v7 = vpop.eup %10351 }
 0x394   :  { %10355 = vtanh.f32 %v2415_v48  ;;  %v2427_v60 = vadd.f32 1.0, %v10352_v7  ;;  %v13321_v48 = vld [vmem:[#allocation81_spill] sm:$0xff] }
 0x395   :  { %10357 = vrcp.f32 %v2426_v3  ;;  %v13322_v3 = vld [vmem:[#allocation83_spill] sm:$0xff] }
 0x39c   :  { %v2668_v1 = vpop.f32.mrf.mxu0  ;;  %v2709_v62 = vpop.f32.mrf.mxu1 }
 0x39d   :  { %v2998_v61 = vadd.f32 %v2668_v1, %v13319_v52  ;;  %v3000_v53 = vadd.f32 %v2709_v62, %v13321_v48 }
 0x39e   :  { %v2670_v63 = vpop.f32.mrf.mxu0  ;;  %v2711_v5 = vpop.f32.mrf.mxu1 }
 0x39f   :  { %v8997_v56 = vmul.f32 -1.442695, %v2998_v61  ;;  %v2999_v47 = vadd.f32 %v2670_v63, %v13320_v0  ;;  %v8999_v51 = vmul.f32 -1.442695, %v3000_v53  ;;  %v3001_v1 = vadd.f32 %v2711_v5, %v13322_v3  ;;  %v11781_v5 = vld [vmem:[#allocation20 + $0xc4] ss:$16 sps:$4 sm:$0xff]  }
 0x3a0   :  { %v10354_v44 = vpop.eup %10353  ;;  %v2672_v46 = vpop.f32.mrf.mxu0  ;;  %v11807_v53 = vld [vmem:[#allocation20 + $0x84] ss:$16 sps:$4 sm:$0xff]  }
 0x3a1   :  { %v2713_v54 = vpop.f32.mrf.mxu1  ;;  %v10356_v43 = vpop.eup %10355  ;;  %10359 = vpow2.f32 %v8997_v56  ;;  %v8998_v4 = vmul.f32 -1.442695, %v2999_v47  ;;  %v11775_v47 = vld [vmem:[#allocation20 + $0xe0] ss:$16 sps:$4 sm:$0xff]   ;;  %v11783_v46 = vld [vmem:[#allocation20 + $0xcc] ss:$16 sps:$4 sm:$0xff]  }
 0x3a2   :  { %v10358_v55 = vpop.eup %10357  ;;  %v2673_v9 = vpop.f32.mrf.mxu0  ;;  %v2436_v41 = vmul.f32 %v10356_v43, %v10354_v44  ;;  %v11777_v44 = vld [vmem:[#allocation20 + $0xe8] ss:$16 sps:$4 sm:$0xff]   ;;  %v11787_v54 = vld [vmem:[#allocation20 + $0xc0] ss:$16 sps:$4 sm:$0xff]  }
 0x3a3   :  { %v2714_v39 = vpop.f32.mrf.mxu1  ;;  %v2435_v18 = vmul.f32 %v10358_v55, %v11505_v58  ;;  %10361 = vpow2.f32 %v8998_v4  ;;  %v11789_v43 = vld [vmem:[#allocation20 + $0xc8] ss:$16 sps:$4 sm:$0xff]   ;;  %v11793_v4 = vld [vmem:[#allocation20 + $0xa4] ss:$16 sps:$4 sm:$0xff]   ;;  %v11795_v55 = vld [vmem:[#allocation20 + $0xac] ss:$16 sps:$4 sm:$0xff]  }
 0x3a4   :  { %10363 = vrcp.f32 %v2427_v60 }
 0x3a5   :  { %v11768_v2 = vadd.f32 %v2436_v41, %v2435_v18  ;;  %v11801_v18 = vld [vmem:[#allocation20 + $0xa0] ss:$16 sps:$4 sm:$0xff]   ;;  %v11803_v41 = vld [vmem:[#allocation20 + $0xa8] ss:$16 sps:$4 sm:$0xff]  }
 0x3a7   :  { %10365 = vtanh.f32 %v11768_v2 }
 0x3a8   :  { %10367 = vpow2.f32 %v8999_v51  ;;  %v11809_v51 = vld [vmem:[#allocation20 + $0x8c] ss:$16 sps:$4 sm:$0xff]  }
 0x3a9   :  { %10369 = vtanh.f32 %v3001_v1 }
 0x3ae   :  { %v10360_v52 = vpop.eup %10359 }
 0x3af   :  { %v3011_v61 = vadd.f32 1.0, %v10360_v52 }
 0x3b0   :  { %v10362_v63 = vpop.eup %10361 }
 0x3b1   :  { %10371 = vrcp.f32 %v3011_v61  ;;  %v3012_v7 = vadd.f32 1.0, %v10362_v63  ;;  %v10364_v58 = vpop.eup %10363  ;;  %v11814_v61 = vld [vmem:[#allocation20 + $0x80] ss:$16 sps:$4 sm:$0xff]   ;;  %v11816_v63 = vld [vmem:[#allocation20 + $0x88] ss:$16 sps:$4 sm:$0xff]  }
 0x3b3   :  { %10373 = vrcp.f32 %v3012_v7 }
 0x3b4   :  { %v10366_v56 = vpop.eup %10365 }
 0x3b5   :  { %v11773_v0 = vmul.f32 %v10366_v56, %v10364_v58  ;;  %v10368_v60 = vpop.eup %10367  ;;  %v11822_v58 = vld [vmem:[#allocation20 + $0x64] ss:$16 sps:$4 sm:$0xff]   ;;  %v11824_v56 = vld [vmem:[#allocation20 + $0x6c] ss:$16 sps:$4 sm:$0xff]  }
 0x3b6   :  { %v10370_v9 = vpop.eup %10369  ;;  %v3013_v1 = vadd.f32 1.0, %v10368_v60  ;;  %v11835_v60 = vld [vmem:[#allocation20 + $0x44] ss:$16 sps:$4 sm:$0xff]  }
 0x3b7   :  { %13323 = vst [vmem:[#allocation80_spill] sm:$0xff] %v11773_v0  ;;  %v2716_v62 = vpack.c.bf16 %v11773_v0, %v11773_v0  ;;  %13326 = vst [vmem:[#allocation83_spill] sm:$0xff] %v11835_v60  ;;  %v11855_v0 = vld [vmem:[#allocation20 + $0x28] ss:$16 sps:$4 sm:$0xff]  }
 0x3b8   :  { %10375 = vrcp.f32 %v3013_v1  ;;  %v11849_v1 = vld [vmem:[#allocation20 + $0x2c] ss:$16 sps:$4 sm:$0xff]  }
 0x3b9   :  { %2942 = vmatmul.mubr.bf16.vlgmr.msra.gmra.mxu0 %v2716_v62  ;;  %2983 = vmatmul.mubr.bf16.vlgmr.msra.gmra.mxu1 %v2716_v62  ;;  %v11831_v62 = vld [vmem:[#allocation20 + $0x68] ss:$16 sps:$4 sm:$0xff]   ;;  %13331 = vst [vmem:[#allocation109_spill] sm:$0xff] %v11849_v1 }
 0x3ba   :  { %3220 = vmatpush1.bf16.msra.mxu0 %v11775_v47  ;;  %3261 = vmatpush1.bf16.msra.mxu1 %v11777_v44  ;;  %13325 = vst [vmem:[#allocation81_spill] sm:$0xff] %v11831_v62 }
 0x3bb   :  { %3221 = vmatprep.subr.bf16.mxu0 %v11781_v5  ;;  %3262 = vmatprep.subr.bf16.mxu1 %v11783_v46 }
 0x3bc   :  { %3251 = vmatprep.mubr.bf16.mxu0 %v13251_v59  ;;  %3292 = vmatprep.mubr.bf16.mxu1 %v13251_v59 }
 0x3be   :  { %v10372_v39 = vpop.eup %10371  ;;  %3222 = vmatpush1.bf16.msra.mxu0 %v11787_v54  ;;  %3263 = vmatpush1.bf16.msra.mxu1 %v11789_v43 }
 0x3bf   :  { %v3022_v48 = vmul.f32 %v10372_v39, %v10370_v9  ;;  %3223 = vmatprep.subr.bf16.mxu0 %v11793_v4  ;;  %3264 = vmatprep.subr.bf16.mxu1 %v11795_v55  ;;  %v11837_v9 = vld [vmem:[#allocation20 + $0x4c] ss:$16 sps:$4 sm:$0xff]   ;;  %v11841_v39 = vld [vmem:[#allocation20 + $0x40] ss:$16 sps:$4 sm:$0xff]  }
 0x3c0   :  { %v10374_v3 = vpop.eup %10373  ;;  %13327 = vst [vmem:[#allocation105_spill] sm:$0xff] %v11837_v9  ;;  %13328 = vst [vmem:[#allocation106_spill] sm:$0xff] %v11841_v39 }
 0x3c1   :  { %v3021_v52 = vmul.f32 %v10374_v3, %v11527_v37  ;;  %v11829_v37 = vld [vmem:[#allocation20 + $0x60] ss:$16 sps:$4 sm:$0xff]   ;;  %v11847_v3 = vld [vmem:[#allocation20 + $0x24] ss:$16 sps:$4 sm:$0xff]  }
 0x3c2   :  { %3224 = vmatpush1.bf16.msra.mxu0 %v11801_v18  ;;  %3265 = vmatpush1.bf16.msra.mxu1 %v11803_v41  ;;  %13324 = vst [vmem:[#allocation82_spill] sm:$0xff] %v11829_v37  ;;  %13330 = vst [vmem:[#allocation108_spill] sm:$0xff] %v11847_v3 }
 0x3c3   :  { %v11818_v7 = vadd.f32 %v3022_v48, %v3021_v52  ;;  %3225 = vmatprep.subr.bf16.mxu0 %v11807_v53  ;;  %3266 = vmatprep.subr.bf16.mxu1 %v11809_v51  ;;  %v11843_v48 = vld [vmem:[#allocation20 + $0x48] ss:$16 sps:$4 sm:$0xff]   ;;  %v11853_v52 = vld [vmem:[#allocation20 + $0x20] ss:$16 sps:$4 sm:$0xff]  }
 0x3c4   :  { %13329 = vst [vmem:[#allocation107_spill] sm:$0xff] %v11843_v48 }
 0x3c5   :  { %10377 = vtanh.f32 %v11818_v7 }
 0x3c6   :  { %3226 = vmatpush1.bf16.msra.mxu0 %v11814_v61  ;;  %3267 = vmatpush1.bf16.msra.mxu1 %v11816_v63 }
 0x3c7   :  { %3227 = vmatprep.subr.bf16.mxu0 %v11822_v58  ;;  %3268 = vmatprep.subr.bf16.mxu1 %v11824_v56 }
 0x3ca   :  { %3228 = vmatpush1.bf16.msra.mxu0 %v11829_v37  ;;  %3269 = vmatpush1.bf16.msra.mxu1 %v11831_v62  ;;  %v11859_v62 = vld [vmem:[#allocation20 + $0x4] ss:$16 sps:$4 sm:$0xff]  }
 0x3cb   :  { %3229 = vmatprep.subr.bf16.mxu0 %v11835_v60  ;;  %3270 = vmatprep.subr.bf16.mxu1 %v11837_v9  ;;  %v11861_v60 = vld [vmem:[#allocation20 + $0xc] ss:$16 sps:$4 sm:$0xff]   ;;  %v10376_v9 = vpop.eup %10375 }
 0x3ce   :  { %3230 = vmatpush1.bf16.msra.mxu0 %v11841_v39  ;;  %3271 = vmatpush1.bf16.msra.mxu1 %v11843_v48  ;;  %v11865_v39 = vld [vmem:[#allocation20] ss:$16 sps:$4 sm:$0xff]   ;;  %v11867_v48 = vld [vmem:[#allocation20 + $0x8] ss:$16 sps:$4 sm:$0xff]  }
 0x3cf   :  { %3231 = vmatprep.subr.bf16.mxu0 %v11847_v3  ;;  %3272 = vmatprep.subr.bf16.mxu1 %v11849_v1 }
 0x3d2   :  { %v10378_v37 = vpop.eup %10377  ;;  %3232 = vmatpush1.bf16.msra.mxu0 %v11853_v52  ;;  %3273 = vmatpush1.bf16.msra.mxu1 %v11855_v0 }
 0x3d3   :  { %3233 = vmatprep.subr.bf16.mxu0 %v11859_v62  ;;  %3274 = vmatprep.subr.bf16.mxu1 %v11861_v60  ;;  %v3025_v3 = vmul.f32 %v10378_v37, %v10376_v9 }
 0x3d5   :  { %v3026_v1 = vpack.c.bf16 %v3025_v3, %v3025_v3 }
 0x3d6   :  { %3234 = vmatpush1.bf16.msra.mxu0 %v11865_v39  ;;  %3275 = vmatpush1.bf16.msra.mxu1 %v11867_v48 }
 0x3d7   :  { %3545 = vmatprep.subr.bf16.mxu0 %v11548_v45  ;;  %3586 = vmatprep.subr.bf16.mxu1 %v11550_v49  ;;  %v13332_v45 = vld [vmem:[#allocation77_spill] sm:$0xff]  ;;  %v13333_v49 = vld [vmem:[#allocation79_spill] sm:$0xff] }
 0x3d9   :  { %3252 = vmatmul.mubr.bf16.vlgmr.msra.gmra.mxu0 %v3026_v1  ;;  %3293 = vmatmul.mubr.bf16.vlgmr.msra.gmra.mxu1 %v3026_v1 }
 0x3da   :  { %3546 = vmatpush1.bf16.msra.mxu0 %v11554_v57  ;;  %3587 = vmatpush1.bf16.msra.mxu1 %v11556_v50  ;;  %v13334_v57 = vld [vmem:[#allocation45_spill] sm:$0xff]  ;;  %v13335_v50 = vld [vmem:[#allocation46_spill] sm:$0xff] }
 0x3db   :  { %3547 = vmatprep.subr.bf16.mxu0 %v11562_v11  ;;  %3588 = vmatprep.subr.bf16.mxu1 %v11564_v10  ;;  %v13336_v11 = vld [vmem:[#allocation47_spill] sm:$0xff]  ;;  %v13337_v10 = vld [vmem:[#allocation48_spill] sm:$0xff] }
 0x3dc   :  { %3577 = vmatprep.mubr.bf16.mxu0 %v13251_v59  ;;  %3618 = vmatprep.mubr.bf16.mxu1 %v13251_v59 }
 0x3de   :  { %3548 = vmatpush1.bf16.msra.mxu0 %v11570_v13  ;;  %3589 = vmatpush1.bf16.msra.mxu1 %v11572_v12  ;;  %v13338_v13 = vld [vmem:[#allocation49_spill] sm:$0xff]  ;;  %v13339_v12 = vld [vmem:[#allocation50_spill] sm:$0xff] }
 0x3df   :  { %3549 = vmatprep.subr.bf16.mxu0 %v11576_v14  ;;  %3590 = vmatprep.subr.bf16.mxu1 %v11578_v15  ;;  %v13340_v14 = vld [vmem:[#allocation51_spill] sm:$0xff]  ;;  %v13341_v15 = vld [vmem:[#allocation52_spill] sm:$0xff] }
 0x3e2   :  { %3550 = vmatpush1.bf16.msra.mxu0 %v11584_v16  ;;  %3591 = vmatpush1.bf16.msra.mxu1 %v11586_v17  ;;  %v13342_v16 = vld [vmem:[#allocation53_spill] sm:$0xff]  ;;  %v13343_v17 = vld [vmem:[#allocation54_spill] sm:$0xff] }
 0x3e3   :  { %3551 = vmatprep.subr.bf16.mxu0 %v11590_v19  ;;  %3592 = vmatprep.subr.bf16.mxu1 %v11592_v20  ;;  %v13344_v19 = vld [vmem:[#allocation55_spill] sm:$0xff]  ;;  %v13345_v20 = vld [vmem:[#allocation56_spill] sm:$0xff] }
 0x3e6   :  { %3552 = vmatpush1.bf16.msra.mxu0 %v11596_v21  ;;  %3593 = vmatpush1.bf16.msra.mxu1 %v11598_v22  ;;  %v13346_v21 = vld [vmem:[#allocation57_spill] sm:$0xff]  ;;  %v13347_v22 = vld [vmem:[#allocation58_spill] sm:$0xff] }
 0x3e7   :  { %3553 = vmatprep.subr.bf16.mxu0 %v11602_v23  ;;  %3594 = vmatprep.subr.bf16.mxu1 %v11604_v24  ;;  %v13348_v23 = vld [vmem:[#allocation59_spill] sm:$0xff]  ;;  %v13349_v24 = vld [vmem:[#allocation61_spill] sm:$0xff] }
 0x3ea   :  { %3554 = vmatpush1.bf16.msra.mxu0 %v11608_v25  ;;  %3595 = vmatpush1.bf16.msra.mxu1 %v11610_v26  ;;  %v13350_v25 = vld [vmem:[#allocation60_spill] sm:$0xff]  ;;  %v13351_v26 = vld [vmem:[#allocation62_spill] sm:$0xff] }
 0x3eb   :  { %3555 = vmatprep.subr.bf16.mxu0 %v11614_v27  ;;  %3596 = vmatprep.subr.bf16.mxu1 %v11616_v28  ;;  %v13352_v27 = vld [vmem:[#allocation63_spill] sm:$0xff]  ;;  %v13353_v28 = vld [vmem:[#allocation64_spill] sm:$0xff] }
 0x3ee   :  { %3556 = vmatpush1.bf16.msra.mxu0 %v11620_v29  ;;  %3597 = vmatpush1.bf16.msra.mxu1 %v11622_v30  ;;  %v13354_v29 = vld [vmem:[#allocation65_spill] sm:$0xff]  ;;  %v13355_v30 = vld [vmem:[#allocation66_spill] sm:$0xff] }
 0x3ef   :  { %3557 = vmatprep.subr.bf16.mxu0 %v11626_v31  ;;  %3598 = vmatprep.subr.bf16.mxu1 %v11628_v32  ;;  %v13356_v31 = vld [vmem:[#allocation67_spill] sm:$0xff]  ;;  %v13357_v32 = vld [vmem:[#allocation68_spill] sm:$0xff] }
 0x3f2   :  { %3558 = vmatpush1.bf16.msra.mxu0 %v11632_v33  ;;  %3599 = vmatpush1.bf16.msra.mxu1 %v11634_v34  ;;  %v13358_v33 = vld [vmem:[#allocation69_spill] sm:$0xff]  ;;  %v13359_v34 = vld [vmem:[#allocation70_spill] sm:$0xff] }
 0x3f3   :  { %3559 = vmatprep.subr.bf16.mxu0 %v11638_v35  ;;  %3600 = vmatprep.subr.bf16.mxu1 %v11640_v36  ;;  %v13360_v35 = vld [vmem:[#allocation71_spill] sm:$0xff]  ;;  %v13361_v36 = vld [vmem:[#allocation72_spill] sm:$0xff] }
 0x3f6   :  { %3560 = vmatpush1.bf16.msra.mxu0 %v11644_v38  ;;  %3601 = vmatpush1.bf16.msra.mxu1 %v11646_v40  ;;  %v13362_v38 = vld [vmem:[#allocation73_spill] sm:$0xff]  ;;  %v13363_v40 = vld [vmem:[#allocation74_spill] sm:$0xff] }
 0x3f7   :  { %3820 = vmatprep.subr.bf16.mxu0 %v11656_v42  ;;  %3861 = vmatprep.subr.bf16.mxu1 %v13332_v45  ;;  %v13364_v42 = vld [vmem:[#allocation104_spill] sm:$0xff] }
 0x3f9   :  { %3578 = vmatmul.mubr.bf16.vlgmr.msra.gmra.mxu0 %v3026_v1  ;;  %3619 = vmatmul.mubr.bf16.vlgmr.msra.gmra.mxu1 %v3026_v1 }
 0x3fa   :  { %3821 = vmatpush1.bf16.msra.mxu0 %v13333_v49  ;;  %3862 = vmatpush1.bf16.msra.mxu1 %v13334_v57 }
 0x3fb   :  { %3822 = vmatprep.subr.bf16.mxu0 %v13335_v50  ;;  %3863 = vmatprep.subr.bf16.mxu1 %v13336_v11  ;;  %v3301_v11 = vld [vmem:[%s12987_s8] sm:$0xf] }
 0x3fc   :  { %3852 = vmatprep.mubr.bf16.mxu0 %v13251_v59  ;;  %3893 = vmatprep.mubr.bf16.mxu1 %v13251_v59 }
 0x3fe   :  { %3823 = vmatpush1.bf16.msra.mxu0 %v13337_v10  ;;  %3864 = vmatpush1.bf16.msra.mxu1 %v13338_v13  ;;  %v13365_v10 = vld [vmem:[#allocation75_spill] sm:$0xff] }
 0x3ff   :  { %3824 = vmatprep.subr.bf16.mxu0 %v13339_v12  ;;  %3865 = vmatprep.subr.bf16.mxu1 %v13340_v14  ;;  %v3306_v13 = vrot.slane %v3301_v11, %v13365_v10 }
 0x402   :  { %3825 = vmatpush1.bf16.msra.mxu0 %v13341_v15  ;;  %3866 = vmatpush1.bf16.msra.mxu1 %v13342_v16  ;;  %v13366_v16 = vld [vmem:[#allocation76_spill] sm:$0xff] }
 0x403   :  { %3826 = vmatprep.subr.bf16.mxu0 %v13343_v17  ;;  %3867 = vmatprep.subr.bf16.mxu1 %v13344_v19  ;;  %v3310_v17 = vrot.slane %v3301_v11, %v13366_v16 }
 0x406   :  { %3827 = vmatpush1.bf16.msra.mxu0 %v13345_v20  ;;  %3868 = vmatpush1.bf16.msra.mxu1 %v13346_v21 }
 0x407   :  { %3828 = vmatprep.subr.bf16.mxu0 %v13347_v22  ;;  %3869 = vmatprep.subr.bf16.mxu1 %v13348_v23 }
 0x40a   :  { %3829 = vmatpush1.bf16.msra.mxu0 %v13349_v24  ;;  %3870 = vmatpush1.bf16.msra.mxu1 %v13350_v25 }
 0x40b   :  { %3830 = vmatprep.subr.bf16.mxu0 %v13351_v26  ;;  %3871 = vmatprep.subr.bf16.mxu1 %v13352_v27 }
 0x40e   :  { %3831 = vmatpush1.bf16.msra.mxu0 %v13353_v28  ;;  %3872 = vmatpush1.bf16.msra.mxu1 %v13354_v29 }
 0x40f   :  { %3832 = vmatprep.subr.bf16.mxu0 %v13355_v30  ;;  %3873 = vmatprep.subr.bf16.mxu1 %v13356_v31  ;;  %v3314_v31 = vrot.slane %v3301_v11, %v11346_v6 }
 0x412   :  { %3833 = vmatpush1.bf16.msra.mxu0 %v13357_v32  ;;  %3874 = vmatpush1.bf16.msra.mxu1 %v13358_v33 }
 0x413   :  { %3834 = vmatprep.subr.bf16.mxu0 %v13359_v34  ;;  %3875 = vmatprep.subr.bf16.mxu1 %v13360_v35  ;;  %v3318_v34 = vrot.slane %v3301_v11, %v11350_v8 }
 0x416   :  { %3835 = vmatpush1.bf16.msra.mxu0 %v13361_v36  ;;  %3876 = vmatpush1.bf16.msra.mxu1 %v13362_v38 }
 0x417   :  { %4130 = vmatprep.subr.bf16.mxu0 %v13363_v40  ;;  %4171 = vmatprep.subr.bf16.mxu1 %v13364_v42 }
 0x479   :  { %v2943_v37 = vpop.f32.mrf.mxu0  ;;  %v2984_v9 = vpop.f32.mrf.mxu1 }
 0x47b   :  { %v2945_v3 = vpop.f32.mrf.mxu0  ;;  %v2986_v1 = vpop.f32.mrf.mxu1 }
 0x47d   :  { %v2947_v45 = vpop.f32.mrf.mxu0  ;;  %v2988_v49 = vpop.f32.mrf.mxu1 }
 0x47e   :  { %v13367_v49 = vld [vmem:[#allocation84_spill] sm:$0xff] }
 0x47f   :  { %v2948_v57 = vpop.f32.mrf.mxu0  ;;  %v2989_v50 = vpop.f32.mrf.mxu1 }
 0x499   :  { %v3253_v12 = vpop.f32.mrf.mxu0  ;;  %v3294_v14 = vpop.f32.mrf.mxu1 }
 0x49a   :  { %v3254_v15 = vadd.f32 %v3253_v12, %v2943_v37  ;;  %v3295_v30 = vadd.f32 %v3294_v14, %v2984_v9  ;;  %v13368_v12 = vld [vmem:[#allocation86_spill] sm:$0xff] }
 0x49b   :  { %v3255_v19 = vpop.f32.mrf.mxu0  ;;  %v3296_v20 = vpop.f32.mrf.mxu1 }
 0x49c   :  { %v3323_v21 = vadd.f32 %v3306_v13, %v3254_v15  ;;  %v3256_v22 = vadd.f32 %v3255_v19, %v2945_v3  ;;  %v3325_v32 = vadd.f32 %v3314_v31, %v3295_v30  ;;  %v3297_v33 = vadd.f32 %v3296_v20, %v2986_v1  ;;  %v13370_v31 = vld [vmem:[#allocation87_spill] sm:$0xff] }
 0x49d   :  { %v3257_v23 = vpop.f32.mrf.mxu0  ;;  %v3298_v24 = vpop.f32.mrf.mxu1 }
 0x49e   :  { %v9032_v25 = vmul.f32 -1.442695, %v3323_v21  ;;  %v3324_v26 = vadd.f32 %v3310_v17, %v3256_v22  ;;  %v9034_v35 = vmul.f32 -1.442695, %v3325_v32  ;;  %v3326_v38 = vadd.f32 %v3318_v34, %v3297_v33 }
 0x49f   :  { %v3258_v27 = vpop.f32.mrf.mxu0  ;;  %v3299_v28 = vpop.f32.mrf.mxu1 }
 0x4a0   :  { %10379 = vpow2.f32 %v9032_v25  ;;  %v9033_v29 = vmul.f32 -1.442695, %v3324_v26  ;;  %v13369_v28 = vld [vmem:[#allocation85_spill] sm:$0xff] }
 0x4a2   :  { %10381 = vpow2.f32 %v9033_v29 }
 0x4a3   :  { %10383 = vpow2.f32 %v9034_v35 }
 0x4ad   :  { %v10380_v36 = vpop.eup %10379 }
 0x4ae   :  { %v3336_v40 = vadd.f32 1.0, %v10380_v36 }
 0x4af   :  { %v10382_v42 = vpop.eup %10381 }
 0x4b0   :  { %10385 = vrcp.f32 %v3336_v40  ;;  %v3337_v37 = vadd.f32 1.0, %v10382_v42  ;;  %v10384_v13 = vpop.eup %10383 }
 0x4b1   :  { %10387 = vtanh.f32 %v3326_v38  ;;  %v3338_v22 = vadd.f32 1.0, %v10384_v13  ;;  %v12032_v13 = vld [vmem:[#allocation17 + $0xa0] ss:$16 sps:$4 sm:$0xff]  }
 0x4b2   :  { %10389 = vrcp.f32 %v3337_v37 }
 0x4b9   :  { %v3579_v3 = vpop.f32.mrf.mxu0  ;;  %v3620_v45 = vpop.f32.mrf.mxu1 }
 0x4ba   :  { %v3909_v9 = vadd.f32 %v3579_v3, %v13367_v49  ;;  %v3911_v29 = vadd.f32 %v3620_v45, %v13369_v28  ;;  %v12076_v28 = vld [vmem:[#allocation17 + $0x2c] ss:$16 sps:$4 sm:$0xff]  }
 0x4bb   :  { %v3581_v57 = vpop.f32.mrf.mxu0  ;;  %v3622_v50 = vpop.f32.mrf.mxu1 }
 0x4bc   :  { %v9099_v1 = vmul.f32 -1.442695, %v3909_v9  ;;  %v3910_v11 = vadd.f32 %v3581_v57, %v13368_v12  ;;  %v9101_v30 = vmul.f32 -1.442695, %v3911_v29  ;;  %v3912_v32 = vadd.f32 %v3622_v50, %v13370_v31  ;;  %v12004_v57 = vld [vmem:[#allocation17 + $0xe0] ss:$16 sps:$4 sm:$0xff]  }
 0x4bd   :  { %v10386_v14 = vpop.eup %10385  ;;  %v3583_v15 = vpop.f32.mrf.mxu0  ;;  %v12026_v50 = vld [vmem:[#allocation17 + $0xac] ss:$16 sps:$4 sm:$0xff]   ;;  %v12038_v12 = vld [vmem:[#allocation17 + $0x84] ss:$16 sps:$4 sm:$0xff]   ;;  %v12080_v29 = vld [vmem:[#allocation17 + $0x20] ss:$16 sps:$4 sm:$0xff]  }
 0x4be   :  { %v3624_v17 = vpop.f32.mrf.mxu1  ;;  %v10388_v19 = vpop.eup %10387  ;;  %10391 = vpow2.f32 %v9099_v1  ;;  %v9100_v20 = vmul.f32 -1.442695, %v3910_v11  ;;  %v12034_v1 = vld [vmem:[#allocation17 + $0xa8] ss:$16 sps:$4 sm:$0xff]   ;;  %v12040_v11 = vld [vmem:[#allocation17 + $0x8c] ss:$16 sps:$4 sm:$0xff]  }
 0x4bf   :  { %v10390_v21 = vpop.eup %10389  ;;  %v3584_v23 = vpop.f32.mrf.mxu0  ;;  %v3347_v26 = vmul.f32 %v10388_v19, %v10386_v14  ;;  %v12044_v14 = vld [vmem:[#allocation17 + $0x80] ss:$16 sps:$4 sm:$0xff]   ;;  %v12046_v15 = vld [vmem:[#allocation17 + $0x88] ss:$16 sps:$4 sm:$0xff]   ;;  %v12050_v17 = vld [vmem:[#allocation17 + $0x64] ss:$16 sps:$4 sm:$0xff]  }
 0x4c0   :  { %v3625_v24 = vpop.f32.mrf.mxu1  ;;  %v3346_v25 = vmul.f32 %v10390_v21, %v11768_v2  ;;  %10393 = vpow2.f32 %v9100_v20  ;;  %v12052_v19 = vld [vmem:[#allocation17 + $0x6c] ss:$16 sps:$4 sm:$0xff]   ;;  %v12056_v20 = vld [vmem:[#allocation17 + $0x60] ss:$16 sps:$4 sm:$0xff]   ;;  %v12058_v21 = vld [vmem:[#allocation17 + $0x68] ss:$16 sps:$4 sm:$0xff]  }
 0x4c1   :  { %10395 = vrcp.f32 %v3338_v22  ;;  %v12062_v22 = vld [vmem:[#allocation17 + $0x44] ss:$16 sps:$4 sm:$0xff]   ;;  %v12064_v23 = vld [vmem:[#allocation17 + $0x4c] ss:$16 sps:$4 sm:$0xff]   ;;  %v12068_v24 = vld [vmem:[#allocation17 + $0x40] ss:$16 sps:$4 sm:$0xff]  }
 0x4c2   :  { %v11953_v27 = vadd.f32 %v3347_v26, %v3346_v25  ;;  %v12070_v25 = vld [vmem:[#allocation17 + $0x48] ss:$16 sps:$4 sm:$0xff]   ;;  %v12074_v26 = vld [vmem:[#allocation17 + $0x24] ss:$16 sps:$4 sm:$0xff]  }
 0x4c3   :  { %v12086_v31 = vld [vmem:[#allocation17 + $0x4] ss:$16 sps:$4 sm:$0xff]  }
 0x4c4   :  { %10397 = vtanh.f32 %v11953_v27 }
 0x4c5   :  { %10399 = vpow2.f32 %v9101_v30  ;;  %v12082_v30 = vld [vmem:[#allocation17 + $0x28] ss:$16 sps:$4 sm:$0xff]  }
 0x4c6   :  { %10401 = vtanh.f32 %v3912_v32  ;;  %v12088_v32 = vld [vmem:[#allocation17 + $0xc] ss:$16 sps:$4 sm:$0xff]  }
 0x4cb   :  { %v10392_v33 = vpop.eup %10391 }
 0x4cc   :  { %v3922_v34 = vadd.f32 1.0, %v10392_v33  ;;  %v12092_v33 = vld [vmem:[#allocation17] ss:$16 sps:$4 sm:$0xff]  }
 0x4cd   :  { %v10394_v35 = vpop.eup %10393 }
 0x4ce   :  { %10403 = vrcp.f32 %v3922_v34  ;;  %v3923_v36 = vadd.f32 1.0, %v10394_v35  ;;  %v10396_v2 = vpop.eup %10395  ;;  %v12094_v34 = vld [vmem:[#allocation17 + $0x8] ss:$16 sps:$4 sm:$0xff]   ;;  %v12104_v35 = vld [vmem:[#allocation18 + $0xe4] ss:$16 sps:$4 sm:$0xff]  }
 0x4d0   :  { %10405 = vrcp.f32 %v3923_v36  ;;  %v12106_v36 = vld [vmem:[#allocation18 + $0xec] ss:$16 sps:$4 sm:$0xff]  }
 0x4d1   :  { %v10398_v38 = vpop.eup %10397  ;;  %13380 = vst [vmem:[#allocation79_spill] sm:$0xff] %v12106_v36 }
 0x4d2   :  { %v11958_v40 = vmul.f32 %v10398_v38, %v10396_v2  ;;  %v10400_v37 = vpop.eup %10399  ;;  %v12108_v2 = vld [vmem:[#allocation18 + $0xe0] ss:$16 sps:$4 sm:$0xff]   ;;  %v12110_v38 = vld [vmem:[#allocation18 + $0xe8] ss:$16 sps:$4 sm:$0xff]  }
 0x4d3   :  { %v10402_v3 = vpop.eup %10401  ;;  %13381 = vst [vmem:[#allocation45_spill] sm:$0xff] %v12108_v2  ;;  %13382 = vst [vmem:[#allocation46_spill] sm:$0xff] %v12110_v38 }
 0x4d4   :  { %13371 = vst [vmem:[#allocation77_spill] sm:$0xff] %v11958_v40  ;;  %v3627_v42 = vpack.c.bf16 %v11958_v40, %v11958_v40  ;;  %v12176_v40 = vld [vmem:[#allocation18 + $0x24] ss:$16 sps:$4 sm:$0xff]  }
 0x4d5   :  { %13403 = vst [vmem:[#allocation67_spill] sm:$0xff] %v12176_v40 }
 0x4d6   :  { %3853 = vmatmul.mubr.bf16.vlgmr.msra.gmra.mxu0 %v3627_v42  ;;  %3894 = vmatmul.mubr.bf16.vlgmr.msra.gmra.mxu1 %v3627_v42  ;;  %v12116_v42 = vld [vmem:[#allocation18 + $0xc4] ss:$16 sps:$4 sm:$0xff]  }
 0x4d7   :  { %4131 = vmatpush1.bf16.msra.mxu0 %v11775_v47  ;;  %4172 = vmatpush1.bf16.msra.mxu1 %v11777_v44  ;;  %v3924_v44 = vadd.f32 1.0, %v10400_v37  ;;  %13383 = vst [vmem:[#allocation47_spill] sm:$0xff] %v12116_v42  ;;  %v12118_v37 = vld [vmem:[#allocation18 + $0xcc] ss:$16 sps:$4 sm:$0xff]  }
 0x4d8   :  { %4132 = vmatprep.subr.bf16.mxu0 %v11781_v5  ;;  %4173 = vmatprep.subr.bf16.mxu1 %v11783_v46  ;;  %13384 = vst [vmem:[#allocation48_spill] sm:$0xff] %v12118_v37 }
 0x4d9   :  { %4162 = vmatprep.mubr.bf16.mxu0 %v13251_v59  ;;  %4203 = vmatprep.mubr.bf16.mxu1 %v13251_v59  ;;  %10407 = vrcp.f32 %v3924_v44  ;;  %v12132_v44 = vld [vmem:[#allocation18 + $0xa0] ss:$16 sps:$4 sm:$0xff]  }
 0x4da   :  { %13389 = vst [vmem:[#allocation53_spill] sm:$0xff] %v12132_v44 }
 0x4db   :  { %v10404_v45 = vpop.eup %10403  ;;  %4133 = vmatpush1.bf16.msra.mxu0 %v11787_v54  ;;  %4174 = vmatpush1.bf16.msra.mxu1 %v11789_v43  ;;  %v13372_v54 = vld [vmem:[#allocation82_spill] sm:$0xff]  ;;  %v13373_v43 = vld [vmem:[#allocation81_spill] sm:$0xff] }
 0x4dc   :  { %v3933_v49 = vmul.f32 %v10404_v45, %v10402_v3  ;;  %4134 = vmatprep.subr.bf16.mxu0 %v11793_v4  ;;  %4175 = vmatprep.subr.bf16.mxu1 %v11795_v55  ;;  %v13374_v4 = vld [vmem:[#allocation83_spill] sm:$0xff]  ;;  %v13375_v55 = vld [vmem:[#allocation105_spill] sm:$0xff]  ;;  %v12122_v45 = vld [vmem:[#allocation18 + $0xc8] ss:$16 sps:$4 sm:$0xff]  }
 0x4dd   :  { %v10406_v47 = vpop.eup %10405  ;;  %v12120_v3 = vld [vmem:[#allocation18 + $0xc0] ss:$16 sps:$4 sm:$0xff]   ;;  %13386 = vst [vmem:[#allocation50_spill] sm:$0xff] %v12122_v45 }
 0x4de   :  { %v3932_v5 = vmul.f32 %v10406_v47, %v11818_v7  ;;  %13385 = vst [vmem:[#allocation49_spill] sm:$0xff] %v12120_v3  ;;  %v12130_v47 = vld [vmem:[#allocation18 + $0xac] ss:$16 sps:$4 sm:$0xff]  }
 0x4df   :  { %4135 = vmatpush1.bf16.msra.mxu0 %v11801_v18  ;;  %4176 = vmatpush1.bf16.msra.mxu1 %v11803_v41  ;;  %v13376_v18 = vld [vmem:[#allocation106_spill] sm:$0xff]  ;;  %v13377_v41 = vld [vmem:[#allocation107_spill] sm:$0xff]  ;;  %13388 = vst [vmem:[#allocation52_spill] sm:$0xff] %v12130_v47 }
 0x4e0   :  { %v11975_v46 = vadd.f32 %v3933_v49, %v3932_v5  ;;  %4136 = vmatprep.subr.bf16.mxu0 %v11807_v53  ;;  %4177 = vmatprep.subr.bf16.mxu1 %v11809_v51  ;;  %v13378_v53 = vld [vmem:[#allocation108_spill] sm:$0xff]  ;;  %v13379_v51 = vld [vmem:[#allocation109_spill] sm:$0xff] }
 0x4e1   :  { %v12128_v49 = vld [vmem:[#allocation18 + $0xa4] ss:$16 sps:$4 sm:$0xff]   ;;  %v12134_v5 = vld [vmem:[#allocation18 + $0xa8] ss:$16 sps:$4 sm:$0xff]  }
 0x4e2   :  { %10409 = vtanh.f32 %v11975_v46  ;;  %13387 = vst [vmem:[#allocation51_spill] sm:$0xff] %v12128_v49  ;;  %13390 = vst [vmem:[#allocation54_spill] sm:$0xff] %v12134_v5 }
 0x4e3   :  { %4137 = vmatpush1.bf16.msra.mxu0 %v11814_v61  ;;  %4178 = vmatpush1.bf16.msra.mxu1 %v11816_v63 }
 0x4e4   :  { %4138 = vmatprep.subr.bf16.mxu0 %v11822_v58  ;;  %4179 = vmatprep.subr.bf16.mxu1 %v11824_v56  ;;  %v11996_v58 = vld [vmem:[#allocation17 + $0xe4] ss:$16 sps:$4 sm:$0xff]   ;;  %v11998_v56 = vld [vmem:[#allocation17 + $0xec] ss:$16 sps:$4 sm:$0xff]  }
 0x4e6   :  { %v10408_v61 = vpop.eup %10407 }
 0x4e7   :  { %4139 = vmatpush1.bf16.msra.mxu0 %v13372_v54  ;;  %4180 = vmatpush1.bf16.msra.mxu1 %v13373_v43  ;;  %v12140_v54 = vld [vmem:[#allocation18 + $0x84] ss:$16 sps:$4 sm:$0xff]   ;;  %v12142_v43 = vld [vmem:[#allocation18 + $0x8c] ss:$16 sps:$4 sm:$0xff]  }
 0x4e8   :  { %4140 = vmatprep.subr.bf16.mxu0 %v13374_v4  ;;  %4181 = vmatprep.subr.bf16.mxu1 %v13375_v55  ;;  %13391 = vst [vmem:[#allocation55_spill] sm:$0xff] %v12140_v54  ;;  %13392 = vst [vmem:[#allocation56_spill] sm:$0xff] %v12142_v43  ;;  %v12144_v4 = vld [vmem:[#allocation18 + $0x80] ss:$16 sps:$4 sm:$0xff]   ;;  %v12146_v55 = vld [vmem:[#allocation18 + $0x88] ss:$16 sps:$4 sm:$0xff]  }
 0x4e9   :  { %13393 = vst [vmem:[#allocation57_spill] sm:$0xff] %v12144_v4  ;;  %13394 = vst [vmem:[#allocation58_spill] sm:$0xff] %v12146_v55 }
 0x4eb   :  { %4141 = vmatpush1.bf16.msra.mxu0 %v13376_v18  ;;  %4182 = vmatpush1.bf16.msra.mxu1 %v13377_v41  ;;  %v12152_v18 = vld [vmem:[#allocation18 + $0x64] ss:$16 sps:$4 sm:$0xff]   ;;  %v12154_v41 = vld [vmem:[#allocation18 + $0x6c] ss:$16 sps:$4 sm:$0xff]  }
 0x4ec   :  { %4142 = vmatprep.subr.bf16.mxu0 %v13378_v53  ;;  %4183 = vmatprep.subr.bf16.mxu1 %v13379_v51  ;;  %13395 = vst [vmem:[#allocation59_spill] sm:$0xff] %v12152_v18  ;;  %13396 = vst [vmem:[#allocation61_spill] sm:$0xff] %v12154_v41  ;;  %v12156_v53 = vld [vmem:[#allocation18 + $0x60] ss:$16 sps:$4 sm:$0xff]   ;;  %v12158_v51 = vld [vmem:[#allocation18 + $0x68] ss:$16 sps:$4 sm:$0xff]  }
 0x4ed   :  { %13397 = vst [vmem:[#allocation60_spill] sm:$0xff] %v12156_v53  ;;  %13398 = vst [vmem:[#allocation62_spill] sm:$0xff] %v12158_v51 }
 0x4ef   :  { %v10410_v63 = vpop.eup %10409  ;;  %4143 = vmatpush1.bf16.msra.mxu0 %v11853_v52  ;;  %4184 = vmatpush1.bf16.msra.mxu1 %v11855_v0  ;;  %v12006_v52 = vld [vmem:[#allocation17 + $0xe8] ss:$16 sps:$4 sm:$0xff]   ;;  %v12010_v0 = vld [vmem:[#allocation17 + $0xc4] ss:$16 sps:$4 sm:$0xff]  }
 0x4f0   :  { %4144 = vmatprep.subr.bf16.mxu0 %v11859_v62  ;;  %4185 = vmatprep.subr.bf16.mxu1 %v11861_v60  ;;  %v3936_v7 = vmul.f32 %v10410_v63, %v10408_v61  ;;  %v12012_v62 = vld [vmem:[#allocation17 + $0xcc] ss:$16 sps:$4 sm:$0xff]   ;;  %v12018_v60 = vld [vmem:[#allocation17 + $0xc0] ss:$16 sps:$4 sm:$0xff]   ;;  %v12164_v61 = vld [vmem:[#allocation18 + $0x44] ss:$16 sps:$4 sm:$0xff]  }
 0x4f1   :  { %13399 = vst [vmem:[#allocation63_spill] sm:$0xff] %v12164_v61  ;;  %v12166_v63 = vld [vmem:[#allocation18 + $0x4c] ss:$16 sps:$4 sm:$0xff]  }
 0x4f2   :  { %v12000_v9 = vpack.c.bf16 %v3936_v7, %v3936_v7  ;;  %13400 = vst [vmem:[#allocation64_spill] sm:$0xff] %v12166_v63  ;;  %v12168_v7 = vld [vmem:[#allocation18 + $0x40] ss:$16 sps:$4 sm:$0xff]  }
 0x4f3   :  { %4145 = vmatpush1.bf16.msra.mxu0 %v11865_v39  ;;  %4186 = vmatpush1.bf16.msra.mxu1 %v11867_v48  ;;  %v12020_v39 = vld [vmem:[#allocation17 + $0xc8] ss:$16 sps:$4 sm:$0xff]   ;;  %v12024_v48 = vld [vmem:[#allocation17 + $0xa4] ss:$16 sps:$4 sm:$0xff]   ;;  %13401 = vst [vmem:[#allocation65_spill] sm:$0xff] %v12168_v7 }
 0x4f4   :  { %4456 = vmatprep.subr.bf16.mxu0 %v11996_v58  ;;  %4497 = vmatprep.subr.bf16.mxu1 %v11998_v56 }
 0x4f6   :  { %4163 = vmatmul.mubr.bf16.vlgmr.msra.gmra.mxu0 %v12000_v9  ;;  %4204 = vmatmul.mubr.bf16.vlgmr.msra.gmra.mxu1 %v12000_v9 }
 0x4f7   :  { %4457 = vmatpush1.bf16.msra.mxu0 %v12004_v57  ;;  %4498 = vmatpush1.bf16.msra.mxu1 %v12006_v52 }
 0x4f8   :  { %4458 = vmatprep.subr.bf16.mxu0 %v12010_v0  ;;  %4499 = vmatprep.subr.bf16.mxu1 %v12012_v62 }
 0x4f9   :  { %4488 = vmatprep.mubr.bf16.mxu0 %v13251_v59  ;;  %4529 = vmatprep.mubr.bf16.mxu1 %v13251_v59 }
 0x4fb   :  { %4459 = vmatpush1.bf16.msra.mxu0 %v12018_v60  ;;  %4500 = vmatpush1.bf16.msra.mxu1 %v12020_v39 }
 0x4fc   :  { %4460 = vmatprep.subr.bf16.mxu0 %v12024_v48  ;;  %4501 = vmatprep.subr.bf16.mxu1 %v12026_v50 }
 0x4ff   :  { %4461 = vmatpush1.bf16.msra.mxu0 %v12032_v13  ;;  %4502 = vmatpush1.bf16.msra.mxu1 %v12034_v1 }
 0x500   :  { %4462 = vmatprep.subr.bf16.mxu0 %v12038_v12  ;;  %4503 = vmatprep.subr.bf16.mxu1 %v12040_v11 }
 0x503   :  { %4463 = vmatpush1.bf16.msra.mxu0 %v12044_v14  ;;  %4504 = vmatpush1.bf16.msra.mxu1 %v12046_v15 }
 0x504   :  { %4464 = vmatprep.subr.bf16.mxu0 %v12050_v17  ;;  %4505 = vmatprep.subr.bf16.mxu1 %v12052_v19 }
 0x507   :  { %4465 = vmatpush1.bf16.msra.mxu0 %v12056_v20  ;;  %4506 = vmatpush1.bf16.msra.mxu1 %v12058_v21 }
 0x508   :  { %4466 = vmatprep.subr.bf16.mxu0 %v12062_v22  ;;  %4507 = vmatprep.subr.bf16.mxu1 %v12064_v23 }
 0x50b   :  { %4467 = vmatpush1.bf16.msra.mxu0 %v12068_v24  ;;  %4508 = vmatpush1.bf16.msra.mxu1 %v12070_v25 }
 0x50c   :  { %4468 = vmatprep.subr.bf16.mxu0 %v12074_v26  ;;  %4509 = vmatprep.subr.bf16.mxu1 %v12076_v28 }
 0x50f   :  { %4469 = vmatpush1.bf16.msra.mxu0 %v12080_v29  ;;  %4510 = vmatpush1.bf16.msra.mxu1 %v12082_v30 }
 0x510   :  { %4470 = vmatprep.subr.bf16.mxu0 %v12086_v31  ;;  %4511 = vmatprep.subr.bf16.mxu1 %v12088_v32 }
 0x513   :  { %4471 = vmatpush1.bf16.msra.mxu0 %v12092_v33  ;;  %4512 = vmatpush1.bf16.msra.mxu1 %v12094_v34 }
 0x514   :  { %4731 = vmatprep.subr.bf16.mxu0 %v12104_v35  ;;  %4772 = vmatprep.subr.bf16.mxu1 %v12106_v36 }
 0x516   :  { %4489 = vmatmul.mubr.bf16.vlgmr.msra.gmra.mxu0 %v12000_v9  ;;  %4530 = vmatmul.mubr.bf16.vlgmr.msra.gmra.mxu1 %v12000_v9  ;;  %v12170_v9 = vld [vmem:[#allocation18 + $0x48] ss:$16 sps:$4 sm:$0xff]  }
 0x517   :  { %4763 = vmatprep.mubr.bf16.mxu0 %v13251_v59  ;;  %4804 = vmatprep.mubr.bf16.mxu1 %v13251_v59  ;;  %13402 = vst [vmem:[#allocation66_spill] sm:$0xff] %v12170_v9 }
 0x518   :  { %4732 = vmatpush1.bf16.msra.mxu0 %v12108_v2  ;;  %4773 = vmatpush1.bf16.msra.mxu1 %v12110_v38 }
 0x519   :  { %4733 = vmatprep.subr.bf16.mxu0 %v12116_v42  ;;  %4774 = vmatprep.subr.bf16.mxu1 %v12118_v37 }
 0x51c   :  { %4734 = vmatpush1.bf16.msra.mxu0 %v12120_v3  ;;  %4775 = vmatpush1.bf16.msra.mxu1 %v12122_v45 }
 0x51d   :  { %4735 = vmatprep.subr.bf16.mxu0 %v12128_v49  ;;  %4776 = vmatprep.subr.bf16.mxu1 %v12130_v47 }
 0x520   :  { %4736 = vmatpush1.bf16.msra.mxu0 %v12132_v44  ;;  %4777 = vmatpush1.bf16.msra.mxu1 %v12134_v5 }
 0x521   :  { %4737 = vmatprep.subr.bf16.mxu0 %v12140_v54  ;;  %4778 = vmatprep.subr.bf16.mxu1 %v12142_v43 }
 0x524   :  { %4738 = vmatpush1.bf16.msra.mxu0 %v12144_v4  ;;  %4779 = vmatpush1.bf16.msra.mxu1 %v12146_v55 }
 0x525   :  { %4739 = vmatprep.subr.bf16.mxu0 %v12152_v18  ;;  %4780 = vmatprep.subr.bf16.mxu1 %v12154_v41  ;;  %v12182_v41 = vld [vmem:[#allocation18 + $0x28] ss:$16 sps:$4 sm:$0xff]  }
 0x526   :  { %13406 = vst [vmem:[#allocation70_spill] sm:$0xff] %v12182_v41 }
 0x528   :  { %4740 = vmatpush1.bf16.msra.mxu0 %v12156_v53  ;;  %4781 = vmatpush1.bf16.msra.mxu1 %v12158_v51  ;;  %v12178_v53 = vld [vmem:[#allocation18 + $0x2c] ss:$16 sps:$4 sm:$0xff]   ;;  %v12180_v51 = vld [vmem:[#allocation18 + $0x20] ss:$16 sps:$4 sm:$0xff]  }
 0x529   :  { %4741 = vmatprep.subr.bf16.mxu0 %v12164_v61  ;;  %4782 = vmatprep.subr.bf16.mxu1 %v12166_v63  ;;  %13404 = vst [vmem:[#allocation68_spill] sm:$0xff] %v12178_v53  ;;  %13405 = vst [vmem:[#allocation69_spill] sm:$0xff] %v12180_v51  ;;  %v12188_v63 = vld [vmem:[#allocation18 + $0x4] ss:$16 sps:$4 sm:$0xff]   ;;  %v12194_v61 = vld [vmem:[#allocation18 + $0x8] ss:$16 sps:$4 sm:$0xff]  }
 0x52a   :  { %13407 = vst [vmem:[#allocation71_spill] sm:$0xff] %v12188_v63  ;;  %13410 = vst [vmem:[#allocation74_spill] sm:$0xff] %v12194_v61 }
 0x52c   :  { %4742 = vmatpush1.bf16.msra.mxu0 %v12168_v7  ;;  %4783 = vmatpush1.bf16.msra.mxu1 %v12170_v9  ;;  %v12190_v7 = vld [vmem:[#allocation18 + $0xc] ss:$16 sps:$4 sm:$0xff]   ;;  %v12192_v9 = vld [vmem:[#allocation18] ss:$16 sps:$4 sm:$0xff]  }
 0x52d   :  { %4743 = vmatprep.subr.bf16.mxu0 %v12176_v40  ;;  %4784 = vmatprep.subr.bf16.mxu1 %v12178_v53  ;;  %13408 = vst [vmem:[#allocation72_spill] sm:$0xff] %v12190_v7  ;;  %13409 = vst [vmem:[#allocation73_spill] sm:$0xff] %v12192_v9  ;;  %v12200_v53 = vld [vmem:[#allocation20 + $0xe4] ss:$16 sps:$4 sm:$0xff]  }
 0x52e   :  { %13411 = vst [vmem:[#allocation104_spill] sm:$0xff] %v12200_v53 }
 0x530   :  { %4744 = vmatpush1.bf16.msra.mxu0 %v12180_v51  ;;  %4785 = vmatpush1.bf16.msra.mxu1 %v12182_v41  ;;  %v12202_v51 = vld [vmem:[#allocation20 + $0xec] ss:$16 sps:$4 sm:$0xff]  }
 0x531   :  { %4745 = vmatprep.subr.bf16.mxu0 %v12188_v63  ;;  %4786 = vmatprep.subr.bf16.mxu1 %v12190_v7  ;;  %13412 = vst [vmem:[#allocation84_spill] sm:$0xff] %v12202_v51 }
 0x534   :  { %4746 = vmatpush1.bf16.msra.mxu0 %v12192_v9  ;;  %4787 = vmatpush1.bf16.msra.mxu1 %v12194_v61  ;;  %v4212_v61 = vld [vmem:[%s12987_s8] sm:$0xf] }
 0x535   :  { %5041 = vmatprep.subr.bf16.mxu0 %v12200_v53  ;;  %5082 = vmatprep.subr.bf16.mxu1 %v12202_v51  ;;  %v4217_v9 = vrot.slane %v4212_v61, %v13365_v10  ;;  %v4221_v53 = vrot.slane %v4212_v61, %v13366_v16  ;;  %v4225_v10 = vrot.slane %v4212_v61, %v11346_v6 }
 0x596   :  { %v3854_v41 = vpop.f32.mrf.mxu0  ;;  %v3895_v40 = vpop.f32.mrf.mxu1 }
 0x598   :  { %v3856_v18 = vpop.f32.mrf.mxu0  ;;  %v3897_v55 = vpop.f32.mrf.mxu1 }
 0x59a   :  { %v3858_v4 = vpop.f32.mrf.mxu0  ;;  %v3899_v63 = vpop.f32.mrf.mxu1 }
 0x59c   :  { %v3859_v43 = vpop.f32.mrf.mxu0  ;;  %v3900_v7 = vpop.f32.mrf.mxu1 }
 0x5b6   :  { %v4164_v54 = vpop.f32.mrf.mxu0  ;;  %v4205_v5 = vpop.f32.mrf.mxu1 }
 0x5b7   :  { %v4165_v44 = vadd.f32 %v4164_v54, %v3854_v41  ;;  %v4206_v38 = vadd.f32 %v4205_v5, %v3895_v40  ;;  %v4229_v41 = vrot.slane %v4212_v61, %v11350_v8 }
 0x5b8   :  { %v4166_v51 = vpop.f32.mrf.mxu0  ;;  %v4207_v47 = vpop.f32.mrf.mxu1 }
 0x5b9   :  { %v4234_v49 = vadd.f32 %v4217_v9, %v4165_v44  ;;  %v4167_v45 = vadd.f32 %v4166_v51, %v3856_v18  ;;  %v4236_v2 = vadd.f32 %v4225_v10, %v4206_v38  ;;  %v4208_v54 = vadd.f32 %v4207_v47, %v3897_v55  ;;  %v13414_v47 = vld [vmem:[#allocation90_spill] sm:$0xff] }
 0x5ba   :  { %v4168_v3 = vpop.f32.mrf.mxu0  ;;  %v4209_v4 = vpop.f32.mrf.mxu1 }
 0x5bb   :  { %v9134_v63 = vmul.f32 -1.442695, %v4234_v49  ;;  %v4235_v43 = vadd.f32 %v4221_v53, %v4167_v45  ;;  %v9136_v16 = vmul.f32 -1.442695, %v4236_v2  ;;  %v4237_v44 = vadd.f32 %v4229_v41, %v4208_v54 }
 0x5bc   :  { %v4169_v7 = vpop.f32.mrf.mxu0  ;;  %v4210_v37 = vpop.f32.mrf.mxu1 }
 0x5bd   :  { %10411 = vpow2.f32 %v9134_v63  ;;  %v9135_v42 = vmul.f32 -1.442695, %v4235_v43 }
 0x5bf   :  { %10413 = vpow2.f32 %v9135_v42  ;;  %v13413_v42 = vld [vmem:[#allocation88_spill] sm:$0xff] }
 0x5c0   :  { %10415 = vpow2.f32 %v9136_v16 }
 0x5ca   :  { %v10412_v36 = vpop.eup %10411 }
 0x5cb   :  { %v4247_v18 = vadd.f32 1.0, %v10412_v36 }
 0x5cc   :  { %v10414_v3 = vpop.eup %10413 }
 0x5cd   :  { %10417 = vrcp.f32 %v4247_v18  ;;  %v4248_v45 = vadd.f32 1.0, %v10414_v3  ;;  %v10416_v10 = vpop.eup %10415 }
 0x5ce   :  { %10419 = vtanh.f32 %v4237_v44  ;;  %v4249_v4 = vadd.f32 1.0, %v10416_v10  ;;  %v13415_v44 = vld [vmem:[#allocation89_spill] sm:$0xff] }
 0x5cf   :  { %10421 = vrcp.f32 %v4248_v45  ;;  %v13416_v45 = vld [vmem:[#allocation91_spill] sm:$0xff] }
 0x5d6   :  { %v4490_v37 = vpop.f32.mrf.mxu0  ;;  %v4531_v49 = vpop.f32.mrf.mxu1 }
 0x5d7   :  { %v4820_v40 = vadd.f32 %v4490_v37, %v13413_v42  ;;  %v4822_v18 = vadd.f32 %v4531_v49, %v13415_v44 }
 0x5d8   :  { %v4492_v5 = vpop.f32.mrf.mxu0  ;;  %v4533_v53 = vpop.f32.mrf.mxu1 }
 0x5d9   :  { %v9201_v38 = vmul.f32 -1.442695, %v4820_v40  ;;  %v4821_v55 = vadd.f32 %v4492_v5, %v13414_v47  ;;  %v9203_v3 = vmul.f32 -1.442695, %v4822_v18  ;;  %v4823_v37 = vadd.f32 %v4533_v53, %v13416_v45  ;;  %v12229_v53 = vld [vmem:[#allocation20 + $0xc4] ss:$16 sps:$4 sm:$0xff]  }
 0x5da   :  { %v10418_v2 = vpop.eup %10417  ;;  %v4494_v51 = vpop.f32.mrf.mxu0  ;;  %v12255_v18 = vld [vmem:[#allocation20 + $0x84] ss:$16 sps:$4 sm:$0xff]  }
 0x5db   :  { %v4535_v61 = vpop.f32.mrf.mxu1  ;;  %v10420_v36 = vpop.eup %10419  ;;  %10423 = vpow2.f32 %v9201_v38  ;;  %v9202_v16 = vmul.f32 -1.442695, %v4821_v55  ;;  %v12223_v55 = vld [vmem:[#allocation20 + $0xe0] ss:$16 sps:$4 sm:$0xff]   ;;  %v12231_v51 = vld [vmem:[#allocation20 + $0xcc] ss:$16 sps:$4 sm:$0xff]  }
 0x5dc   :  { %v10422_v9 = vpop.eup %10421  ;;  %v4495_v63 = vpop.f32.mrf.mxu0  ;;  %v4258_v54 = vmul.f32 %v10420_v36, %v10418_v2  ;;  %v12225_v2 = vld [vmem:[#allocation20 + $0xe8] ss:$16 sps:$4 sm:$0xff]   ;;  %v12235_v61 = vld [vmem:[#allocation20 + $0xc0] ss:$16 sps:$4 sm:$0xff]  }
 0x5dd   :  { %v4536_v43 = vpop.f32.mrf.mxu1  ;;  %v4257_v7 = vmul.f32 %v10422_v9, %v11953_v27  ;;  %10425 = vpow2.f32 %v9202_v16  ;;  %v12237_v36 = vld [vmem:[#allocation20 + $0xc8] ss:$16 sps:$4 sm:$0xff]   ;;  %v12241_v16 = vld [vmem:[#allocation20 + $0xa4] ss:$16 sps:$4 sm:$0xff]   ;;  %v12243_v9 = vld [vmem:[#allocation20 + $0xac] ss:$16 sps:$4 sm:$0xff]  }
 0x5de   :  { %10427 = vrcp.f32 %v4249_v4 }
 0x5df   :  { %v12216_v41 = vadd.f32 %v4258_v54, %v4257_v7  ;;  %v12249_v7 = vld [vmem:[#allocation20 + $0xa0] ss:$16 sps:$4 sm:$0xff]   ;;  %v12251_v54 = vld [vmem:[#allocation20 + $0xa8] ss:$16 sps:$4 sm:$0xff]  }
 0x5e1   :  { %10429 = vtanh.f32 %v12216_v41 }
 0x5e2   :  { %10431 = vpow2.f32 %v9203_v3  ;;  %v12257_v3 = vld [vmem:[#allocation20 + $0x8c] ss:$16 sps:$4 sm:$0xff]  }
 0x5e3   :  { %10433 = vtanh.f32 %v4823_v37 }
 0x5e8   :  { %v10424_v42 = vpop.eup %10423 }
 0x5e9   :  { %v4833_v40 = vadd.f32 1.0, %v10424_v42 }
 0x5ea   :  { %v10426_v5 = vpop.eup %10425 }
 0x5eb   :  { %10435 = vrcp.f32 %v4833_v40  ;;  %v4834_v10 = vadd.f32 1.0, %v10426_v5  ;;  %v10428_v27 = vpop.eup %10427  ;;  %v12262_v40 = vld [vmem:[#allocation20 + $0x80] ss:$16 sps:$4 sm:$0xff]   ;;  %v12264_v5 = vld [vmem:[#allocation20 + $0x88] ss:$16 sps:$4 sm:$0xff]  }
 0x5ed   :  { %10437 = vrcp.f32 %v4834_v10 }
 0x5ee   :  { %v10430_v38 = vpop.eup %10429 }
 0x5ef   :  { %v12221_v47 = vmul.f32 %v10430_v38, %v10428_v27  ;;  %v10432_v4 = vpop.eup %10431  ;;  %v12270_v27 = vld [vmem:[#allocation20 + $0x64] ss:$16 sps:$4 sm:$0xff]   ;;  %v12272_v38 = vld [vmem:[#allocation20 + $0x6c] ss:$16 sps:$4 sm:$0xff]  }
 0x5f0   :  { %v10434_v63 = vpop.eup %10433  ;;  %v4835_v37 = vadd.f32 1.0, %v10432_v4  ;;  %v12283_v4 = vld [vmem:[#allocation20 + $0x44] ss:$16 sps:$4 sm:$0xff]  }
 0x5f1   :  { %13417 = vst [vmem:[#allocation86_spill] sm:$0xff] %v12221_v47  ;;  %v4538_v49 = vpack.c.bf16 %v12221_v47, %v12221_v47  ;;  %13420 = vst [vmem:[#allocation82_spill] sm:$0xff] %v12283_v4  ;;  %v12303_v47 = vld [vmem:[#allocation20 + $0x28] ss:$16 sps:$4 sm:$0xff]  }
 0x5f2   :  { %10439 = vrcp.f32 %v4835_v37  ;;  %v12297_v37 = vld [vmem:[#allocation20 + $0x2c] ss:$16 sps:$4 sm:$0xff]  }
 0x5f3   :  { %4764 = vmatmul.mubr.bf16.vlgmr.msra.gmra.mxu0 %v4538_v49  ;;  %4805 = vmatmul.mubr.bf16.vlgmr.msra.gmra.mxu1 %v4538_v49  ;;  %v12279_v49 = vld [vmem:[#allocation20 + $0x68] ss:$16 sps:$4 sm:$0xff]   ;;  %13425 = vst [vmem:[#allocation107_spill] sm:$0xff] %v12297_v37 }
 0x5f4   :  { %5042 = vmatpush1.bf16.msra.mxu0 %v12223_v55  ;;  %5083 = vmatpush1.bf16.msra.mxu1 %v12225_v2  ;;  %13419 = vst [vmem:[#allocation87_spill] sm:$0xff] %v12279_v49 }
 0x5f5   :  { %5043 = vmatprep.subr.bf16.mxu0 %v12229_v53  ;;  %5084 = vmatprep.subr.bf16.mxu1 %v12231_v51 }
 0x5f6   :  { %5073 = vmatprep.mubr.bf16.mxu0 %v13251_v59  ;;  %5114 = vmatprep.mubr.bf16.mxu1 %v13251_v59 }
 0x5f8   :  { %v10436_v43 = vpop.eup %10435  ;;  %5044 = vmatpush1.bf16.msra.mxu0 %v12235_v61  ;;  %5085 = vmatpush1.bf16.msra.mxu1 %v12237_v36 }
 0x5f9   :  { %v4844_v44 = vmul.f32 %v10436_v43, %v10434_v63  ;;  %5045 = vmatprep.subr.bf16.mxu0 %v12241_v16  ;;  %5086 = vmatprep.subr.bf16.mxu1 %v12243_v9  ;;  %v12285_v63 = vld [vmem:[#allocation20 + $0x4c] ss:$16 sps:$4 sm:$0xff]   ;;  %v12289_v43 = vld [vmem:[#allocation20 + $0x40] ss:$16 sps:$4 sm:$0xff]  }
 0x5fa   :  { %v10438_v45 = vpop.eup %10437  ;;  %13421 = vst [vmem:[#allocation81_spill] sm:$0xff] %v12285_v63  ;;  %13422 = vst [vmem:[#allocation83_spill] sm:$0xff] %v12289_v43 }
 0x5fb   :  { %v4843_v42 = vmul.f32 %v10438_v45, %v11975_v46  ;;  %v12277_v46 = vld [vmem:[#allocation20 + $0x60] ss:$16 sps:$4 sm:$0xff]   ;;  %v12295_v45 = vld [vmem:[#allocation20 + $0x24] ss:$16 sps:$4 sm:$0xff]  }
 0x5fc   :  { %5046 = vmatpush1.bf16.msra.mxu0 %v12249_v7  ;;  %5087 = vmatpush1.bf16.msra.mxu1 %v12251_v54  ;;  %13418 = vst [vmem:[#allocation85_spill] sm:$0xff] %v12277_v46  ;;  %13424 = vst [vmem:[#allocation106_spill] sm:$0xff] %v12295_v45 }
 0x5fd   :  { %v12266_v10 = vadd.f32 %v4844_v44, %v4843_v42  ;;  %5047 = vmatprep.subr.bf16.mxu0 %v12255_v18  ;;  %5088 = vmatprep.subr.bf16.mxu1 %v12257_v3  ;;  %v12291_v44 = vld [vmem:[#allocation20 + $0x48] ss:$16 sps:$4 sm:$0xff]   ;;  %v12301_v42 = vld [vmem:[#allocation20 + $0x20] ss:$16 sps:$4 sm:$0xff]  }
 0x5fe   :  { %13423 = vst [vmem:[#allocation105_spill] sm:$0xff] %v12291_v44 }
 0x5ff   :  { %10441 = vtanh.f32 %v12266_v10 }
 0x600   :  { %5048 = vmatpush1.bf16.msra.mxu0 %v12262_v40  ;;  %5089 = vmatpush1.bf16.msra.mxu1 %v12264_v5 }
 0x601   :  { %5049 = vmatprep.subr.bf16.mxu0 %v12270_v27  ;;  %5090 = vmatprep.subr.bf16.mxu1 %v12272_v38 }
 0x604   :  { %5050 = vmatpush1.bf16.msra.mxu0 %v12277_v46  ;;  %5091 = vmatpush1.bf16.msra.mxu1 %v12279_v49  ;;  %v12307_v49 = vld [vmem:[#allocation20 + $0x4] ss:$16 sps:$4 sm:$0xff]  }
 0x605   :  { %5051 = vmatprep.subr.bf16.mxu0 %v12283_v4  ;;  %5092 = vmatprep.subr.bf16.mxu1 %v12285_v63  ;;  %v12309_v4 = vld [vmem:[#allocation20 + $0xc] ss:$16 sps:$4 sm:$0xff]   ;;  %v10440_v63 = vpop.eup %10439 }
 0x608   :  { %5052 = vmatpush1.bf16.msra.mxu0 %v12289_v43  ;;  %5093 = vmatpush1.bf16.msra.mxu1 %v12291_v44  ;;  %v12313_v43 = vld [vmem:[#allocation20] ss:$16 sps:$4 sm:$0xff]   ;;  %v12315_v44 = vld [vmem:[#allocation20 + $0x8] ss:$16 sps:$4 sm:$0xff]  }
 0x609   :  { %5053 = vmatprep.subr.bf16.mxu0 %v12295_v45  ;;  %5094 = vmatprep.subr.bf16.mxu1 %v12297_v37 }
 0x60c   :  { %v10442_v46 = vpop.eup %10441  ;;  %5054 = vmatpush1.bf16.msra.mxu0 %v12301_v42  ;;  %5095 = vmatpush1.bf16.msra.mxu1 %v12303_v47 }
 0x60d   :  { %5055 = vmatprep.subr.bf16.mxu0 %v12307_v49  ;;  %5096 = vmatprep.subr.bf16.mxu1 %v12309_v4  ;;  %v4847_v45 = vmul.f32 %v10442_v46, %v10440_v63 }
 0x60f   :  { %v4848_v37 = vpack.c.bf16 %v4847_v45, %v4847_v45 }
 0x610   :  { %5056 = vmatpush1.bf16.msra.mxu0 %v12313_v43  ;;  %5097 = vmatpush1.bf16.msra.mxu1 %v12315_v44 }
 0x611   :  { %5367 = vmatprep.subr.bf16.mxu0 %v11996_v58  ;;  %5408 = vmatprep.subr.bf16.mxu1 %v11998_v56  ;;  %v13426_v58 = vld [vmem:[#allocation79_spill] sm:$0xff]  ;;  %v13427_v56 = vld [vmem:[#allocation45_spill] sm:$0xff] }
 0x613   :  { %5074 = vmatmul.mubr.bf16.vlgmr.msra.gmra.mxu0 %v4848_v37  ;;  %5115 = vmatmul.mubr.bf16.vlgmr.msra.gmra.mxu1 %v4848_v37 }
 0x614   :  { %5368 = vmatpush1.bf16.msra.mxu0 %v12004_v57  ;;  %5409 = vmatpush1.bf16.msra.mxu1 %v12006_v52  ;;  %v13428_v57 = vld [vmem:[#allocation46_spill] sm:$0xff]  ;;  %v13429_v52 = vld [vmem:[#allocation47_spill] sm:$0xff] }
 0x615   :  { %5369 = vmatprep.subr.bf16.mxu0 %v12010_v0  ;;  %5410 = vmatprep.subr.bf16.mxu1 %v12012_v62  ;;  %v13430_v0 = vld [vmem:[#allocation48_spill] sm:$0xff]  ;;  %v13431_v62 = vld [vmem:[#allocation49_spill] sm:$0xff] }
 0x616   :  { %5399 = vmatprep.mubr.bf16.mxu0 %v13251_v59  ;;  %5440 = vmatprep.mubr.bf16.mxu1 %v13251_v59 }
 0x618   :  { %5370 = vmatpush1.bf16.msra.mxu0 %v12018_v60  ;;  %5411 = vmatpush1.bf16.msra.mxu1 %v12020_v39  ;;  %v13432_v60 = vld [vmem:[#allocation50_spill] sm:$0xff]  ;;  %v13433_v39 = vld [vmem:[#allocation51_spill] sm:$0xff] }
 0x619   :  { %5371 = vmatprep.subr.bf16.mxu0 %v12024_v48  ;;  %5412 = vmatprep.subr.bf16.mxu1 %v12026_v50  ;;  %v13434_v48 = vld [vmem:[#allocation52_spill] sm:$0xff]  ;;  %v13435_v50 = vld [vmem:[#allocation53_spill] sm:$0xff] }
 0x61c   :  { %5372 = vmatpush1.bf16.msra.mxu0 %v12032_v13  ;;  %5413 = vmatpush1.bf16.msra.mxu1 %v12034_v1  ;;  %v13436_v13 = vld [vmem:[#allocation54_spill] sm:$0xff]  ;;  %v13437_v1 = vld [vmem:[#allocation55_spill] sm:$0xff] }
 0x61d   :  { %5373 = vmatprep.subr.bf16.mxu0 %v12038_v12  ;;  %5414 = vmatprep.subr.bf16.mxu1 %v12040_v11  ;;  %v13438_v12 = vld [vmem:[#allocation56_spill] sm:$0xff]  ;;  %v13439_v11 = vld [vmem:[#allocation57_spill] sm:$0xff] }
 0x620   :  { %5374 = vmatpush1.bf16.msra.mxu0 %v12044_v14  ;;  %5415 = vmatpush1.bf16.msra.mxu1 %v12046_v15  ;;  %v13440_v14 = vld [vmem:[#allocation58_spill] sm:$0xff]  ;;  %v13441_v15 = vld [vmem:[#allocation59_spill] sm:$0xff] }
 0x621   :  { %5375 = vmatprep.subr.bf16.mxu0 %v12050_v17  ;;  %5416 = vmatprep.subr.bf16.mxu1 %v12052_v19  ;;  %v13442_v17 = vld [vmem:[#allocation61_spill] sm:$0xff]  ;;  %v13443_v19 = vld [vmem:[#allocation60_spill] sm:$0xff] }
 0x624   :  { %5376 = vmatpush1.bf16.msra.mxu0 %v12056_v20  ;;  %5417 = vmatpush1.bf16.msra.mxu1 %v12058_v21  ;;  %v13444_v20 = vld [vmem:[#allocation62_spill] sm:$0xff]  ;;  %v13445_v21 = vld [vmem:[#allocation63_spill] sm:$0xff] }
 0x625   :  { %5377 = vmatprep.subr.bf16.mxu0 %v12062_v22  ;;  %5418 = vmatprep.subr.bf16.mxu1 %v12064_v23  ;;  %v13446_v22 = vld [vmem:[#allocation64_spill] sm:$0xff]  ;;  %v13447_v23 = vld [vmem:[#allocation65_spill] sm:$0xff] }
 0x628   :  { %5378 = vmatpush1.bf16.msra.mxu0 %v12068_v24  ;;  %5419 = vmatpush1.bf16.msra.mxu1 %v12070_v25  ;;  %v13448_v24 = vld [vmem:[#allocation66_spill] sm:$0xff]  ;;  %v13449_v25 = vld [vmem:[#allocation67_spill] sm:$0xff] }
 0x629   :  { %5379 = vmatprep.subr.bf16.mxu0 %v12074_v26  ;;  %5420 = vmatprep.subr.bf16.mxu1 %v12076_v28  ;;  %v13450_v26 = vld [vmem:[#allocation68_spill] sm:$0xff]  ;;  %v13451_v28 = vld [vmem:[#allocation69_spill] sm:$0xff] }
 0x62c   :  { %5380 = vmatpush1.bf16.msra.mxu0 %v12080_v29  ;;  %5421 = vmatpush1.bf16.msra.mxu1 %v12082_v30  ;;  %v13452_v29 = vld [vmem:[#allocation70_spill] sm:$0xff]  ;;  %v13453_v30 = vld [vmem:[#allocation71_spill] sm:$0xff] }
 0x62d   :  { %5381 = vmatprep.subr.bf16.mxu0 %v12086_v31  ;;  %5422 = vmatprep.subr.bf16.mxu1 %v12088_v32  ;;  %v13454_v31 = vld [vmem:[#allocation72_spill] sm:$0xff]  ;;  %v13455_v32 = vld [vmem:[#allocation73_spill] sm:$0xff] }
 0x630   :  { %5382 = vmatpush1.bf16.msra.mxu0 %v12092_v33  ;;  %5423 = vmatpush1.bf16.msra.mxu1 %v12094_v34  ;;  %v13456_v33 = vld [vmem:[#allocation74_spill] sm:$0xff]  ;;  %v13457_v34 = vld [vmem:[#allocation104_spill] sm:$0xff] }
 0x631   :  { %5642 = vmatprep.subr.bf16.mxu0 %v12104_v35  ;;  %5683 = vmatprep.subr.bf16.mxu1 %v13426_v58  ;;  %v13458_v35 = vld [vmem:[#allocation84_spill] sm:$0xff] }
 0x633   :  { %5400 = vmatmul.mubr.bf16.vlgmr.msra.gmra.mxu0 %v4848_v37  ;;  %5441 = vmatmul.mubr.bf16.vlgmr.msra.gmra.mxu1 %v4848_v37 }
 0x634   :  { %5643 = vmatpush1.bf16.msra.mxu0 %v13427_v56  ;;  %5684 = vmatpush1.bf16.msra.mxu1 %v13428_v57 }
 0x635   :  { %5644 = vmatprep.subr.bf16.mxu0 %v13429_v52  ;;  %5685 = vmatprep.subr.bf16.mxu1 %v13430_v0  ;;  %v5123_v0 = vld [vmem:[%s12987_s8] sm:$0xf] }
 0x636   :  { %5674 = vmatprep.mubr.bf16.mxu0 %v13251_v59  ;;  %5715 = vmatprep.mubr.bf16.mxu1 %v13251_v59 }
 0x638   :  { %5645 = vmatpush1.bf16.msra.mxu0 %v13431_v62  ;;  %5686 = vmatpush1.bf16.msra.mxu1 %v13432_v60  ;;  %v13459_v62 = vld [vmem:[#allocation75_spill] sm:$0xff] }
 0x639   :  { %5646 = vmatprep.subr.bf16.mxu0 %v13433_v39  ;;  %5687 = vmatprep.subr.bf16.mxu1 %v13434_v48  ;;  %v5128_v60 = vrot.slane %v5123_v0, %v13459_v62 }
 0x63c   :  { %5647 = vmatpush1.bf16.msra.mxu0 %v13435_v50  ;;  %5688 = vmatpush1.bf16.msra.mxu1 %v13436_v13  ;;  %v13460_v13 = vld [vmem:[#allocation76_spill] sm:$0xff] }
 0x63d   :  { %5648 = vmatprep.subr.bf16.mxu0 %v13437_v1  ;;  %5689 = vmatprep.subr.bf16.mxu1 %v13438_v12  ;;  %v5132_v1 = vrot.slane %v5123_v0, %v13460_v13 }
 0x640   :  { %5649 = vmatpush1.bf16.msra.mxu0 %v13439_v11  ;;  %5690 = vmatpush1.bf16.msra.mxu1 %v13440_v14 }
 0x641   :  { %5650 = vmatprep.subr.bf16.mxu0 %v13441_v15  ;;  %5691 = vmatprep.subr.bf16.mxu1 %v13442_v17 }
 0x644   :  { %5651 = vmatpush1.bf16.msra.mxu0 %v13443_v19  ;;  %5692 = vmatpush1.bf16.msra.mxu1 %v13444_v20 }
 0x645   :  { %5652 = vmatprep.subr.bf16.mxu0 %v13445_v21  ;;  %5693 = vmatprep.subr.bf16.mxu1 %v13446_v22 }
 0x648   :  { %5653 = vmatpush1.bf16.msra.mxu0 %v13447_v23  ;;  %5694 = vmatpush1.bf16.msra.mxu1 %v13448_v24 }
 0x649   :  { %5654 = vmatprep.subr.bf16.mxu0 %v13449_v25  ;;  %5695 = vmatprep.subr.bf16.mxu1 %v13450_v26  ;;  %v5136_v26 = vrot.slane %v5123_v0, %v11346_v6 }
 0x64c   :  { %5655 = vmatpush1.bf16.msra.mxu0 %v13451_v28  ;;  %5696 = vmatpush1.bf16.msra.mxu1 %v13452_v29 }
 0x64d   :  { %5656 = vmatprep.subr.bf16.mxu0 %v13453_v30  ;;  %5697 = vmatprep.subr.bf16.mxu1 %v13454_v31  ;;  %v5140_v30 = vrot.slane %v5123_v0, %v11350_v8 }
 0x650   :  { %5657 = vmatpush1.bf16.msra.mxu0 %v13455_v32  ;;  %5698 = vmatpush1.bf16.msra.mxu1 %v13456_v33 }
 0x651   :  { %5952 = vmatprep.subr.bf16.mxu0 %v13457_v34  ;;  %5993 = vmatprep.subr.bf16.mxu1 %v13458_v35 }
 0x6b3   :  { %v4765_v46 = vpop.f32.mrf.mxu0  ;;  %v4806_v63 = vpop.f32.mrf.mxu1 }
 0x6b5   :  { %v4767_v45 = vpop.f32.mrf.mxu0  ;;  %v4808_v37 = vpop.f32.mrf.mxu1 }
 0x6b7   :  { %v4769_v58 = vpop.f32.mrf.mxu0  ;;  %v4810_v56 = vpop.f32.mrf.mxu1 }
 0x6b8   :  { %v13461_v56 = vld [vmem:[#allocation92_spill] sm:$0xff] }
 0x6b9   :  { %v4770_v57 = vpop.f32.mrf.mxu0  ;;  %v4811_v52 = vpop.f32.mrf.mxu1 }
 0x6d3   :  { %v5075_v39 = vpop.f32.mrf.mxu0  ;;  %v5116_v48 = vpop.f32.mrf.mxu1 }
 0x6d4   :  { %v5076_v50 = vadd.f32 %v5075_v39, %v4765_v46  ;;  %v5117_v25 = vadd.f32 %v5116_v48, %v4806_v63  ;;  %v13462_v39 = vld [vmem:[#allocation94_spill] sm:$0xff] }
 0x6d5   :  { %v5077_v12 = vpop.f32.mrf.mxu0  ;;  %v5118_v11 = vpop.f32.mrf.mxu1 }
 0x6d6   :  { %v5145_v14 = vadd.f32 %v5128_v60, %v5076_v50  ;;  %v5078_v15 = vadd.f32 %v5077_v12, %v4767_v45  ;;  %v5147_v28 = vadd.f32 %v5136_v26, %v5117_v25  ;;  %v5119_v29 = vadd.f32 %v5118_v11, %v4808_v37  ;;  %v13464_v26 = vld [vmem:[#allocation95_spill] sm:$0xff] }
 0x6d7   :  { %v5079_v17 = vpop.f32.mrf.mxu0  ;;  %v5120_v19 = vpop.f32.mrf.mxu1 }
 0x6d8   :  { %v9236_v20 = vmul.f32 -1.442695, %v5145_v14  ;;  %v5146_v21 = vadd.f32 %v5132_v1, %v5078_v15  ;;  %v9238_v31 = vmul.f32 -1.442695, %v5147_v28  ;;  %v5148_v33 = vadd.f32 %v5140_v30, %v5119_v29 }
 0x6d9   :  { %v5080_v22 = vpop.f32.mrf.mxu0  ;;  %v5121_v23 = vpop.f32.mrf.mxu1 }
 0x6da   :  { %10443 = vpow2.f32 %v9236_v20  ;;  %v9237_v24 = vmul.f32 -1.442695, %v5146_v21  ;;  %v13463_v23 = vld [vmem:[#allocation93_spill] sm:$0xff] }
 0x6dc   :  { %10445 = vpow2.f32 %v9237_v24 }
 0x6dd   :  { %10447 = vpow2.f32 %v9238_v31 }
 0x6e7   :  { %v10444_v32 = vpop.eup %10443 }
 0x6e8   :  { %v5158_v34 = vadd.f32 1.0, %v10444_v32 }
 0x6e9   :  { %v10446_v35 = vpop.eup %10445 }
 0x6ea   :  { %10449 = vrcp.f32 %v5158_v34  ;;  %v5159_v46 = vadd.f32 1.0, %v10446_v35  ;;  %v10448_v60 = vpop.eup %10447 }
 0x6eb   :  { %10451 = vtanh.f32 %v5148_v33  ;;  %v5160_v15 = vadd.f32 1.0, %v10448_v60  ;;  %v12480_v60 = vld [vmem:[#allocation17 + $0xa0] ss:$16 sps:$4 sm:$0xff]  }
 0x6ec   :  { %10453 = vrcp.f32 %v5159_v46 }
 0x6f3   :  { %v5401_v45 = vpop.f32.mrf.mxu0  ;;  %v5442_v58 = vpop.f32.mrf.mxu1 }
 0x6f4   :  { %v5731_v63 = vadd.f32 %v5401_v45, %v13461_v56  ;;  %v5733_v24 = vadd.f32 %v5442_v58, %v13463_v23  ;;  %v12524_v23 = vld [vmem:[#allocation17 + $0x2c] ss:$16 sps:$4 sm:$0xff]  }
 0x6f5   :  { %v5403_v57 = vpop.f32.mrf.mxu0  ;;  %v5444_v52 = vpop.f32.mrf.mxu1 }
 0x6f6   :  { %v9303_v37 = vmul.f32 -1.442695, %v5731_v63  ;;  %v5732_v0 = vadd.f32 %v5403_v57, %v13462_v39  ;;  %v9305_v25 = vmul.f32 -1.442695, %v5733_v24  ;;  %v5734_v28 = vadd.f32 %v5444_v52, %v13464_v26  ;;  %v12452_v57 = vld [vmem:[#allocation17 + $0xe0] ss:$16 sps:$4 sm:$0xff]  }
 0x6f7   :  { %v10450_v48 = vpop.eup %10449  ;;  %v5405_v50 = vpop.f32.mrf.mxu0  ;;  %v12474_v52 = vld [vmem:[#allocation17 + $0xac] ss:$16 sps:$4 sm:$0xff]   ;;  %v12486_v39 = vld [vmem:[#allocation17 + $0x84] ss:$16 sps:$4 sm:$0xff]   ;;  %v12528_v24 = vld [vmem:[#allocation17 + $0x20] ss:$16 sps:$4 sm:$0xff]  }
 0x6f8   :  { %v5446_v1 = vpop.f32.mrf.mxu1  ;;  %v10452_v12 = vpop.eup %10451  ;;  %10455 = vpow2.f32 %v9303_v37  ;;  %v9304_v11 = vmul.f32 -1.442695, %v5732_v0  ;;  %v12482_v37 = vld [vmem:[#allocation17 + $0xa8] ss:$16 sps:$4 sm:$0xff]   ;;  %v12488_v0 = vld [vmem:[#allocation17 + $0x8c] ss:$16 sps:$4 sm:$0xff]  }
 0x6f9   :  { %v10454_v14 = vpop.eup %10453  ;;  %v5406_v17 = vpop.f32.mrf.mxu0  ;;  %v5169_v21 = vmul.f32 %v10452_v12, %v10450_v48  ;;  %v12492_v48 = vld [vmem:[#allocation17 + $0x80] ss:$16 sps:$4 sm:$0xff]   ;;  %v12494_v50 = vld [vmem:[#allocation17 + $0x88] ss:$16 sps:$4 sm:$0xff]   ;;  %v12498_v1 = vld [vmem:[#allocation17 + $0x64] ss:$16 sps:$4 sm:$0xff]  }
 0x6fa   :  { %v5447_v19 = vpop.f32.mrf.mxu1  ;;  %v5168_v20 = vmul.f32 %v10454_v14, %v12216_v41  ;;  %10457 = vpow2.f32 %v9304_v11  ;;  %v12500_v12 = vld [vmem:[#allocation17 + $0x6c] ss:$16 sps:$4 sm:$0xff]   ;;  %v12504_v11 = vld [vmem:[#allocation17 + $0x60] ss:$16 sps:$4 sm:$0xff]   ;;  %v12506_v14 = vld [vmem:[#allocation17 + $0x68] ss:$16 sps:$4 sm:$0xff]  }
 0x6fb   :  { %10459 = vrcp.f32 %v5160_v15  ;;  %v12510_v15 = vld [vmem:[#allocation17 + $0x44] ss:$16 sps:$4 sm:$0xff]   ;;  %v12512_v17 = vld [vmem:[#allocation17 + $0x4c] ss:$16 sps:$4 sm:$0xff]   ;;  %v12516_v19 = vld [vmem:[#allocation17 + $0x40] ss:$16 sps:$4 sm:$0xff]  }
 0x6fc   :  { %v12401_v22 = vadd.f32 %v5169_v21, %v5168_v20  ;;  %v12518_v20 = vld [vmem:[#allocation17 + $0x48] ss:$16 sps:$4 sm:$0xff]   ;;  %v12522_v21 = vld [vmem:[#allocation17 + $0x24] ss:$16 sps:$4 sm:$0xff]  }
 0x6fd   :  { %v12534_v26 = vld [vmem:[#allocation17 + $0x4] ss:$16 sps:$4 sm:$0xff]  }
 0x6fe   :  { %10461 = vtanh.f32 %v12401_v22 }
 0x6ff   :  { %10463 = vpow2.f32 %v9305_v25  ;;  %v12530_v25 = vld [vmem:[#allocation17 + $0x28] ss:$16 sps:$4 sm:$0xff]  }
 0x700   :  { %10465 = vtanh.f32 %v5734_v28  ;;  %v12536_v28 = vld [vmem:[#allocation17 + $0xc] ss:$16 sps:$4 sm:$0xff]  }
 0x705   :  { %v10456_v29 = vpop.eup %10455 }
 0x706   :  { %v5744_v30 = vadd.f32 1.0, %v10456_v29  ;;  %v12540_v29 = vld [vmem:[#allocation17] ss:$16 sps:$4 sm:$0xff]  }
 0x707   :  { %v10458_v31 = vpop.eup %10457 }
 0x708   :  { %10467 = vrcp.f32 %v5744_v30  ;;  %v5745_v32 = vadd.f32 1.0, %v10458_v31  ;;  %v10460_v41 = vpop.eup %10459  ;;  %v12542_v30 = vld [vmem:[#allocation17 + $0x8] ss:$16 sps:$4 sm:$0xff]   ;;  %v12552_v31 = vld [vmem:[#allocation18 + $0xe4] ss:$16 sps:$4 sm:$0xff]  }
 0x70a   :  { %10469 = vrcp.f32 %v5745_v32  ;;  %v12554_v32 = vld [vmem:[#allocation18 + $0xec] ss:$16 sps:$4 sm:$0xff]  }
 0x70b   :  { %v10462_v33 = vpop.eup %10461  ;;  %13474 = vst [vmem:[#allocation109_spill] sm:$0xff] %v12554_v32 }
 0x70c   :  { %v12406_v34 = vmul.f32 %v10462_v33, %v10460_v41  ;;  %v10464_v46 = vpop.eup %10463  ;;  %v12556_v41 = vld [vmem:[#allocation18 + $0xe0] ss:$16 sps:$4 sm:$0xff]   ;;  %v12558_v33 = vld [vmem:[#allocation18 + $0xe8] ss:$16 sps:$4 sm:$0xff]  }
 0x70d   :  { %v10466_v45 = vpop.eup %10465  ;;  %13475 = vst [vmem:[#allocation88_spill] sm:$0xff] %v12556_v41  ;;  %13476 = vst [vmem:[#allocation90_spill] sm:$0xff] %v12558_v33 }
 0x70e   :  { %13465 = vst [vmem:[#allocation108_spill] sm:$0xff] %v12406_v34  ;;  %v5449_v35 = vpack.c.bf16 %v12406_v34, %v12406_v34  ;;  %v12624_v34 = vld [vmem:[#allocation18 + $0x24] ss:$16 sps:$4 sm:$0xff]  }
 0x70f   :  { %13497 = vst [vmem:[#allocation62_spill] sm:$0xff] %v12624_v34 }
 0x710   :  { %5675 = vmatmul.mubr.bf16.vlgmr.msra.gmra.mxu0 %v5449_v35  ;;  %5716 = vmatmul.mubr.bf16.vlgmr.msra.gmra.mxu1 %v5449_v35  ;;  %v12564_v35 = vld [vmem:[#allocation18 + $0xc4] ss:$16 sps:$4 sm:$0xff]  }
 0x711   :  { %5953 = vmatpush1.bf16.msra.mxu0 %v12223_v55  ;;  %5994 = vmatpush1.bf16.msra.mxu1 %v12225_v2  ;;  %v5746_v2 = vadd.f32 1.0, %v10464_v46  ;;  %13477 = vst [vmem:[#allocation89_spill] sm:$0xff] %v12564_v35  ;;  %v12566_v46 = vld [vmem:[#allocation18 + $0xcc] ss:$16 sps:$4 sm:$0xff]  }
 0x712   :  { %5954 = vmatprep.subr.bf16.mxu0 %v12229_v53  ;;  %5995 = vmatprep.subr.bf16.mxu1 %v12231_v51  ;;  %13478 = vst [vmem:[#allocation91_spill] sm:$0xff] %v12566_v46 }
 0x713   :  { %5984 = vmatprep.mubr.bf16.mxu0 %v13251_v59  ;;  %6025 = vmatprep.mubr.bf16.mxu1 %v13251_v59  ;;  %10471 = vrcp.f32 %v5746_v2  ;;  %v12580_v2 = vld [vmem:[#allocation18 + $0xa0] ss:$16 sps:$4 sm:$0xff]  }
 0x714   :  { %13483 = vst [vmem:[#allocation48_spill] sm:$0xff] %v12580_v2 }
 0x715   :  { %v10468_v58 = vpop.eup %10467  ;;  %5955 = vmatpush1.bf16.msra.mxu0 %v12235_v61  ;;  %5996 = vmatpush1.bf16.msra.mxu1 %v12237_v36  ;;  %v13466_v61 = vld [vmem:[#allocation85_spill] sm:$0xff]  ;;  %v13467_v36 = vld [vmem:[#allocation87_spill] sm:$0xff] }
 0x716   :  { %v5755_v56 = vmul.f32 %v10468_v58, %v10466_v45  ;;  %5956 = vmatprep.subr.bf16.mxu0 %v12241_v16  ;;  %5997 = vmatprep.subr.bf16.mxu1 %v12243_v9  ;;  %v13468_v16 = vld [vmem:[#allocation82_spill] sm:$0xff]  ;;  %v13469_v9 = vld [vmem:[#allocation81_spill] sm:$0xff] }
 0x717   :  { %v10470_v55 = vpop.eup %10469  ;;  %v12568_v45 = vld [vmem:[#allocation18 + $0xc0] ss:$16 sps:$4 sm:$0xff]   ;;  %v12570_v58 = vld [vmem:[#allocation18 + $0xc8] ss:$16 sps:$4 sm:$0xff]  }
 0x718   :  { %v5754_v53 = vmul.f32 %v10470_v55, %v12266_v10  ;;  %13479 = vst [vmem:[#allocation79_spill] sm:$0xff] %v12568_v45  ;;  %13480 = vst [vmem:[#allocation45_spill] sm:$0xff] %v12570_v58  ;;  %v12578_v55 = vld [vmem:[#allocation18 + $0xac] ss:$16 sps:$4 sm:$0xff]  }
 0x719   :  { %5957 = vmatpush1.bf16.msra.mxu0 %v12249_v7  ;;  %5998 = vmatpush1.bf16.msra.mxu1 %v12251_v54  ;;  %v13470_v7 = vld [vmem:[#allocation83_spill] sm:$0xff]  ;;  %v13471_v54 = vld [vmem:[#allocation105_spill] sm:$0xff]  ;;  %13482 = vst [vmem:[#allocation47_spill] sm:$0xff] %v12578_v55 }
 0x71a   :  { %v12423_v51 = vadd.f32 %v5755_v56, %v5754_v53  ;;  %5958 = vmatprep.subr.bf16.mxu0 %v12255_v18  ;;  %5999 = vmatprep.subr.bf16.mxu1 %v12257_v3  ;;  %v13472_v18 = vld [vmem:[#allocation106_spill] sm:$0xff]  ;;  %v13473_v3 = vld [vmem:[#allocation107_spill] sm:$0xff] }
 0x71b   :  { %v12576_v56 = vld [vmem:[#allocation18 + $0xa4] ss:$16 sps:$4 sm:$0xff]   ;;  %v12582_v53 = vld [vmem:[#allocation18 + $0xa8] ss:$16 sps:$4 sm:$0xff]  }
 0x71c   :  { %10473 = vtanh.f32 %v12423_v51  ;;  %13481 = vst [vmem:[#allocation46_spill] sm:$0xff] %v12576_v56  ;;  %13484 = vst [vmem:[#allocation49_spill] sm:$0xff] %v12582_v53 }
 0x71d   :  { %5959 = vmatpush1.bf16.msra.mxu0 %v12262_v40  ;;  %6000 = vmatpush1.bf16.msra.mxu1 %v12264_v5 }
 0x71e   :  { %5960 = vmatprep.subr.bf16.mxu0 %v12270_v27  ;;  %6001 = vmatprep.subr.bf16.mxu1 %v12272_v38  ;;  %v12444_v27 = vld [vmem:[#allocation17 + $0xe4] ss:$16 sps:$4 sm:$0xff]   ;;  %v12446_v38 = vld [vmem:[#allocation17 + $0xec] ss:$16 sps:$4 sm:$0xff]  }
 0x720   :  { %v10472_v40 = vpop.eup %10471 }
 0x721   :  { %5961 = vmatpush1.bf16.msra.mxu0 %v13466_v61  ;;  %6002 = vmatpush1.bf16.msra.mxu1 %v13467_v36  ;;  %v12588_v61 = vld [vmem:[#allocation18 + $0x84] ss:$16 sps:$4 sm:$0xff]   ;;  %v12590_v36 = vld [vmem:[#allocation18 + $0x8c] ss:$16 sps:$4 sm:$0xff]  }
 0x722   :  { %5962 = vmatprep.subr.bf16.mxu0 %v13468_v16  ;;  %6003 = vmatprep.subr.bf16.mxu1 %v13469_v9  ;;  %13485 = vst [vmem:[#allocation50_spill] sm:$0xff] %v12588_v61  ;;  %13486 = vst [vmem:[#allocation51_spill] sm:$0xff] %v12590_v36  ;;  %v12592_v16 = vld [vmem:[#allocation18 + $0x80] ss:$16 sps:$4 sm:$0xff]   ;;  %v12594_v9 = vld [vmem:[#allocation18 + $0x88] ss:$16 sps:$4 sm:$0xff]  }
 0x723   :  { %13487 = vst [vmem:[#allocation52_spill] sm:$0xff] %v12592_v16  ;;  %13488 = vst [vmem:[#allocation53_spill] sm:$0xff] %v12594_v9 }
 0x725   :  { %5963 = vmatpush1.bf16.msra.mxu0 %v13470_v7  ;;  %6004 = vmatpush1.bf16.msra.mxu1 %v13471_v54  ;;  %v12600_v7 = vld [vmem:[#allocation18 + $0x64] ss:$16 sps:$4 sm:$0xff]   ;;  %v12602_v54 = vld [vmem:[#allocation18 + $0x6c] ss:$16 sps:$4 sm:$0xff]  }
 0x726   :  { %5964 = vmatprep.subr.bf16.mxu0 %v13472_v18  ;;  %6005 = vmatprep.subr.bf16.mxu1 %v13473_v3  ;;  %13489 = vst [vmem:[#allocation54_spill] sm:$0xff] %v12600_v7  ;;  %13490 = vst [vmem:[#allocation55_spill] sm:$0xff] %v12602_v54  ;;  %v12604_v18 = vld [vmem:[#allocation18 + $0x60] ss:$16 sps:$4 sm:$0xff]   ;;  %v12606_v3 = vld [vmem:[#allocation18 + $0x68] ss:$16 sps:$4 sm:$0xff]  }
 0x727   :  { %13491 = vst [vmem:[#allocation56_spill] sm:$0xff] %v12604_v18  ;;  %13492 = vst [vmem:[#allocation57_spill] sm:$0xff] %v12606_v3 }
 0x729   :  { %v10474_v5 = vpop.eup %10473  ;;  %5965 = vmatpush1.bf16.msra.mxu0 %v12301_v42  ;;  %6006 = vmatpush1.bf16.msra.mxu1 %v12303_v47  ;;  %v12454_v42 = vld [vmem:[#allocation17 + $0xe8] ss:$16 sps:$4 sm:$0xff]   ;;  %v12458_v47 = vld [vmem:[#allocation17 + $0xc4] ss:$16 sps:$4 sm:$0xff]  }
 0x72a   :  { %5966 = vmatprep.subr.bf16.mxu0 %v12307_v49  ;;  %6007 = vmatprep.subr.bf16.mxu1 %v12309_v4  ;;  %v5758_v10 = vmul.f32 %v10474_v5, %v10472_v40  ;;  %v12460_v49 = vld [vmem:[#allocation17 + $0xcc] ss:$16 sps:$4 sm:$0xff]   ;;  %v12466_v4 = vld [vmem:[#allocation17 + $0xc0] ss:$16 sps:$4 sm:$0xff]   ;;  %v12612_v40 = vld [vmem:[#allocation18 + $0x44] ss:$16 sps:$4 sm:$0xff]  }
 0x72b   :  { %13493 = vst [vmem:[#allocation58_spill] sm:$0xff] %v12612_v40  ;;  %v12614_v5 = vld [vmem:[#allocation18 + $0x4c] ss:$16 sps:$4 sm:$0xff]  }
 0x72c   :  { %v12448_v63 = vpack.c.bf16 %v5758_v10, %v5758_v10  ;;  %13494 = vst [vmem:[#allocation59_spill] sm:$0xff] %v12614_v5  ;;  %v12616_v10 = vld [vmem:[#allocation18 + $0x40] ss:$16 sps:$4 sm:$0xff]  }
 0x72d   :  { %5967 = vmatpush1.bf16.msra.mxu0 %v12313_v43  ;;  %6008 = vmatpush1.bf16.msra.mxu1 %v12315_v44  ;;  %v12468_v43 = vld [vmem:[#allocation17 + $0xc8] ss:$16 sps:$4 sm:$0xff]   ;;  %v12472_v44 = vld [vmem:[#allocation17 + $0xa4] ss:$16 sps:$4 sm:$0xff]   ;;  %13495 = vst [vmem:[#allocation61_spill] sm:$0xff] %v12616_v10 }
 0x72e   :  { %6278 = vmatprep.subr.bf16.mxu0 %v12444_v27  ;;  %6319 = vmatprep.subr.bf16.mxu1 %v12446_v38 }
 0x730   :  { %5985 = vmatmul.mubr.bf16.vlgmr.msra.gmra.mxu0 %v12448_v63  ;;  %6026 = vmatmul.mubr.bf16.vlgmr.msra.gmra.mxu1 %v12448_v63 }
 0x731   :  { %6279 = vmatpush1.bf16.msra.mxu0 %v12452_v57  ;;  %6320 = vmatpush1.bf16.msra.mxu1 %v12454_v42 }
 0x732   :  { %6280 = vmatprep.subr.bf16.mxu0 %v12458_v47  ;;  %6321 = vmatprep.subr.bf16.mxu1 %v12460_v49 }
 0x733   :  { %6310 = vmatprep.mubr.bf16.mxu0 %v13251_v59  ;;  %6351 = vmatprep.mubr.bf16.mxu1 %v13251_v59 }
 0x735   :  { %6281 = vmatpush1.bf16.msra.mxu0 %v12466_v4  ;;  %6322 = vmatpush1.bf16.msra.mxu1 %v12468_v43 }
 0x736   :  { %6282 = vmatprep.subr.bf16.mxu0 %v12472_v44  ;;  %6323 = vmatprep.subr.bf16.mxu1 %v12474_v52 }
 0x739   :  { %6283 = vmatpush1.bf16.msra.mxu0 %v12480_v60  ;;  %6324 = vmatpush1.bf16.msra.mxu1 %v12482_v37 }
 0x73a   :  { %6284 = vmatprep.subr.bf16.mxu0 %v12486_v39  ;;  %6325 = vmatprep.subr.bf16.mxu1 %v12488_v0 }
 0x73d   :  { %6285 = vmatpush1.bf16.msra.mxu0 %v12492_v48  ;;  %6326 = vmatpush1.bf16.msra.mxu1 %v12494_v50 }
 0x73e   :  { %6286 = vmatprep.subr.bf16.mxu0 %v12498_v1  ;;  %6327 = vmatprep.subr.bf16.mxu1 %v12500_v12 }
 0x741   :  { %6287 = vmatpush1.bf16.msra.mxu0 %v12504_v11  ;;  %6328 = vmatpush1.bf16.msra.mxu1 %v12506_v14 }
 0x742   :  { %6288 = vmatprep.subr.bf16.mxu0 %v12510_v15  ;;  %6329 = vmatprep.subr.bf16.mxu1 %v12512_v17 }
 0x745   :  { %6289 = vmatpush1.bf16.msra.mxu0 %v12516_v19  ;;  %6330 = vmatpush1.bf16.msra.mxu1 %v12518_v20 }
 0x746   :  { %6290 = vmatprep.subr.bf16.mxu0 %v12522_v21  ;;  %6331 = vmatprep.subr.bf16.mxu1 %v12524_v23 }
 0x749   :  { %6291 = vmatpush1.bf16.msra.mxu0 %v12528_v24  ;;  %6332 = vmatpush1.bf16.msra.mxu1 %v12530_v25 }
 0x74a   :  { %6292 = vmatprep.subr.bf16.mxu0 %v12534_v26  ;;  %6333 = vmatprep.subr.bf16.mxu1 %v12536_v28 }
 0x74d   :  { %6293 = vmatpush1.bf16.msra.mxu0 %v12540_v29  ;;  %6334 = vmatpush1.bf16.msra.mxu1 %v12542_v30 }
 0x74e   :  { %6553 = vmatprep.subr.bf16.mxu0 %v12552_v31  ;;  %6594 = vmatprep.subr.bf16.mxu1 %v12554_v32 }
 0x750   :  { %6311 = vmatmul.mubr.bf16.vlgmr.msra.gmra.mxu0 %v12448_v63  ;;  %6352 = vmatmul.mubr.bf16.vlgmr.msra.gmra.mxu1 %v12448_v63  ;;  %v12618_v63 = vld [vmem:[#allocation18 + $0x48] ss:$16 sps:$4 sm:$0xff]  }
 0x751   :  { %6585 = vmatprep.mubr.bf16.mxu0 %v13251_v59  ;;  %6626 = vmatprep.mubr.bf16.mxu1 %v13251_v59  ;;  %13496 = vst [vmem:[#allocation60_spill] sm:$0xff] %v12618_v63 }
 0x752   :  { %6554 = vmatpush1.bf16.msra.mxu0 %v12556_v41  ;;  %6595 = vmatpush1.bf16.msra.mxu1 %v12558_v33 }
 0x753   :  { %6555 = vmatprep.subr.bf16.mxu0 %v12564_v35  ;;  %6596 = vmatprep.subr.bf16.mxu1 %v12566_v46 }
 0x756   :  { %6556 = vmatpush1.bf16.msra.mxu0 %v12568_v45  ;;  %6597 = vmatpush1.bf16.msra.mxu1 %v12570_v58 }
 0x757   :  { %6557 = vmatprep.subr.bf16.mxu0 %v12576_v56  ;;  %6598 = vmatprep.subr.bf16.mxu1 %v12578_v55 }
 0x75a   :  { %6558 = vmatpush1.bf16.msra.mxu0 %v12580_v2  ;;  %6599 = vmatpush1.bf16.msra.mxu1 %v12582_v53 }
 0x75b   :  { %6559 = vmatprep.subr.bf16.mxu0 %v12588_v61  ;;  %6600 = vmatprep.subr.bf16.mxu1 %v12590_v36 }
 0x75e   :  { %6560 = vmatpush1.bf16.msra.mxu0 %v12592_v16  ;;  %6601 = vmatpush1.bf16.msra.mxu1 %v12594_v9 }
 0x75f   :  { %6561 = vmatprep.subr.bf16.mxu0 %v12600_v7  ;;  %6602 = vmatprep.subr.bf16.mxu1 %v12602_v54  ;;  %v12630_v54 = vld [vmem:[#allocation18 + $0x28] ss:$16 sps:$4 sm:$0xff]  }
 0x760   :  { %13500 = vst [vmem:[#allocation65_spill] sm:$0xff] %v12630_v54 }
 0x762   :  { %6562 = vmatpush1.bf16.msra.mxu0 %v12604_v18  ;;  %6603 = vmatpush1.bf16.msra.mxu1 %v12606_v3  ;;  %v12626_v18 = vld [vmem:[#allocation18 + $0x2c] ss:$16 sps:$4 sm:$0xff]   ;;  %v12628_v3 = vld [vmem:[#allocation18 + $0x20] ss:$16 sps:$4 sm:$0xff]  }
 0x763   :  { %6563 = vmatprep.subr.bf16.mxu0 %v12612_v40  ;;  %6604 = vmatprep.subr.bf16.mxu1 %v12614_v5  ;;  %13498 = vst [vmem:[#allocation63_spill] sm:$0xff] %v12626_v18  ;;  %13499 = vst [vmem:[#allocation64_spill] sm:$0xff] %v12628_v3  ;;  %v12636_v5 = vld [vmem:[#allocation18 + $0x4] ss:$16 sps:$4 sm:$0xff]   ;;  %v12642_v40 = vld [vmem:[#allocation18 + $0x8] ss:$16 sps:$4 sm:$0xff]  }
 0x764   :  { %13501 = vst [vmem:[#allocation66_spill] sm:$0xff] %v12636_v5  ;;  %13504 = vst [vmem:[#allocation69_spill] sm:$0xff] %v12642_v40 }
 0x766   :  { %6564 = vmatpush1.bf16.msra.mxu0 %v12616_v10  ;;  %6605 = vmatpush1.bf16.msra.mxu1 %v12618_v63  ;;  %v12638_v10 = vld [vmem:[#allocation18 + $0xc] ss:$16 sps:$4 sm:$0xff]   ;;  %v12640_v63 = vld [vmem:[#allocation18] ss:$16 sps:$4 sm:$0xff]  }
 0x767   :  { %6565 = vmatprep.subr.bf16.mxu0 %v12624_v34  ;;  %6606 = vmatprep.subr.bf16.mxu1 %v12626_v18  ;;  %13502 = vst [vmem:[#allocation67_spill] sm:$0xff] %v12638_v10  ;;  %13503 = vst [vmem:[#allocation68_spill] sm:$0xff] %v12640_v63  ;;  %v12648_v18 = vld [vmem:[#allocation20 + $0xe4] ss:$16 sps:$4 sm:$0xff]  }
 0x768   :  { %13505 = vst [vmem:[#allocation70_spill] sm:$0xff] %v12648_v18 }
 0x76a   :  { %6566 = vmatpush1.bf16.msra.mxu0 %v12628_v3  ;;  %6607 = vmatpush1.bf16.msra.mxu1 %v12630_v54  ;;  %v12650_v3 = vld [vmem:[#allocation20 + $0xec] ss:$16 sps:$4 sm:$0xff]  }
 0x76b   :  { %6567 = vmatprep.subr.bf16.mxu0 %v12636_v5  ;;  %6608 = vmatprep.subr.bf16.mxu1 %v12638_v10  ;;  %13506 = vst [vmem:[#allocation71_spill] sm:$0xff] %v12650_v3 }
 0x76e   :  { %6568 = vmatpush1.bf16.msra.mxu0 %v12640_v63  ;;  %6609 = vmatpush1.bf16.msra.mxu1 %v12642_v40  ;;  %v6034_v40 = vld [vmem:[%s12987_s8] sm:$0xf] }
 0x76f   :  { %6863 = vmatprep.subr.bf16.mxu0 %v12648_v18  ;;  %6904 = vmatprep.subr.bf16.mxu1 %v12650_v3  ;;  %v6039_v63 = vrot.slane %v6034_v40, %v13459_v62  ;;  %v6043_v18 = vrot.slane %v6034_v40, %v13460_v13  ;;  %v6047_v62 = vrot.slane %v6034_v40, %v11346_v6 }
 0x7d0   :  { %v5676_v54 = vpop.f32.mrf.mxu0  ;;  %v5717_v34 = vpop.f32.mrf.mxu1 }
 0x7d2   :  { %v5678_v7 = vpop.f32.mrf.mxu0  ;;  %v5719_v9 = vpop.f32.mrf.mxu1 }
 0x7d4   :  { %v5680_v16 = vpop.f32.mrf.mxu0  ;;  %v5721_v5 = vpop.f32.mrf.mxu1 }
 0x7d6   :  { %v5681_v36 = vpop.f32.mrf.mxu0  ;;  %v5722_v10 = vpop.f32.mrf.mxu1 }
 0x7f0   :  { %v5986_v61 = vpop.f32.mrf.mxu0  ;;  %v6027_v53 = vpop.f32.mrf.mxu1 }
 0x7f1   :  { %v5987_v2 = vadd.f32 %v5986_v61, %v5676_v54  ;;  %v6028_v33 = vadd.f32 %v6027_v53, %v5717_v34  ;;  %v6051_v54 = vrot.slane %v6034_v40, %v11350_v8 }
 0x7f2   :  { %v5988_v3 = vpop.f32.mrf.mxu0  ;;  %v6029_v55 = vpop.f32.mrf.mxu1 }
 0x7f3   :  { %v6056_v56 = vadd.f32 %v6039_v63, %v5987_v2  ;;  %v5989_v58 = vadd.f32 %v5988_v3, %v5678_v7  ;;  %v6058_v41 = vadd.f32 %v6047_v62, %v6028_v33  ;;  %v6030_v61 = vadd.f32 %v6029_v55, %v5719_v9  ;;  %v13508_v55 = vld [vmem:[#allocation98_spill] sm:$0xff] }
 0x7f4   :  { %v5990_v45 = vpop.f32.mrf.mxu0  ;;  %v6031_v16 = vpop.f32.mrf.mxu1 }
 0x7f5   :  { %v9338_v5 = vmul.f32 -1.442695, %v6056_v56  ;;  %v6057_v36 = vadd.f32 %v6043_v18, %v5989_v58  ;;  %v9340_v13 = vmul.f32 -1.442695, %v6058_v41  ;;  %v6059_v2 = vadd.f32 %v6051_v54, %v6030_v61 }
 0x7f6   :  { %v5991_v10 = vpop.f32.mrf.mxu0  ;;  %v6032_v46 = vpop.f32.mrf.mxu1 }
 0x7f7   :  { %10475 = vpow2.f32 %v9338_v5  ;;  %v9339_v35 = vmul.f32 -1.442695, %v6057_v36 }
 0x7f9   :  { %10477 = vpow2.f32 %v9339_v35  ;;  %v13507_v35 = vld [vmem:[#allocation96_spill] sm:$0xff] }
 0x7fa   :  { %10479 = vpow2.f32 %v9340_v13 }
 0x804   :  { %v10476_v32 = vpop.eup %10475 }
 0x805   :  { %v6069_v7 = vadd.f32 1.0, %v10476_v32 }
 0x806   :  { %v10478_v45 = vpop.eup %10477 }
 0x807   :  { %10481 = vrcp.f32 %v6069_v7  ;;  %v6070_v58 = vadd.f32 1.0, %v10478_v45  ;;  %v10480_v62 = vpop.eup %10479 }
 0x808   :  { %10483 = vtanh.f32 %v6059_v2  ;;  %v6071_v16 = vadd.f32 1.0, %v10480_v62  ;;  %v13509_v2 = vld [vmem:[#allocation97_spill] sm:$0xff] }
 0x809   :  { %10485 = vrcp.f32 %v6070_v58  ;;  %v13510_v58 = vld [vmem:[#allocation99_spill] sm:$0xff] }
 0x810   :  { %v6312_v46 = vpop.f32.mrf.mxu0  ;;  %v6353_v56 = vpop.f32.mrf.mxu1 }
 0x811   :  { %v6642_v34 = vadd.f32 %v6312_v46, %v13507_v35  ;;  %v6644_v7 = vadd.f32 %v6353_v56, %v13509_v2 }
 0x812   :  { %v6314_v53 = vpop.f32.mrf.mxu0  ;;  %v6355_v18 = vpop.f32.mrf.mxu1 }
 0x813   :  { %v9405_v33 = vmul.f32 -1.442695, %v6642_v34  ;;  %v6643_v9 = vadd.f32 %v6314_v53, %v13508_v55  ;;  %v9407_v45 = vmul.f32 -1.442695, %v6644_v7  ;;  %v6645_v46 = vadd.f32 %v6355_v18, %v13510_v58  ;;  %v12677_v18 = vld [vmem:[#allocation20 + $0xc4] ss:$16 sps:$4 sm:$0xff]  }
 0x814   :  { %v10482_v41 = vpop.eup %10481  ;;  %v6316_v3 = vpop.f32.mrf.mxu0  ;;  %v12703_v7 = vld [vmem:[#allocation20 + $0x84] ss:$16 sps:$4 sm:$0xff]  }
 0x815   :  { %v6357_v40 = vpop.f32.mrf.mxu1  ;;  %v10484_v32 = vpop.eup %10483  ;;  %10487 = vpow2.f32 %v9405_v33  ;;  %v9406_v13 = vmul.f32 -1.442695, %v6643_v9  ;;  %v12671_v9 = vld [vmem:[#allocation20 + $0xe0] ss:$16 sps:$4 sm:$0xff]   ;;  %v12679_v3 = vld [vmem:[#allocation20 + $0xcc] ss:$16 sps:$4 sm:$0xff]  }
 0x816   :  { %v10486_v63 = vpop.eup %10485  ;;  %v6317_v5 = vpop.f32.mrf.mxu0  ;;  %v6080_v61 = vmul.f32 %v10484_v32, %v10482_v41  ;;  %v12673_v41 = vld [vmem:[#allocation20 + $0xe8] ss:$16 sps:$4 sm:$0xff]   ;;  %v12683_v40 = vld [vmem:[#allocation20 + $0xc0] ss:$16 sps:$4 sm:$0xff]  }
 0x817   :  { %v6358_v36 = vpop.f32.mrf.mxu1  ;;  %v6079_v10 = vmul.f32 %v10486_v63, %v12401_v22  ;;  %10489 = vpow2.f32 %v9406_v13  ;;  %v12685_v32 = vld [vmem:[#allocation20 + $0xc8] ss:$16 sps:$4 sm:$0xff]   ;;  %v12689_v13 = vld [vmem:[#allocation20 + $0xa4] ss:$16 sps:$4 sm:$0xff]   ;;  %v12691_v63 = vld [vmem:[#allocation20 + $0xac] ss:$16 sps:$4 sm:$0xff]  }
 0x818   :  { %10491 = vrcp.f32 %v6071_v16 }
 0x819   :  { %v12664_v54 = vadd.f32 %v6080_v61, %v6079_v10  ;;  %v12697_v10 = vld [vmem:[#allocation20 + $0xa0] ss:$16 sps:$4 sm:$0xff]   ;;  %v12699_v61 = vld [vmem:[#allocation20 + $0xa8] ss:$16 sps:$4 sm:$0xff]  }
 0x81b   :  { %10493 = vtanh.f32 %v12664_v54 }
 0x81c   :  { %10495 = vpow2.f32 %v9407_v45  ;;  %v12705_v45 = vld [vmem:[#allocation20 + $0x8c] ss:$16 sps:$4 sm:$0xff]  }
 0x81d   :  { %10497 = vtanh.f32 %v6645_v46 }
 0x822   :  { %v10488_v35 = vpop.eup %10487 }
 0x823   :  { %v6655_v34 = vadd.f32 1.0, %v10488_v35 }
 0x824   :  { %v10490_v53 = vpop.eup %10489 }
 0x825   :  { %10499 = vrcp.f32 %v6655_v34  ;;  %v6656_v62 = vadd.f32 1.0, %v10490_v53  ;;  %v10492_v22 = vpop.eup %10491  ;;  %v12710_v34 = vld [vmem:[#allocation20 + $0x80] ss:$16 sps:$4 sm:$0xff]   ;;  %v12712_v53 = vld [vmem:[#allocation20 + $0x88] ss:$16 sps:$4 sm:$0xff]  }
 0x827   :  { %10501 = vrcp.f32 %v6656_v62 }
 0x828   :  { %v10494_v33 = vpop.eup %10493 }
 0x829   :  { %v12669_v55 = vmul.f32 %v10494_v33, %v10492_v22  ;;  %v10496_v16 = vpop.eup %10495  ;;  %v12718_v22 = vld [vmem:[#allocation20 + $0x64] ss:$16 sps:$4 sm:$0xff]   ;;  %v12720_v33 = vld [vmem:[#allocation20 + $0x6c] ss:$16 sps:$4 sm:$0xff]  }
 0x82a   :  { %v10498_v5 = vpop.eup %10497  ;;  %v6657_v46 = vadd.f32 1.0, %v10496_v16  ;;  %v12731_v16 = vld [vmem:[#allocation20 + $0x44] ss:$16 sps:$4 sm:$0xff]  }
 0x82b   :  { %13511 = vst [vmem:[#allocation72_spill] sm:$0xff] %v12669_v55  ;;  %v6360_v56 = vpack.c.bf16 %v12669_v55, %v12669_v55  ;;  %13514 = vst [vmem:[#allocation104_spill] sm:$0xff] %v12731_v16  ;;  %v12751_v55 = vld [vmem:[#allocation20 + $0x28] ss:$16 sps:$4 sm:$0xff]  }
 0x82c   :  { %10503 = vrcp.f32 %v6657_v46  ;;  %v12745_v46 = vld [vmem:[#allocation20 + $0x2c] ss:$16 sps:$4 sm:$0xff]  }
 0x82d   :  { %6586 = vmatmul.mubr.bf16.vlgmr.msra.gmra.mxu0 %v6360_v56  ;;  %6627 = vmatmul.mubr.bf16.vlgmr.msra.gmra.mxu1 %v6360_v56  ;;  %v12727_v56 = vld [vmem:[#allocation20 + $0x68] ss:$16 sps:$4 sm:$0xff]   ;;  %13519 = vst [vmem:[#allocation95_spill] sm:$0xff] %v12745_v46 }
 0x82e   :  { %6864 = vmatpush1.bf16.msra.mxu0 %v12671_v9  ;;  %6905 = vmatpush1.bf16.msra.mxu1 %v12673_v41  ;;  %13513 = vst [vmem:[#allocation74_spill] sm:$0xff] %v12727_v56 }
 0x82f   :  { %6865 = vmatprep.subr.bf16.mxu0 %v12677_v18  ;;  %6906 = vmatprep.subr.bf16.mxu1 %v12679_v3 }
 0x830   :  { %6895 = vmatprep.mubr.bf16.mxu0 %v13251_v59  ;;  %6936 = vmatprep.mubr.bf16.mxu1 %v13251_v59 }
 0x832   :  { %v10500_v36 = vpop.eup %10499  ;;  %6866 = vmatpush1.bf16.msra.mxu0 %v12683_v40  ;;  %6907 = vmatpush1.bf16.msra.mxu1 %v12685_v32 }
 0x833   :  { %v6666_v2 = vmul.f32 %v10500_v36, %v10498_v5  ;;  %6867 = vmatprep.subr.bf16.mxu0 %v12689_v13  ;;  %6908 = vmatprep.subr.bf16.mxu1 %v12691_v63  ;;  %v12733_v5 = vld [vmem:[#allocation20 + $0x4c] ss:$16 sps:$4 sm:$0xff]   ;;  %v12737_v36 = vld [vmem:[#allocation20 + $0x40] ss:$16 sps:$4 sm:$0xff]  }
 0x834   :  { %v10502_v58 = vpop.eup %10501  ;;  %13515 = vst [vmem:[#allocation84_spill] sm:$0xff] %v12733_v5  ;;  %13516 = vst [vmem:[#allocation92_spill] sm:$0xff] %v12737_v36 }
 0x835   :  { %v6665_v35 = vmul.f32 %v10502_v58, %v12423_v51  ;;  %v12725_v51 = vld [vmem:[#allocation20 + $0x60] ss:$16 sps:$4 sm:$0xff]   ;;  %v12743_v58 = vld [vmem:[#allocation20 + $0x24] ss:$16 sps:$4 sm:$0xff]  }
 0x836   :  { %6868 = vmatpush1.bf16.msra.mxu0 %v12697_v10  ;;  %6909 = vmatpush1.bf16.msra.mxu1 %v12699_v61  ;;  %13512 = vst [vmem:[#allocation73_spill] sm:$0xff] %v12725_v51  ;;  %13518 = vst [vmem:[#allocation93_spill] sm:$0xff] %v12743_v58 }
 0x837   :  { %v12714_v62 = vadd.f32 %v6666_v2, %v6665_v35  ;;  %6869 = vmatprep.subr.bf16.mxu0 %v12703_v7  ;;  %6910 = vmatprep.subr.bf16.mxu1 %v12705_v45  ;;  %v12739_v2 = vld [vmem:[#allocation20 + $0x48] ss:$16 sps:$4 sm:$0xff]   ;;  %v12749_v35 = vld [vmem:[#allocation20 + $0x20] ss:$16 sps:$4 sm:$0xff]  }
 0x838   :  { %13517 = vst [vmem:[#allocation94_spill] sm:$0xff] %v12739_v2 }
 0x839   :  { %10505 = vtanh.f32 %v12714_v62 }
 0x83a   :  { %6870 = vmatpush1.bf16.msra.mxu0 %v12710_v34  ;;  %6911 = vmatpush1.bf16.msra.mxu1 %v12712_v53 }
 0x83b   :  { %6871 = vmatprep.subr.bf16.mxu0 %v12718_v22  ;;  %6912 = vmatprep.subr.bf16.mxu1 %v12720_v33 }
 0x83e   :  { %6872 = vmatpush1.bf16.msra.mxu0 %v12725_v51  ;;  %6913 = vmatpush1.bf16.msra.mxu1 %v12727_v56  ;;  %v12755_v56 = vld [vmem:[#allocation20 + $0x4] ss:$16 sps:$4 sm:$0xff]  }
 0x83f   :  { %6873 = vmatprep.subr.bf16.mxu0 %v12731_v16  ;;  %6914 = vmatprep.subr.bf16.mxu1 %v12733_v5  ;;  %v12757_v16 = vld [vmem:[#allocation20 + $0xc] ss:$16 sps:$4 sm:$0xff]   ;;  %v10504_v5 = vpop.eup %10503 }
 0x842   :  { %6874 = vmatpush1.bf16.msra.mxu0 %v12737_v36  ;;  %6915 = vmatpush1.bf16.msra.mxu1 %v12739_v2  ;;  %v12761_v36 = vld [vmem:[#allocation20] ss:$16 sps:$4 sm:$0xff]   ;;  %v12763_v2 = vld [vmem:[#allocation20 + $0x8] ss:$16 sps:$4 sm:$0xff]  }
 0x843   :  { %6875 = vmatprep.subr.bf16.mxu0 %v12743_v58  ;;  %6916 = vmatprep.subr.bf16.mxu1 %v12745_v46 }
 0x846   :  { %v10506_v51 = vpop.eup %10505  ;;  %6876 = vmatpush1.bf16.msra.mxu0 %v12749_v35  ;;  %6917 = vmatpush1.bf16.msra.mxu1 %v12751_v55 }
 0x847   :  { %6877 = vmatprep.subr.bf16.mxu0 %v12755_v56  ;;  %6918 = vmatprep.subr.bf16.mxu1 %v12757_v16  ;;  %v6669_v58 = vmul.f32 %v10506_v51, %v10504_v5 }
 0x849   :  { %v6670_v46 = vpack.c.bf16 %v6669_v58, %v6669_v58 }
 0x84a   :  { %6878 = vmatpush1.bf16.msra.mxu0 %v12761_v36  ;;  %6919 = vmatpush1.bf16.msra.mxu1 %v12763_v2 }
 0x84b   :  { %7189 = vmatprep.subr.bf16.mxu0 %v12444_v27  ;;  %7230 = vmatprep.subr.bf16.mxu1 %v12446_v38  ;;  %v13520_v27 = vld [vmem:[#allocation109_spill] sm:$0xff]  ;;  %v13521_v38 = vld [vmem:[#allocation88_spill] sm:$0xff] }
 0x84d   :  { %6896 = vmatmul.mubr.bf16.vlgmr.msra.gmra.mxu0 %v6670_v46  ;;  %6937 = vmatmul.mubr.bf16.vlgmr.msra.gmra.mxu1 %v6670_v46 }
 0x84e   :  { %7190 = vmatpush1.bf16.msra.mxu0 %v12452_v57  ;;  %7231 = vmatpush1.bf16.msra.mxu1 %v12454_v42  ;;  %v13522_v57 = vld [vmem:[#allocation90_spill] sm:$0xff]  ;;  %v13523_v42 = vld [vmem:[#allocation89_spill] sm:$0xff] }
 0x84f   :  { %7191 = vmatprep.subr.bf16.mxu0 %v12458_v47  ;;  %7232 = vmatprep.subr.bf16.mxu1 %v12460_v49  ;;  %v13524_v47 = vld [vmem:[#allocation91_spill] sm:$0xff] }
 0x850   :  { %7221 = vmatprep.mubr.bf16.mxu0 %v13251_v59  ;;  %7262 = vmatprep.mubr.bf16.mxu1 %v13251_v59  ;;  %v13525_v49 = vld [vmem:[#allocation79_spill] sm:$0xff] }
 0x852   :  { %7192 = vmatpush1.bf16.msra.mxu0 %v12466_v4  ;;  %7233 = vmatpush1.bf16.msra.mxu1 %v12468_v43  ;;  %v13526_v4 = vld [vmem:[#allocation45_spill] sm:$0xff]  ;;  %v13527_v43 = vld [vmem:[#allocation46_spill] sm:$0xff] }
 0x853   :  { %7193 = vmatprep.subr.bf16.mxu0 %v12472_v44  ;;  %7234 = vmatprep.subr.bf16.mxu1 %v12474_v52  ;;  %v13528_v44 = vld [vmem:[#allocation47_spill] sm:$0xff]  ;;  %v13529_v52 = vld [vmem:[#allocation48_spill] sm:$0xff] }
 0x856   :  { %7194 = vmatpush1.bf16.msra.mxu0 %v12480_v60  ;;  %7235 = vmatpush1.bf16.msra.mxu1 %v12482_v37  ;;  %v13530_v60 = vld [vmem:[#allocation49_spill] sm:$0xff]  ;;  %v13531_v37 = vld [vmem:[#allocation50_spill] sm:$0xff] }
 0x857   :  { %7195 = vmatprep.subr.bf16.mxu0 %v12486_v39  ;;  %7236 = vmatprep.subr.bf16.mxu1 %v12488_v0  ;;  %v13532_v39 = vld [vmem:[#allocation51_spill] sm:$0xff]  ;;  %v13533_v0 = vld [vmem:[#allocation52_spill] sm:$0xff] }
 0x85a   :  { %7196 = vmatpush1.bf16.msra.mxu0 %v12492_v48  ;;  %7237 = vmatpush1.bf16.msra.mxu1 %v12494_v50  ;;  %v13534_v48 = vld [vmem:[#allocation53_spill] sm:$0xff]  ;;  %v13535_v50 = vld [vmem:[#allocation54_spill] sm:$0xff] }
 0x85b   :  { %7197 = vmatprep.subr.bf16.mxu0 %v12498_v1  ;;  %7238 = vmatprep.subr.bf16.mxu1 %v12500_v12  ;;  %v13536_v1 = vld [vmem:[#allocation55_spill] sm:$0xff]  ;;  %v13537_v12 = vld [vmem:[#allocation56_spill] sm:$0xff] }
 0x85e   :  { %7198 = vmatpush1.bf16.msra.mxu0 %v12504_v11  ;;  %7239 = vmatpush1.bf16.msra.mxu1 %v12506_v14  ;;  %v13538_v11 = vld [vmem:[#allocation57_spill] sm:$0xff]  ;;  %v13539_v14 = vld [vmem:[#allocation58_spill] sm:$0xff] }
 0x85f   :  { %7199 = vmatprep.subr.bf16.mxu0 %v12510_v15  ;;  %7240 = vmatprep.subr.bf16.mxu1 %v12512_v17  ;;  %v13540_v15 = vld [vmem:[#allocation59_spill] sm:$0xff]  ;;  %v13541_v17 = vld [vmem:[#allocation61_spill] sm:$0xff] }
 0x862   :  { %7200 = vmatpush1.bf16.msra.mxu0 %v12516_v19  ;;  %7241 = vmatpush1.bf16.msra.mxu1 %v12518_v20  ;;  %v13542_v19 = vld [vmem:[#allocation60_spill] sm:$0xff]  ;;  %v13543_v20 = vld [vmem:[#allocation62_spill] sm:$0xff] }
 0x863   :  { %7201 = vmatprep.subr.bf16.mxu0 %v12522_v21  ;;  %7242 = vmatprep.subr.bf16.mxu1 %v12524_v23  ;;  %v13544_v21 = vld [vmem:[#allocation63_spill] sm:$0xff]  ;;  %v13545_v23 = vld [vmem:[#allocation64_spill] sm:$0xff] }
 0x866   :  { %7202 = vmatpush1.bf16.msra.mxu0 %v12528_v24  ;;  %7243 = vmatpush1.bf16.msra.mxu1 %v12530_v25  ;;  %v13546_v24 = vld [vmem:[#allocation65_spill] sm:$0xff]  ;;  %v13547_v25 = vld [vmem:[#allocation66_spill] sm:$0xff] }
 0x867   :  { %7203 = vmatprep.subr.bf16.mxu0 %v12534_v26  ;;  %7244 = vmatprep.subr.bf16.mxu1 %v12536_v28  ;;  %v13548_v26 = vld [vmem:[#allocation67_spill] sm:$0xff]  ;;  %v13549_v28 = vld [vmem:[#allocation68_spill] sm:$0xff] }
 0x86a   :  { %7204 = vmatpush1.bf16.msra.mxu0 %v12540_v29  ;;  %7245 = vmatpush1.bf16.msra.mxu1 %v12542_v30  ;;  %v13550_v29 = vld [vmem:[#allocation69_spill] sm:$0xff]  ;;  %v13551_v30 = vld [vmem:[#allocation70_spill] sm:$0xff] }
 0x86b   :  { %7464 = vmatprep.subr.bf16.mxu0 %v12552_v31  ;;  %7505 = vmatprep.subr.bf16.mxu1 %v13520_v27  ;;  %v13552_v31 = vld [vmem:[#allocation71_spill] sm:$0xff] }
 0x86d   :  { %7222 = vmatmul.mubr.bf16.vlgmr.msra.gmra.mxu0 %v6670_v46  ;;  %7263 = vmatmul.mubr.bf16.vlgmr.msra.gmra.mxu1 %v6670_v46 }
 0x86e   :  { %7465 = vmatpush1.bf16.msra.mxu0 %v13521_v38  ;;  %7506 = vmatpush1.bf16.msra.mxu1 %v13522_v57 }
 0x86f   :  { %7466 = vmatprep.subr.bf16.mxu0 %v13523_v42  ;;  %7507 = vmatprep.subr.bf16.mxu1 %v13524_v47  ;;  %v6945_v47 = vld [vmem:[%s12987_s8] sm:$0xf] }
 0x870   :  { %7496 = vmatprep.mubr.bf16.mxu0 %v13251_v59  ;;  %7537 = vmatprep.mubr.bf16.mxu1 %v13251_v59 }
 0x872   :  { %7467 = vmatpush1.bf16.msra.mxu0 %v13525_v49  ;;  %7508 = vmatpush1.bf16.msra.mxu1 %v13526_v4  ;;  %v13553_v49 = vld [vmem:[#allocation75_spill] sm:$0xff] }
 0x873   :  { %7468 = vmatprep.subr.bf16.mxu0 %v13527_v43  ;;  %7509 = vmatprep.subr.bf16.mxu1 %v13528_v44  ;;  %v6950_v4 = vrot.slane %v6945_v47, %v13553_v49 }
 0x876   :  { %7469 = vmatpush1.bf16.msra.mxu0 %v13529_v52  ;;  %7510 = vmatpush1.bf16.msra.mxu1 %v13530_v60  ;;  %v13554_v60 = vld [vmem:[#allocation76_spill] sm:$0xff] }
 0x877   :  { %7470 = vmatprep.subr.bf16.mxu0 %v13531_v37  ;;  %7511 = vmatprep.subr.bf16.mxu1 %v13532_v39  ;;  %v6954_v37 = vrot.slane %v6945_v47, %v13554_v60 }
 0x87a   :  { %7471 = vmatpush1.bf16.msra.mxu0 %v13533_v0  ;;  %7512 = vmatpush1.bf16.msra.mxu1 %v13534_v48 }
 0x87b   :  { %7472 = vmatprep.subr.bf16.mxu0 %v13535_v50  ;;  %7513 = vmatprep.subr.bf16.mxu1 %v13536_v1 }
 0x87e   :  { %7473 = vmatpush1.bf16.msra.mxu0 %v13537_v12  ;;  %7514 = vmatpush1.bf16.msra.mxu1 %v13538_v11 }
 0x87f   :  { %7474 = vmatprep.subr.bf16.mxu0 %v13539_v14  ;;  %7515 = vmatprep.subr.bf16.mxu1 %v13540_v15 }
 0x882   :  { %7475 = vmatpush1.bf16.msra.mxu0 %v13541_v17  ;;  %7516 = vmatpush1.bf16.msra.mxu1 %v13542_v19 }
 0x883   :  { %7476 = vmatprep.subr.bf16.mxu0 %v13543_v20  ;;  %7517 = vmatprep.subr.bf16.mxu1 %v13544_v21  ;;  %v6958_v21 = vrot.slane %v6945_v47, %v11346_v6 }
 0x886   :  { %7477 = vmatpush1.bf16.msra.mxu0 %v13545_v23  ;;  %7518 = vmatpush1.bf16.msra.mxu1 %v13546_v24 }
 0x887   :  { %7478 = vmatprep.subr.bf16.mxu0 %v13547_v25  ;;  %7519 = vmatprep.subr.bf16.mxu1 %v13548_v26  ;;  %v6962_v25 = vrot.slane %v6945_v47, %v11350_v8 }
 0x88a   :  { %7479 = vmatpush1.bf16.msra.mxu0 %v13549_v28  ;;  %7520 = vmatpush1.bf16.msra.mxu1 %v13550_v29 }
 0x88b   :  { %7774 = vmatprep.subr.bf16.mxu0 %v13551_v30  ;;  %7815 = vmatprep.subr.bf16.mxu1 %v13552_v31 }
 0x8ed   :  { %v6587_v51 = vpop.f32.mrf.mxu0  ;;  %v6628_v5 = vpop.f32.mrf.mxu1 }
 0x8ef   :  { %v6589_v58 = vpop.f32.mrf.mxu0  ;;  %v6630_v46 = vpop.f32.mrf.mxu1 }
 0x8f1   :  { %v6591_v27 = vpop.f32.mrf.mxu0  ;;  %v6632_v38 = vpop.f32.mrf.mxu1 }
 0x8f2   :  { %v13555_v38 = vld [vmem:[#allocation100_spill] sm:$0xff] }
 0x8f3   :  { %v6592_v57 = vpop.f32.mrf.mxu0  ;;  %v6633_v42 = vpop.f32.mrf.mxu1 }
 0x90d   :  { %v6897_v43 = vpop.f32.mrf.mxu0  ;;  %v6938_v44 = vpop.f32.mrf.mxu1 }
 0x90e   :  { %v6898_v52 = vadd.f32 %v6897_v43, %v6587_v51  ;;  %v6939_v20 = vadd.f32 %v6938_v44, %v6628_v5  ;;  %v13556_v43 = vld [vmem:[#allocation102_spill] sm:$0xff] }
 0x90f   :  { %v6899_v39 = vpop.f32.mrf.mxu0  ;;  %v6940_v0 = vpop.f32.mrf.mxu1 }
 0x910   :  { %v6967_v48 = vadd.f32 %v6950_v4, %v6898_v52  ;;  %v6900_v50 = vadd.f32 %v6899_v39, %v6589_v58  ;;  %v6969_v23 = vadd.f32 %v6958_v21, %v6939_v20  ;;  %v6941_v24 = vadd.f32 %v6940_v0, %v6630_v46  ;;  %v13558_v21 = vld [vmem:[#allocation103_spill] sm:$0xff] }
 0x911   :  { %v6901_v1 = vpop.f32.mrf.mxu0  ;;  %v6942_v12 = vpop.f32.mrf.mxu1 }
 0x912   :  { %v9440_v11 = vmul.f32 -1.442695, %v6967_v48  ;;  %v6968_v14 = vadd.f32 %v6954_v37, %v6900_v50  ;;  %v9442_v26 = vmul.f32 -1.442695, %v6969_v23  ;;  %v6970_v29 = vadd.f32 %v6962_v25, %v6941_v24 }
 0x913   :  { %v6902_v15 = vpop.f32.mrf.mxu0  ;;  %v6943_v17 = vpop.f32.mrf.mxu1 }
 0x914   :  { %10507 = vpow2.f32 %v9440_v11  ;;  %v9441_v19 = vmul.f32 -1.442695, %v6968_v14  ;;  %v13557_v17 = vld [vmem:[#allocation101_spill] sm:$0xff] }
 0x916   :  { %10509 = vpow2.f32 %v9441_v19 }
 0x917   :  { %10511 = vpow2.f32 %v9442_v26 }
 0x921   :  { %v10508_v28 = vpop.eup %10507 }
 0x922   :  { %v6980_v30 = vadd.f32 1.0, %v10508_v28 }
 0x923   :  { %v10510_v31 = vpop.eup %10509 }
 0x924   :  { %10513 = vrcp.f32 %v6980_v30  ;;  %v6981_v51 = vadd.f32 1.0, %v10510_v31  ;;  %v10512_v4 = vpop.eup %10511 }
 0x925   :  { %10515 = vtanh.f32 %v6970_v29  ;;  %v6982_v50 = vadd.f32 1.0, %v10512_v4 }
 0x926   :  { %10517 = vrcp.f32 %v6981_v51 }
 0x92d   :  { %v7223_v58 = vpop.f32.mrf.mxu0  ;;  %v7264_v27 = vpop.f32.mrf.mxu1 }
 0x92e   :  { %v7553_v5 = vadd.f32 %v7223_v58, %v13555_v38  ;;  %v7555_v19 = vadd.f32 %v7264_v27, %v13557_v17 }
 0x92f   :  { %v7225_v57 = vpop.f32.mrf.mxu0  ;;  %v7266_v42 = vpop.f32.mrf.mxu1 }
 0x930   :  { %v9507_v46 = vmul.f32 -1.442695, %v7553_v5  ;;  %v7554_v47 = vadd.f32 %v7225_v57, %v13556_v43  ;;  %v9509_v20 = vmul.f32 -1.442695, %v7555_v19  ;;  %v7556_v23 = vadd.f32 %v7266_v42, %v13558_v21 }
 0x931   :  { %v10514_v44 = vpop.eup %10513  ;;  %v7227_v52 = vpop.f32.mrf.mxu0 }
 0x932   :  { %v7268_v37 = vpop.f32.mrf.mxu1  ;;  %v10516_v39 = vpop.eup %10515  ;;  %10519 = vpow2.f32 %v9507_v46  ;;  %v9508_v0 = vmul.f32 -1.442695, %v7554_v47 }
 0x933   :  { %v10518_v48 = vpop.eup %10517  ;;  %v7228_v1 = vpop.f32.mrf.mxu0  ;;  %v6991_v14 = vmul.f32 %v10516_v39, %v10514_v44 }
 0x934   :  { %v7269_v12 = vpop.f32.mrf.mxu1  ;;  %v6990_v11 = vmul.f32 %v10518_v48, %v12664_v54  ;;  %10521 = vpow2.f32 %v9508_v0 }
 0x935   :  { %10523 = vrcp.f32 %v6982_v50 }
 0x936   :  { %v12849_v15 = vadd.f32 %v6991_v14, %v6990_v11 }
 0x938   :  { %10525 = vtanh.f32 %v12849_v15 }
 0x939   :  { %10527 = vpow2.f32 %v9509_v20 }
 0x93a   :  { %10529 = vtanh.f32 %v7556_v23 }
 0x93f   :  { %v10520_v24 = vpop.eup %10519 }
 0x940   :  { %v7566_v25 = vadd.f32 1.0, %v10520_v24 }
 0x941   :  { %v10522_v26 = vpop.eup %10521 }
 0x942   :  { %10531 = vrcp.f32 %v7566_v25  ;;  %v7567_v28 = vadd.f32 1.0, %v10522_v26  ;;  %v10524_v54 = vpop.eup %10523 }
 0x944   :  { %10533 = vrcp.f32 %v7567_v28 }
 0x945   :  { %v10526_v29 = vpop.eup %10525 }
 0x946   :  { %v12854_v30 = vmul.f32 %v10526_v29, %v10524_v54  ;;  %v10528_v51 = vpop.eup %10527 }
 0x947   :  { %v10530_v58 = vpop.eup %10529 }
 0x948   :  { %v7271_v31 = vpack.c.bf16 %v12854_v30, %v12854_v30 }
 0x94a   :  { %7497 = vmatmul.mubr.bf16.vlgmr.msra.gmra.mxu0 %v7271_v31  ;;  %7538 = vmatmul.mubr.bf16.vlgmr.msra.gmra.mxu1 %v7271_v31 }
 0x94b   :  { %7775 = vmatpush1.bf16.msra.mxu0 %v12671_v9  ;;  %7816 = vmatpush1.bf16.msra.mxu1 %v12673_v41  ;;  %v7568_v41 = vadd.f32 1.0, %v10528_v51 }
 0x94c   :  { %7776 = vmatprep.subr.bf16.mxu0 %v12677_v18  ;;  %7817 = vmatprep.subr.bf16.mxu1 %v12679_v3 }
 0x94d   :  { %7806 = vmatprep.mubr.bf16.mxu0 %v13251_v59  ;;  %7847 = vmatprep.mubr.bf16.mxu1 %v13251_v59  ;;  %10535 = vrcp.f32 %v7568_v41 }
 0x94f   :  { %v10532_v27 = vpop.eup %10531  ;;  %7777 = vmatpush1.bf16.msra.mxu0 %v12683_v40  ;;  %7818 = vmatpush1.bf16.msra.mxu1 %v12685_v32  ;;  %v13559_v40 = vld [vmem:[#allocation73_spill] sm:$0xff]  ;;  %v13560_v32 = vld [vmem:[#allocation74_spill] sm:$0xff] }
 0x950   :  { %v7577_v38 = vmul.f32 %v10532_v27, %v10530_v58  ;;  %7778 = vmatprep.subr.bf16.mxu0 %v12689_v13  ;;  %7819 = vmatprep.subr.bf16.mxu1 %v12691_v63  ;;  %v13561_v13 = vld [vmem:[#allocation104_spill] sm:$0xff] }
 0x951   :  { %v10534_v9 = vpop.eup %10533  ;;  %v13562_v63 = vld [vmem:[#allocation84_spill] sm:$0xff] }
 0x952   :  { %v7576_v18 = vmul.f32 %v10534_v9, %v12714_v62 }
 0x953   :  { %7779 = vmatpush1.bf16.msra.mxu0 %v12697_v10  ;;  %7820 = vmatpush1.bf16.msra.mxu1 %v12699_v61  ;;  %v13563_v10 = vld [vmem:[#allocation92_spill] sm:$0xff]  ;;  %v13564_v61 = vld [vmem:[#allocation94_spill] sm:$0xff] }
 0x954   :  { %v7578_v3 = vadd.f32 %v7577_v38, %v7576_v18  ;;  %7780 = vmatprep.subr.bf16.mxu0 %v12703_v7  ;;  %7821 = vmatprep.subr.bf16.mxu1 %v12705_v45  ;;  %v13565_v7 = vld [vmem:[#allocation93_spill] sm:$0xff]  ;;  %v13566_v45 = vld [vmem:[#allocation95_spill] sm:$0xff] }
 0x956   :  { %10537 = vtanh.f32 %v7578_v3  ;;  %7911 = vst [vmem:[#allocation24] sm:$0xff] %v7578_v3 }
 0x957   :  { %7781 = vmatpush1.bf16.msra.mxu0 %v12710_v34  ;;  %7822 = vmatpush1.bf16.msra.mxu1 %v12712_v53 }
 0x958   :  { %7782 = vmatprep.subr.bf16.mxu0 %v12718_v22  ;;  %7823 = vmatprep.subr.bf16.mxu1 %v12720_v33 }
 0x95a   :  { %v10536_v34 = vpop.eup %10535 }
 0x95b   :  { %7783 = vmatpush1.bf16.msra.mxu0 %v13559_v40  ;;  %7824 = vmatpush1.bf16.msra.mxu1 %v13560_v32 }
 0x95c   :  { %7784 = vmatprep.subr.bf16.mxu0 %v13561_v13  ;;  %7825 = vmatprep.subr.bf16.mxu1 %v13562_v63 }
 0x95f   :  { %7785 = vmatpush1.bf16.msra.mxu0 %v13563_v10  ;;  %7826 = vmatpush1.bf16.msra.mxu1 %v13564_v61 }
 0x960   :  { %7786 = vmatprep.subr.bf16.mxu0 %v13565_v7  ;;  %7827 = vmatprep.subr.bf16.mxu1 %v13566_v45 }
 0x963   :  { %v10538_v53 = vpop.eup %10537  ;;  %7787 = vmatpush1.bf16.msra.mxu0 %v12749_v35  ;;  %7828 = vmatpush1.bf16.msra.mxu1 %v12751_v55 }
 0x964   :  { %7788 = vmatprep.subr.bf16.mxu0 %v12755_v56  ;;  %7829 = vmatprep.subr.bf16.mxu1 %v12757_v16  ;;  %v7580_v62 = vmul.f32 %v10538_v53, %v10536_v34 }
 0x966   :  { %v7581_v22 = vpack.c.bf16 %v7580_v62, %v7580_v62  ;;  %7908 = vst [vmem:[#allocation22] sm:$0xff] %v7580_v62 }
 0x967   :  { %7789 = vmatpush1.bf16.msra.mxu0 %v12761_v36  ;;  %7830 = vmatpush1.bf16.msra.mxu1 %v12763_v2 }
 0x96a   :  { %7807 = vmatmul.mubr.bf16.vlgmr.msra.gmra.mxu0 %v7581_v22  ;;  %7848 = vmatmul.mubr.bf16.vlgmr.msra.gmra.mxu1 %v7581_v22 }
 0x96b   :  { %10830 = shalt.err (!%p10827_p11)  }
 0x96c   :  { %165 = dma.hbm_to_vmem [thread:$0]  %s12988_s9, 1024, %s163_s7, [#allocation7] }
 0x96d   :  { %s10839_s4 = scalar_lea.vmem %s175_s30, 2048  ;;  %p10844_p13 = scmp.lt.s32.totalorder %s175_s30, %s175_s30 }
 0x96e   :  { %p10840_p12 = scmp.ne.s32.totalorder %s175_s30, %s10839_s4  ;;  %p10845_p0 = scmp.lt.s32.totalorder %s10839_s4, %s10839_s4 }
 0x970   :  { %p10846_p1 = por %p10845_p0, %p10844_p13 }
 0x972   :  { %p10847_p2 = pnand %p10846_p1, %p10840_p12 }
 0x974   :  { %10850 = shalt.err (!%p10847_p2)  }
 0x975   :  { %177 = dma.hbm_to_vmem [thread:$0]  %s12992_s13, 2048, %s175_s30, [#allocation7 + $0x1] }
 0x976   :  { %s10987_s25 = smov [#allocation6]  }
 0x977   :  { %s186_s29 = sshll.u32 %s10987_s25, 4  ;;  %s187_s29 = int_to_ptr.vmem [resolvable:$true] %s186_s29 }
 0x978   :  { %s10859_s21 = scalar_lea.vmem %s187_s29, 2048  ;;  %p10864_p4 = scmp.lt.s32.totalorder %s187_s29, %s187_s29 }
 0x979   :  { %p10860_p3 = scmp.ne.s32.totalorder %s187_s29, %s10859_s21  ;;  %p10865_p5 = scmp.lt.s32.totalorder %s10859_s21, %s10859_s21 }
 0x97b   :  { %p10866_p6 = por %p10865_p5, %p10864_p4 }
 0x97d   :  { %p10867_p7 = pnand %p10866_p6, %p10860_p3 }
 0x97f   :  { %10870 = shalt.err (!%p10867_p7)  }
 0x980   :  { %189 = dma.hbm_to_vmem [thread:$0]  %s12994_s15, 2048, %s187_s29, [#allocation7 + $0x2]  ;;  %v7856_v57 = vld [vmem:[%s12987_s8] sm:$0xf] }
 0x981   :  { %v7861_v42 = vrot.slane %v7856_v57, %v13553_v49  ;;  %v7865_v47 = vrot.slane %v7856_v57, %v13554_v60  ;;  %v7869_v19 = vrot.slane %v7856_v57, %v11346_v6  ;;  %v7873_v23 = vrot.slane %v7856_v57, %v11350_v8 }
 0xa0a   :  { %v7498_v55 = vpop.f32.mrf.mxu0  ;;  %v7539_v33 = vpop.f32.mrf.mxu1 }
 0xa0c   :  { %v7500_v56 = vpop.f32.mrf.mxu0  ;;  %v7541_v16 = vpop.f32.mrf.mxu1 }
 0xa0e   :  { %v7502_v36 = vpop.f32.mrf.mxu0  ;;  %v7543_v2 = vpop.f32.mrf.mxu1 }
 0xa10   :  { %v7503_v35 = vpop.f32.mrf.mxu0  ;;  %v7544_v5 = vpop.f32.mrf.mxu1 }
 0xa2a   :  { %v7808_v4 = vpop.f32.mrf.mxu0  ;;  %v7849_v46 = vpop.f32.mrf.mxu1 }
 0xa2b   :  { %v7809_v43 = vadd.f32 %v7808_v4, %v7498_v55  ;;  %v7850_v17 = vadd.f32 %v7849_v46, %v7539_v33 }
 0xa2c   :  { %v7810_v44 = vpop.f32.mrf.mxu0  ;;  %v7851_v52 = vpop.f32.mrf.mxu1 }
 0xa2d   :  { %v7878_v37 = vadd.f32 %v7861_v42, %v7809_v43  ;;  %v7811_v39 = vadd.f32 %v7810_v44, %v7500_v56  ;;  %v7880_v20 = vadd.f32 %v7869_v19, %v7850_v17  ;;  %v7852_v21 = vadd.f32 %v7851_v52, %v7541_v16 }
 0xa2e   :  { %v7812_v0 = vpop.f32.mrf.mxu0  ;;  %v7853_v48 = vpop.f32.mrf.mxu1 }
 0xa2f   :  { %v9542_v50 = vmul.f32 -1.442695, %v7878_v37  ;;  %v7879_v1 = vadd.f32 %v7865_v47, %v7811_v39  ;;  %v9544_v24 = vmul.f32 -1.442695, %v7880_v20  ;;  %v7881_v26 = vadd.f32 %v7873_v23, %v7852_v21 }
 0xa30   :  { %v7813_v12 = vpop.f32.mrf.mxu0  ;;  %v7854_v11 = vpop.f32.mrf.mxu1 }
 0xa31   :  { %10539 = vpow2.f32 %v9542_v50  ;;  %v9543_v14 = vmul.f32 -1.442695, %v7879_v1 }
 0xa33   :  { %10541 = vpow2.f32 %v9543_v14 }
 0xa34   :  { %10543 = vpow2.f32 %v9544_v24 }
 0xa3e   :  { %v10540_v25 = vpop.eup %10539 }
 0xa3f   :  { %v7891_v28 = vadd.f32 1.0, %v10540_v25 }
 0xa40   :  { %v10542_v54 = vpop.eup %10541 }
 0xa41   :  { %10545 = vrcp.f32 %v7891_v28  ;;  %v7892_v29 = vadd.f32 1.0, %v10542_v54  ;;  %v10544_v31 = vpop.eup %10543 }
 0xa42   :  { %10547 = vtanh.f32 %v7881_v26  ;;  %v7893_v38 = vadd.f32 1.0, %v10544_v31 }
 0xa43   :  { %10549 = vrcp.f32 %v7892_v29 }
 0xa44   :  { %10551 = vrcp.f32 %v7893_v38 }
 0xa4e   :  { %v10546_v51 = vpop.eup %10545 }
 0xa4f   :  { %v10548_v58 = vpop.eup %10547 }
 0xa50   :  { %v10550_v27 = vpop.eup %10549  ;;  %v7902_v9 = vmul.f32 %v10548_v58, %v10546_v51 }
 0xa51   :  { %v7901_v6 = vmul.f32 %v10550_v27, %v12849_v15  ;;  %v10552_v8 = vpop.eup %10551 }
 0xa53   :  { %v7903_v41 = vadd.f32 %v7902_v9, %v7901_v6 }
 0xa55   :  { %10553 = vtanh.f32 %v7903_v41  ;;  %7913 = vst [vmem:[#allocation24 + $0x8] sm:$0xff] %v7903_v41 }
 0xa62   :  { %v10554_v18 = vpop.eup %10553 }
 0xa63   :  { %v12908_v3 = vmul.f32 %v10554_v18, %v10552_v8 }
 0xa65   :  { %7910 = vst [vmem:[#allocation22 + $0x8] sm:$0xff] %v12908_v3 }
 0xa66   :  { %10959 = dma.done.wait [#allocation7], 1024 }
 0xa67   :  { %10960 = vsyncadd [#allocation7], 4294966272 }
 0xa68   :  { %10961 = dma.done.wait [#allocation7 + $0x1], 2048 }
 0xa69   :  { %10962 = vsyncadd [#allocation7 + $0x1], 4294965248 }
 0xa6a   :  { %10963 = dma.done.wait [#allocation7 + $0x2], 2048 }
 0xa6b   :  { %10964 = vsyncadd [#allocation7 + $0x2], 4294965248  ;;  %v13567_v40 = vld [vmem:[#allocation78_spill] sm:$0xff]  ;;  %v13568_v32 = vld [vmem:[#allocation80_spill] sm:$0xff]  ;;  %10588 = vset.pattern.permute.xlu1 %v13251_v59  ;;  %10587 = vset.pattern.permute.xlu0 %v13251_v59  ;;  %v7936_v16 = vpack.c.bf16 %v12908_v3, %v12854_v30  ;;  %vm8127_vm0 = vcmask 7168   ;;  %s10988_s5 = smov [#allocation22]  }
 0xa6c   :  { %v7933_v15 = vpack.c.bf16 %v13568_v32, %v13567_v40  ;;  %8414 = vmatprep.mubr.bf16.mxu1 %v13251_v59  ;;  %v10589_v13 = vld [vmem:[#allocation4 + $0x38] sm:$0xff]   ;;  %v10590_v63 = vld [vmem:[#allocation4 + $0x30] sm:$0xff]   ;;  %v10591_v10 = vld [vmem:[#allocation4 + $0x28] sm:$0xff]   ;;  %s8618_s7 = sshll.u32 %s10988_s5, 4  ;;  %s8619_s7 = int_to_ptr.vmem [resolvable:$true] %s8618_s7 }
 0xa6d   :  { %9626 = vmatprep.subr.bf16.mxu0 %v10589_v13  ;;  %v10592_v61 = vld [vmem:[#allocation4 + $0x20] sm:$0xff]   ;;  %v10593_v7 = vld [vmem:[#allocation4 + $0x18] sm:$0xff]   ;;  %v10594_v45 = vld [vmem:[#allocation4 + $0x10] sm:$0xff]   ;;  %s10871_s30 = scalar_lea.vmem %s8619_s7, 256  ;;  %p10876_p9 = scmp.lt.s32.totalorder %s8619_s7, %s8619_s7 }
 0xa6e   :  { %9642 = vmatprep.mubr.bf16.mxu0 %v7933_v15  ;;  %9627 = vmatpush3.bf16.msra.mxu0 %v10589_v13  ;;  %v10595_v34 = vld [vmem:[#allocation4 + $0x8] sm:$0xff]   ;;  %v10596_v59 = vld [vmem:[#allocation4] sm:$0xff]   ;;  %v13569_v53 = vld [vmem:[#allocation77_spill] sm:$0xff]  ;;  %p10872_p8 = scmp.ne.s32.totalorder %s8619_s7, %s10871_s30  ;;  %p10877_p10 = scmp.lt.s32.totalorder %s10871_s30, %s10871_s30 }
 0xa6f   :  { %9628 = vmatprep.subr.bf16.mxu0 %v10590_v63  ;;  %v13570_v62 = vld [vmem:[#allocation86_spill] sm:$0xff]  ;;  %v13571_v55 = vld [vmem:[#allocation108_spill] sm:$0xff] }
 0xa70   :  { %v7934_v22 = vpack.c.bf16 %v13570_v62, %v13569_v53  ;;  %v13572_v33 = vld [vmem:[#allocation72_spill] sm:$0xff]  ;;  %v9545_v36 = vld [vmem:[%s12989_s10] ss:$0 sm:$0xff]  ;;  %v10597_v58 = vld [vmem:[#allocation5 + $0x74] ss:$8 sps:$4 sm:$0xff]   ;;  %p10878_p11 = por %p10877_p10, %p10876_p9 }
 0xa71   :  { %v7935_v56 = vpack.c.bf16 %v13572_v33, %v13571_v55  ;;  %v9554_v48 = vld [vmem:[%s12990_s11] ss:$0 sm:$0xff]  ;;  %v10599_v27 = vld [vmem:[#allocation5 + $0x70] ss:$8 sps:$4 sm:$0xff]   ;;  %8382 = vmatprep.subr.bf16.mxu1 %v10597_v58 }
 0xa72   :  { %9629 = vmatpush3.bf16.msra.mxu0 %v10590_v63  ;;  %8383 = vmatpush1.bf16.msra.mxu1 %v10599_v27  ;;  %v9555_v18 = vld [vmem:[#allocation8] ss:$0 sm:$0xff]  ;;  %p10879_p12 = pnand %p10878_p11, %p10872_p8 }
 0xa73   :  { %9630 = vmatprep.subr.bf16.mxu0 %v10591_v10 }
 0xa76   :  { %9631 = vmatpush3.bf16.msra.mxu0 %v10591_v10 }
 0xa77   :  { %9632 = vmatprep.subr.bf16.mxu0 %v10592_v61 }
 0xa7a   :  { %9633 = vmatpush3.bf16.msra.mxu0 %v10592_v61 }
 0xa7b   :  { %9634 = vmatprep.subr.bf16.mxu0 %v10593_v7 }
 0xa7e   :  { %9635 = vmatpush3.bf16.msra.mxu0 %v10593_v7 }
 0xa7f   :  { %9636 = vmatprep.subr.bf16.mxu0 %v10594_v45 }
 0xa82   :  { %9637 = vmatpush3.bf16.msra.mxu0 %v10594_v45 }
 0xa83   :  { %9638 = vmatprep.subr.bf16.mxu0 %v10595_v34 }
 0xa86   :  { %9639 = vmatpush3.bf16.msra.mxu0 %v10595_v34 }
 0xa87   :  { %9640 = vmatprep.subr.bf16.mxu0 %v10596_v59 }
 0xa8a   :  { %9641 = vmatpush3.bf16.msra.mxu0 %v10596_v59 }
 0xa8d   :  { %9643 = vmatmul.mubr.bf16.vlgmr.msra.gmra.mxu0 %v7934_v22 }
 0xa8e   :  { %9646 = vmatprep.mubr.bf16.mxu0 %v7935_v56 }
 0xa95   :  { %9647 = vmatmul.mubr.bf16.gmra.mxu0 %v7936_v16 }
 0xb4d   :  { %v9644_v2 = vpop.f32.mrf.mxu0 }
 0xb4e   :  { %v8051_v35 = vadd.f32 %v9644_v2, %v9545_v36 }
 0xb4f   :  { %v8042_v5 = vpop.f32.mrf.mxu0 }
 0xb50   :  { %10637 = vtanh.f32 %v8051_v35  ;;  %v8043_v57 = vadd.f32 %v9545_v36, %v8042_v5 }
 0xb51   :  { %v9645_v42 = vpop.f32.mrf.mxu0 }
 0xb52   :  { %10639 = vtanh.f32 %v8043_v57  ;;  %v8054_v4 = vadd.f32 %v9645_v42, %v9545_v36 }
 0xb53   :  { %v8045_v46 = vpop.f32.mrf.mxu0 }
 0xb54   :  { %10641 = vtanh.f32 %v8054_v4  ;;  %v8046_v43 = vadd.f32 %v9545_v36, %v8045_v46 }
 0xb55   :  { %v9648_v47 = vpop.f32.mrf.mxu0 }
 0xb56   :  { %10643 = vtanh.f32 %v8046_v43  ;;  %v8067_v52 = vadd.f32 %v9648_v47, %v9545_v36 }
 0xb57   :  { %v8058_v44 = vpop.f32.mrf.mxu0 }
 0xb58   :  { %v8059_v37 = vadd.f32 %v9545_v36, %v8058_v44 }
 0xb59   :  { %v9649_v39 = vpop.f32.mrf.mxu0 }
 0xb5a   :  { %10645 = vtanh.f32 %v8059_v37  ;;  %v8070_v50 = vadd.f32 %v9649_v39, %v9545_v36 }
 0xb5b   :  { %v8061_v0 = vpop.f32.mrf.mxu0  ;;  %10647 = vtanh.f32 %v8067_v52 }
 0xb5c   :  { %v8062_v1 = vadd.f32 %v9545_v36, %v8061_v0 }
 0xb5d   :  { %v10638_v12 = vpop.eup %10637 }
 0xb5e   :  { %10649 = vtanh.f32 %v8062_v1  ;;  %v8090_v11 = vmul.f32 %v10638_v12, %v9554_v48 }
 0xb5f   :  { %v10640_v14 = vpop.eup %10639  ;;  %10651 = vtanh.f32 %v8070_v50 }
 0xb60   :  { %8100 = vadd.xlane.f32.xlu1 %v8090_v11  ;;  %v8088_v17 = vmul.f32 %v10640_v14, %v9554_v48 }
 0xb61   :  { %v10642_v19 = vpop.eup %10641 }
 0xb62   :  { %8096 = vadd.xlane.f32.xlu0 %v8088_v17  ;;  %v8091_v20 = vmul.f32 %v10642_v19, %v9554_v48 }
 0xb63   :  { %v10644_v21 = vpop.eup %10643 }
 0xb64   :  { %8102 = vadd.xlane.f32.xlu1 %v8091_v20  ;;  %v8089_v23 = vmul.f32 %v10644_v21, %v9554_v48 }
 0xb66   :  { %8098 = vadd.xlane.f32.xlu0 %v8089_v23 }
 0xb67   :  { %v10646_v24 = vpop.eup %10645 }
 0xb68   :  { %v8092_v25 = vmul.f32 %v10646_v24, %v9554_v48  ;;  %v10648_v26 = vpop.eup %10647 }
 0xb69   :  { %v8094_v29 = vmul.f32 %v10648_v26, %v9554_v48 }
 0xb6a   :  { %8104 = vadd.xlane.f32.xlu0 %v8092_v25 }
 0xb6b   :  { %v10650_v28 = vpop.eup %10649 }
 0xb6c   :  { %v8093_v54 = vmul.f32 %v10650_v28, %v9554_v48  ;;  %v10652_v31 = vpop.eup %10651 }
 0xb6d   :  { %v8095_v51 = vmul.f32 %v10652_v31, %v9554_v48 }
 0xb6e   :  { %8106 = vadd.xlane.f32.xlu1 %v8093_v54  ;;  %8108 = vadd.xlane.f32.xlu0 %v8094_v29 }
 0xb72   :  { %8110 = vadd.xlane.f32.xlu1 %v8095_v51 }
 0xbe9   :  { %v8101_v6 = vpop.xlane.xlu1 %8100 }
 0xbea   :  { %v8121_v45 = vadd.f32 %v9555_v18, %v8101_v6 }
 0xbeb   :  { %v8097_v38 = vpop.xlane.xlu0 %8096 }
 0xbec   :  { %v8119_v34 = vadd.f32 %v9555_v18, %v8097_v38  ;;  %v8130_v57 = vsel %vm8127_vm0, %v8121_v45, -inf }
 0xbed   :  { %v8103_v41 = vpop.xlane.xlu1 %8102 }
 0xbee   :  { %v8122_v59 = vadd.f32 %v9555_v18, %v8103_v41  ;;  %v8128_v42 = vsel %vm8127_vm0, %v8119_v34, -inf }
 0xbef   :  { %v8099_v9 = vpop.xlane.xlu0 %8098 }
 0xbf0   :  { %v8120_v63 = vadd.f32 %v9555_v18, %v8099_v9  ;;  %v8131_v4 = vsel %vm8127_vm0, %v8122_v59, -inf }
 0xbf2   :  { %v8129_v16 = vsel %vm8127_vm0, %v8120_v63, -inf }
 0xbf3   :  { %v8105_v8 = vpop.xlane.xlu0 %8104 }
 0xbf4   :  { %v8123_v10 = vadd.f32 %v9555_v18, %v8105_v8 }
 0xbf6   :  { %v8132_v36 = vsel %vm8127_vm0, %v8123_v10, -inf }
 0xbf7   :  { %v8107_v15 = vpop.xlane.xlu1 %8106  ;;  %v8109_v13 = vpop.xlane.xlu0 %8108  ;;  %v8133_v43 = vmax.f32 %v8128_v42, %v8132_v36  ;;  %v10600_v36 = vld [vmem:[#allocation5 + $0x64] ss:$8 sps:$4 sm:$0xff]  }
 0xbf8   :  { %v8124_v61 = vadd.f32 %v9555_v18, %v8107_v15  ;;  %v8125_v7 = vadd.f32 %v9555_v18, %v8109_v13  ;;  %8384 = vmatprep.subr.bf16.mxu1 %v10600_v36 }
 0xbfa   :  { %v8134_v22 = vsel %vm8127_vm0, %v8124_v61, -inf  ;;  %v8136_v2 = vsel %vm8127_vm0, %v8125_v7, -inf }
 0xbfb   :  { %v8111_v56 = vpop.xlane.xlu1 %8110  ;;  %v8135_v5 = vmax.f32 %v8129_v16, %v8134_v22  ;;  %v8137_v47 = vmax.f32 %v8130_v57, %v8136_v2  ;;  %v10603_v57 = vld [vmem:[#allocation5 + $0x54] ss:$8 sps:$4 sm:$0xff]  }
 0xbfc   :  { %v8126_v35 = vadd.f32 %v9555_v18, %v8111_v56 }
 0xbfd   :  { %v8140_v52 = vmax.f32 %v8133_v43, %v8135_v5  ;;  %v10602_v5 = vld [vmem:[#allocation5 + $0x60] ss:$8 sps:$4 sm:$0xff]  }
 0xbfe   :  { %v8138_v46 = vsel %vm8127_vm0, %v8126_v35, -inf  ;;  %8385 = vmatpush1.bf16.msra.mxu1 %v10602_v5 }
 0xbff   :  { %v8139_v44 = vmax.f32 %v8131_v4, %v8138_v46  ;;  %v10605_v4 = vld [vmem:[#allocation5 + $0x50] ss:$8 sps:$4 sm:$0xff]   ;;  %8386 = vmatprep.subr.bf16.mxu1 %v10603_v57  ;;  %v10606_v46 = vld [vmem:[#allocation5 + $0x44] ss:$8 sps:$4 sm:$0xff]  }
 0xc01   :  { %v8141_v37 = vmax.f32 %v8137_v47, %v8139_v44  ;;  %v10608_v47 = vld [vmem:[#allocation5 + $0x40] ss:$8 sps:$4 sm:$0xff]   ;;  %v10609_v44 = vld [vmem:[#allocation5 + $0x34] ss:$8 sps:$4 sm:$0xff]  }
 0xc02   :  { %8387 = vmatpush1.bf16.msra.mxu1 %v10605_v4 }
 0xc03   :  { %v8142_v39 = vmax.f32 %v8140_v52, %v8141_v37  ;;  %8388 = vmatprep.subr.bf16.mxu1 %v10606_v46  ;;  %v10611_v37 = vld [vmem:[#allocation5 + $0x30] ss:$8 sps:$4 sm:$0xff]  }
 0xc05   :  { %v8143_v0 = vsub.f32 %v8119_v34, %v8142_v39  ;;  %v8145_v48 = vsub.f32 %v8121_v45, %v8142_v39  ;;  %v8144_v1 = vsub.f32 %v8120_v63, %v8142_v39  ;;  %v8146_v12 = vsub.f32 %v8122_v59, %v8142_v39 }
 0xc06   :  { %v8147_v14 = vsub.f32 %v8123_v10, %v8142_v39  ;;  %v8148_v19 = vsub.f32 %v8124_v61, %v8142_v39  ;;  %v8149_v21 = vsub.f32 %v8125_v7, %v8142_v39  ;;  %v8150_v24 = vsub.f32 %v8126_v35, %v8142_v39  ;;  %8389 = vmatpush1.bf16.msra.mxu1 %v10608_v47  ;;  %v10612_v39 = vld [vmem:[#allocation5 + $0x24] ss:$8 sps:$4 sm:$0xff]  }
 0xc07   :  { %v8151_v50 = vmul.f32 1.442695, %v8143_v0  ;;  %v8155_v11 = vmul.f32 1.442695, %v8145_v48  ;;  %v8153_v17 = vmul.f32 1.442695, %v8144_v1  ;;  %8390 = vmatprep.subr.bf16.mxu1 %v10609_v44 }
 0xc08   :  { %v8157_v20 = vmul.f32 1.442695, %v8146_v12  ;;  %v8159_v23 = vmul.f32 1.442695, %v8147_v14  ;;  %v8161_v25 = vmul.f32 1.442695, %v8148_v19 }
 0xc09   :  { %10653 = vpow2.f32 %v8151_v50  ;;  %v8163_v26 = vmul.f32 1.442695, %v8149_v21  ;;  %v8165_v28 = vmul.f32 1.442695, %v8150_v24  ;;  %v10614_v48 = vld [vmem:[#allocation5 + $0x20] ss:$8 sps:$4 sm:$0xff]  }
 0xc0a   :  { %10655 = vpow2.f32 %v8155_v11  ;;  %8391 = vmatpush1.bf16.msra.mxu1 %v10611_v37  ;;  %v10615_v50 = vld [vmem:[#allocation5 + $0x14] ss:$8 sps:$4 sm:$0xff]   ;;  %v10617_v12 = vld [vmem:[#allocation5 + $0x10] ss:$8 sps:$4 sm:$0xff]   ;;  %v10618_v11 = vld [vmem:[#allocation5 + $0x4] ss:$8 sps:$4 sm:$0xff]  }
 0xc0b   :  { %10657 = vpow2.f32 %v8153_v17  ;;  %8392 = vmatprep.subr.bf16.mxu1 %v10612_v39  ;;  %v10620_v17 = vld [vmem:[#allocation5] ss:$8 sps:$4 sm:$0xff]   ;;  %v10621_v19 = vld [vmem:[#allocation6 + $0x78] sm:$0xff]   ;;  %v10623_v21 = vld [vmem:[#allocation6 + $0x70] sm:$0xff]  }
 0xc0c   :  { %10659 = vpow2.f32 %v8157_v20  ;;  %v10622_v20 = vld [vmem:[#allocation6 + $0x38] sm:$0xff]   ;;  %9604 = vmatprep.subr.bf16.mxu0 %v10621_v19  ;;  %v10625_v24 = vld [vmem:[#allocation6 + $0x68] sm:$0xff]  }
 0xc0d   :  { %10661 = vpow2.f32 %v8159_v23  ;;  %9605 = vmatpush3.bf16.msra.mxu0 %v10622_v20  ;;  %v10624_v23 = vld [vmem:[#allocation6 + $0x30] sm:$0xff]  }
 0xc0e   :  { %10663 = vpow2.f32 %v8161_v25  ;;  %8393 = vmatpush1.bf16.msra.mxu1 %v10614_v48  ;;  %9606 = vmatprep.subr.bf16.mxu0 %v10623_v21  ;;  %v10626_v25 = vld [vmem:[#allocation6 + $0x28] sm:$0xff]  }
 0xc0f   :  { %10665 = vpow2.f32 %v8163_v26  ;;  %8394 = vmatprep.subr.bf16.mxu1 %v10615_v50  ;;  %v10627_v26 = vld [vmem:[#allocation6 + $0x60] sm:$0xff]   ;;  %v10633_v48 = vld [vmem:[#allocation6 + $0x48] sm:$0xff]  }
 0xc10   :  { %10667 = vpow2.f32 %v8165_v28  ;;  %v10628_v28 = vld [vmem:[#allocation6 + $0x20] sm:$0xff]   ;;  %v10634_v50 = vld [vmem:[#allocation6 + $0x8] sm:$0xff]  }
 0xc11   :  { %9607 = vmatpush3.bf16.msra.mxu0 %v10624_v23 }
 0xc12   :  { %8395 = vmatpush1.bf16.msra.mxu1 %v10617_v12  ;;  %9608 = vmatprep.subr.bf16.mxu0 %v10625_v24  ;;  %v8290_v12 = vld [vmem:[%s12993_s14] sm:$0x3]  ;;  %s10989_s14 = smov [#allocation21]  }
 0xc13   :  { %8396 = vmatprep.subr.bf16.mxu1 %v10618_v11  ;;  %v8299_v11 = vrot.slane %v8290_v12, %v13554_v60  ;;  %s8609_s12 = sshll.u32 %s10989_s14, 4  ;;  %s8610_s12 = int_to_ptr.vmem [resolvable:$true] %s8609_s12 }
 0xc15   :  { %9609 = vmatpush3.bf16.msra.mxu0 %v10626_v25 }
 0xc16   :  { %v10654_v54 = vpop.eup %10653  ;;  %8397 = vmatpush1.bf16.msra.mxu1 %v10620_v17  ;;  %9610 = vmatprep.subr.bf16.mxu0 %v10627_v26 }
 0xc17   :  { %v10656_v29 = vpop.eup %10655  ;;  %v8167_v31 = vsel %vm8127_vm0, %v10654_v54, 0.0 }
 0xc18   :  { %v10658_v51 = vpop.eup %10657  ;;  %v8170_v6 = vsel %vm8127_vm0, %v10656_v29, 0.0 }
 0xc19   :  { %v8168_v58 = vsel %vm8127_vm0, %v10658_v51, 0.0  ;;  %v10660_v27 = vpop.eup %10659  ;;  %9611 = vmatpush3.bf16.msra.mxu0 %v10628_v28 }
 0xc1a   :  { %v8169_v38 = vadd.f32 %v8168_v58, %v8167_v31  ;;  %v10662_v9 = vpop.eup %10661  ;;  %v8172_v8 = vsel %vm8127_vm0, %v10660_v27, 0.0  ;;  %v10631_v31 = vld [vmem:[#allocation6 + $0x50] sm:$0xff]  }
 0xc1b   :  { %v10664_v18 = vpop.eup %10663  ;;  %v8174_v13 = vsel %vm8127_vm0, %v10662_v9, 0.0 }
 0xc1c   :  { %v8171_v41 = vadd.f32 %v8170_v6, %v8169_v38  ;;  %v10666_v63 = vpop.eup %10665  ;;  %v8176_v61 = vsel %vm8127_vm0, %v10664_v18, 0.0 }
 0xc1d   :  { %v10668_v7 = vpop.eup %10667  ;;  %v8178_v34 = vsel %vm8127_vm0, %v10666_v63, 0.0 }
 0xc1e   :  { %v8173_v15 = vadd.f32 %v8172_v8, %v8171_v41  ;;  %v8180_v22 = vsel %vm8127_vm0, %v10668_v7, 0.0 }
 0xc20   :  { %v8175_v10 = vadd.f32 %v8174_v13, %v8173_v15 }
 0xc22   :  { %v8177_v45 = vadd.f32 %v8176_v61, %v8175_v10 }
 0xc24   :  { %v8179_v59 = vadd.f32 %v8178_v34, %v8177_v45 }
 0xc26   :  { %v8181_v56 = vadd.f32 %v8180_v22, %v8179_v59 }
 0xc28   :  { %10669 = vrcp.f32 %v8181_v56 }
 0xc35   :  { %v10670_v16 = vpop.eup %10669 }
 0xc36   :  { %v8184_v2 = vmul.f32 %v10670_v16, %v10658_v51  ;;  %v8183_v35 = vmul.f32 %v10670_v16, %v10654_v54  ;;  %v8185_v42 = vmul.f32 %v10670_v16, %v10656_v29  ;;  %v8186_v43 = vmul.f32 %v10670_v16, %v10660_v27  ;;  %v10629_v54 = vld [vmem:[#allocation6 + $0x58] sm:$0xff]   ;;  %v10632_v51 = vld [vmem:[#allocation6 + $0x10] sm:$0xff]  }
 0xc37   :  { %v8187_v52 = vmul.f32 %v10670_v16, %v10662_v9  ;;  %v8188_v0 = vmul.f32 %v10670_v16, %v10664_v18  ;;  %v8189_v1 = vmul.f32 %v10670_v16, %v10666_v63  ;;  %v8190_v14 = vmul.f32 %v10670_v16, %v10668_v7  ;;  %v10630_v29 = vld [vmem:[#allocation6 + $0x18] sm:$0xff]   ;;  %9612 = vmatprep.subr.bf16.mxu0 %v10629_v54 }
 0xc38   :  { %8198 = vperm.xlu1 %10588, %v8184_v2   ;;  %8193 = vperm.xlu0 %10587, %v8183_v35   ;;  %v13573_v27 = vlaneseq }
 0xc39   :  { %9613 = vmatpush3.bf16.msra.mxu0 %v10630_v29 }
 0xc3a   :  { %9614 = vmatprep.subr.bf16.mxu0 %v10631_v31  ;;  %v8247_v38 = vand.u32 127, %v13573_v27 }
 0xc3c   :  { %8203 = vperm.xlu1 %10588, %v8185_v42   ;;  %vm8251_vm1 = vcmp.eq.s32.totalorder %v8247_v38, 1  ;;  %vm8248_vm2 = vcmp.eq.s32.totalorder %v8247_v38, 0  ;;  %vm8254_vm3 = vcmp.eq.s32.totalorder %v8247_v38, 2  ;;  %vm8257_vm4 = vcmp.eq.s32.totalorder %v8247_v38, 3 }
 0xc3d   :  { %9615 = vmatpush3.bf16.msra.mxu0 %v10632_v51  ;;  %vm8260_vm5 = vcmp.eq.s32.totalorder %v8247_v38, 4  ;;  %vm8263_vm6 = vcmp.eq.s32.totalorder %v8247_v38, 5  ;;  %vm8266_vm7 = vcmp.eq.s32.totalorder %v8247_v38, 6  ;;  %vm8269_vm8 = vcmp.eq.s32.totalorder %v8247_v38, 7 }
 0xc3e   :  { %9616 = vmatprep.subr.bf16.mxu0 %v10633_v48 }
 0xc40   :  { %8208 = vperm.xlu1 %10588, %v8186_v43  }
 0xc41   :  { %9617 = vmatpush3.bf16.msra.mxu0 %v10634_v50 }
 0xc44   :  { %8213 = vperm.xlu1 %10588, %v8187_v52  }
 0xc48   :  { %8218 = vperm.xlu1 %10588, %v8188_v0  }
 0xc4c   :  { %8223 = vperm.xlu1 %10588, %v8189_v1   ;;  %v10636_v1 = vld [vmem:[#allocation6] sm:$0xff]  }
 0xc50   :  { %8228 = vperm.xlu1 %10588, %v8190_v14  }
 0xcb3   :  { %v8199_v58 = vpop.permute.xlu1 %8198  ;;  %v8194_v9 = vpop.permute.xlu0 %8193 }
 0xcb4   :  { %v8232_v8 = vmul.f32 %v8199_v58, %v13568_v32  ;;  %v8252_v18 = vsel %vm8251_vm1, %v8199_v58, 0.0  ;;  %v8231_v15 = vmul.f32 %v8194_v9, %v13567_v40  ;;  %v8249_v13 = vsel %vm8248_vm2, %v8194_v9, 0.0 }
 0xcb5   :  { %v8253_v7 = vadd.f32 %v8252_v18, %v8249_v13 }
 0xcb6   :  { %v8239_v45 = vadd.f32 %v8232_v8, %v8231_v15 }
 0xcb7   :  { %v8204_v6 = vpop.permute.xlu1 %8203 }
 0xcb8   :  { %v8233_v10 = vmul.f32 %v8204_v6, %v13569_v53  ;;  %v8255_v61 = vsel %vm8254_vm3, %v8204_v6, 0.0 }
 0xcb9   :  { %v8256_v22 = vadd.f32 %v8255_v61, %v8253_v7 }
 0xcba   :  { %v8240_v16 = vadd.f32 %v8239_v45, %v8233_v10 }
 0xcbb   :  { %v8209_v41 = vpop.permute.xlu1 %8208 }
 0xcbc   :  { %v8234_v34 = vmul.f32 %v8209_v41, %v13570_v62  ;;  %v8258_v59 = vsel %vm8257_vm4, %v8209_v41, 0.0 }
 0xcbd   :  { %v8259_v40 = vadd.f32 %v8258_v59, %v8256_v22 }
 0xcbe   :  { %v8241_v2 = vadd.f32 %v8240_v16, %v8234_v34 }
 0xcbf   :  { %v8214_v63 = vpop.permute.xlu1 %8213 }
 0xcc0   :  { %v8235_v32 = vmul.f32 %v8214_v63, %v13571_v55  ;;  %v8261_v36 = vsel %vm8260_vm5, %v8214_v63, 0.0 }
 0xcc1   :  { %v8262_v5 = vadd.f32 %v8261_v36, %v8259_v40 }
 0xcc2   :  { %v8242_v42 = vadd.f32 %v8241_v2, %v8235_v32 }
 0xcc3   :  { %v8219_v56 = vpop.permute.xlu1 %8218 }
 0xcc4   :  { %v8236_v35 = vmul.f32 %v8219_v56, %v13572_v33  ;;  %v8264_v53 = vsel %vm8263_vm6, %v8219_v56, 0.0 }
 0xcc5   :  { %v8265_v46 = vadd.f32 %v8264_v53, %v8262_v5 }
 0xcc6   :  { %v8243_v43 = vadd.f32 %v8242_v42, %v8236_v35 }
 0xcc7   :  { %v8224_v57 = vpop.permute.xlu1 %8223 }
 0xcc8   :  { %v8237_v4 = vmul.f32 %v8224_v57, %v12854_v30  ;;  %v8267_v62 = vsel %vm8266_vm7, %v8224_v57, 0.0  ;;  %v10635_v30 = vld [vmem:[#allocation6 + $0x40] sm:$0xff]  }
 0xcc9   :  { %v8268_v47 = vadd.f32 %v8267_v62, %v8265_v46  ;;  %9618 = vmatprep.subr.bf16.mxu0 %v10635_v30 }
 0xcca   :  { %v8244_v52 = vadd.f32 %v8243_v43, %v8237_v4  ;;  %9619 = vmatpush3.bf16.msra.mxu0 %v10636_v1 }
 0xccb   :  { %v8229_v44 = vpop.permute.xlu1 %8228 }
 0xccc   :  { %v8238_v55 = vmul.f32 %v8229_v44, %v12908_v3  ;;  %v8270_v37 = vsel %vm8269_vm8, %v8229_v44, 0.0  ;;  %v8295_v3 = vrot.slane %v8290_v12, %v13553_v49 }
 0xccd   :  { %v8271_v39 = vadd.f32 %v8270_v37, %v8268_v47 }
 0xcce   :  { %v8245_v0 = vadd.f32 %v8244_v52, %v8238_v55 }
 0xccf   :  { %8272 = vst [vmem:[#allocation21] sm:$0xff] %v8271_v39 }
 0xcd0   :  { %v8273_v33 = vpack.c.bf16 %v8245_v0, %v8245_v0 }
 0xcd2   :  { %8415 = vmatmul.mubr.bf16.vlgmr.msra.gmra.mxu1 %v8273_v33 }
 0xd92   :  { %v8416_v14 = vpop.f32.mrf.mxu1 }
 0xd93   :  { %v8417_v17 = vadd.f32 %v8416_v14, %v8295_v3 }
 0xd94   :  { %v8418_v19 = vpop.f32.mrf.mxu1 }
 0xd95   :  { %v8419_v20 = vadd.f32 %v8418_v19, %v8299_v11  ;;  %v8423_v21 = vmax.f32 %v8417_v17, 0.0 }
 0xd96   :  { %v8420_v23 = vpop.f32.mrf.mxu1 }
 0xd97   :  { %v8424_v24 = vmax.f32 %v8419_v20, 0.0  ;;  %v8425_v28 = vpack.c.bf16 %v8423_v21, %v8423_v21 }
 0xd98   :  { %v8421_v25 = vpop.f32.mrf.mxu1 }
 0xd99   :  { %v8426_v26 = vpack.c.bf16 %v8424_v24, %v8424_v24 }
 0xd9b   :  { %8594 = vmatprep.mubr.bf16.mxu0 %v8426_v26 }
 0xd9c   :  { %8595 = vmatmul.mubr.bf16.vlgmr.msra.gmra.mxu0 %v8425_v28 }
 0xd9d   :  { %10882 = shalt.err (!%p10879_p12)
}
 0xd9e   :  { %8624 = dma.vmem_to_hbm [thread:$0]  %s8619_s7, 256, %s12997_s18, [#allocation23], %s13189_s27, %s13189_s27, %s13188_s24  }
 0xd9f   :  { %s10891_s28 = scalar_lea.vmem %s8610_s12, 128  ;;  %p10896_p0 = scmp.lt.s32.totalorder %s8610_s12, %s8610_s12 }
 0xda0   :  { %p10892_p13 = scmp.ne.s32.totalorder %s8610_s12, %s10891_s28  ;;  %p10897_p1 = scmp.lt.s32.totalorder %s10891_s28, %s10891_s28 }
 0xda2   :  { %p10898_p2 = por %p10897_p1, %p10896_p0 }
 0xda4   :  { %p10899_p3 = pnand %p10898_p2, %p10892_p13 }
 0xda6   :  { %10902 = shalt.err (!%p10899_p3)
}
 0xda7   :  { %8612 = dma.vmem_to_hbm [thread:$0]  %s8610_s12, 128, %s12996_s17, [#allocation11]  }
 0xda8   :  { %s10990_s3 = smov [#allocation24]  }
 0xda9   :  { %s8630_s25 = sshll.u32 %s10990_s3, 4  ;;  %s8631_s25 = int_to_ptr.vmem [resolvable:$true] %s8630_s25 }
 0xdaa   :  { %s10911_s29 = scalar_lea.vmem %s8631_s25, 256  ;;  %p10916_p5 = scmp.lt.s32.totalorder %s8631_s25, %s8631_s25 }
 0xdab   :  { %p10912_p4 = scmp.ne.s32.totalorder %s8631_s25, %s10911_s29  ;;  %p10917_p6 = scmp.lt.s32.totalorder %s10911_s29, %s10911_s29 }
 0xdad   :  { %p10918_p7 = por %p10917_p6, %p10916_p5 }
 0xdaf   :  { %p10919_p8 = pnand %p10918_p7, %p10912_p4 }
 0xdb1   :  { %10922 = shalt.err (!%p10919_p8)
}
 0xdb2   :  { %8636 = dma.vmem_to_hbm [thread:$0]  %s8631_s25, 256, %s12998_s19, [#allocation23], %s13189_s27, %s13189_s27, %s13188_s24  }
 0xdb3   :  { %v9572_v60 = vld [vmem:[%s12995_s16] ss:$0 sm:$0xff]  ;;  %s10991_s22 = smov [#allocation25]  }
 0xdb4   :  { %s8643_s13 = sshll.u32 %s10991_s22, 4  ;;  %s8644_s13 = int_to_ptr.vmem [resolvable:$true] %s8643_s13 }
 0xdb5   :  { %s10931_s23 = scalar_lea.vmem %s8644_s13, 128  ;;  %p10936_p10 = scmp.lt.s32.totalorder %s8644_s13, %s8644_s13 }
 0xdb6   :  { %p10932_p9 = scmp.ne.s32.totalorder %s8644_s13, %s10931_s23  ;;  %p10937_p11 = scmp.lt.s32.totalorder %s10931_s23, %s10931_s23 }
 0xdb8   :  { %p10938_p12 = por %p10937_p11, %p10936_p10 }
 0xdba   :  { %p10939_p13 = pnand %p10938_p12, %p10932_p9 }
 0xe5c   :  { %v9620_v49 = vpop.f32.mrf.mxu0 }
 0xe5e   :  { %v9621_v54 = vpop.f32.mrf.mxu0 }
 0xe5f   :  { %v9622_v29 = vadd.f32 %v9621_v54, %v9620_v49 }
 0xe60   :  { %v9623_v31 = vpop.f32.mrf.mxu0 }
 0xe61   :  { %v8597_v51 = vadd.f32 %v9622_v29, %v9572_v60 }
 0xe62   :  { %v9624_v58 = vpop.f32.mrf.mxu0 }
 0xe63   :  { %8602 = vst [vmem:[#allocation25] sm:$0xff] %v8597_v51 }
 0xe64   :  { %10942 = shalt.err (!%p10939_p13)
}
 0xe65   :  { %8646 = dma.vmem_to_hbm [thread:$0]  %s8644_s13, 128, %s12999_s20, [#allocation26]  }
 0xe66   :  { %10965 = dma.done.wait [#allocation11], 128  }
 0xe67   :  { %10966 = vsyncadd [#allocation11], 4294967168 }
 0xe68   :  { %10967 = dma.done.wait [#allocation23], 512  }
 0xe69   :  { %10968 = vsyncadd [#allocation23], 4294966784 }
 0xe6a   :  { %10969 = dma.done.wait [#allocation26], 128  }
 0xe6b   :  { %10970 = vsyncadd [#allocation26], 4294967168 }
 0xe6c   :  { %8659 = vsyncpa [#allocation10], 1 }
 0xe6d   :  { %8660 = vsyncpa [#allocation13], 1 }
 0xe6e   :  { %8661 = vsyncpa [#allocation16], 1 }
 0xe6f   :  { %8662 = vsyncpa [#allocation19], 1 }
 0xe70   :  { %8663 = vsyncpa [#allocation11], 1 }
 0xe71   :  { %8664 = vsyncpa [#allocation23], 1 }
 0xe72   :  { %8665 = vsyncpa [#allocation26], 1 }
 0xe73   :  { %8666 = vsyncmov [#allocation7] }
 0xe76   :  { %s8667_s16 = vpop.sfrf %8666 }
 0xe77   :  { %p9589_p0 = scmp.ne.s32.totalorder %s8667_s16, 0 }
 0xe79   :  { %8671 = shalt.err (%p9589_p0)  }
 0xe7a   :  { %8673 = vsyncmov [#allocation7 + $0x1] }
 0xe7d   :  { %s8674_s27 = vpop.sfrf %8673 }
 0xe7e   :  { %p9590_p1 = scmp.ne.s32.totalorder %s8674_s27, 0 }
 0xe80   :  { %8678 = shalt.err (%p9590_p1)  }
 0xe81   :  { %8680 = vsyncmov [#allocation7 + $0x2] }
 0xe84   :  { %s8681_s20 = vpop.sfrf %8680 }
 0xe85   :  { %p9591_p2 = scmp.ne.s32.totalorder %s8681_s20, 0 }
 0xe87   :  { %8685 = shalt.err (%p9591_p2)  }

</bundles_post_ra>
